<compile_context>
chip_gen: v7x
topology: tpu7x:2x2x1
jax: 0.10.0
libtpu: 0.0.40
codegen_flags: <defaults>
</compile_context>

<pallas_src>
import jax
import jax.numpy as jnp
from jax.experimental import pallas as pl
from jax.experimental.pallas import tpu as pltpu


# --------------------------- Toeplitz weight builders ------------------------
# conv1: T[ki][w_in, c*13 + q] = w1[c, 0, ki, w_in - j], j = 2q (even) / 2q+1 (odd)
def _conv1_toeplitz(w1):
    w = w1[:, 0]                                   # (6, 3, 3)
    w_in = jnp.arange(28)[:, None]                 # (28, 1)
    q = jnp.arange(13)[None, :]                    # (1, 13)
    outs = []
    for s in (0, 1):
        kj = w_in - (2 * q + s)                    # (28, 13)
        valid = (kj >= 0) & (kj <= 2)
        kj_c = jnp.clip(kj, 0, 2)
        per_ki = []
        for ki in range(3):
            vals = w[:, ki, :][:, kj_c]            # (6, 28, 13)
            vals = jnp.where(valid[None, :, :], vals, 0.0)
            per_ki.append(jnp.transpose(vals, (1, 0, 2)).reshape(28, 78))
        outs.append(jnp.stack(per_ki))             # (3, 28, 78)
    return outs[0], outs[1]


# conv2: T[ki][c*13 + w_in, o*5 + q] = w2[o, c, ki, w_in - j], j = 2q / 2q+1
def _conv2_toeplitz(w2):
    w_in = jnp.arange(13)[:, None]                 # (13, 1)
    q = jnp.arange(5)[None, :]                     # (1, 5)
    outs = []
    for s in (0, 1):
        kj = w_in - (2 * q + s)                    # (13, 5)
        valid = (kj >= 0) & (kj <= 2)
        kj_c = jnp.clip(kj, 0, 2)
        per_ki = []
        for ki in range(3):
            vals = w2[:, :, ki, :][:, :, kj_c]     # (10, 6, 13, 5)
            vals = jnp.where(valid[None, None, :, :], vals, 0.0)
            per_ki.append(jnp.transpose(vals, (1, 2, 0, 3)).reshape(78, 50))
        outs.append(jnp.stack(per_ki))             # (3, 78, 50)
    return outs[0], outs[1]


# ------------------------------ fused kernel ---------------------------------
def fused_cnn_kernel(x_ref,                        # (1, 28*TN, 28)   rows = h*TN + n
                     t1e_ref, t1o_ref,             # (3, 28, 78) conv1 Toeplitz (even/odd col)
                     t2e_ref, t2o_ref,             # (3, 78, 50) conv2 Toeplitz (even/odd col)
                     fc1w_ref, fc1b_ref,           # (5, 50, 120), (1, 120)  (bias has conv biases folded in)
                     fc2w_ref, fc2b_ref,           # (120, 60), (1, 60)
                     fc3w_ref, fc3b_ref,           # (60, 10), (1, 10)
                     out_ref):                     # (TN, 10)
    f32 = jnp.float32
    tn = out_ref.shape[0]
    x = x_ref[0]                                   # (28*TN, 28)

    def band(src, t_ref, h_out):
        # src: (H_in*TN, K); t_ref: (3, K, F).  Sum of 3 banded MXU matmuls.
        acc = None
        for ki in range(3):
            slab = src[ki * tn:(ki + h_out) * tn, :]            # aligned sublane slice
            t = jnp.dot(slab, t_ref[ki], preferred_element_type=f32)
            acc = t if acc is None else acc + t
        return acc                                              # (h_out*TN, F)

    # ---- conv1: even / odd output columns, lanes = c*13 + q --------------------
    y1e = band(x, t1e_ref, 26)                     # (26*TN, 78)
    y1o = band(x, t1o_ref, 26)
    c1 = jnp.maximum(y1e, y1o)                     # column-pair max of maxpool1

    # ---- maxpool1 row pairs -> pool1, channel-packed lanes c*13 + q ------------
    m1 = jnp.concatenate(
        [jnp.maximum(c1[(2 * r) * tn:(2 * r + 1) * tn, :],
                     c1[(2 * r + 1) * tn:(2 * r + 2) * tn, :]) for r in range(13)],
        axis=0)                                    # (13*TN, 78)

    # ---- conv2 (only the 10 rows / 10 cols kept by floor-pool2), lanes o*5+q ---
    y2e = band(m1, t2e_ref, 10)                    # (10*TN, 50)
    y2o = band(m1, t2o_ref, 10)
    c2 = jnp.maximum(y2e, y2o)                     # column-pair max of maxpool2

    # ---- maxpool2 row pairs fused with flatten + fc1 (5 accumulated K=50 dots) -
    h1 = None
    for p_row in range(5):
        m2p = jnp.maximum(c2[(2 * p_row) * tn:(2 * p_row + 1) * tn, :],
                          c2[(2 * p_row + 1) * tn:(2 * p_row + 2) * tn, :])  # (TN, 50)
        t = jnp.dot(m2p, fc1w_ref[p_row], preferred_element_type=f32)        # (TN, 120)
        h1 = t if h1 is None else h1 + t
    h1 = jnp.maximum(h1 + fc1b_ref[...], 0.0)      # (TN, 120)

    # ---- fc2 (ReLU) and fc3 ----------------------------------------------------
    h2 = jnp.dot(h1, fc2w_ref[...], preferred_element_type=f32) + fc2b_ref[...]
    h2 = jnp.maximum(h2, 0.0)                      # (TN, 60)
    out = jnp.dot(h2, fc3w_ref[...], preferred_element_type=f32) + fc3b_ref[...]
    out_ref[...] = out.astype(out_ref.dtype)       # (TN, 10)


# ------------------------------- wrapper --------------------------------------
def _full_spec(shape):
    nd = len(shape)
    return pl.BlockSpec(shape, lambda i, _nd=nd: (0,) * _nd)


def mycnn_forward(x, p):
    """x: (N, 1, 28, 28) f32 NCHW; returns (N, 10) logits."""
    N = x.shape[0]
    tile_n = N if N <= 128 else 128
    assert N % tile_n == 0 and tile_n % 8 == 0, "batch must tile into multiples of 8"
    n_tiles = N // tile_n

    # Input relayout: (N,1,28,28) -> per batch-tile 2-D slabs with rows h*TN + n.
    x_hnw = jnp.transpose(x[:, 0, :, :], (1, 0, 2)).astype(jnp.float32)   # (28, N, 28)
    x_in = jnp.transpose(x_hnw.reshape(28, n_tiles, tile_n, 28),
                         (1, 0, 2, 3)).reshape(n_tiles, 28 * tile_n, 28)

    # Weight preprocessing (weights only, negligible).
    t1e, t1o = _conv1_toeplitz(p["conv1_w"])       # (3, 28, 78) each
    t2e, t2o = _conv2_toeplitz(p["conv2_w"])       # (3, 78, 50) each

    # fc1 weight blocks: row (o*5+q) of block p_row == fc1_w row o*25 + p_row*5 + q.
    fc1w_blocks = jnp.transpose(p["fc1_w"].reshape(10, 5, 5, 120),
                                (1, 0, 2, 3)).reshape(5, 50, 120)

    # Fold conv1/conv2 biases (which commute with max-pool and are constant per
    # channel) through the linear pipeline into the fc1 bias.
    b2_eff = p["conv2_b"] + jnp.einsum("ockl,c->o", p["conv2_w"], p["conv1_b"])
    fc1b_eff = (p["fc1_b"] + jnp.dot(jnp.repeat(b2_eff, 25), p["fc1_w"])).reshape(1, 120)
    fc2b = p["fc2_b"].reshape(1, 60)
    fc3b = p["fc3_b"].reshape(1, 10)

    return pl.pallas_call(
        fused_cnn_kernel,
        out_shape=jax.ShapeDtypeStruct((N, 10), jnp.float32),
        grid=(n_tiles,),
        in_specs=[pl.BlockSpec((1, 28 * tile_n, 28), lambda i: (i, 0, 0)),
                  _full_spec((3, 28, 78)), _full_spec((3, 28, 78)),
                  _full_spec((3, 78, 50)), _full_spec((3, 78, 50)),
                  _full_spec((5, 50, 120)), _full_spec((1, 120)),
                  _full_spec((120, 60)), _full_spec((1, 60)),
                  _full_spec((60, 10)), _full_spec((1, 10))],
        out_specs=pl.BlockSpec((tile_n, 10), lambda i: (i, 0)),
        compiler_params=pltpu.CompilerParams(
            dimension_semantics=("parallel",)),
    )(x_in, t1e, t1o, t2e, t2o, fc1w_blocks, fc1b_eff,
      p["fc2_w"], fc2b, p["fc3_w"], fc3b)


# ------------------------------- params / main ---------------------------------
def init_params(key):
    ks = jax.random.split(key, 10)

    def u(k, shape, fan_in):
        bound = 1.0 / jnp.sqrt(fan_in)
        return jax.random.uniform(k, shape, jnp.float32, -bound, bound)

    return dict(
        conv1_w=u(ks[0], (6, 1, 3, 3), 1 * 3 * 3),
        conv1_b=u(ks[1], (6,), 1 * 3 * 3),
        conv2_w=u(ks[2], (10, 6, 3, 3), 6 * 3 * 3),
        conv2_b=u(ks[3], (10,), 6 * 3 * 3),
        fc1_w=u(ks[4], (250, 120), 250),
        fc1_b=u(ks[5], (120,), 250),
        fc2_w=u(ks[6], (120, 60), 120),
        fc2_b=u(ks[7], (60,), 120),
        fc3_w=u(ks[8], (60, 10), 60),
        fc3_b=u(ks[9], (10,), 60),
    )


if __name__ == "__main__":
    key = jax.random.PRNGKey(0)
    k_params, k_x = jax.random.split(key)
    params = init_params(k_params)

    # Spatial size must be 28x28 so the flattened feature size is 10*5*5 = 250.
    # Batch 64 matches the original module's hardcoded batch_size.
    batch = 64
    x = jax.random.normal(k_x, (batch, 1, 28, 28), jnp.float32)

    fwd = jax.jit(mycnn_forward)
    out = fwd(x, params)
    out = jax.block_until_ready(out)
    assert out.shape == (batch, 10), out.shape
    print("KERNEL_OK")
</pallas_src>

<mosaic_0001>
module attributes {stable_mosaic.version = 11 : i64} {
  func.func @fused_cnn_kernel(%arg0: i32, %arg1: memref<1x1792x28xf32, #tpu.memory_space<vmem>>, %arg2: memref<3x28x78xf32, #tpu.memory_space<vmem>>, %arg3: memref<3x28x78xf32, #tpu.memory_space<vmem>>, %arg4: memref<3x78x50xf32, #tpu.memory_space<vmem>>, %arg5: memref<3x78x50xf32, #tpu.memory_space<vmem>>, %arg6: memref<5x50x120xf32, #tpu.memory_space<vmem>>, %arg7: memref<1x120xf32, #tpu.memory_space<vmem>>, %arg8: memref<120x60xf32, #tpu.memory_space<vmem>>, %arg9: memref<1x60xf32, #tpu.memory_space<vmem>>, %arg10: memref<60x10xf32, #tpu.memory_space<vmem>>, %arg11: memref<1x10xf32, #tpu.memory_space<vmem>>, %arg12: memref<64x10xf32, #tpu.memory_space<vmem>>) attributes {dimension_semantics = [#tpu.dimension_semantics<parallel>], iteration_bounds = array<i64: 1>, scalar_prefetch = 0 : i64, scratch_operands = 0 : i64, tpu.core_type = #tpu.core_type<tc>, window_params = [{transform_indices = @transform_0, window_bounds = array<i64: 1, 1792, 28>}, {pipeline_mode = #tpu.pipeline_mode<synchronous>, transform_indices = @transform_1, window_bounds = array<i64: 3, 28, 78>}, {pipeline_mode = #tpu.pipeline_mode<synchronous>, transform_indices = @transform_2, window_bounds = array<i64: 3, 28, 78>}, {pipeline_mode = #tpu.pipeline_mode<synchronous>, transform_indices = @transform_3, window_bounds = array<i64: 3, 78, 50>}, {pipeline_mode = #tpu.pipeline_mode<synchronous>, transform_indices = @transform_4, window_bounds = array<i64: 3, 78, 50>}, {pipeline_mode = #tpu.pipeline_mode<synchronous>, transform_indices = @transform_5, window_bounds = array<i64: 5, 50, 120>}, {pipeline_mode = #tpu.pipeline_mode<synchronous>, transform_indices = @transform_6, window_bounds = array<i64: 1, 120>}, {pipeline_mode = #tpu.pipeline_mode<synchronous>, transform_indices = @transform_7, window_bounds = array<i64: 120, 60>}, {pipeline_mode = #tpu.pipeline_mode<synchronous>, transform_indices = @transform_8, window_bounds = array<i64: 1, 60>}, {pipeline_mode = #tpu.pipeline_mode<synchronous>, transform_indices = @transform_9, window_bounds = array<i64: 60, 10>}, {pipeline_mode = #tpu.pipeline_mode<synchronous>, transform_indices = @transform_10, window_bounds = array<i64: 1, 10>}, {transform_indices = @transform_11, window_bounds = array<i64: 64, 10>}]} {
    %c0 = arith.constant 0 : index
    %c0_0 = arith.constant 0 : index
    %c0_1 = arith.constant 0 : index
    %0 = vector.load %arg1[%c0, %c0_0, %c0_1] : memref<1x1792x28xf32, #tpu.memory_space<vmem>>, vector<1x1792x28xf32>
    %1 = vector.shape_cast %0 : vector<1x1792x28xf32> to vector<1792x28xf32>
    %2 = vector.extract_strided_slice %1 {offsets = [0, 0], sizes = [1664, 28], strides = [1, 1]} : vector<1792x28xf32> to vector<1664x28xf32>
    %c0_2 = arith.constant 0 : index
    %c0_3 = arith.constant 0 : index
    %c0_4 = arith.constant 0 : index
    %3 = vector.load %arg2[%c0_2, %c0_3, %c0_4] : memref<3x28x78xf32, #tpu.memory_space<vmem>>, vector<1x28x78xf32>
    %4 = vector.shape_cast %3 : vector<1x28x78xf32> to vector<28x78xf32>
    %cst = arith.constant dense<0.000000e+00> : vector<1664x78xf32>
    %5 = tpu.matmul %2, %4, %cst {dimension_numbers = #tpu.dot_dimension_numbers<[1], [0], [0], [1], [0, 0, 1, 1], [], []>} : vector<1664x28xf32>, vector<28x78xf32>, vector<1664x78xf32> -> vector<1664x78xf32>
    %6 = vector.extract_strided_slice %1 {offsets = [64, 0], sizes = [1664, 28], strides = [1, 1]} : vector<1792x28xf32> to vector<1664x28xf32>
    %c1 = arith.constant 1 : index
    %c0_5 = arith.constant 0 : index
    %c0_6 = arith.constant 0 : index
    %7 = vector.load %arg2[%c1, %c0_5, %c0_6] : memref<3x28x78xf32, #tpu.memory_space<vmem>>, vector<1x28x78xf32>
    %8 = vector.shape_cast %7 : vector<1x28x78xf32> to vector<28x78xf32>
    %cst_7 = arith.constant dense<0.000000e+00> : vector<1664x78xf32>
    %9 = tpu.matmul %6, %8, %cst_7 {dimension_numbers = #tpu.dot_dimension_numbers<[1], [0], [0], [1], [0, 0, 1, 1], [], []>} : vector<1664x28xf32>, vector<28x78xf32>, vector<1664x78xf32> -> vector<1664x78xf32>
    %10 = arith.addf %5, %9 : vector<1664x78xf32>
    %11 = vector.extract_strided_slice %1 {offsets = [128, 0], sizes = [1664, 28], strides = [1, 1]} : vector<1792x28xf32> to vector<1664x28xf32>
    %c2 = arith.constant 2 : index
    %c0_8 = arith.constant 0 : index
    %c0_9 = arith.constant 0 : index
    %12 = vector.load %arg2[%c2, %c0_8, %c0_9] : memref<3x28x78xf32, #tpu.memory_space<vmem>>, vector<1x28x78xf32>
    %13 = vector.shape_cast %12 : vector<1x28x78xf32> to vector<28x78xf32>
    %cst_10 = arith.constant dense<0.000000e+00> : vector<1664x78xf32>
    %14 = tpu.matmul %11, %13, %cst_10 {dimension_numbers = #tpu.dot_dimension_numbers<[1], [0], [0], [1], [0, 0, 1, 1], [], []>} : vector<1664x28xf32>, vector<28x78xf32>, vector<1664x78xf32> -> vector<1664x78xf32>
    %15 = arith.addf %10, %14 : vector<1664x78xf32>
    %16 = vector.extract_strided_slice %1 {offsets = [0, 0], sizes = [1664, 28], strides = [1, 1]} : vector<1792x28xf32> to vector<1664x28xf32>
    %c0_11 = arith.constant 0 : index
    %c0_12 = arith.constant 0 : index
    %c0_13 = arith.constant 0 : index
    %17 = vector.load %arg3[%c0_11, %c0_12, %c0_13] : memref<3x28x78xf32, #tpu.memory_space<vmem>>, vector<1x28x78xf32>
    %18 = vector.shape_cast %17 : vector<1x28x78xf32> to vector<28x78xf32>
    %cst_14 = arith.constant dense<0.000000e+00> : vector<1664x78xf32>
    %19 = tpu.matmul %16, %18, %cst_14 {dimension_numbers = #tpu.dot_dimension_numbers<[1], [0], [0], [1], [0, 0, 1, 1], [], []>} : vector<1664x28xf32>, vector<28x78xf32>, vector<1664x78xf32> -> vector<1664x78xf32>
    %20 = vector.extract_strided_slice %1 {offsets = [64, 0], sizes = [1664, 28], strides = [1, 1]} : vector<1792x28xf32> to vector<1664x28xf32>
    %c1_15 = arith.constant 1 : index
    %c0_16 = arith.constant 0 : index
    %c0_17 = arith.constant 0 : index
    %21 = vector.load %arg3[%c1_15, %c0_16, %c0_17] : memref<3x28x78xf32, #tpu.memory_space<vmem>>, vector<1x28x78xf32>
    %22 = vector.shape_cast %21 : vector<1x28x78xf32> to vector<28x78xf32>
    %cst_18 = arith.constant dense<0.000000e+00> : vector<1664x78xf32>
    %23 = tpu.matmul %20, %22, %cst_18 {dimension_numbers = #tpu.dot_dimension_numbers<[1], [0], [0], [1], [0, 0, 1, 1], [], []>} : vector<1664x28xf32>, vector<28x78xf32>, vector<1664x78xf32> -> vector<1664x78xf32>
    %24 = arith.addf %19, %23 : vector<1664x78xf32>
    %25 = vector.extract_strided_slice %1 {offsets = [128, 0], sizes = [1664, 28], strides = [1, 1]} : vector<1792x28xf32> to vector<1664x28xf32>
    %c2_19 = arith.constant 2 : index
    %c0_20 = arith.constant 0 : index
    %c0_21 = arith.constant 0 : index
    %26 = vector.load %arg3[%c2_19, %c0_20, %c0_21] : memref<3x28x78xf32, #tpu.memory_space<vmem>>, vector<1x28x78xf32>
    %27 = vector.shape_cast %26 : vector<1x28x78xf32> to vector<28x78xf32>
    %cst_22 = arith.constant dense<0.000000e+00> : vector<1664x78xf32>
    %28 = tpu.matmul %25, %27, %cst_22 {dimension_numbers = #tpu.dot_dimension_numbers<[1], [0], [0], [1], [0, 0, 1, 1], [], []>} : vector<1664x28xf32>, vector<28x78xf32>, vector<1664x78xf32> -> vector<1664x78xf32>
    %29 = arith.addf %24, %28 : vector<1664x78xf32>
    %30 = arith.maximumf %15, %29 : vector<1664x78xf32>
    %31 = vector.extract_strided_slice %30 {offsets = [0, 0], sizes = [64, 78], strides = [1, 1]} : vector<1664x78xf32> to vector<64x78xf32>
    %32 = vector.extract_strided_slice %30 {offsets = [64, 0], sizes = [64, 78], strides = [1, 1]} : vector<1664x78xf32> to vector<64x78xf32>
    %33 = arith.maximumf %31, %32 : vector<64x78xf32>
    %34 = vector.extract_strided_slice %30 {offsets = [128, 0], sizes = [64, 78], strides = [1, 1]} : vector<1664x78xf32> to vector<64x78xf32>
    %35 = vector.extract_strided_slice %30 {offsets = [192, 0], sizes = [64, 78], strides = [1, 1]} : vector<1664x78xf32> to vector<64x78xf32>
    %36 = arith.maximumf %34, %35 : vector<64x78xf32>
    %37 = vector.extract_strided_slice %30 {offsets = [256, 0], sizes = [64, 78], strides = [1, 1]} : vector<1664x78xf32> to vector<64x78xf32>
    %38 = vector.extract_strided_slice %30 {offsets = [320, 0], sizes = [64, 78], strides = [1, 1]} : vector<1664x78xf32> to vector<64x78xf32>
    %39 = arith.maximumf %37, %38 : vector<64x78xf32>
    %40 = vector.extract_strided_slice %30 {offsets = [384, 0], sizes = [64, 78], strides = [1, 1]} : vector<1664x78xf32> to vector<64x78xf32>
    %41 = vector.extract_strided_slice %30 {offsets = [448, 0], sizes = [64, 78], strides = [1, 1]} : vector<1664x78xf32> to vector<64x78xf32>
    %42 = arith.maximumf %40, %41 : vector<64x78xf32>
    %43 = vector.extract_strided_slice %30 {offsets = [512, 0], sizes = [64, 78], strides = [1, 1]} : vector<1664x78xf32> to vector<64x78xf32>
    %44 = vector.extract_strided_slice %30 {offsets = [576, 0], sizes = [64, 78], strides = [1, 1]} : vector<1664x78xf32> to vector<64x78xf32>
    %45 = arith.maximumf %43, %44 : vector<64x78xf32>
    %46 = vector.extract_strided_slice %30 {offsets = [640, 0], sizes = [64, 78], strides = [1, 1]} : vector<1664x78xf32> to vector<64x78xf32>
    %47 = vector.extract_strided_slice %30 {offsets = [704, 0], sizes = [64, 78], strides = [1, 1]} : vector<1664x78xf32> to vector<64x78xf32>
    %48 = arith.maximumf %46, %47 : vector<64x78xf32>
    %49 = vector.extract_strided_slice %30 {offsets = [768, 0], sizes = [64, 78], strides = [1, 1]} : vector<1664x78xf32> to vector<64x78xf32>
    %50 = vector.extract_strided_slice %30 {offsets = [832, 0], sizes = [64, 78], strides = [1, 1]} : vector<1664x78xf32> to vector<64x78xf32>
    %51 = arith.maximumf %49, %50 : vector<64x78xf32>
    %52 = vector.extract_strided_slice %30 {offsets = [896, 0], sizes = [64, 78], strides = [1, 1]} : vector<1664x78xf32> to vector<64x78xf32>
    %53 = vector.extract_strided_slice %30 {offsets = [960, 0], sizes = [64, 78], strides = [1, 1]} : vector<1664x78xf32> to vector<64x78xf32>
    %54 = arith.maximumf %52, %53 : vector<64x78xf32>
    %55 = vector.extract_strided_slice %30 {offsets = [1024, 0], sizes = [64, 78], strides = [1, 1]} : vector<1664x78xf32> to vector<64x78xf32>
    %56 = vector.extract_strided_slice %30 {offsets = [1088, 0], sizes = [64, 78], strides = [1, 1]} : vector<1664x78xf32> to vector<64x78xf32>
    %57 = arith.maximumf %55, %56 : vector<64x78xf32>
    %58 = vector.extract_strided_slice %30 {offsets = [1152, 0], sizes = [64, 78], strides = [1, 1]} : vector<1664x78xf32> to vector<64x78xf32>
    %59 = vector.extract_strided_slice %30 {offsets = [1216, 0], sizes = [64, 78], strides = [1, 1]} : vector<1664x78xf32> to vector<64x78xf32>
    %60 = arith.maximumf %58, %59 : vector<64x78xf32>
    %61 = vector.extract_strided_slice %30 {offsets = [1280, 0], sizes = [64, 78], strides = [1, 1]} : vector<1664x78xf32> to vector<64x78xf32>
    %62 = vector.extract_strided_slice %30 {offsets = [1344, 0], sizes = [64, 78], strides = [1, 1]} : vector<1664x78xf32> to vector<64x78xf32>
    %63 = arith.maximumf %61, %62 : vector<64x78xf32>
    %64 = vector.extract_strided_slice %30 {offsets = [1408, 0], sizes = [64, 78], strides = [1, 1]} : vector<1664x78xf32> to vector<64x78xf32>
    %65 = vector.extract_strided_slice %30 {offsets = [1472, 0], sizes = [64, 78], strides = [1, 1]} : vector<1664x78xf32> to vector<64x78xf32>
    %66 = arith.maximumf %64, %65 : vector<64x78xf32>
    %67 = vector.extract_strided_slice %30 {offsets = [1536, 0], sizes = [64, 78], strides = [1, 1]} : vector<1664x78xf32> to vector<64x78xf32>
    %68 = vector.extract_strided_slice %30 {offsets = [1600, 0], sizes = [64, 78], strides = [1, 1]} : vector<1664x78xf32> to vector<64x78xf32>
    %69 = arith.maximumf %67, %68 : vector<64x78xf32>
    %70 = tpu.concatenate %33, %36, %39, %42, %45, %48, %51, %54, %57, %60, %63, %66, %69 in 0 : vector<64x78xf32>, vector<64x78xf32>, vector<64x78xf32>, vector<64x78xf32>, vector<64x78xf32>, vector<64x78xf32>, vector<64x78xf32>, vector<64x78xf32>, vector<64x78xf32>, vector<64x78xf32>, vector<64x78xf32>, vector<64x78xf32>, vector<64x78xf32> -> vector<832x78xf32>
    %71 = vector.extract_strided_slice %70 {offsets = [0, 0], sizes = [640, 78], strides = [1, 1]} : vector<832x78xf32> to vector<640x78xf32>
    %c0_23 = arith.constant 0 : index
    %c0_24 = arith.constant 0 : index
    %c0_25 = arith.constant 0 : index
    %72 = vector.load %arg4[%c0_23, %c0_24, %c0_25] : memref<3x78x50xf32, #tpu.memory_space<vmem>>, vector<1x78x50xf32>
    %73 = vector.shape_cast %72 : vector<1x78x50xf32> to vector<78x50xf32>
    %cst_26 = arith.constant dense<0.000000e+00> : vector<640x50xf32>
    %74 = tpu.matmul %71, %73, %cst_26 {dimension_numbers = #tpu.dot_dimension_numbers<[1], [0], [0], [1], [0, 0, 1, 1], [], []>} : vector<640x78xf32>, vector<78x50xf32>, vector<640x50xf32> -> vector<640x50xf32>
    %75 = vector.extract_strided_slice %70 {offsets = [64, 0], sizes = [640, 78], strides = [1, 1]} : vector<832x78xf32> to vector<640x78xf32>
    %c1_27 = arith.constant 1 : index
    %c0_28 = arith.constant 0 : index
    %c0_29 = arith.constant 0 : index
    %76 = vector.load %arg4[%c1_27, %c0_28, %c0_29] : memref<3x78x50xf32, #tpu.memory_space<vmem>>, vector<1x78x50xf32>
    %77 = vector.shape_cast %76 : vector<1x78x50xf32> to vector<78x50xf32>
    %cst_30 = arith.constant dense<0.000000e+00> : vector<640x50xf32>
    %78 = tpu.matmul %75, %77, %cst_30 {dimension_numbers = #tpu.dot_dimension_numbers<[1], [0], [0], [1], [0, 0, 1, 1], [], []>} : vector<640x78xf32>, vector<78x50xf32>, vector<640x50xf32> -> vector<640x50xf32>
    %79 = arith.addf %74, %78 : vector<640x50xf32>
    %80 = vector.extract_strided_slice %70 {offsets = [128, 0], sizes = [640, 78], strides = [1, 1]} : vector<832x78xf32> to vector<640x78xf32>
    %c2_31 = arith.constant 2 : index
    %c0_32 = arith.constant 0 : index
    %c0_33 = arith.constant 0 : index
    %81 = vector.load %arg4[%c2_31, %c0_32, %c0_33] : memref<3x78x50xf32, #tpu.memory_space<vmem>>, vector<1x78x50xf32>
    %82 = vector.shape_cast %81 : vector<1x78x50xf32> to vector<78x50xf32>
    %cst_34 = arith.constant dense<0.000000e+00> : vector<640x50xf32>
    %83 = tpu.matmul %80, %82, %cst_34 {dimension_numbers = #tpu.dot_dimension_numbers<[1], [0], [0], [1], [0, 0, 1, 1], [], []>} : vector<640x78xf32>, vector<78x50xf32>, vector<640x50xf32> -> vector<640x50xf32>
    %84 = arith.addf %79, %83 : vector<640x50xf32>
    %85 = vector.extract_strided_slice %70 {offsets = [0, 0], sizes = [640, 78], strides = [1, 1]} : vector<832x78xf32> to vector<640x78xf32>
    %c0_35 = arith.constant 0 : index
    %c0_36 = arith.constant 0 : index
    %c0_37 = arith.constant 0 : index
    %86 = vector.load %arg5[%c0_35, %c0_36, %c0_37] : memref<3x78x50xf32, #tpu.memory_space<vmem>>, vector<1x78x50xf32>
    %87 = vector.shape_cast %86 : vector<1x78x50xf32> to vector<78x50xf32>
    %cst_38 = arith.constant dense<0.000000e+00> : vector<640x50xf32>
    %88 = tpu.matmul %85, %87, %cst_38 {dimension_numbers = #tpu.dot_dimension_numbers<[1], [0], [0], [1], [0, 0, 1, 1], [], []>} : vector<640x78xf32>, vector<78x50xf32>, vector<640x50xf32> -> vector<640x50xf32>
    %89 = vector.extract_strided_slice %70 {offsets = [64, 0], sizes = [640, 78], strides = [1, 1]} : vector<832x78xf32> to vector<640x78xf32>
    %c1_39 = arith.constant 1 : index
    %c0_40 = arith.constant 0 : index
    %c0_41 = arith.constant 0 : index
    %90 = vector.load %arg5[%c1_39, %c0_40, %c0_41] : memref<3x78x50xf32, #tpu.memory_space<vmem>>, vector<1x78x50xf32>
    %91 = vector.shape_cast %90 : vector<1x78x50xf32> to vector<78x50xf32>
    %cst_42 = arith.constant dense<0.000000e+00> : vector<640x50xf32>
    %92 = tpu.matmul %89, %91, %cst_42 {dimension_numbers = #tpu.dot_dimension_numbers<[1], [0], [0], [1], [0, 0, 1, 1], [], []>} : vector<640x78xf32>, vector<78x50xf32>, vector<640x50xf32> -> vector<640x50xf32>
    %93 = arith.addf %88, %92 : vector<640x50xf32>
    %94 = vector.extract_strided_slice %70 {offsets = [128, 0], sizes = [640, 78], strides = [1, 1]} : vector<832x78xf32> to vector<640x78xf32>
    %c2_43 = arith.constant 2 : index
    %c0_44 = arith.constant 0 : index
    %c0_45 = arith.constant 0 : index
    %95 = vector.load %arg5[%c2_43, %c0_44, %c0_45] : memref<3x78x50xf32, #tpu.memory_space<vmem>>, vector<1x78x50xf32>
    %96 = vector.shape_cast %95 : vector<1x78x50xf32> to vector<78x50xf32>
    %cst_46 = arith.constant dense<0.000000e+00> : vector<640x50xf32>
    %97 = tpu.matmul %94, %96, %cst_46 {dimension_numbers = #tpu.dot_dimension_numbers<[1], [0], [0], [1], [0, 0, 1, 1], [], []>} : vector<640x78xf32>, vector<78x50xf32>, vector<640x50xf32> -> vector<640x50xf32>
    %98 = arith.addf %93, %97 : vector<640x50xf32>
    %99 = arith.maximumf %84, %98 : vector<640x50xf32>
    %100 = vector.extract_strided_slice %99 {offsets = [0, 0], sizes = [64, 50], strides = [1, 1]} : vector<640x50xf32> to vector<64x50xf32>
    %101 = vector.extract_strided_slice %99 {offsets = [64, 0], sizes = [64, 50], strides = [1, 1]} : vector<640x50xf32> to vector<64x50xf32>
    %102 = arith.maximumf %100, %101 : vector<64x50xf32>
    %c0_47 = arith.constant 0 : index
    %c0_48 = arith.constant 0 : index
    %c0_49 = arith.constant 0 : index
    %103 = vector.load %arg6[%c0_47, %c0_48, %c0_49] : memref<5x50x120xf32, #tpu.memory_space<vmem>>, vector<1x50x120xf32>
    %104 = vector.shape_cast %103 : vector<1x50x120xf32> to vector<50x120xf32>
    %cst_50 = arith.constant dense<0.000000e+00> : vector<64x120xf32>
    %105 = tpu.matmul %102, %104, %cst_50 {dimension_numbers = #tpu.dot_dimension_numbers<[1], [0], [0], [1], [0, 0, 1, 1], [], []>} : vector<64x50xf32>, vector<50x120xf32>, vector<64x120xf32> -> vector<64x120xf32>
    %106 = vector.extract_strided_slice %99 {offsets = [128, 0], sizes = [64, 50], strides = [1, 1]} : vector<640x50xf32> to vector<64x50xf32>
    %107 = vector.extract_strided_slice %99 {offsets = [192, 0], sizes = [64, 50], strides = [1, 1]} : vector<640x50xf32> to vector<64x50xf32>
    %108 = arith.maximumf %106, %107 : vector<64x50xf32>
    %c1_51 = arith.constant 1 : index
    %c0_52 = arith.constant 0 : index
    %c0_53 = arith.constant 0 : index
    %109 = vector.load %arg6[%c1_51, %c0_52, %c0_53] : memref<5x50x120xf32, #tpu.memory_space<vmem>>, vector<1x50x120xf32>
    %110 = vector.shape_cast %109 : vector<1x50x120xf32> to vector<50x120xf32>
    %cst_54 = arith.constant dense<0.000000e+00> : vector<64x120xf32>
    %111 = tpu.matmul %108, %110, %cst_54 {dimension_numbers = #tpu.dot_dimension_numbers<[1], [0], [0], [1], [0, 0, 1, 1], [], []>} : vector<64x50xf32>, vector<50x120xf32>, vector<64x120xf32> -> vector<64x120xf32>
    %112 = arith.addf %105, %111 : vector<64x120xf32>
    %113 = vector.extract_strided_slice %99 {offsets = [256, 0], sizes = [64, 50], strides = [1, 1]} : vector<640x50xf32> to vector<64x50xf32>
    %114 = vector.extract_strided_slice %99 {offsets = [320, 0], sizes = [64, 50], strides = [1, 1]} : vector<640x50xf32> to vector<64x50xf32>
    %115 = arith.maximumf %113, %114 : vector<64x50xf32>
    %c2_55 = arith.constant 2 : index
    %c0_56 = arith.constant 0 : index
    %c0_57 = arith.constant 0 : index
    %116 = vector.load %arg6[%c2_55, %c0_56, %c0_57] : memref<5x50x120xf32, #tpu.memory_space<vmem>>, vector<1x50x120xf32>
    %117 = vector.shape_cast %116 : vector<1x50x120xf32> to vector<50x120xf32>
    %cst_58 = arith.constant dense<0.000000e+00> : vector<64x120xf32>
    %118 = tpu.matmul %115, %117, %cst_58 {dimension_numbers = #tpu.dot_dimension_numbers<[1], [0], [0], [1], [0, 0, 1, 1], [], []>} : vector<64x50xf32>, vector<50x120xf32>, vector<64x120xf32> -> vector<64x120xf32>
    %119 = arith.addf %112, %118 : vector<64x120xf32>
    %120 = vector.extract_strided_slice %99 {offsets = [384, 0], sizes = [64, 50], strides = [1, 1]} : vector<640x50xf32> to vector<64x50xf32>
    %121 = vector.extract_strided_slice %99 {offsets = [448, 0], sizes = [64, 50], strides = [1, 1]} : vector<640x50xf32> to vector<64x50xf32>
    %122 = arith.maximumf %120, %121 : vector<64x50xf32>
    %c3 = arith.constant 3 : index
    %c0_59 = arith.constant 0 : index
    %c0_60 = arith.constant 0 : index
    %123 = vector.load %arg6[%c3, %c0_59, %c0_60] : memref<5x50x120xf32, #tpu.memory_space<vmem>>, vector<1x50x120xf32>
    %124 = vector.shape_cast %123 : vector<1x50x120xf32> to vector<50x120xf32>
    %cst_61 = arith.constant dense<0.000000e+00> : vector<64x120xf32>
    %125 = tpu.matmul %122, %124, %cst_61 {dimension_numbers = #tpu.dot_dimension_numbers<[1], [0], [0], [1], [0, 0, 1, 1], [], []>} : vector<64x50xf32>, vector<50x120xf32>, vector<64x120xf32> -> vector<64x120xf32>
    %126 = arith.addf %119, %125 : vector<64x120xf32>
    %127 = vector.extract_strided_slice %99 {offsets = [512, 0], sizes = [64, 50], strides = [1, 1]} : vector<640x50xf32> to vector<64x50xf32>
    %128 = vector.extract_strided_slice %99 {offsets = [576, 0], sizes = [64, 50], strides = [1, 1]} : vector<640x50xf32> to vector<64x50xf32>
    %129 = arith.maximumf %127, %128 : vector<64x50xf32>
    %c4 = arith.constant 4 : index
    %c0_62 = arith.constant 0 : index
    %c0_63 = arith.constant 0 : index
    %130 = vector.load %arg6[%c4, %c0_62, %c0_63] : memref<5x50x120xf32, #tpu.memory_space<vmem>>, vector<1x50x120xf32>
    %131 = vector.shape_cast %130 : vector<1x50x120xf32> to vector<50x120xf32>
    %cst_64 = arith.constant dense<0.000000e+00> : vector<64x120xf32>
    %132 = tpu.matmul %129, %131, %cst_64 {dimension_numbers = #tpu.dot_dimension_numbers<[1], [0], [0], [1], [0, 0, 1, 1], [], []>} : vector<64x50xf32>, vector<50x120xf32>, vector<64x120xf32> -> vector<64x120xf32>
    %133 = arith.addf %126, %132 : vector<64x120xf32>
    %c0_65 = arith.constant 0 : index
    %c0_66 = arith.constant 0 : index
    %134 = vector.load %arg7[%c0_65, %c0_66] : memref<1x120xf32, #tpu.memory_space<vmem>>, vector<1x120xf32>
    %135 = vector.broadcast %134 : vector<1x120xf32> to vector<64x120xf32>
    %136 = arith.addf %133, %135 : vector<64x120xf32>
    %cst_67 = arith.constant 0.000000e+00 : f32
    %137 = vector.broadcast %cst_67 : f32 to vector<64x120xf32>
    %138 = arith.maximumf %136, %137 : vector<64x120xf32>
    %c0_68 = arith.constant 0 : index
    %c0_69 = arith.constant 0 : index
    %139 = vector.load %arg8[%c0_68, %c0_69] : memref<120x60xf32, #tpu.memory_space<vmem>>, vector<120x60xf32>
    %cst_70 = arith.constant dense<0.000000e+00> : vector<64x60xf32>
    %140 = tpu.matmul %138, %139, %cst_70 {dimension_numbers = #tpu.dot_dimension_numbers<[1], [0], [0], [1], [0, 0, 1, 1], [], []>} : vector<64x120xf32>, vector<120x60xf32>, vector<64x60xf32> -> vector<64x60xf32>
    %c0_71 = arith.constant 0 : index
    %c0_72 = arith.constant 0 : index
    %141 = vector.load %arg9[%c0_71, %c0_72] : memref<1x60xf32, #tpu.memory_space<vmem>>, vector<1x60xf32>
    %142 = vector.broadcast %141 : vector<1x60xf32> to vector<64x60xf32>
    %143 = arith.addf %140, %142 : vector<64x60xf32>
    %cst_73 = arith.constant 0.000000e+00 : f32
    %144 = vector.broadcast %cst_73 : f32 to vector<64x60xf32>
    %145 = arith.maximumf %143, %144 : vector<64x60xf32>
    %c0_74 = arith.constant 0 : index
    %c0_75 = arith.constant 0 : index
    %146 = vector.load %arg10[%c0_74, %c0_75] : memref<60x10xf32, #tpu.memory_space<vmem>>, vector<60x10xf32>
    %cst_76 = arith.constant dense<0.000000e+00> : vector<64x10xf32>
    %147 = tpu.matmul %145, %146, %cst_76 {dimension_numbers = #tpu.dot_dimension_numbers<[1], [0], [0], [1], [0, 0, 1, 1], [], []>} : vector<64x60xf32>, vector<60x10xf32>, vector<64x10xf32> -> vector<64x10xf32>
    %c0_77 = arith.constant 0 : index
    %c0_78 = arith.constant 0 : index
    %148 = vector.load %arg11[%c0_77, %c0_78] : memref<1x10xf32, #tpu.memory_space<vmem>>, vector<1x10xf32>
    %149 = vector.broadcast %148 : vector<1x10xf32> to vector<64x10xf32>
    %150 = arith.addf %147, %149 : vector<64x10xf32>
    %c0_79 = arith.constant 0 : index
    %c0_80 = arith.constant 0 : index
    %151 = vector.load %arg12[%c0_79, %c0_80] : memref<64x10xf32, #tpu.memory_space<vmem>>, vector<64x10xf32>
    tpu.vector_store %arg12[%c0_79, %c0_80], %150 {strides = array<i32>} : memref<64x10xf32, #tpu.memory_space<vmem>>, vector<64x10xf32>,
    return
  }
  func.func @transform_0(%arg0: i32) -> (i32, i32, i32) {
    %c0_i32 = arith.constant 0 : i32
    %c0_i32_0 = arith.constant 0 : i32
    %c0_i32_1 = arith.constant 0 : i32
    return %arg0, %c0_i32, %c0_i32_0 : i32, i32, i32
  }
  func.func @transform_1(%arg0: i32) -> (i32, i32, i32) {
    %c0_i32 = arith.constant 0 : i32
    %c0_i32_0 = arith.constant 0 : i32
    %c0_i32_1 = arith.constant 0 : i32
    %c0_i32_2 = arith.constant 0 : i32
    return %c0_i32, %c0_i32_0, %c0_i32_1 : i32, i32, i32
  }
  func.func @transform_2(%arg0: i32) -> (i32, i32, i32) {
    %c0_i32 = arith.constant 0 : i32
    %c0_i32_0 = arith.constant 0 : i32
    %c0_i32_1 = arith.constant 0 : i32
    %c0_i32_2 = arith.constant 0 : i32
    return %c0_i32, %c0_i32_0, %c0_i32_1 : i32, i32, i32
  }
  func.func @transform_3(%arg0: i32) -> (i32, i32, i32) {
    %c0_i32 = arith.constant 0 : i32
    %c0_i32_0 = arith.constant 0 : i32
    %c0_i32_1 = arith.constant 0 : i32
    %c0_i32_2 = arith.constant 0 : i32
    return %c0_i32, %c0_i32_0, %c0_i32_1 : i32, i32, i32
  }
  func.func @transform_4(%arg0: i32) -> (i32, i32, i32) {
    %c0_i32 = arith.constant 0 : i32
    %c0_i32_0 = arith.constant 0 : i32
    %c0_i32_1 = arith.constant 0 : i32
    %c0_i32_2 = arith.constant 0 : i32
    return %c0_i32, %c0_i32_0, %c0_i32_1 : i32, i32, i32
  }
  func.func @transform_5(%arg0: i32) -> (i32, i32, i32) {
    %c0_i32 = arith.constant 0 : i32
    %c0_i32_0 = arith.constant 0 : i32
    %c0_i32_1 = arith.constant 0 : i32
    %c0_i32_2 = arith.constant 0 : i32
    return %c0_i32, %c0_i32_0, %c0_i32_1 : i32, i32, i32
  }
  func.func @transform_6(%arg0: i32) -> (i32, i32) {
    %c0_i32 = arith.constant 0 : i32
    %c0_i32_0 = arith.constant 0 : i32
    %c0_i32_1 = arith.constant 0 : i32
    return %c0_i32, %c0_i32_0 : i32, i32
  }
  func.func @transform_7(%arg0: i32) -> (i32, i32) {
    %c0_i32 = arith.constant 0 : i32
    %c0_i32_0 = arith.constant 0 : i32
    %c0_i32_1 = arith.constant 0 : i32
    return %c0_i32, %c0_i32_0 : i32, i32
  }
  func.func @transform_8(%arg0: i32) -> (i32, i32) {
    %c0_i32 = arith.constant 0 : i32
    %c0_i32_0 = arith.constant 0 : i32
    %c0_i32_1 = arith.constant 0 : i32
    return %c0_i32, %c0_i32_0 : i32, i32
  }
  func.func @transform_9(%arg0: i32) -> (i32, i32) {
    %c0_i32 = arith.constant 0 : i32
    %c0_i32_0 = arith.constant 0 : i32
    %c0_i32_1 = arith.constant 0 : i32
    return %c0_i32, %c0_i32_0 : i32, i32
  }
  func.func @transform_10(%arg0: i32) -> (i32, i32) {
    %c0_i32 = arith.constant 0 : i32
    %c0_i32_0 = arith.constant 0 : i32
    %c0_i32_1 = arith.constant 0 : i32
    return %c0_i32, %c0_i32_0 : i32, i32
  }
  func.func @transform_11(%arg0: i32) -> (i32, i32) {
    %c0_i32 = arith.constant 0 : i32
    %c0_i32_0 = arith.constant 0 : i32
    return %arg0, %c0_i32 : i32, i32
  }
}

</mosaic_0001>

<bundles_post_ra>
// kernel: mycnn_forward.1
= control target key start
LH: loop header
LB: loop body
LE: loop exit
PB: predicated region body
PF: predicated region fallthrough
CT: control target
= control target key end

     0   :  { %vm896_vm0 = vcmask 1043456   ;;  %vm271_vm1 = vcmask 228352   ;;  %vm21222_vm2 = vmmov 1   ;;  %v28704_v7 = vmov 0  ;;  %s28319_s1 = inlined_call_operand.vmem [shape: f32[3,28,78], index: 1, kind: input, shape index: {}]   ;;  %s28320_s0 = inlined_call_operand.vmem [shape: f32[1,1792,28], index: 0, kind: input, shape index: {}]   ;;  %s28321_s2 = inlined_call_operand.vmem [shape: f32[3,28,78], index: 2, kind: input, shape index: {}]   ;;  %s28322_s3 = inlined_call_operand.vmem [shape: f32[3,78,50], index: 3, kind: input, shape index: {}]   ;;  %s28323_s4 = inlined_call_operand.vmem [shape: f32[3,78,50], index: 4, kind: input, shape index: {}]   ;;  %s28324_s5 = inlined_call_operand.vmem [shape: f32[5,50,120], index: 5, kind: input, shape index: {}]   ;;  %s28325_s7 = inlined_call_operand.vmem [shape: f32[120,60], index: 7, kind: input, shape index: {}]   ;;  %s28326_s9 = inlined_call_operand.vmem [shape: f32[60,10], index: 9, kind: input, shape index: {}]   ;;  %s28327_s6 = inlined_call_operand.vmem [shape: f32[1,120], index: 6, kind: input, shape index: {}]   ;;  %s28328_s8 = inlined_call_operand.vmem [shape: f32[1,60], index: 8, kind: input, shape index: {}]   ;;  %s28329_s10 = inlined_call_operand.vmem [shape: f32[1,10], index: 10, kind: input, shape index: {}]   ;;  %s28330_s11 = inlined_call_operand.vmem [shape: f32[64,10], index: 11, kind: output, shape index: {}]  }
   0x1   :  { %v12699_v0 = vld [vmem:[%s28319_s1 + $0x20] sm:$0xff]  ;;  %v12700_v1 = vld [vmem:[%s28319_s1 + $0x28] sm:$0xff]  ;;  %v12701_v2 = vld [vmem:[%s28319_s1 + $0x30] sm:$0xff]  ;;  %vm8450_vm4 = vcmask 1045504   ;;  %vm8209_vm6 = vcmask 637952   ;;  %vm11646_vm7 = vcmask 1041408  }
   0x2   :  { %v19474_v3 = vpack.c.bf16 %v12700_v1, %v12699_v0  ;;  %v12702_v4 = vld [vmem:[%s28319_s1 + $0x38] sm:$0xf]  ;;  %v21298_v5 = vld [vmem:[%s28320_s0 + $0x40] sm:$0xff]  ;;  %vm21301_vm3 = vmpackc.low %vm896_vm0, %vm21222_vm2  ;;  %vm11621_vm8 = vcmask 408576   ;;  %vm12400_vm9 = vcmask 982016   ;;  %vm12553_vm10 = vcmask 490496  }
   0x3   :  { %v19478_v6 = vpack.c.bf16 %v12702_v4, %v12701_v2  ;;  %v28705_v7 = vsel %vm21301_vm3, 4294967295, %v28704_v7  ;;  %16522 = vmatprep.mubr.msk.f32.mxu0 %vm271_vm1, %v21298_v5  ;;  %v242_v8 = vld [vmem:[%s28320_s0 + $0x660] sm:$0xff]  ;;  %v13335_v10 = vld [vmem:[%s28321_s2 + $0x28] sm:$0xff]  ;;  %v13336_v12 = vld [vmem:[%s28321_s2 + $0x30] sm:$0xff]  ;;  %vm12686_vm11 = vcmask 80896  }
   0x4   :  { %28706 = vst [vmem:[#allocation2_spill] sm:$0xff] %v28705_v7  ;;  %19475 = vmatprep.subr.bf16.mxu0 %v19474_v3  ;;  %19772 = vmatprep.subr.bf16.mxu1 %v19474_v3  ;;  %v13334_v9 = vld [vmem:[%s28321_s2 + $0x20] sm:$0xff]  ;;  %v21331_v13 = vld [vmem:[%s28320_s0 + $0x48] sm:$0xff]  ;;  %v13337_v15 = vld [vmem:[%s28321_s2 + $0x38] sm:$0xf] }
   0x5   :  { %19477 = vmatpush3.bf16.msra.mxu0 %v19474_v3  ;;  %19774 = vmatpush3.bf16.msra.mxu1 %v19474_v3  ;;  %v19504_v11 = vpack.c.bf16 %v13335_v10, %v13334_v9  ;;  %v243_v14 = vld [vmem:[%s28320_s0 + $0x668] sm:$0xff]  ;;  %v21342_v16 = vld [vmem:[%s28320_s0 + $0x50] sm:$0xff]  ;;  %v19508_v17 = vpack.c.bf16 %v13337_v15, %v13336_v12  ;;  %v4418_v19 = vld [vmem:[%s28321_s2] sm:$0xff] }
   0x6   :  { %19480 = vmatprep.subr.msk.bf16.mxu0 %vm21301_vm3, %v19478_v6  ;;  %19773 = vmatprep.subr.msk.bf16.mxu1 %vm21301_vm3, %v19478_v6  ;;  %v244_v18 = vld [vmem:[%s28320_s0 + $0x670] sm:$0xff]  ;;  %v49_v20 = vld [vmem:[%s28320_s0 + $0x58] sm:$0xff]  ;;  %v4419_v22 = vld [vmem:[%s28321_s2 + $0x8] sm:$0xff] }
   0x7   :  { %16816 = vmatprep.mubr.msk.f32.mxu1 %vm271_vm1, %v242_v8  ;;  %v245_v21 = vld [vmem:[%s28320_s0 + $0x678] sm:$0xff]  ;;  %v50_v23 = vld [vmem:[%s28320_s0 + $0x60] sm:$0xff]  ;;  %v19514_v25 = vpack.c.bf16 %v4419_v22, %v4418_v19  ;;  %v51_v26 = vld [vmem:[%s28320_s0 + $0x68] sm:$0xff] }
   0x8   :  { %v246_v24 = vld [vmem:[%s28320_s0 + $0x680] sm:$0xff]  ;;  %v247_v27 = vld [vmem:[%s28320_s0 + $0x688] sm:$0xff]  ;;  %v52_v30 = vld [vmem:[%s28320_s0 + $0x70] sm:$0xff] }
   0x9   :  { %19483 = vmatpush3.bf16.msk.msra.mxu0 %vm21301_vm3, %v19478_v6  ;;  %19775 = vmatpush3.bf16.msk.msra.mxu1 %vm21301_vm3, %v19478_v6  ;;  %v262_v28 = vld [vmem:[%s28319_s1] sm:$0xff]  ;;  %v263_v29 = vld [vmem:[%s28319_s1 + $0x8] sm:$0xff]  ;;  %v248_v31 = vld [vmem:[%s28320_s0 + $0x690] sm:$0xff] }
   0xa   :  { %19505 = vmatprep.subr.bf16.mxu1 %v19504_v11  ;;  %v19484_v32 = vpack.c.bf16 %v263_v29, %v262_v28  ;;  %v53_v33 = vld [vmem:[%s28320_s0 + $0x78] sm:$0xff]  ;;  %v54_v35 = vld [vmem:[%s28320_s0 + $0x80] sm:$0xff]  ;;  %v55_v37 = vld [vmem:[%s28320_s0 + $0x88] sm:$0xff] }
   0xb   :  { %v249_v34 = vld [vmem:[%s28320_s0 + $0x698] sm:$0xff]  ;;  %v250_v36 = vld [vmem:[%s28320_s0 + $0x6a0] sm:$0xff]  ;;  %v251_v38 = vld [vmem:[%s28320_s0 + $0x6a8] sm:$0xff] }
   0xc   :  { %16523 = vmatmul.mubr.msk.f32.vlgmr.msra.gmra.mrb[0].mxu0 %vm271_vm1, %v21331_v13  ;;  %16817 = vmatmul.mubr.msk.f32.vlgmr.msra.gmra.mrb[0].mxu1 %vm271_vm1, %v243_v14  ;;  %v56_v39 = vld [vmem:[%s28320_s0 + $0x90] sm:$0xff]  ;;  %v57_v41 = vld [vmem:[%s28320_s0 + $0x98] sm:$0xff]  ;;  %v58_v43 = vld [vmem:[%s28320_s0 + $0xa0] sm:$0xff] }
   0xd   :  { %19507 = vmatpush3.bf16.msra.mxu1 %v19504_v11  ;;  %16525 = vmatprep.mubr.msk.f32.mxu0 %vm271_vm1, %v21342_v16  ;;  %v252_v40 = vld [vmem:[%s28320_s0 + $0x6b0] sm:$0xff]  ;;  %v253_v42 = vld [vmem:[%s28320_s0 + $0x6b8] sm:$0xff]  ;;  %v59_v44 = vld [vmem:[%s28320_s0 + $0xa8] sm:$0xff] }
   0xe   :  { %16819 = vmatprep.mubr.msk.f32.mxu1 %vm271_vm1, %v244_v18  ;;  %19510 = vmatprep.subr.msk.bf16.mxu1 %vm21301_vm3, %v19508_v17  ;;  %v60_v45 = vld [vmem:[%s28320_s0 + $0xb0] sm:$0xff]  ;;  %v61_v46 = vld [vmem:[%s28320_s0 + $0xb8] sm:$0xff]  ;;  %v62_v47 = vld [vmem:[%s28320_s0 + $0xc0] sm:$0xff] }
   0xf   :  { %19485 = vmatprep.subr.bf16.mxu0 %v19484_v32  ;;  %v63_v48 = vld [vmem:[%s28320_s0 + $0xc8] sm:$0xff]  ;;  %v64_v49 = vld [vmem:[%s28320_s0 + $0xd0] sm:$0xff]  ;;  %v65_v50 = vld [vmem:[%s28320_s0 + $0xd8] sm:$0xff] }
  0x10   :  { %16526 = vmatmul.mubr.msk.f32.gmra.mrb[2].mxu0 %vm271_vm1, %v49_v20  ;;  %16820 = vmatmul.mubr.msk.f32.gmra.mrb[2].mxu1 %vm271_vm1, %v245_v21  ;;  %v66_v51 = vld [vmem:[%s28320_s0 + $0xe0] sm:$0xff]  ;;  %v67_v52 = vld [vmem:[%s28320_s0 + $0xe8] sm:$0xff]  ;;  %v68_v53 = vld [vmem:[%s28320_s0 + $0xf0] sm:$0xff] }
  0x11   :  { %16528 = vmatprep.mubr.msk.f32.mxu0 %vm271_vm1, %v50_v23  ;;  %16822 = vmatprep.mubr.msk.f32.mxu1 %vm271_vm1, %v246_v24  ;;  %v69_v54 = vld [vmem:[%s28320_s0 + $0xf8] sm:$0xff]  ;;  %v70_v55 = vld [vmem:[%s28320_s0 + $0x100] sm:$0xff]  ;;  %v71_v56 = vld [vmem:[%s28320_s0 + $0x108] sm:$0xff] }
  0x12   :  { %19513 = vmatpush3.bf16.msk.msra.mxu1 %vm21301_vm3, %v19508_v17  ;;  %19487 = vmatpush3.bf16.msra.mxu0 %v19484_v32  ;;  %v72_v57 = vld [vmem:[%s28320_s0 + $0x110] sm:$0xff]  ;;  %v73_v58 = vld [vmem:[%s28320_s0 + $0x118] sm:$0xff]  ;;  %v74_v59 = vld [vmem:[%s28320_s0 + $0x120] sm:$0xff] }
  0x13   :  { %19515 = vmatprep.subr.bf16.mxu1 %v19514_v25  ;;  %v75_v60 = vld [vmem:[%s28320_s0 + $0x128] sm:$0xff]  ;;  %v76_v61 = vld [vmem:[%s28320_s0 + $0x130] sm:$0xff]  ;;  %v77_v62 = vld [vmem:[%s28320_s0 + $0x138] sm:$0xff] }
  0x14   :  { %16529 = vmatmul.mubr.msk.f32.gmra.mrb[4].mxu0 %vm271_vm1, %v51_v26  ;;  %16823 = vmatmul.mubr.msk.f32.gmra.mrb[4].mxu1 %vm271_vm1, %v247_v27  ;;  %v78_v63 = vld [vmem:[%s28320_s0 + $0x140] sm:$0xff]  ;;  %v79_v0 = vld [vmem:[%s28320_s0 + $0x148] sm:$0xff]  ;;  %v80_v1 = vld [vmem:[%s28320_s0 + $0x150] sm:$0xff] }
  0x15   :  { %16531 = vmatprep.mubr.msk.f32.mxu0 %vm271_vm1, %v52_v30  ;;  %16825 = vmatprep.mubr.msk.f32.mxu1 %vm271_vm1, %v248_v31  ;;  %v81_v2 = vld [vmem:[%s28320_s0 + $0x158] sm:$0xff]  ;;  %v82_v3 = vld [vmem:[%s28320_s0 + $0x160] sm:$0xff]  ;;  %v83_v4 = vld [vmem:[%s28320_s0 + $0x168] sm:$0xff] }
  0x16   :  { %v85_v6 = vld [vmem:[%s28320_s0 + $0x178] sm:$0xff]  ;;  %v86_v8 = vld [vmem:[%s28320_s0 + $0x180] sm:$0xff]  ;;  %v87_v9 = vld [vmem:[%s28320_s0 + $0x188] sm:$0xff] }
  0x17   :  { %v88_v10 = vld [vmem:[%s28320_s0 + $0x190] sm:$0xff]  ;;  %v89_v11 = vld [vmem:[%s28320_s0 + $0x198] sm:$0xff]  ;;  %v90_v12 = vld [vmem:[%s28320_s0 + $0x1a0] sm:$0xff] }
  0x18   :  { %16532 = vmatmul.mubr.msk.f32.gmra.mrb[6].mxu0 %vm271_vm1, %v53_v33  ;;  %16826 = vmatmul.mubr.msk.f32.gmra.mrb[6].mxu1 %vm271_vm1, %v249_v34  ;;  %v92_v14 = vld [vmem:[%s28320_s0 + $0x1b0] sm:$0xff]  ;;  %v93_v15 = vld [vmem:[%s28320_s0 + $0x1b8] sm:$0xff]  ;;  %v95_v17 = vld [vmem:[%s28320_s0 + $0x1c8] sm:$0xff] }
  0x19   :  { %16534 = vmatprep.mubr.msk.f32.mxu0 %vm271_vm1, %v54_v35  ;;  %16828 = vmatprep.mubr.msk.f32.mxu1 %vm271_vm1, %v250_v36  ;;  %v96_v18 = vld [vmem:[%s28320_s0 + $0x1d0] sm:$0xff]  ;;  %v97_v19 = vld [vmem:[%s28320_s0 + $0x1d8] sm:$0xff]  ;;  %v99_v21 = vld [vmem:[%s28320_s0 + $0x1e8] sm:$0xff] }
  0x1a   :  { %v100_v22 = vld [vmem:[%s28320_s0 + $0x1f0] sm:$0xff]  ;;  %v4421_v24 = vld [vmem:[%s28321_s2 + $0x18] sm:$0xf]  ;;  %v102_v27 = vld [vmem:[%s28320_s0 + $0x200] sm:$0xff] }
  0x1b   :  { %v103_v28 = vld [vmem:[%s28320_s0 + $0x208] sm:$0xff]  ;;  %v104_v29 = vld [vmem:[%s28320_s0 + $0x210] sm:$0xff]  ;;  %v106_v31 = vld [vmem:[%s28320_s0 + $0x220] sm:$0xff] }
  0x1c   :  { %16535 = vmatmul.mubr.msk.f32.gmra.mrb[8].mxu0 %vm271_vm1, %v55_v37  ;;  %16829 = vmatmul.mubr.msk.f32.gmra.mrb[8].mxu1 %vm271_vm1, %v251_v38  ;;  %v264_v32 = vld [vmem:[%s28319_s1 + $0x10] sm:$0xff]  ;;  %v107_v34 = vld [vmem:[%s28320_s0 + $0x228] sm:$0xff]  ;;  %v110_v38 = vld [vmem:[%s28320_s0 + $0x240] sm:$0xff] }
  0x1d   :  { %16537 = vmatprep.mubr.msk.f32.mxu0 %vm271_vm1, %v56_v39  ;;  %16831 = vmatprep.mubr.msk.f32.mxu1 %vm271_vm1, %v252_v40  ;;  %v108_v36 = vld [vmem:[%s28320_s0 + $0x230] sm:$0xff]  ;;  %vm25088_vm5 = vmpackc.low %vm8450_vm4, %vm21222_vm2 }
  0x1e   :  { %v112_v40 = vld [vmem:[%s28320_s0 + $0x250] sm:$0xff] }
  0x1f   :  { %v23333_v7 = vld [vmem:[%s28320_s0 + $0x250] sm:$0xff] }
  0x20   :  { %16538 = vmatmul.mubr.msk.f32.gmra.mrb[10].mxu0 %vm271_vm1, %v57_v41  ;;  %16832 = vmatmul.mubr.msk.f32.gmra.mrb[10].mxu1 %vm271_vm1, %v253_v42  ;;  %v114_v42 = vld [vmem:[%s28320_s0 + $0x260] sm:$0xff]  ;;  %28788 = vst [vmem:[#allocation84_spill] sm:$0xff] %v23333_v7 }
  0x21   :  { %16540 = vmatprep.mubr.msk.f32.mxu0 %vm271_vm1, %v58_v43  ;;  %17482 = vmatprep.mubr.msk.f32.mxu1 %vm271_vm1, %v21298_v5  ;;  %v84_v5 = vld [vmem:[%s28320_s0 + $0x170] sm:$0xff] }
  0x24   :  { %16541 = vmatmul.mubr.msk.f32.gmra.mrb[12].mxu0 %vm271_vm1, %v59_v44  ;;  %17483 = vmatmul.mubr.msk.f32.vlgmr.msra.gmra.mrb[12].mxu1 %vm271_vm1, %v21331_v13  ;;  %v91_v13 = vld [vmem:[%s28320_s0 + $0x1a8] sm:$0xff] }
  0x25   :  { %19517 = vmatpush3.bf16.msra.mxu1 %v19514_v25  ;;  %16543 = vmatprep.mubr.msk.f32.mxu0 %vm271_vm1, %v60_v45  ;;  %v101_v25 = vld [vmem:[%s28320_s0 + $0x1f8] sm:$0xff] }
  0x26   :  { %17485 = vmatprep.mubr.msk.f32.mxu1 %vm271_vm1, %v21342_v16  ;;  %v94_v16 = vld [vmem:[%s28320_s0 + $0x1c0] sm:$0xff] }
  0x28   :  { %16544 = vmatmul.mubr.msk.f32.gmra.mrb[14].mxu0 %vm271_vm1, %v61_v46  ;;  %17486 = vmatmul.mubr.msk.f32.gmra.mrb[14].mxu1 %vm271_vm1, %v49_v20  ;;  %v98_v20 = vld [vmem:[%s28320_s0 + $0x1e0] sm:$0xff] }
  0x29   :  { %16546 = vmatprep.mubr.msk.f32.mxu0 %vm271_vm1, %v62_v47  ;;  %17488 = vmatprep.mubr.msk.f32.mxu1 %vm271_vm1, %v50_v23  ;;  %v4420_v23 = vld [vmem:[%s28321_s2 + $0x10] sm:$0xff] }
  0x2c   :  { %16547 = vmatmul.mubr.msk.f32.gmra.mrb[16].mxu0 %vm271_vm1, %v63_v48  ;;  %17489 = vmatmul.mubr.msk.f32.gmra.mrb[16].mxu1 %vm271_vm1, %v51_v26  ;;  %v19518_v26 = vpack.c.bf16 %v4421_v24, %v4420_v23  ;;  %v156_v23 = vld [vmem:[%s28320_s0 + $0x3b0] sm:$0xff] }
  0x2d   :  { %16549 = vmatprep.mubr.msk.f32.mxu0 %vm271_vm1, %v64_v49  ;;  %17491 = vmatprep.mubr.msk.f32.mxu1 %vm271_vm1, %v52_v30  ;;  %v105_v30 = vld [vmem:[%s28320_s0 + $0x218] sm:$0xff] }
  0x2e   :  { %19520 = vmatprep.subr.msk.bf16.mxu1 %vm21301_vm3, %v19518_v26 }
  0x2f   :  { %19523 = vmatpush3.bf16.msk.msra.mxu1 %vm21301_vm3, %v19518_v26  ;;  %v157_v26 = vld [vmem:[%s28320_s0 + $0x3b8] sm:$0xff] }
  0x30   :  { %16550 = vmatmul.mubr.msk.f32.gmra.mrb[18].mxu0 %vm271_vm1, %v65_v50  ;;  %17492 = vmatmul.mubr.msk.f32.gmra.mrb[18].mxu1 %vm271_vm1, %v53_v33  ;;  %v265_v33 = vld [vmem:[%s28319_s1 + $0x18] sm:$0xf] }
  0x31   :  { %16552 = vmatprep.mubr.msk.f32.mxu0 %vm271_vm1, %v66_v51  ;;  %17494 = vmatprep.mubr.msk.f32.mxu1 %vm271_vm1, %v54_v35  ;;  %v19488_v35 = vpack.c.bf16 %v265_v33, %v264_v32 }
  0x33   :  { %19490 = vmatprep.subr.msk.bf16.mxu0 %vm21301_vm3, %v19488_v35 }
  0x34   :  { %16553 = vmatmul.mubr.msk.f32.gmra.mrb[20].mxu0 %vm271_vm1, %v67_v52  ;;  %17495 = vmatmul.mubr.msk.f32.gmra.mrb[20].mxu1 %vm271_vm1, %v55_v37  ;;  %v109_v37 = vld [vmem:[%s28320_s0 + $0x238] sm:$0xff] }
  0x35   :  { %16555 = vmatprep.mubr.msk.f32.mxu0 %vm271_vm1, %v68_v53  ;;  %17497 = vmatprep.mubr.msk.f32.mxu1 %vm271_vm1, %v56_v39  ;;  %v111_v39 = vld [vmem:[%s28320_s0 + $0x248] sm:$0xff] }
  0x36   :  { %19493 = vmatpush3.bf16.msk.msra.mxu0 %vm21301_vm3, %v19488_v35  ;;  %v162_v35 = vld [vmem:[%s28320_s0 + $0x3e0] sm:$0xff] }
  0x38   :  { %16556 = vmatmul.mubr.msk.f32.gmra.mrb[22].mxu0 %vm271_vm1, %v69_v54  ;;  %17498 = vmatmul.mubr.msk.f32.gmra.mrb[22].mxu1 %vm271_vm1, %v57_v41  ;;  %v113_v41 = vld [vmem:[%s28320_s0 + $0x258] sm:$0xff] }
  0x39   :  { %16558 = vmatprep.mubr.msk.f32.mxu0 %vm271_vm1, %v70_v55  ;;  %17500 = vmatprep.mubr.msk.f32.mxu1 %vm271_vm1, %v58_v43  ;;  %v115_v43 = vld [vmem:[%s28320_s0 + $0x268] sm:$0xff] }
  0x3c   :  { %16559 = vmatmul.mubr.msk.f32.gmra.mrb[24].mxu0 %vm271_vm1, %v71_v56  ;;  %17501 = vmatmul.mubr.msk.f32.gmra.mrb[24].mxu1 %vm271_vm1, %v59_v44  ;;  %v116_v44 = vld [vmem:[%s28320_s0 + $0x270] sm:$0xff] }
  0x3d   :  { %16561 = vmatprep.mubr.msk.f32.mxu0 %vm271_vm1, %v72_v57  ;;  %17503 = vmatprep.mubr.msk.f32.mxu1 %vm271_vm1, %v60_v45  ;;  %v117_v45 = vld [vmem:[%s28320_s0 + $0x278] sm:$0xff] }
  0x40   :  { %16562 = vmatmul.mubr.msk.f32.gmra.mrb[26].mxu0 %vm271_vm1, %v73_v58  ;;  %17504 = vmatmul.mubr.msk.f32.gmra.mrb[26].mxu1 %vm271_vm1, %v61_v46  ;;  %v118_v46 = vld [vmem:[%s28320_s0 + $0x280] sm:$0xff] }
  0x41   :  { %16564 = vmatprep.mubr.msk.f32.mxu0 %vm271_vm1, %v74_v59  ;;  %17506 = vmatprep.mubr.msk.f32.mxu1 %vm271_vm1, %v62_v47  ;;  %v119_v47 = vld [vmem:[%s28320_s0 + $0x288] sm:$0xff] }
  0x44   :  { %16565 = vmatmul.mubr.msk.f32.gmra.mrb[28].mxu0 %vm271_vm1, %v75_v60  ;;  %17507 = vmatmul.mubr.msk.f32.gmra.mrb[28].mxu1 %vm271_vm1, %v63_v48  ;;  %v120_v48 = vld [vmem:[%s28320_s0 + $0x290] sm:$0xff] }
  0x45   :  { %16567 = vmatprep.mubr.msk.f32.mxu0 %vm271_vm1, %v76_v61  ;;  %17509 = vmatprep.mubr.msk.f32.mxu1 %vm271_vm1, %v64_v49  ;;  %v121_v49 = vld [vmem:[%s28320_s0 + $0x298] sm:$0xff] }
  0x48   :  { %16568 = vmatmul.mubr.msk.f32.gmra.mrb[30].mxu0 %vm271_vm1, %v77_v62  ;;  %17510 = vmatmul.mubr.msk.f32.gmra.mrb[30].mxu1 %vm271_vm1, %v65_v50  ;;  %v122_v50 = vld [vmem:[%s28320_s0 + $0x2a0] sm:$0xff] }
  0x49   :  { %16570 = vmatprep.mubr.msk.f32.mxu0 %vm271_vm1, %v78_v63  ;;  %17512 = vmatprep.mubr.msk.f32.mxu1 %vm271_vm1, %v66_v51  ;;  %v123_v51 = vld [vmem:[%s28320_s0 + $0x2a8] sm:$0xff] }
  0x4c   :  { %16571 = vmatmul.mubr.msk.f32.gmra.mrb[32].mxu0 %vm271_vm1, %v79_v0  ;;  %17513 = vmatmul.mubr.msk.f32.gmra.mrb[32].mxu1 %vm271_vm1, %v67_v52  ;;  %v124_v52 = vld [vmem:[%s28320_s0 + $0x2b0] sm:$0xff] }
  0x4d   :  { %16573 = vmatprep.mubr.msk.f32.mxu0 %vm271_vm1, %v80_v1  ;;  %17515 = vmatprep.mubr.msk.f32.mxu1 %vm271_vm1, %v68_v53  ;;  %v125_v53 = vld [vmem:[%s28320_s0 + $0x2b8] sm:$0xff] }
  0x50   :  { %16574 = vmatmul.mubr.msk.f32.gmra.mrb[34].mxu0 %vm271_vm1, %v81_v2  ;;  %17516 = vmatmul.mubr.msk.f32.gmra.mrb[34].mxu1 %vm271_vm1, %v69_v54  ;;  %v126_v54 = vld [vmem:[%s28320_s0 + $0x2c0] sm:$0xff] }
  0x51   :  { %16576 = vmatprep.mubr.msk.f32.mxu0 %vm271_vm1, %v82_v3  ;;  %17518 = vmatprep.mubr.msk.f32.mxu1 %vm271_vm1, %v70_v55  ;;  %v127_v55 = vld [vmem:[%s28320_s0 + $0x2c8] sm:$0xff] }
  0x54   :  { %16577 = vmatmul.mubr.msk.f32.gmra.mrb[36].mxu0 %vm271_vm1, %v83_v4  ;;  %17519 = vmatmul.mubr.msk.f32.gmra.mrb[36].mxu1 %vm271_vm1, %v71_v56  ;;  %v128_v56 = vld [vmem:[%s28320_s0 + $0x2d0] sm:$0xff] }
  0x55   :  { %16579 = vmatprep.mubr.msk.f32.mxu0 %vm271_vm1, %v84_v5  ;;  %17521 = vmatprep.mubr.msk.f32.mxu1 %vm271_vm1, %v72_v57  ;;  %v129_v57 = vld [vmem:[%s28320_s0 + $0x2d8] sm:$0xff] }
  0x58   :  { %16580 = vmatmul.mubr.msk.f32.gmra.mrb[38].mxu0 %vm271_vm1, %v85_v6  ;;  %17522 = vmatmul.mubr.msk.f32.gmra.mrb[38].mxu1 %vm271_vm1, %v73_v58  ;;  %v130_v58 = vld [vmem:[%s28320_s0 + $0x2e0] sm:$0xff] }
  0x59   :  { %16582 = vmatprep.mubr.msk.f32.mxu0 %vm271_vm1, %v86_v8  ;;  %17524 = vmatprep.mubr.msk.f32.mxu1 %vm271_vm1, %v74_v59  ;;  %v131_v59 = vld [vmem:[%s28320_s0 + $0x2e8] sm:$0xff] }
  0x5c   :  { %16583 = vmatmul.mubr.msk.f32.gmra.mrb[40].mxu0 %vm271_vm1, %v87_v9  ;;  %17525 = vmatmul.mubr.msk.f32.gmra.mrb[40].mxu1 %vm271_vm1, %v75_v60  ;;  %v132_v60 = vld [vmem:[%s28320_s0 + $0x2f0] sm:$0xff] }
  0x5d   :  { %16585 = vmatprep.mubr.msk.f32.mxu0 %vm271_vm1, %v88_v10  ;;  %17527 = vmatprep.mubr.msk.f32.mxu1 %vm271_vm1, %v76_v61  ;;  %v133_v61 = vld [vmem:[%s28320_s0 + $0x2f8] sm:$0xff] }
  0x60   :  { %16586 = vmatmul.mubr.msk.f32.gmra.mrb[42].mxu0 %vm271_vm1, %v89_v11  ;;  %17528 = vmatmul.mubr.msk.f32.gmra.mrb[42].mxu1 %vm271_vm1, %v77_v62  ;;  %v134_v62 = vld [vmem:[%s28320_s0 + $0x300] sm:$0xff] }
  0x61   :  { %16588 = vmatprep.mubr.msk.f32.mxu0 %vm271_vm1, %v90_v12  ;;  %17530 = vmatprep.mubr.msk.f32.mxu1 %vm271_vm1, %v78_v63  ;;  %v135_v63 = vld [vmem:[%s28320_s0 + $0x308] sm:$0xff] }
  0x64   :  { %16589 = vmatmul.mubr.msk.f32.gmra.mrb[44].mxu0 %vm271_vm1, %v91_v13  ;;  %17531 = vmatmul.mubr.msk.f32.gmra.mrb[44].mxu1 %vm271_vm1, %v79_v0  ;;  %v136_v0 = vld [vmem:[%s28320_s0 + $0x310] sm:$0xff] }
  0x65   :  { %16591 = vmatprep.mubr.msk.f32.mxu0 %vm271_vm1, %v92_v14  ;;  %17533 = vmatprep.mubr.msk.f32.mxu1 %vm271_vm1, %v80_v1  ;;  %v137_v1 = vld [vmem:[%s28320_s0 + $0x318] sm:$0xff] }
  0x68   :  { %16592 = vmatmul.mubr.msk.f32.gmra.mrb[46].mxu0 %vm271_vm1, %v93_v15  ;;  %17534 = vmatmul.mubr.msk.f32.gmra.mrb[46].mxu1 %vm271_vm1, %v81_v2  ;;  %v138_v2 = vld [vmem:[%s28320_s0 + $0x320] sm:$0xff] }
  0x69   :  { %16594 = vmatprep.mubr.msk.f32.mxu0 %vm271_vm1, %v94_v16  ;;  %17536 = vmatprep.mubr.msk.f32.mxu1 %vm271_vm1, %v82_v3  ;;  %v139_v3 = vld [vmem:[%s28320_s0 + $0x328] sm:$0xff] }
  0x6c   :  { %16595 = vmatmul.mubr.msk.f32.gmra.mrb[48].mxu0 %vm271_vm1, %v95_v17  ;;  %17537 = vmatmul.mubr.msk.f32.gmra.mrb[48].mxu1 %vm271_vm1, %v83_v4  ;;  %v140_v4 = vld [vmem:[%s28320_s0 + $0x330] sm:$0xff] }
  0x6d   :  { %16597 = vmatprep.mubr.msk.f32.mxu0 %vm271_vm1, %v96_v18  ;;  %17539 = vmatprep.mubr.msk.f32.mxu1 %vm271_vm1, %v84_v5  ;;  %v141_v5 = vld [vmem:[%s28320_s0 + $0x338] sm:$0xff] }
  0x70   :  { %16598 = vmatmul.mubr.msk.f32.gmra.mrb[50].mxu0 %vm271_vm1, %v97_v19  ;;  %17540 = vmatmul.mubr.msk.f32.gmra.mrb[50].mxu1 %vm271_vm1, %v85_v6  ;;  %v142_v6 = vld [vmem:[%s28320_s0 + $0x340] sm:$0xff] }
  0x71   :  { %16600 = vmatprep.mubr.msk.f32.mxu0 %vm271_vm1, %v98_v20  ;;  %17542 = vmatprep.mubr.msk.f32.mxu1 %vm271_vm1, %v86_v8  ;;  %v143_v8 = vld [vmem:[%s28320_s0 + $0x348] sm:$0xff] }
  0x74   :  { %16601 = vmatmul.mubr.msk.f32.gmra.mrb[52].mxu0 %vm271_vm1, %v99_v21  ;;  %17543 = vmatmul.mubr.msk.f32.gmra.mrb[52].mxu1 %vm271_vm1, %v87_v9  ;;  %v144_v9 = vld [vmem:[%s28320_s0 + $0x350] sm:$0xff] }
  0x75   :  { %16603 = vmatprep.mubr.msk.f32.mxu0 %vm271_vm1, %v100_v22  ;;  %17545 = vmatprep.mubr.msk.f32.mxu1 %vm271_vm1, %v88_v10  ;;  %v145_v10 = vld [vmem:[%s28320_s0 + $0x358] sm:$0xff] }
  0x78   :  { %16604 = vmatmul.mubr.msk.f32.gmra.mrb[54].mxu0 %vm271_vm1, %v101_v25  ;;  %17546 = vmatmul.mubr.msk.f32.gmra.mrb[54].mxu1 %vm271_vm1, %v89_v11  ;;  %v146_v11 = vld [vmem:[%s28320_s0 + $0x360] sm:$0xff] }
  0x79   :  { %16606 = vmatprep.mubr.msk.f32.mxu0 %vm271_vm1, %v102_v27  ;;  %17548 = vmatprep.mubr.msk.f32.mxu1 %vm271_vm1, %v90_v12  ;;  %v147_v12 = vld [vmem:[%s28320_s0 + $0x368] sm:$0xff] }
  0x7c   :  { %16607 = vmatmul.mubr.msk.f32.gmra.mrb[56].mxu0 %vm271_vm1, %v103_v28  ;;  %17549 = vmatmul.mubr.msk.f32.gmra.mrb[56].mxu1 %vm271_vm1, %v91_v13  ;;  %v148_v13 = vld [vmem:[%s28320_s0 + $0x370] sm:$0xff] }
  0x7d   :  { %16609 = vmatprep.mubr.msk.f32.mxu0 %vm271_vm1, %v104_v29  ;;  %17551 = vmatprep.mubr.msk.f32.mxu1 %vm271_vm1, %v92_v14  ;;  %v149_v14 = vld [vmem:[%s28320_s0 + $0x378] sm:$0xff] }
  0x80   :  { %16610 = vmatmul.mubr.msk.f32.gmra.mrb[58].mxu0 %vm271_vm1, %v105_v30  ;;  %17552 = vmatmul.mubr.msk.f32.gmra.mrb[58].mxu1 %vm271_vm1, %v93_v15  ;;  %v150_v15 = vld [vmem:[%s28320_s0 + $0x380] sm:$0xff] }
  0x81   :  { %16612 = vmatprep.mubr.msk.f32.mxu0 %vm271_vm1, %v106_v31  ;;  %17554 = vmatprep.mubr.msk.f32.mxu1 %vm271_vm1, %v94_v16  ;;  %v151_v16 = vld [vmem:[%s28320_s0 + $0x388] sm:$0xff] }
  0x84   :  { %16613 = vmatmul.mubr.msk.f32.gmra.mrb[60].mxu0 %vm271_vm1, %v107_v34  ;;  %17555 = vmatmul.mubr.msk.f32.gmra.mrb[60].mxu1 %vm271_vm1, %v95_v17  ;;  %v152_v17 = vld [vmem:[%s28320_s0 + $0x390] sm:$0xff] }
  0x85   :  { %16615 = vmatprep.mubr.msk.f32.mxu0 %vm271_vm1, %v108_v36  ;;  %17557 = vmatprep.mubr.msk.f32.mxu1 %vm271_vm1, %v96_v18  ;;  %v153_v18 = vld [vmem:[%s28320_s0 + $0x398] sm:$0xff] }
  0x88   :  { %16616 = vmatmul.mubr.msk.f32.gmra.mrb[62].mxu0 %vm271_vm1, %v109_v37  ;;  %17558 = vmatmul.mubr.msk.f32.gmra.mrb[62].mxu1 %vm271_vm1, %v97_v19  ;;  %v154_v19 = vld [vmem:[%s28320_s0 + $0x3a0] sm:$0xff] }
  0x89   :  { %16618 = vmatprep.mubr.msk.f32.mxu0 %vm271_vm1, %v110_v38  ;;  %17560 = vmatprep.mubr.msk.f32.mxu1 %vm271_vm1, %v98_v20 }
  0x8c   :  { %16619 = vmatmul.mubr.msk.f32.gmra.mrb[64].mxu0 %vm271_vm1, %v111_v39  ;;  %17561 = vmatmul.mubr.msk.f32.gmra.mrb[64].mxu1 %vm271_vm1, %v99_v21 }
  0x8d   :  { %16621 = vmatprep.mubr.msk.f32.mxu0 %vm271_vm1, %v112_v40  ;;  %17563 = vmatprep.mubr.msk.f32.mxu1 %vm271_vm1, %v100_v22  ;;  %v155_v22 = vld [vmem:[%s28320_s0 + $0x3a8] sm:$0xff] }
  0x90   :  { %16622 = vmatmul.mubr.msk.f32.gmra.mrb[66].mxu0 %vm271_vm1, %v113_v41  ;;  %17564 = vmatmul.mubr.msk.f32.gmra.mrb[66].mxu1 %vm271_vm1, %v101_v25 }
  0x91   :  { %16624 = vmatprep.mubr.msk.f32.mxu0 %vm271_vm1, %v114_v42  ;;  %17566 = vmatprep.mubr.msk.f32.mxu1 %vm271_vm1, %v102_v27  ;;  %v158_v27 = vld [vmem:[%s28320_s0 + $0x3c0] sm:$0xff] }
  0x94   :  { %16625 = vmatmul.mubr.msk.f32.gmra.mrb[68].mxu0 %vm271_vm1, %v115_v43  ;;  %17567 = vmatmul.mubr.msk.f32.gmra.mrb[68].mxu1 %vm271_vm1, %v103_v28 }
  0x95   :  { %16627 = vmatprep.mubr.msk.f32.mxu0 %vm271_vm1, %v116_v44  ;;  %17569 = vmatprep.mubr.msk.f32.mxu1 %vm271_vm1, %v104_v29 }
  0x98   :  { %16628 = vmatmul.mubr.msk.f32.gmra.mrb[70].mxu0 %vm271_vm1, %v117_v45  ;;  %17570 = vmatmul.mubr.msk.f32.gmra.mrb[70].mxu1 %vm271_vm1, %v105_v30  ;;  %v159_v30 = vld [vmem:[%s28320_s0 + $0x3c8] sm:$0xff] }
  0x99   :  { %16630 = vmatprep.mubr.msk.f32.mxu0 %vm271_vm1, %v118_v46  ;;  %17572 = vmatprep.mubr.msk.f32.mxu1 %vm271_vm1, %v106_v31  ;;  %v160_v31 = vld [vmem:[%s28320_s0 + $0x3d0] sm:$0xff] }
  0x9c   :  { %16631 = vmatmul.mubr.msk.f32.gmra.mrb[72].mxu0 %vm271_vm1, %v119_v47  ;;  %17573 = vmatmul.mubr.msk.f32.gmra.mrb[72].mxu1 %vm271_vm1, %v107_v34  ;;  %v161_v34 = vld [vmem:[%s28320_s0 + $0x3d8] sm:$0xff] }
  0x9d   :  { %16633 = vmatprep.mubr.msk.f32.mxu0 %vm271_vm1, %v120_v48  ;;  %17575 = vmatprep.mubr.msk.f32.mxu1 %vm271_vm1, %v108_v36 }
  0xa0   :  { %16634 = vmatmul.mubr.msk.f32.gmra.mrb[74].mxu0 %vm271_vm1, %v121_v49  ;;  %17576 = vmatmul.mubr.msk.f32.gmra.mrb[74].mxu1 %vm271_vm1, %v109_v37 }
  0xa1   :  { %16636 = vmatprep.mubr.msk.f32.mxu0 %vm271_vm1, %v122_v50  ;;  %17578 = vmatprep.mubr.msk.f32.mxu1 %vm271_vm1, %v110_v38  ;;  %v163_v38 = vld [vmem:[%s28320_s0 + $0x3e8] sm:$0xff] }
  0xa4   :  { %16637 = vmatmul.mubr.msk.f32.gmra.mrb[76].mxu0 %vm271_vm1, %v123_v51  ;;  %17579 = vmatmul.mubr.msk.f32.gmra.mrb[76].mxu1 %vm271_vm1, %v111_v39  ;;  %v164_v39 = vld [vmem:[%s28320_s0 + $0x3f0] sm:$0xff] }
  0xa5   :  { %16639 = vmatprep.mubr.msk.f32.mxu0 %vm271_vm1, %v124_v52  ;;  %17581 = vmatprep.mubr.msk.f32.mxu1 %vm271_vm1, %v112_v40 }
  0xa8   :  { %16640 = vmatmul.mubr.msk.f32.gmra.mrb[78].mxu0 %vm271_vm1, %v125_v53  ;;  %17582 = vmatmul.mubr.msk.f32.gmra.mrb[78].mxu1 %vm271_vm1, %v113_v41 }
  0xa9   :  { %16642 = vmatprep.mubr.msk.f32.mxu0 %vm271_vm1, %v126_v54  ;;  %17584 = vmatprep.mubr.msk.f32.mxu1 %vm271_vm1, %v114_v42  ;;  %v165_v42 = vld [vmem:[%s28320_s0 + $0x3f8] sm:$0xff] }
  0xac   :  { %16643 = vmatmul.mubr.msk.f32.gmra.mrb[80].mxu0 %vm271_vm1, %v127_v55  ;;  %17585 = vmatmul.mubr.msk.f32.gmra.mrb[80].mxu1 %vm271_vm1, %v115_v43  ;;  %v166_v43 = vld [vmem:[%s28320_s0 + $0x400] sm:$0xff] }
  0xad   :  { %16645 = vmatprep.mubr.msk.f32.mxu0 %vm271_vm1, %v128_v56  ;;  %17587 = vmatprep.mubr.msk.f32.mxu1 %vm271_vm1, %v116_v44  ;;  %v167_v44 = vld [vmem:[%s28320_s0 + $0x408] sm:$0xff] }
  0xb0   :  { %16646 = vmatmul.mubr.msk.f32.gmra.mrb[82].mxu0 %vm271_vm1, %v129_v57  ;;  %17588 = vmatmul.mubr.msk.f32.gmra.mrb[82].mxu1 %vm271_vm1, %v117_v45  ;;  %v168_v45 = vld [vmem:[%s28320_s0 + $0x410] sm:$0xff] }
  0xb1   :  { %16648 = vmatprep.mubr.msk.f32.mxu0 %vm271_vm1, %v130_v58  ;;  %17590 = vmatprep.mubr.msk.f32.mxu1 %vm271_vm1, %v118_v46  ;;  %v169_v46 = vld [vmem:[%s28320_s0 + $0x418] sm:$0xff] }
  0xb4   :  { %16649 = vmatmul.mubr.msk.f32.gmra.mrb[84].mxu0 %vm271_vm1, %v131_v59  ;;  %17591 = vmatmul.mubr.msk.f32.gmra.mrb[84].mxu1 %vm271_vm1, %v119_v47  ;;  %v170_v47 = vld [vmem:[%s28320_s0 + $0x420] sm:$0xff] }
  0xb5   :  { %16651 = vmatprep.mubr.msk.f32.mxu0 %vm271_vm1, %v132_v60  ;;  %17593 = vmatprep.mubr.msk.f32.mxu1 %vm271_vm1, %v120_v48  ;;  %v171_v48 = vld [vmem:[%s28320_s0 + $0x428] sm:$0xff] }
  0xb8   :  { %16652 = vmatmul.mubr.msk.f32.gmra.mrb[86].mxu0 %vm271_vm1, %v133_v61  ;;  %17594 = vmatmul.mubr.msk.f32.gmra.mrb[86].mxu1 %vm271_vm1, %v121_v49  ;;  %v172_v49 = vld [vmem:[%s28320_s0 + $0x430] sm:$0xff] }
  0xb9   :  { %16654 = vmatprep.mubr.msk.f32.mxu0 %vm271_vm1, %v134_v62  ;;  %17596 = vmatprep.mubr.msk.f32.mxu1 %vm271_vm1, %v122_v50  ;;  %v173_v50 = vld [vmem:[%s28320_s0 + $0x438] sm:$0xff] }
  0xbc   :  { %16655 = vmatmul.mubr.msk.f32.gmra.mrb[88].mxu0 %vm271_vm1, %v135_v63  ;;  %17597 = vmatmul.mubr.msk.f32.gmra.mrb[88].mxu1 %vm271_vm1, %v123_v51  ;;  %v174_v51 = vld [vmem:[%s28320_s0 + $0x440] sm:$0xff] }
  0xbd   :  { %16657 = vmatprep.mubr.msk.f32.mxu0 %vm271_vm1, %v136_v0  ;;  %17599 = vmatprep.mubr.msk.f32.mxu1 %vm271_vm1, %v124_v52  ;;  %v175_v52 = vld [vmem:[%s28320_s0 + $0x448] sm:$0xff] }
  0xc0   :  { %16658 = vmatmul.mubr.msk.f32.gmra.mrb[90].mxu0 %vm271_vm1, %v137_v1  ;;  %17600 = vmatmul.mubr.msk.f32.gmra.mrb[90].mxu1 %vm271_vm1, %v125_v53  ;;  %v176_v53 = vld [vmem:[%s28320_s0 + $0x450] sm:$0xff] }
  0xc1   :  { %16660 = vmatprep.mubr.msk.f32.mxu0 %vm271_vm1, %v138_v2  ;;  %17602 = vmatprep.mubr.msk.f32.mxu1 %vm271_vm1, %v126_v54  ;;  %v177_v54 = vld [vmem:[%s28320_s0 + $0x458] sm:$0xff] }
  0xc4   :  { %16661 = vmatmul.mubr.msk.f32.gmra.mrb[92].mxu0 %vm271_vm1, %v139_v3  ;;  %17603 = vmatmul.mubr.msk.f32.gmra.mrb[92].mxu1 %vm271_vm1, %v127_v55  ;;  %v178_v55 = vld [vmem:[%s28320_s0 + $0x460] sm:$0xff] }
  0xc5   :  { %16663 = vmatprep.mubr.msk.f32.mxu0 %vm271_vm1, %v140_v4  ;;  %17605 = vmatprep.mubr.msk.f32.mxu1 %vm271_vm1, %v128_v56  ;;  %v179_v56 = vld [vmem:[%s28320_s0 + $0x468] sm:$0xff] }
  0xc8   :  { %16664 = vmatmul.mubr.msk.f32.gmra.mrb[94].mxu0 %vm271_vm1, %v141_v5  ;;  %17606 = vmatmul.mubr.msk.f32.gmra.mrb[94].mxu1 %vm271_vm1, %v129_v57  ;;  %v180_v57 = vld [vmem:[%s28320_s0 + $0x470] sm:$0xff] }
  0xc9   :  { %16666 = vmatprep.mubr.msk.f32.mxu0 %vm271_vm1, %v142_v6  ;;  %17608 = vmatprep.mubr.msk.f32.mxu1 %vm271_vm1, %v130_v58  ;;  %v181_v58 = vld [vmem:[%s28320_s0 + $0x478] sm:$0xff] }
  0xcc   :  { %16667 = vmatmul.mubr.msk.f32.gmra.mrb[96].mxu0 %vm271_vm1, %v143_v8  ;;  %17609 = vmatmul.mubr.msk.f32.gmra.mrb[96].mxu1 %vm271_vm1, %v131_v59  ;;  %v182_v59 = vld [vmem:[%s28320_s0 + $0x480] sm:$0xff] }
  0xcd   :  { %16669 = vmatprep.mubr.msk.f32.mxu0 %vm271_vm1, %v144_v9  ;;  %17611 = vmatprep.mubr.msk.f32.mxu1 %vm271_vm1, %v132_v60  ;;  %v183_v60 = vld [vmem:[%s28320_s0 + $0x488] sm:$0xff] }
  0xd0   :  { %16670 = vmatmul.mubr.msk.f32.gmra.mrb[98].mxu0 %vm271_vm1, %v145_v10  ;;  %17612 = vmatmul.mubr.msk.f32.gmra.mrb[98].mxu1 %vm271_vm1, %v133_v61  ;;  %v184_v61 = vld [vmem:[%s28320_s0 + $0x490] sm:$0xff] }
  0xd1   :  { %16672 = vmatprep.mubr.msk.f32.mxu0 %vm271_vm1, %v146_v11  ;;  %17614 = vmatprep.mubr.msk.f32.mxu1 %vm271_vm1, %v134_v62  ;;  %v185_v62 = vld [vmem:[%s28320_s0 + $0x498] sm:$0xff] }
  0xd4   :  { %16673 = vmatmul.mubr.msk.f32.gmra.mrb[100].mxu0 %vm271_vm1, %v147_v12  ;;  %17615 = vmatmul.mubr.msk.f32.gmra.mrb[100].mxu1 %vm271_vm1, %v135_v63  ;;  %v186_v63 = vld [vmem:[%s28320_s0 + $0x4a0] sm:$0xff] }
  0xd5   :  { %16675 = vmatprep.mubr.msk.f32.mxu0 %vm271_vm1, %v148_v13  ;;  %17617 = vmatprep.mubr.msk.f32.mxu1 %vm271_vm1, %v136_v0  ;;  %v22112_v0 = vld [vmem:[%s28320_s0 + $0x4a8] sm:$0xff] }
  0xd8   :  { %16676 = vmatmul.mubr.msk.f32.gmra.mrb[102].mxu0 %vm271_vm1, %v149_v14  ;;  %17618 = vmatmul.mubr.msk.f32.gmra.mrb[102].mxu1 %vm271_vm1, %v137_v1  ;;  %v188_v1 = vld [vmem:[%s28320_s0 + $0x4b0] sm:$0xff] }
  0xd9   :  { %16678 = vmatprep.mubr.msk.f32.mxu0 %vm271_vm1, %v150_v15  ;;  %17620 = vmatprep.mubr.msk.f32.mxu1 %vm271_vm1, %v138_v2  ;;  %v22125_v2 = vld [vmem:[%s28320_s0 + $0x4b8] sm:$0xff] }
  0xdc   :  { %16679 = vmatmul.mubr.msk.f32.gmra.mrb[104].mxu0 %vm271_vm1, %v151_v16  ;;  %17621 = vmatmul.mubr.msk.f32.gmra.mrb[104].mxu1 %vm271_vm1, %v139_v3  ;;  %v22130_v3 = vld [vmem:[%s28320_s0 + $0x4c0] sm:$0xff] }
  0xdd   :  { %16681 = vmatprep.mubr.msk.f32.mxu0 %vm271_vm1, %v152_v17  ;;  %17623 = vmatprep.mubr.msk.f32.mxu1 %vm271_vm1, %v140_v4  ;;  %v22141_v4 = vld [vmem:[%s28320_s0 + $0x4c8] sm:$0xff] }
  0xdf   :  { %v16818_v20 = vpop.f32.mrb[0].mxu1 }
  0xe0   :  { %16682 = vmatmul.mubr.msk.f32.gmra.mrb[106].mxu0 %vm271_vm1, %v153_v18  ;;  %v1942_v21 = vpop.f32.mrb[1].mxu1  ;;  %17624 = vmatmul.mubr.msk.f32.gmra.mrb[106].mxu1 %vm271_vm1, %v141_v5  ;;  %v22146_v5 = vld [vmem:[%s28320_s0 + $0x4d0] sm:$0xff]  ;;  %v13122_v20 = vld [vmem:[%s28319_s1 + $0x48] sm:$0xff] }
  0xe1   :  { %16684 = vmatprep.mubr.msk.f32.mxu0 %vm271_vm1, %v154_v19  ;;  %17626 = vmatprep.mubr.msk.f32.mxu1 %vm271_vm1, %v142_v6  ;;  %v22157_v6 = vld [vmem:[%s28320_s0 + $0x4d8] sm:$0xff]  ;;  %v13756_v21 = vld [vmem:[%s28321_s2 + $0x40] sm:$0xff] }
  0xe3   :  { %v16821_v24 = vpop.f32.mrb[2].mxu1 }
  0xe4   :  { %16685 = vmatmul.mubr.msk.f32.gmra.mrb[108].mxu0 %vm271_vm1, %v155_v22  ;;  %v1950_v25 = vpop.f32.mrb[3].mxu1  ;;  %17627 = vmatmul.mubr.msk.f32.gmra.mrb[108].mxu1 %vm271_vm1, %v143_v8  ;;  %v22162_v8 = vld [vmem:[%s28320_s0 + $0x4e0] sm:$0xff]  ;;  %v13757_v24 = vld [vmem:[%s28321_s2 + $0x48] sm:$0xff] }
  0xe5   :  { %16687 = vmatprep.mubr.msk.f32.mxu0 %vm271_vm1, %v156_v23  ;;  %17629 = vmatprep.mubr.msk.f32.mxu1 %vm271_vm1, %v144_v9  ;;  %v22173_v9 = vld [vmem:[%s28320_s0 + $0x4e8] sm:$0xff]  ;;  %v22277_v25 = vld [vmem:[%s28320_s0 + $0x540] sm:$0xff] }
  0xe7   :  { %v16824_v28 = vpop.f32.mrb[4].mxu1 }
  0xe8   :  { %16688 = vmatmul.mubr.msk.f32.gmra.mrb[110].mxu0 %vm271_vm1, %v157_v26  ;;  %v1958_v29 = vpop.f32.mrb[5].mxu1  ;;  %17630 = vmatmul.mubr.msk.f32.gmra.mrb[110].mxu1 %vm271_vm1, %v145_v10  ;;  %v22178_v10 = vld [vmem:[%s28320_s0 + $0x4f0] sm:$0xff] }
  0xe9   :  { %16690 = vmatprep.mubr.msk.f32.mxu0 %vm271_vm1, %v158_v27  ;;  %17632 = vmatprep.mubr.msk.f32.mxu1 %vm271_vm1, %v146_v11  ;;  %v22189_v11 = vld [vmem:[%s28320_s0 + $0x4f8] sm:$0xff]  ;;  %v22298_v28 = vld [vmem:[%s28320_s0 + $0x550] sm:$0xff] }
  0xea   :  { %v22312_v29 = vld [vmem:[%s28320_s0 + $0x558] sm:$0xff] }
  0xeb   :  { %v16827_v32 = vpop.f32.mrb[6].mxu1 }
  0xec   :  { %16691 = vmatmul.mubr.msk.f32.gmra.mrb[112].mxu0 %vm271_vm1, %v159_v30  ;;  %v1966_v33 = vpop.f32.mrb[7].mxu1  ;;  %17633 = vmatmul.mubr.msk.f32.gmra.mrb[112].mxu1 %vm271_vm1, %v147_v12  ;;  %v22194_v12 = vld [vmem:[%s28320_s0 + $0x500] sm:$0xff]  ;;  %v22335_v32 = vld [vmem:[%s28320_s0 + $0x570] sm:$0xff] }
  0xed   :  { %16693 = vmatprep.mubr.msk.f32.mxu0 %vm271_vm1, %v160_v31  ;;  %17635 = vmatprep.mubr.msk.f32.mxu1 %vm271_vm1, %v148_v13  ;;  %v22205_v13 = vld [vmem:[%s28320_s0 + $0x508] sm:$0xff]  ;;  %v22348_v33 = vld [vmem:[%s28320_s0 + $0x578] sm:$0xff] }
  0xef   :  { %v16830_v36 = vpop.f32.mrb[8].mxu1 }
  0xf0   :  { %16694 = vmatmul.mubr.msk.f32.gmra.mrb[114].mxu0 %vm271_vm1, %v161_v34  ;;  %v1974_v37 = vpop.f32.mrb[9].mxu1  ;;  %17636 = vmatmul.mubr.msk.f32.gmra.mrb[114].mxu1 %vm271_vm1, %v149_v14  ;;  %v22210_v14 = vld [vmem:[%s28320_s0 + $0x510] sm:$0xff] }
  0xf1   :  { %16696 = vmatprep.mubr.msk.f32.mxu0 %vm271_vm1, %v162_v35  ;;  %17638 = vmatprep.mubr.msk.f32.mxu1 %vm271_vm1, %v150_v15  ;;  %v22222_v15 = vld [vmem:[%s28320_s0 + $0x518] sm:$0xff]  ;;  %v22371_v36 = vld [vmem:[%s28320_s0 + $0x590] sm:$0xff] }
  0xf2   :  { %v22384_v37 = vld [vmem:[%s28320_s0 + $0x598] sm:$0xff] }
  0xf3   :  { %v16833_v40 = vpop.f32.mrb[10].mxu1 }
  0xf4   :  { %16697 = vmatmul.mubr.msk.f32.gmra.mrb[116].mxu0 %vm271_vm1, %v163_v38  ;;  %v1982_v41 = vpop.f32.mrb[11].mxu1  ;;  %17639 = vmatmul.mubr.msk.f32.gmra.mrb[116].mxu1 %vm271_vm1, %v151_v16  ;;  %v22227_v16 = vld [vmem:[%s28320_s0 + $0x520] sm:$0xff]  ;;  %v22407_v40 = vld [vmem:[%s28320_s0 + $0x5b0] sm:$0xff] }
  0xf5   :  { %16699 = vmatprep.mubr.msk.f32.mxu0 %vm271_vm1, %v164_v39  ;;  %17641 = vmatprep.mubr.msk.f32.mxu1 %vm271_vm1, %v152_v17  ;;  %v22240_v17 = vld [vmem:[%s28320_s0 + $0x528] sm:$0xff]  ;;  %28708 = vst [vmem:[#allocation4_spill] sm:$0xff] %v22407_v40  ;;  %v22420_v41 = vld [vmem:[%s28320_s0 + $0x5b8] sm:$0xff] }
  0xf6   :  { %28709 = vst [vmem:[#allocation5_spill] sm:$0xff] %v22420_v41 }
  0xf8   :  { %16700 = vmatmul.mubr.msk.f32.gmra.mrb[118].mxu0 %vm271_vm1, %v165_v42  ;;  %17642 = vmatmul.mubr.msk.f32.gmra.mrb[118].mxu1 %vm271_vm1, %v153_v18  ;;  %v22245_v18 = vld [vmem:[%s28320_s0 + $0x530] sm:$0xff] }
  0xf9   :  { %16702 = vmatprep.mubr.msk.f32.mxu0 %vm271_vm1, %v166_v43  ;;  %17644 = vmatprep.mubr.msk.f32.mxu1 %vm271_vm1, %v154_v19  ;;  %v13121_v19 = vld [vmem:[%s28319_s1 + $0x40] sm:$0xff] }
  0xfc   :  { %16703 = vmatmul.mubr.msk.f32.gmra.mrb[120].mxu0 %vm271_vm1, %v167_v44  ;;  %17645 = vmatmul.mubr.msk.f32.gmra.mrb[120].mxu1 %vm271_vm1, %v155_v22  ;;  %v22267_v22 = vld [vmem:[%s28320_s0 + $0x538] sm:$0xff] }
  0xfd   :  { %16705 = vmatprep.mubr.msk.f32.mxu0 %vm271_vm1, %v168_v45  ;;  %17647 = vmatprep.mubr.msk.f32.mxu1 %vm271_vm1, %v156_v23  ;;  %v22269_v23 = vpack.c.bf16 %v13122_v20, %v13121_v19  ;;  %v22636_v19 = vld [vmem:[%s28320_s0 + $0x18] sm:$0xff]  ;;  %v22641_v20 = vld [vmem:[%s28320_s0 + $0x20] sm:$0xff] }
  0xff   :  { %19495 = vmatprep.subr.bf16.mxu0 %v22269_v23 }
 0x100   :  { %16706 = vmatmul.mubr.msk.f32.gmra.mrb[122].mxu0 %vm271_vm1, %v169_v46  ;;  %17648 = vmatmul.mubr.msk.f32.gmra.mrb[122].mxu1 %vm271_vm1, %v157_v26  ;;  %v22279_v26 = vpack.c.bf16 %v13757_v24, %v13756_v21  ;;  %v22655_v21 = vld [vmem:[%s28320_s0 + $0x28] sm:$0xff]  ;;  %v22673_v24 = vld [vmem:[%s28320_s0 + $0x38] sm:$0xff] }
 0x101   :  { %16708 = vmatprep.mubr.msk.f32.mxu0 %vm271_vm1, %v170_v47  ;;  %17650 = vmatprep.mubr.msk.f32.mxu1 %vm271_vm1, %v158_v27  ;;  %v22293_v27 = vld [vmem:[%s28320_s0 + $0x548] sm:$0xff] }
 0x102   :  { %19525 = vmatprep.subr.bf16.mxu1 %v22279_v26 }
 0x104   :  { %16709 = vmatmul.mubr.msk.f32.gmra.mrb[124].mxu0 %vm271_vm1, %v171_v48  ;;  %17651 = vmatmul.mubr.msk.f32.gmra.mrb[124].mxu1 %vm271_vm1, %v159_v30  ;;  %v22317_v30 = vld [vmem:[%s28320_s0 + $0x560] sm:$0xff] }
 0x105   :  { %16711 = vmatprep.mubr.msk.f32.mxu0 %vm271_vm1, %v172_v49  ;;  %17653 = vmatprep.mubr.msk.f32.mxu1 %vm271_vm1, %v160_v31  ;;  %v22330_v31 = vld [vmem:[%s28320_s0 + $0x568] sm:$0xff] }
 0x108   :  { %16712 = vmatmul.mubr.msk.f32.gmra.mrb[126].mxu0 %vm271_vm1, %v173_v50  ;;  %17654 = vmatmul.mubr.msk.f32.gmra.mrb[126].mxu1 %vm271_vm1, %v161_v34  ;;  %v22353_v34 = vld [vmem:[%s28320_s0 + $0x580] sm:$0xff] }
 0x109   :  { %16714 = vmatprep.mubr.msk.f32.mxu0 %vm271_vm1, %v174_v51  ;;  %17656 = vmatprep.mubr.msk.f32.mxu1 %vm271_vm1, %v162_v35  ;;  %v22366_v35 = vld [vmem:[%s28320_s0 + $0x588] sm:$0xff] }
 0x10c   :  { %16715 = vmatmul.mubr.msk.f32.gmra.mrb[128].mxu0 %vm271_vm1, %v175_v52  ;;  %17657 = vmatmul.mubr.msk.f32.gmra.mrb[128].mxu1 %vm271_vm1, %v163_v38  ;;  %v22389_v38 = vld [vmem:[%s28320_s0 + $0x5a0] sm:$0xff] }
 0x10d   :  { %16717 = vmatprep.mubr.msk.f32.mxu0 %vm271_vm1, %v176_v53  ;;  %17659 = vmatprep.mubr.msk.f32.mxu1 %vm271_vm1, %v164_v39  ;;  %v22402_v39 = vld [vmem:[%s28320_s0 + $0x5a8] sm:$0xff] }
 0x10e   :  { %28707 = vst [vmem:[#allocation3_spill] sm:$0xff] %v22402_v39 }
 0x110   :  { %16718 = vmatmul.mubr.msk.f32.gmra.mrb[130].mxu0 %vm271_vm1, %v177_v54  ;;  %17660 = vmatmul.mubr.msk.f32.gmra.mrb[130].mxu1 %vm271_vm1, %v165_v42  ;;  %v22425_v42 = vld [vmem:[%s28320_s0 + $0x5c0] sm:$0xff] }
 0x111   :  { %16720 = vmatprep.mubr.msk.f32.mxu0 %vm271_vm1, %v178_v55  ;;  %17662 = vmatprep.mubr.msk.f32.mxu1 %vm271_vm1, %v166_v43  ;;  %28710 = vst [vmem:[#allocation6_spill] sm:$0xff] %v22425_v42  ;;  %v22438_v43 = vld [vmem:[%s28320_s0 + $0x5c8] sm:$0xff] }
 0x112   :  { %28711 = vst [vmem:[#allocation7_spill] sm:$0xff] %v22438_v43 }
 0x114   :  { %16721 = vmatmul.mubr.msk.f32.gmra.mrb[132].mxu0 %vm271_vm1, %v179_v56  ;;  %17663 = vmatmul.mubr.msk.f32.gmra.mrb[132].mxu1 %vm271_vm1, %v167_v44  ;;  %v22443_v44 = vld [vmem:[%s28320_s0 + $0x5d0] sm:$0xff] }
 0x115   :  { %16723 = vmatprep.mubr.msk.f32.mxu0 %vm271_vm1, %v180_v57  ;;  %17665 = vmatprep.mubr.msk.f32.mxu1 %vm271_vm1, %v168_v45  ;;  %28712 = vst [vmem:[#allocation8_spill] sm:$0xff] %v22443_v44  ;;  %v22456_v45 = vld [vmem:[%s28320_s0 + $0x5d8] sm:$0xff] }
 0x116   :  { %28713 = vst [vmem:[#allocation9_spill] sm:$0xff] %v22456_v45 }
 0x118   :  { %16724 = vmatmul.mubr.msk.f32.gmra.mrb[134].mxu0 %vm271_vm1, %v181_v58  ;;  %17666 = vmatmul.mubr.msk.f32.gmra.mrb[134].mxu1 %vm271_vm1, %v169_v46  ;;  %v22461_v46 = vld [vmem:[%s28320_s0 + $0x5e0] sm:$0xff] }
 0x119   :  { %16726 = vmatprep.mubr.msk.f32.mxu0 %vm271_vm1, %v182_v59  ;;  %17668 = vmatprep.mubr.msk.f32.mxu1 %vm271_vm1, %v170_v47  ;;  %28714 = vst [vmem:[#allocation10_spill] sm:$0xff] %v22461_v46  ;;  %v22474_v47 = vld [vmem:[%s28320_s0 + $0x5e8] sm:$0xff] }
 0x11a   :  { %28715 = vst [vmem:[#allocation11_spill] sm:$0xff] %v22474_v47 }
 0x11c   :  { %16727 = vmatmul.mubr.msk.f32.gmra.mrb[136].mxu0 %vm271_vm1, %v183_v60  ;;  %17669 = vmatmul.mubr.msk.f32.gmra.mrb[136].mxu1 %vm271_vm1, %v171_v48  ;;  %v22479_v48 = vld [vmem:[%s28320_s0 + $0x5f0] sm:$0xff] }
 0x11d   :  { %16729 = vmatprep.mubr.msk.f32.mxu0 %vm271_vm1, %v184_v61  ;;  %17671 = vmatprep.mubr.msk.f32.mxu1 %vm271_vm1, %v172_v49  ;;  %28716 = vst [vmem:[#allocation12_spill] sm:$0xff] %v22479_v48  ;;  %v22492_v49 = vld [vmem:[%s28320_s0 + $0x5f8] sm:$0xff] }
 0x11e   :  { %28717 = vst [vmem:[#allocation13_spill] sm:$0xff] %v22492_v49 }
 0x120   :  { %16730 = vmatmul.mubr.msk.f32.gmra.mrb[138].mxu0 %vm271_vm1, %v185_v62  ;;  %17672 = vmatmul.mubr.msk.f32.gmra.mrb[138].mxu1 %vm271_vm1, %v173_v50  ;;  %v22497_v50 = vld [vmem:[%s28320_s0 + $0x600] sm:$0xff] }
 0x121   :  { %16732 = vmatprep.mubr.msk.f32.mxu0 %vm271_vm1, %v186_v63  ;;  %17674 = vmatprep.mubr.msk.f32.mxu1 %vm271_vm1, %v174_v51  ;;  %28718 = vst [vmem:[#allocation14_spill] sm:$0xff] %v22497_v50  ;;  %v22510_v51 = vld [vmem:[%s28320_s0 + $0x608] sm:$0xff] }
 0x122   :  { %28719 = vst [vmem:[#allocation15_spill] sm:$0xff] %v22510_v51 }
 0x124   :  { %16733 = vmatmul.mubr.msk.f32.gmra.mrb[140].mxu0 %vm271_vm1, %v22112_v0  ;;  %17675 = vmatmul.mubr.msk.f32.gmra.mrb[140].mxu1 %vm271_vm1, %v175_v52  ;;  %v22515_v52 = vld [vmem:[%s28320_s0 + $0x610] sm:$0xff] }
 0x125   :  { %16735 = vmatprep.mubr.msk.f32.mxu0 %vm271_vm1, %v188_v1  ;;  %17677 = vmatprep.mubr.msk.f32.mxu1 %vm271_vm1, %v176_v53  ;;  %28720 = vst [vmem:[#allocation16_spill] sm:$0xff] %v22515_v52  ;;  %v22528_v53 = vld [vmem:[%s28320_s0 + $0x618] sm:$0xff] }
 0x126   :  { %28721 = vst [vmem:[#allocation17_spill] sm:$0xff] %v22528_v53 }
 0x128   :  { %16736 = vmatmul.mubr.msk.f32.gmra.mrb[142].mxu0 %vm271_vm1, %v22125_v2  ;;  %17678 = vmatmul.mubr.msk.f32.gmra.mrb[142].mxu1 %vm271_vm1, %v177_v54  ;;  %v22533_v54 = vld [vmem:[%s28320_s0 + $0x620] sm:$0xff] }
 0x129   :  { %16738 = vmatprep.mubr.msk.f32.mxu0 %vm271_vm1, %v22130_v3  ;;  %17680 = vmatprep.mubr.msk.f32.mxu1 %vm271_vm1, %v178_v55  ;;  %28722 = vst [vmem:[#allocation18_spill] sm:$0xff] %v22533_v54  ;;  %v22546_v55 = vld [vmem:[%s28320_s0 + $0x628] sm:$0xff] }
 0x12a   :  { %28723 = vst [vmem:[#allocation19_spill] sm:$0xff] %v22546_v55 }
 0x12c   :  { %16739 = vmatmul.mubr.msk.f32.gmra.mrb[144].mxu0 %vm271_vm1, %v22141_v4  ;;  %17681 = vmatmul.mubr.msk.f32.gmra.mrb[144].mxu1 %vm271_vm1, %v179_v56  ;;  %v22551_v56 = vld [vmem:[%s28320_s0 + $0x630] sm:$0xff] }
 0x12d   :  { %16741 = vmatprep.mubr.msk.f32.mxu0 %vm271_vm1, %v22146_v5  ;;  %17683 = vmatprep.mubr.msk.f32.mxu1 %vm271_vm1, %v180_v57  ;;  %28724 = vst [vmem:[#allocation20_spill] sm:$0xff] %v22551_v56  ;;  %v22564_v57 = vld [vmem:[%s28320_s0 + $0x638] sm:$0xff] }
 0x12e   :  { %28725 = vst [vmem:[#allocation21_spill] sm:$0xff] %v22564_v57 }
 0x130   :  { %16742 = vmatmul.mubr.msk.f32.gmra.mrb[146].mxu0 %vm271_vm1, %v22157_v6  ;;  %17684 = vmatmul.mubr.msk.f32.gmra.mrb[146].mxu1 %vm271_vm1, %v181_v58  ;;  %v22569_v58 = vld [vmem:[%s28320_s0 + $0x640] sm:$0xff] }
 0x131   :  { %16744 = vmatprep.mubr.msk.f32.mxu0 %vm271_vm1, %v22162_v8  ;;  %17686 = vmatprep.mubr.msk.f32.mxu1 %vm271_vm1, %v182_v59  ;;  %28726 = vst [vmem:[#allocation22_spill] sm:$0xff] %v22569_v58  ;;  %v22582_v59 = vld [vmem:[%s28320_s0 + $0x648] sm:$0xff] }
 0x132   :  { %28727 = vst [vmem:[#allocation23_spill] sm:$0xff] %v22582_v59 }
 0x134   :  { %16745 = vmatmul.mubr.msk.f32.gmra.mrb[148].mxu0 %vm271_vm1, %v22173_v9  ;;  %17687 = vmatmul.mubr.msk.f32.gmra.mrb[148].mxu1 %vm271_vm1, %v183_v60  ;;  %v22587_v60 = vld [vmem:[%s28320_s0 + $0x650] sm:$0xff] }
 0x135   :  { %16747 = vmatprep.mubr.msk.f32.mxu0 %vm271_vm1, %v22178_v10  ;;  %17689 = vmatprep.mubr.msk.f32.mxu1 %vm271_vm1, %v184_v61  ;;  %28728 = vst [vmem:[#allocation24_spill] sm:$0xff] %v22587_v60  ;;  %v22600_v61 = vld [vmem:[%s28320_s0 + $0x658] sm:$0xff] }
 0x136   :  { %28729 = vst [vmem:[#allocation25_spill] sm:$0xff] %v22600_v61 }
 0x138   :  { %16748 = vmatmul.mubr.msk.f32.gmra.mrb[150].mxu0 %vm271_vm1, %v22189_v11  ;;  %17690 = vmatmul.mubr.msk.f32.gmra.mrb[150].mxu1 %vm271_vm1, %v185_v62  ;;  %v22605_v62 = vld [vmem:[%s28320_s0] sm:$0xff] }
 0x139   :  { %16750 = vmatprep.mubr.msk.f32.mxu0 %vm271_vm1, %v22194_v12  ;;  %17692 = vmatprep.mubr.msk.f32.mxu1 %vm271_vm1, %v186_v63  ;;  %v22618_v63 = vld [vmem:[%s28320_s0 + $0x8] sm:$0xff] }
 0x13c   :  { %16751 = vmatmul.mubr.msk.f32.gmra.mrb[152].mxu0 %vm271_vm1, %v22205_v13  ;;  %17693 = vmatmul.mubr.msk.f32.gmra.mrb[152].mxu1 %vm271_vm1, %v22112_v0 }
 0x13d   :  { %16753 = vmatprep.mubr.msk.f32.mxu0 %vm271_vm1, %v22210_v14  ;;  %17695 = vmatprep.mubr.msk.f32.mxu1 %vm271_vm1, %v188_v1  ;;  %v22623_v1 = vld [vmem:[%s28320_s0 + $0x10] sm:$0xff] }
 0x140   :  { %16754 = vmatmul.mubr.msk.f32.gmra.mrb[154].mxu0 %vm271_vm1, %v22222_v15  ;;  %17696 = vmatmul.mubr.msk.f32.gmra.mrb[154].mxu1 %vm271_vm1, %v22125_v2 }
 0x141   :  { %16756 = vmatprep.mubr.msk.f32.mxu0 %vm271_vm1, %v22227_v16  ;;  %17698 = vmatprep.mubr.msk.f32.mxu1 %vm271_vm1, %v22130_v3 }
 0x144   :  { %16757 = vmatmul.mubr.msk.f32.gmra.mrb[156].mxu0 %vm271_vm1, %v22240_v17  ;;  %17699 = vmatmul.mubr.msk.f32.gmra.mrb[156].mxu1 %vm271_vm1, %v22141_v4 }
 0x145   :  { %16759 = vmatprep.mubr.msk.f32.mxu0 %vm271_vm1, %v22245_v18  ;;  %17701 = vmatprep.mubr.msk.f32.mxu1 %vm271_vm1, %v22146_v5 }
 0x148   :  { %16760 = vmatmul.mubr.msk.f32.gmra.mrb[158].mxu0 %vm271_vm1, %v22267_v22  ;;  %17702 = vmatmul.mubr.msk.f32.gmra.mrb[158].mxu1 %vm271_vm1, %v22157_v6 }
 0x149   :  { %16762 = vmatprep.mubr.msk.f32.mxu0 %vm271_vm1, %v22277_v25  ;;  %17704 = vmatprep.mubr.msk.f32.mxu1 %vm271_vm1, %v22162_v8 }
 0x14c   :  { %16763 = vmatmul.mubr.msk.f32.gmra.mrb[160].mxu0 %vm271_vm1, %v22293_v27  ;;  %17705 = vmatmul.mubr.msk.f32.gmra.mrb[160].mxu1 %vm271_vm1, %v22173_v9 }
 0x14d   :  { %16765 = vmatprep.mubr.msk.f32.mxu0 %vm271_vm1, %v22298_v28  ;;  %17707 = vmatprep.mubr.msk.f32.mxu1 %vm271_vm1, %v22178_v10 }
 0x150   :  { %16766 = vmatmul.mubr.msk.f32.gmra.mrb[162].mxu0 %vm271_vm1, %v22312_v29  ;;  %17708 = vmatmul.mubr.msk.f32.gmra.mrb[162].mxu1 %vm271_vm1, %v22189_v11 }
 0x151   :  { %16768 = vmatprep.mubr.msk.f32.mxu0 %vm271_vm1, %v22317_v30  ;;  %17710 = vmatprep.mubr.msk.f32.mxu1 %vm271_vm1, %v22194_v12 }
 0x154   :  { %16769 = vmatmul.mubr.msk.f32.gmra.mrb[164].mxu0 %vm271_vm1, %v22330_v31  ;;  %17711 = vmatmul.mubr.msk.f32.gmra.mrb[164].mxu1 %vm271_vm1, %v22205_v13 }
 0x155   :  { %16771 = vmatprep.mubr.msk.f32.mxu0 %vm271_vm1, %v22335_v32  ;;  %17713 = vmatprep.mubr.msk.f32.mxu1 %vm271_vm1, %v22210_v14 }
 0x158   :  { %16772 = vmatmul.mubr.msk.f32.gmra.mrb[166].mxu0 %vm271_vm1, %v22348_v33  ;;  %17714 = vmatmul.mubr.msk.f32.gmra.mrb[166].mxu1 %vm271_vm1, %v22222_v15 }
 0x159   :  { %16774 = vmatprep.mubr.msk.f32.mxu0 %vm271_vm1, %v22353_v34  ;;  %17716 = vmatprep.mubr.msk.f32.mxu1 %vm271_vm1, %v22227_v16 }
 0x15c   :  { %16775 = vmatmul.mubr.msk.f32.gmra.mrb[168].mxu0 %vm271_vm1, %v22366_v35  ;;  %17717 = vmatmul.mubr.msk.f32.gmra.mrb[168].mxu1 %vm271_vm1, %v22240_v17 }
 0x15d   :  { %16777 = vmatprep.mubr.msk.f32.mxu0 %vm271_vm1, %v22371_v36  ;;  %17719 = vmatprep.mubr.msk.f32.mxu1 %vm271_vm1, %v22245_v18 }
 0x160   :  { %16778 = vmatmul.mubr.msk.f32.gmra.mrb[170].mxu0 %vm271_vm1, %v22384_v37  ;;  %17720 = vmatmul.mubr.msk.f32.gmra.mrb[170].mxu1 %vm271_vm1, %v22267_v22 }
 0x161   :  { %16780 = vmatprep.mubr.msk.f32.mxu0 %vm271_vm1, %v22389_v38  ;;  %17722 = vmatprep.mubr.msk.f32.mxu1 %vm271_vm1, %v22277_v25 }
 0x164   :  { %16781 = vmatmul.mubr.msk.f32.gmra.mrb[172].mxu0 %vm271_vm1, %v22402_v39  ;;  %17723 = vmatmul.mubr.msk.f32.gmra.mrb[172].mxu1 %vm271_vm1, %v22293_v27 }
 0x165   :  { %16783 = vmatprep.mubr.msk.f32.mxu0 %vm271_vm1, %v22407_v40  ;;  %17725 = vmatprep.mubr.msk.f32.mxu1 %vm271_vm1, %v22298_v28 }
 0x168   :  { %16784 = vmatmul.mubr.msk.f32.gmra.mrb[174].mxu0 %vm271_vm1, %v22420_v41  ;;  %17726 = vmatmul.mubr.msk.f32.gmra.mrb[174].mxu1 %vm271_vm1, %v22312_v29 }
 0x169   :  { %16786 = vmatprep.mubr.msk.f32.mxu0 %vm271_vm1, %v22425_v42  ;;  %17728 = vmatprep.mubr.msk.f32.mxu1 %vm271_vm1, %v22317_v30 }
 0x16c   :  { %16787 = vmatmul.mubr.msk.f32.gmra.mrb[176].mxu0 %vm271_vm1, %v22438_v43  ;;  %17729 = vmatmul.mubr.msk.f32.gmra.mrb[176].mxu1 %vm271_vm1, %v22330_v31 }
 0x16d   :  { %16789 = vmatprep.mubr.msk.f32.mxu0 %vm271_vm1, %v22443_v44  ;;  %17731 = vmatprep.mubr.msk.f32.mxu1 %vm271_vm1, %v22335_v32 }
 0x170   :  { %16790 = vmatmul.mubr.msk.f32.gmra.mrb[178].mxu0 %vm271_vm1, %v22456_v45  ;;  %17732 = vmatmul.mubr.msk.f32.gmra.mrb[178].mxu1 %vm271_vm1, %v22348_v33 }
 0x171   :  { %16792 = vmatprep.mubr.msk.f32.mxu0 %vm271_vm1, %v22461_v46  ;;  %17734 = vmatprep.mubr.msk.f32.mxu1 %vm271_vm1, %v22353_v34 }
 0x174   :  { %16793 = vmatmul.mubr.msk.f32.gmra.mrb[180].mxu0 %vm271_vm1, %v22474_v47  ;;  %17735 = vmatmul.mubr.msk.f32.gmra.mrb[180].mxu1 %vm271_vm1, %v22366_v35 }
 0x175   :  { %16795 = vmatprep.mubr.msk.f32.mxu0 %vm271_vm1, %v22479_v48  ;;  %17737 = vmatprep.mubr.msk.f32.mxu1 %vm271_vm1, %v22371_v36 }
 0x178   :  { %16796 = vmatmul.mubr.msk.f32.gmra.mrb[182].mxu0 %vm271_vm1, %v22492_v49  ;;  %17738 = vmatmul.mubr.msk.f32.gmra.mrb[182].mxu1 %vm271_vm1, %v22384_v37 }
 0x179   :  { %16798 = vmatprep.mubr.msk.f32.mxu0 %vm271_vm1, %v22497_v50  ;;  %17740 = vmatprep.mubr.msk.f32.mxu1 %vm271_vm1, %v22389_v38 }
 0x17c   :  { %16799 = vmatmul.mubr.msk.f32.gmra.mrb[184].mxu0 %vm271_vm1, %v22510_v51  ;;  %17741 = vmatmul.mubr.msk.f32.gmra.mrb[184].mxu1 %vm271_vm1, %v22402_v39  ;;  %v23264_v39 = vld [vmem:[%s28320_s0 + $0x218] sm:$0xff] }
 0x17d   :  { %16801 = vmatprep.mubr.msk.f32.mxu0 %vm271_vm1, %v22515_v52  ;;  %17743 = vmatprep.mubr.msk.f32.mxu1 %vm271_vm1, %v22407_v40  ;;  %28781 = vst [vmem:[#allocation77_spill] sm:$0xff] %v23264_v39 }
 0x180   :  { %16802 = vmatmul.mubr.msk.f32.gmra.mrb[186].mxu0 %vm271_vm1, %v22528_v53  ;;  %17744 = vmatmul.mubr.msk.f32.gmra.mrb[186].mxu1 %vm271_vm1, %v22420_v41  ;;  %v13759_v41 = vld [vmem:[%s28321_s2 + $0x58] sm:$0xf] }
 0x181   :  { %16804 = vmatprep.mubr.msk.f32.mxu0 %vm271_vm1, %v22533_v54  ;;  %17746 = vmatprep.mubr.msk.f32.mxu1 %vm271_vm1, %v22425_v42  ;;  %v23250_v42 = vld [vmem:[%s28320_s0 + $0x210] sm:$0xff] }
 0x182   :  { %28780 = vst [vmem:[#allocation76_spill] sm:$0xff] %v23250_v42 }
 0x184   :  { %16805 = vmatmul.mubr.msk.f32.gmra.mrb[188].mxu0 %vm271_vm1, %v22546_v55  ;;  %17747 = vmatmul.mubr.msk.f32.gmra.mrb[188].mxu1 %vm271_vm1, %v22438_v43  ;;  %v22862_v43 = vld [vmem:[%s28320_s0 + $0xc0] sm:$0xff] }
 0x185   :  { %16807 = vmatprep.mubr.msk.f32.mxu0 %vm271_vm1, %v22551_v56  ;;  %17749 = vmatprep.mubr.msk.f32.mxu1 %vm271_vm1, %v22443_v44  ;;  %v22851_v44 = vld [vmem:[%s28320_s0 + $0xb8] sm:$0xff]  ;;  %28742 = vst [vmem:[#allocation38_spill] sm:$0xff] %v22862_v43 }
 0x186   :  { %28741 = vst [vmem:[#allocation37_spill] sm:$0xff] %v22851_v44 }
 0x188   :  { %16808 = vmatmul.mubr.msk.f32.gmra.mrb[190].mxu0 %vm271_vm1, %v22564_v57  ;;  %17750 = vmatmul.mubr.msk.f32.gmra.mrb[190].mxu1 %vm271_vm1, %v22456_v45  ;;  %v22840_v45 = vld [vmem:[%s28320_s0 + $0xb0] sm:$0xff] }
 0x189   :  { %16810 = vmatprep.mubr.msk.f32.mxu0 %vm271_vm1, %v22569_v58  ;;  %17752 = vmatprep.mubr.msk.f32.mxu1 %vm271_vm1, %v22461_v46  ;;  %v22829_v46 = vld [vmem:[%s28320_s0 + $0xa8] sm:$0xff]  ;;  %28740 = vst [vmem:[#allocation36_spill] sm:$0xff] %v22840_v45 }
 0x18a   :  { %28739 = vst [vmem:[#allocation35_spill] sm:$0xff] %v22829_v46 }
 0x18c   :  { %16811 = vmatmul.mubr.msk.f32.gmra.mrb[192].mxu0 %vm271_vm1, %v22582_v59  ;;  %17753 = vmatmul.mubr.msk.f32.gmra.mrb[192].mxu1 %vm271_vm1, %v22474_v47  ;;  %v22818_v47 = vld [vmem:[%s28320_s0 + $0xa0] sm:$0xff] }
 0x18d   :  { %16813 = vmatprep.mubr.msk.f32.mxu0 %vm271_vm1, %v22587_v60  ;;  %17755 = vmatprep.mubr.msk.f32.mxu1 %vm271_vm1, %v22479_v48  ;;  %v22807_v48 = vld [vmem:[%s28320_s0 + $0x98] sm:$0xff]  ;;  %28738 = vst [vmem:[#allocation34_spill] sm:$0xff] %v22818_v47 }
 0x18e   :  { %28737 = vst [vmem:[#allocation33_spill] sm:$0xff] %v22807_v48 }
 0x190   :  { %16814 = vmatmul.mubr.msk.f32.gmra.mrb[194].mxu0 %vm271_vm1, %v22600_v61  ;;  %17756 = vmatmul.mubr.msk.f32.gmra.mrb[194].mxu1 %vm271_vm1, %v22492_v49  ;;  %v22796_v49 = vld [vmem:[%s28320_s0 + $0x90] sm:$0xff] }
 0x191   :  { %16842 = vmatprep.mubr.msk.f32.mxu0 %vm271_vm1, %v22605_v62  ;;  %17758 = vmatprep.mubr.msk.f32.mxu1 %vm271_vm1, %v22497_v50  ;;  %v22785_v50 = vld [vmem:[%s28320_s0 + $0x88] sm:$0xff]  ;;  %28736 = vst [vmem:[#allocation32_spill] sm:$0xff] %v22796_v49 }
 0x192   :  { %28735 = vst [vmem:[#allocation31_spill] sm:$0xff] %v22785_v50 }
 0x194   :  { %16843 = vmatmul.mubr.msk.f32.vlgmr.msra.gmra.mrb[0].mxu0 %vm271_vm1, %v22618_v63  ;;  %17759 = vmatmul.mubr.msk.f32.gmra.mrb[196].mxu1 %vm271_vm1, %v22510_v51  ;;  %v20910_v51 = vld [vmem:[%s28320_s0 + $0x680] sm:$0xff] }
 0x195   :  { %16845 = vmatprep.mubr.msk.f32.mxu0 %vm271_vm1, %v22623_v1  ;;  %17761 = vmatprep.mubr.msk.f32.mxu1 %vm271_vm1, %v22515_v52  ;;  %v22767_v52 = vld [vmem:[%s28320_s0 + $0x678] sm:$0xff] }
 0x196   :  { %19497 = vmatpush3.bf16.msra.mxu0 %v22269_v23  ;;  %v22660_v23 = vld [vmem:[%s28320_s0 + $0x30] sm:$0xff]  ;;  %28733 = vst [vmem:[#allocation29_spill] sm:$0xff] %v22767_v52 }
 0x198   :  { %16846 = vmatmul.mubr.msk.f32.gmra.mrb[2].mxu0 %vm271_vm1, %v22636_v19  ;;  %17762 = vmatmul.mubr.msk.f32.gmra.mrb[198].mxu1 %vm271_vm1, %v22528_v53  ;;  %v22753_v53 = vld [vmem:[%s28320_s0 + $0x670] sm:$0xff] }
 0x199   :  { %16848 = vmatprep.mubr.msk.f32.mxu0 %vm271_vm1, %v22641_v20  ;;  %17764 = vmatprep.mubr.msk.f32.mxu1 %vm271_vm1, %v22533_v54  ;;  %v22739_v54 = vld [vmem:[%s28320_s0 + $0x668] sm:$0xff]  ;;  %28732 = vst [vmem:[#allocation28_spill] sm:$0xff] %v22753_v53 }
 0x19a   :  { %28731 = vst [vmem:[#allocation27_spill] sm:$0xff] %v22739_v54 }
 0x19c   :  { %16849 = vmatmul.mubr.msk.f32.gmra.mrb[4].mxu0 %vm271_vm1, %v22655_v21  ;;  %17765 = vmatmul.mubr.msk.f32.gmra.mrb[200].mxu1 %vm271_vm1, %v22546_v55  ;;  %v22682_v55 = vld [vmem:[%s28320_s0 + $0x40] sm:$0xff] }
 0x19d   :  { %16851 = vmatprep.mubr.msk.f32.mxu0 %vm271_vm1, %v22660_v23  ;;  %17767 = vmatprep.mubr.msk.f32.mxu1 %vm271_vm1, %v22551_v56  ;;  %v22691_v56 = vld [vmem:[%s28320_s0 + $0x48] sm:$0xff] }
 0x1a0   :  { %16852 = vmatmul.mubr.msk.f32.gmra.mrb[6].mxu0 %vm271_vm1, %v22673_v24  ;;  %17768 = vmatmul.mubr.msk.f32.gmra.mrb[202].mxu1 %vm271_vm1, %v22564_v57  ;;  %v22700_v57 = vld [vmem:[%s28320_s0 + $0x50] sm:$0xff] }
 0x1a1   :  { %16854 = vmatprep.mubr.msk.f32.mxu0 %vm271_vm1, %v22682_v55  ;;  %17770 = vmatprep.mubr.msk.f32.mxu1 %vm271_vm1, %v22569_v58  ;;  %v22709_v58 = vld [vmem:[%s28320_s0 + $0x58] sm:$0xff] }
 0x1a4   :  { %16855 = vmatmul.mubr.msk.f32.gmra.mrb[8].mxu0 %vm271_vm1, %v22691_v56  ;;  %17771 = vmatmul.mubr.msk.f32.gmra.mrb[204].mxu1 %vm271_vm1, %v22582_v59  ;;  %v22718_v59 = vld [vmem:[%s28320_s0 + $0x60] sm:$0xff] }
 0x1a5   :  { %16857 = vmatprep.mubr.msk.f32.mxu0 %vm271_vm1, %v22700_v57  ;;  %17773 = vmatprep.mubr.msk.f32.mxu1 %vm271_vm1, %v22587_v60  ;;  %v22725_v60 = vld [vmem:[%s28320_s0 + $0x660] sm:$0xff] }
 0x1a6   :  { %28730 = vst [vmem:[#allocation26_spill] sm:$0xff] %v22725_v60 }
 0x1a8   :  { %16858 = vmatmul.mubr.msk.f32.gmra.mrb[10].mxu0 %vm271_vm1, %v22709_v58  ;;  %17774 = vmatmul.mubr.msk.f32.gmra.mrb[206].mxu1 %vm271_vm1, %v22600_v61  ;;  %v22732_v61 = vld [vmem:[%s28320_s0 + $0x68] sm:$0xff] }
 0x1a9   :  { %16860 = vmatprep.mubr.msk.f32.mxu0 %vm271_vm1, %v22718_v59  ;;  %17776 = vmatprep.mubr.msk.f32.mxu1 %vm271_vm1, %v22725_v60  ;;  %v22746_v60 = vld [vmem:[%s28320_s0 + $0x70] sm:$0xff] }
 0x1ac   :  { %16861 = vmatmul.mubr.msk.f32.gmra.mrb[12].mxu0 %vm271_vm1, %v22732_v61  ;;  %17777 = vmatmul.mubr.msk.f32.gmra.mrb[208].mxu1 %vm271_vm1, %v22739_v54  ;;  %v22760_v54 = vld [vmem:[%s28320_s0 + $0x78] sm:$0xff] }
 0x1ad   :  { %16863 = vmatprep.mubr.msk.f32.mxu0 %vm271_vm1, %v22746_v60  ;;  %17779 = vmatprep.mubr.msk.f32.mxu1 %vm271_vm1, %v22753_v53  ;;  %v22774_v53 = vld [vmem:[%s28320_s0 + $0x80] sm:$0xff] }
 0x1ae   :  { %28734 = vst [vmem:[#allocation30_spill] sm:$0xff] %v22774_v53 }
 0x1b0   :  { %16864 = vmatmul.mubr.msk.f32.gmra.mrb[14].mxu0 %vm271_vm1, %v22760_v54  ;;  %17780 = vmatmul.mubr.msk.f32.gmra.mrb[210].mxu1 %vm271_vm1, %v22767_v52  ;;  %v20912_v52 = vld [vmem:[%s28320_s0 + $0x688] sm:$0xff] }
 0x1b1   :  { %16866 = vmatprep.mubr.msk.f32.mxu0 %vm271_vm1, %v22774_v53  ;;  %17782 = vmatprep.mubr.msk.f32.mxu1 %vm271_vm1, %v20910_v51  ;;  %v20914_v51 = vld [vmem:[%s28320_s0 + $0x690] sm:$0xff] }
 0x1b4   :  { %16867 = vmatmul.mubr.msk.f32.gmra.mrb[16].mxu0 %vm271_vm1, %v22785_v50  ;;  %17783 = vmatmul.mubr.msk.f32.gmra.mrb[212].mxu1 %vm271_vm1, %v20912_v52  ;;  %v20916_v52 = vld [vmem:[%s28320_s0 + $0x698] sm:$0xff] }
 0x1b5   :  { %16869 = vmatprep.mubr.msk.f32.mxu0 %vm271_vm1, %v22796_v49  ;;  %17785 = vmatprep.mubr.msk.f32.mxu1 %vm271_vm1, %v20914_v51  ;;  %v20918_v51 = vld [vmem:[%s28320_s0 + $0x6a0] sm:$0xff] }
 0x1b8   :  { %16870 = vmatmul.mubr.msk.f32.gmra.mrb[18].mxu0 %vm271_vm1, %v22807_v48  ;;  %17786 = vmatmul.mubr.msk.f32.gmra.mrb[214].mxu1 %vm271_vm1, %v20916_v52  ;;  %v20920_v52 = vld [vmem:[%s28320_s0 + $0x6a8] sm:$0xff] }
 0x1b9   :  { %16872 = vmatprep.mubr.msk.f32.mxu0 %vm271_vm1, %v22818_v47  ;;  %17788 = vmatprep.mubr.msk.f32.mxu1 %vm271_vm1, %v20918_v51  ;;  %v20922_v51 = vld [vmem:[%s28320_s0 + $0x6b0] sm:$0xff] }
 0x1bc   :  { %16873 = vmatmul.mubr.msk.f32.gmra.mrb[20].mxu0 %vm271_vm1, %v22829_v46  ;;  %17789 = vmatmul.mubr.msk.f32.gmra.mrb[216].mxu1 %vm271_vm1, %v20920_v52  ;;  %v20924_v52 = vld [vmem:[%s28320_s0 + $0x6b8] sm:$0xff] }
 0x1bd   :  { %16875 = vmatprep.mubr.msk.f32.mxu0 %vm271_vm1, %v22840_v45  ;;  %17791 = vmatprep.mubr.msk.f32.mxu1 %vm271_vm1, %v20922_v51  ;;  %v22871_v51 = vld [vmem:[%s28320_s0 + $0xc8] sm:$0xff] }
 0x1be   :  { %28743 = vst [vmem:[#allocation39_spill] sm:$0xff] %v22871_v51 }
 0x1c0   :  { %16876 = vmatmul.mubr.msk.f32.gmra.mrb[22].mxu0 %vm271_vm1, %v22851_v44  ;;  %17792 = vmatmul.mubr.msk.f32.gmra.mrb[218].mxu1 %vm271_vm1, %v20924_v52  ;;  %v22881_v52 = vld [vmem:[%s28320_s0 + $0xd0] sm:$0xff] }
 0x1c1   :  { %16878 = vmatprep.mubr.msk.f32.mxu0 %vm271_vm1, %v22862_v43  ;;  %17802 = vmatprep.mubr.msk.f32.mxu1 %vm271_vm1, %v22605_v62  ;;  %28744 = vst [vmem:[#allocation40_spill] sm:$0xff] %v22881_v52  ;;  %v22890_v62 = vld [vmem:[%s28320_s0 + $0xd8] sm:$0xff] }
 0x1c2   :  { %28745 = vst [vmem:[#allocation41_spill] sm:$0xff] %v22890_v62 }
 0x1c4   :  { %16879 = vmatmul.mubr.msk.f32.gmra.mrb[24].mxu0 %vm271_vm1, %v22871_v51  ;;  %17803 = vmatmul.mubr.msk.f32.vlgmr.msra.gmra.mrb[12].mxu1 %vm271_vm1, %v22618_v63  ;;  %v22908_v63 = vld [vmem:[%s28320_s0 + $0xe8] sm:$0xff] }
 0x1c5   :  { %19527 = vmatpush3.bf16.msra.mxu1 %v22279_v26  ;;  %16881 = vmatprep.mubr.msk.f32.mxu0 %vm271_vm1, %v22881_v52  ;;  %v22899_v26 = vld [vmem:[%s28320_s0 + $0xe0] sm:$0xff]  ;;  %28747 = vst [vmem:[#allocation43_spill] sm:$0xff] %v22908_v63 }
 0x1c6   :  { %17805 = vmatprep.mubr.msk.f32.mxu1 %vm271_vm1, %v22623_v1  ;;  %28746 = vst [vmem:[#allocation42_spill] sm:$0xff] %v22899_v26  ;;  %v22917_v1 = vld [vmem:[%s28320_s0 + $0xf0] sm:$0xff] }
 0x1c7   :  { %28748 = vst [vmem:[#allocation44_spill] sm:$0xff] %v22917_v1 }
 0x1c8   :  { %16882 = vmatmul.mubr.msk.f32.gmra.mrb[26].mxu0 %vm271_vm1, %v22890_v62  ;;  %17806 = vmatmul.mubr.msk.f32.gmra.mrb[14].mxu1 %vm271_vm1, %v22636_v19  ;;  %v22926_v19 = vld [vmem:[%s28320_s0 + $0xf8] sm:$0xff] }
 0x1c9   :  { %16884 = vmatprep.mubr.msk.f32.mxu0 %vm271_vm1, %v22899_v26  ;;  %17808 = vmatprep.mubr.msk.f32.mxu1 %vm271_vm1, %v22641_v20  ;;  %28749 = vst [vmem:[#allocation45_spill] sm:$0xff] %v22926_v19  ;;  %v22935_v20 = vld [vmem:[%s28320_s0 + $0x100] sm:$0xff] }
 0x1ca   :  { %28750 = vst [vmem:[#allocation46_spill] sm:$0xff] %v22935_v20 }
 0x1cc   :  { %16885 = vmatmul.mubr.msk.f32.gmra.mrb[28].mxu0 %vm271_vm1, %v22908_v63  ;;  %17809 = vmatmul.mubr.msk.f32.gmra.mrb[16].mxu1 %vm271_vm1, %v22655_v21  ;;  %v22944_v21 = vld [vmem:[%s28320_s0 + $0x108] sm:$0xff] }
 0x1cd   :  { %16887 = vmatprep.mubr.msk.f32.mxu0 %vm271_vm1, %v22917_v1  ;;  %17811 = vmatprep.mubr.msk.f32.mxu1 %vm271_vm1, %v22660_v23  ;;  %28751 = vst [vmem:[#allocation47_spill] sm:$0xff] %v22944_v21  ;;  %v22953_v23 = vld [vmem:[%s28320_s0 + $0x110] sm:$0xff] }
 0x1ce   :  { %28752 = vst [vmem:[#allocation48_spill] sm:$0xff] %v22953_v23 }
 0x1d0   :  { %16888 = vmatmul.mubr.msk.f32.gmra.mrb[30].mxu0 %vm271_vm1, %v22926_v19  ;;  %17812 = vmatmul.mubr.msk.f32.gmra.mrb[18].mxu1 %vm271_vm1, %v22673_v24  ;;  %v23034_v24 = vld [vmem:[%s28320_s0 + $0x158] sm:$0xff] }
 0x1d1   :  { %16890 = vmatprep.mubr.msk.f32.mxu0 %vm271_vm1, %v22935_v20  ;;  %17814 = vmatprep.mubr.msk.f32.mxu1 %vm271_vm1, %v22682_v55  ;;  %v22962_v55 = vld [vmem:[%s28320_s0 + $0x118] sm:$0xff] }
 0x1d2   :  { %28753 = vst [vmem:[#allocation49_spill] sm:$0xff] %v22962_v55 }
 0x1d4   :  { %16891 = vmatmul.mubr.msk.f32.gmra.mrb[32].mxu0 %vm271_vm1, %v22944_v21  ;;  %17815 = vmatmul.mubr.msk.f32.gmra.mrb[20].mxu1 %vm271_vm1, %v22691_v56  ;;  %v22971_v56 = vld [vmem:[%s28320_s0 + $0x120] sm:$0xff] }
 0x1d5   :  { %16893 = vmatprep.mubr.msk.f32.mxu0 %vm271_vm1, %v22953_v23  ;;  %17817 = vmatprep.mubr.msk.f32.mxu1 %vm271_vm1, %v22700_v57  ;;  %28754 = vst [vmem:[#allocation50_spill] sm:$0xff] %v22971_v56  ;;  %v22980_v57 = vld [vmem:[%s28320_s0 + $0x128] sm:$0xff] }
 0x1d6   :  { %28755 = vst [vmem:[#allocation51_spill] sm:$0xff] %v22980_v57 }
 0x1d8   :  { %16894 = vmatmul.mubr.msk.f32.gmra.mrb[34].mxu0 %vm271_vm1, %v22962_v55  ;;  %17818 = vmatmul.mubr.msk.f32.gmra.mrb[22].mxu1 %vm271_vm1, %v22709_v58  ;;  %v22989_v58 = vld [vmem:[%s28320_s0 + $0x130] sm:$0xff] }
 0x1d9   :  { %16896 = vmatprep.mubr.msk.f32.mxu0 %vm271_vm1, %v22971_v56  ;;  %17820 = vmatprep.mubr.msk.f32.mxu1 %vm271_vm1, %v22718_v59  ;;  %28756 = vst [vmem:[#allocation52_spill] sm:$0xff] %v22989_v58  ;;  %v22998_v59 = vld [vmem:[%s28320_s0 + $0x138] sm:$0xff] }
 0x1da   :  { %28757 = vst [vmem:[#allocation53_spill] sm:$0xff] %v22998_v59 }
 0x1dc   :  { %16897 = vmatmul.mubr.msk.f32.gmra.mrb[36].mxu0 %vm271_vm1, %v22980_v57  ;;  %17821 = vmatmul.mubr.msk.f32.gmra.mrb[24].mxu1 %vm271_vm1, %v22732_v61  ;;  %v23007_v61 = vld [vmem:[%s28320_s0 + $0x140] sm:$0xff] }
 0x1dd   :  { %16899 = vmatprep.mubr.msk.f32.mxu0 %vm271_vm1, %v22989_v58  ;;  %17823 = vmatprep.mubr.msk.f32.mxu1 %vm271_vm1, %v22746_v60  ;;  %28758 = vst [vmem:[#allocation54_spill] sm:$0xff] %v23007_v61  ;;  %v23016_v60 = vld [vmem:[%s28320_s0 + $0x148] sm:$0xff] }
 0x1de   :  { %28759 = vst [vmem:[#allocation55_spill] sm:$0xff] %v23016_v60 }
 0x1e0   :  { %16900 = vmatmul.mubr.msk.f32.gmra.mrb[38].mxu0 %vm271_vm1, %v22998_v59  ;;  %17824 = vmatmul.mubr.msk.f32.gmra.mrb[26].mxu1 %vm271_vm1, %v22760_v54  ;;  %v23025_v54 = vld [vmem:[%s28320_s0 + $0x150] sm:$0xff] }
 0x1e1   :  { %16902 = vmatprep.mubr.msk.f32.mxu0 %vm271_vm1, %v23007_v61  ;;  %17826 = vmatprep.mubr.msk.f32.mxu1 %vm271_vm1, %v22774_v53  ;;  %v13124_v53 = vld [vmem:[%s28319_s1 + $0x58] sm:$0xf] }
 0x1e4   :  { %16903 = vmatmul.mubr.msk.f32.gmra.mrb[40].mxu0 %vm271_vm1, %v23016_v60  ;;  %17827 = vmatmul.mubr.msk.f32.gmra.mrb[28].mxu1 %vm271_vm1, %v22785_v50  ;;  %v23043_v50 = vld [vmem:[%s28320_s0 + $0x160] sm:$0xff] }
 0x1e5   :  { %16905 = vmatprep.mubr.msk.f32.mxu0 %vm271_vm1, %v23025_v54  ;;  %17829 = vmatprep.mubr.msk.f32.mxu1 %vm271_vm1, %v22796_v49  ;;  %v23052_v49 = vld [vmem:[%s28320_s0 + $0x168] sm:$0xff] }
 0x1e8   :  { %16906 = vmatmul.mubr.msk.f32.gmra.mrb[42].mxu0 %vm271_vm1, %v23034_v24  ;;  %17830 = vmatmul.mubr.msk.f32.gmra.mrb[30].mxu1 %vm271_vm1, %v22807_v48  ;;  %v23061_v48 = vld [vmem:[%s28320_s0 + $0x170] sm:$0xff] }
 0x1e9   :  { %16908 = vmatprep.mubr.msk.f32.mxu0 %vm271_vm1, %v23043_v50  ;;  %17832 = vmatprep.mubr.msk.f32.mxu1 %vm271_vm1, %v22818_v47  ;;  %28760 = vst [vmem:[#allocation56_spill] sm:$0xff] %v23061_v48  ;;  %v23070_v47 = vld [vmem:[%s28320_s0 + $0x178] sm:$0xff] }
 0x1ea   :  { %28761 = vst [vmem:[#allocation57_spill] sm:$0xff] %v23070_v47 }
 0x1ec   :  { %16909 = vmatmul.mubr.msk.f32.gmra.mrb[44].mxu0 %vm271_vm1, %v23052_v49  ;;  %17833 = vmatmul.mubr.msk.f32.gmra.mrb[32].mxu1 %vm271_vm1, %v22829_v46  ;;  %v23079_v46 = vld [vmem:[%s28320_s0 + $0x180] sm:$0xff] }
 0x1ed   :  { %16911 = vmatprep.mubr.msk.f32.mxu0 %vm271_vm1, %v23061_v48  ;;  %17835 = vmatprep.mubr.msk.f32.mxu1 %vm271_vm1, %v22840_v45  ;;  %28762 = vst [vmem:[#allocation58_spill] sm:$0xff] %v23079_v46  ;;  %v23088_v45 = vld [vmem:[%s28320_s0 + $0x188] sm:$0xff] }
 0x1ee   :  { %28763 = vst [vmem:[#allocation59_spill] sm:$0xff] %v23088_v45 }
 0x1f0   :  { %16912 = vmatmul.mubr.msk.f32.gmra.mrb[46].mxu0 %vm271_vm1, %v23070_v47  ;;  %17836 = vmatmul.mubr.msk.f32.gmra.mrb[34].mxu1 %vm271_vm1, %v22851_v44  ;;  %v23097_v44 = vld [vmem:[%s28320_s0 + $0x190] sm:$0xff] }
 0x1f1   :  { %16914 = vmatprep.mubr.msk.f32.mxu0 %vm271_vm1, %v23079_v46  ;;  %17838 = vmatprep.mubr.msk.f32.mxu1 %vm271_vm1, %v22862_v43  ;;  %28764 = vst [vmem:[#allocation60_spill] sm:$0xff] %v23097_v44  ;;  %v23106_v43 = vld [vmem:[%s28320_s0 + $0x198] sm:$0xff] }
 0x1f2   :  { %28765 = vst [vmem:[#allocation61_spill] sm:$0xff] %v23106_v43 }
 0x1f4   :  { %16915 = vmatmul.mubr.msk.f32.gmra.mrb[48].mxu0 %vm271_vm1, %v23088_v45  ;;  %17839 = vmatmul.mubr.msk.f32.gmra.mrb[36].mxu1 %vm271_vm1, %v22871_v51  ;;  %v23115_v51 = vld [vmem:[%s28320_s0 + $0x1a0] sm:$0xff] }
 0x1f5   :  { %16917 = vmatprep.mubr.msk.f32.mxu0 %vm271_vm1, %v23097_v44  ;;  %17841 = vmatprep.mubr.msk.f32.mxu1 %vm271_vm1, %v22881_v52  ;;  %28766 = vst [vmem:[#allocation62_spill] sm:$0xff] %v23115_v51  ;;  %v23124_v52 = vld [vmem:[%s28320_s0 + $0x1a8] sm:$0xff] }
 0x1f6   :  { %28767 = vst [vmem:[#allocation63_spill] sm:$0xff] %v23124_v52 }
 0x1f8   :  { %16918 = vmatmul.mubr.msk.f32.gmra.mrb[50].mxu0 %vm271_vm1, %v23106_v43  ;;  %17842 = vmatmul.mubr.msk.f32.gmra.mrb[38].mxu1 %vm271_vm1, %v22890_v62  ;;  %v23133_v62 = vld [vmem:[%s28320_s0 + $0x1b0] sm:$0xff] }
 0x1f9   :  { %16920 = vmatprep.mubr.msk.f32.mxu0 %vm271_vm1, %v23115_v51  ;;  %17844 = vmatprep.mubr.msk.f32.mxu1 %vm271_vm1, %v22899_v26  ;;  %28768 = vst [vmem:[#allocation64_spill] sm:$0xff] %v23133_v62  ;;  %v23142_v26 = vld [vmem:[%s28320_s0 + $0x1b8] sm:$0xff] }
 0x1fa   :  { %28769 = vst [vmem:[#allocation65_spill] sm:$0xff] %v23142_v26 }
 0x1fc   :  { %16921 = vmatmul.mubr.msk.f32.gmra.mrb[52].mxu0 %vm271_vm1, %v23124_v52  ;;  %17845 = vmatmul.mubr.msk.f32.gmra.mrb[40].mxu1 %vm271_vm1, %v22908_v63  ;;  %v23151_v63 = vld [vmem:[%s28320_s0 + $0x1c0] sm:$0xff] }
 0x1fd   :  { %16923 = vmatprep.mubr.msk.f32.mxu0 %vm271_vm1, %v23133_v62  ;;  %17847 = vmatprep.mubr.msk.f32.mxu1 %vm271_vm1, %v22917_v1  ;;  %28770 = vst [vmem:[#allocation66_spill] sm:$0xff] %v23151_v63  ;;  %v23160_v1 = vld [vmem:[%s28320_s0 + $0x1c8] sm:$0xff] }
 0x1fe   :  { %28771 = vst [vmem:[#allocation67_spill] sm:$0xff] %v23160_v1 }
 0x200   :  { %16924 = vmatmul.mubr.msk.f32.gmra.mrb[54].mxu0 %vm271_vm1, %v23142_v26  ;;  %17848 = vmatmul.mubr.msk.f32.gmra.mrb[42].mxu1 %vm271_vm1, %v22926_v19  ;;  %v23169_v19 = vld [vmem:[%s28320_s0 + $0x1d0] sm:$0xff] }
 0x201   :  { %16926 = vmatprep.mubr.msk.f32.mxu0 %vm271_vm1, %v23151_v63  ;;  %17850 = vmatprep.mubr.msk.f32.mxu1 %vm271_vm1, %v22935_v20  ;;  %28772 = vst [vmem:[#allocation68_spill] sm:$0xff] %v23169_v19  ;;  %v23178_v20 = vld [vmem:[%s28320_s0 + $0x1d8] sm:$0xff] }
 0x202   :  { %28773 = vst [vmem:[#allocation69_spill] sm:$0xff] %v23178_v20 }
 0x204   :  { %16927 = vmatmul.mubr.msk.f32.gmra.mrb[56].mxu0 %vm271_vm1, %v23160_v1  ;;  %17851 = vmatmul.mubr.msk.f32.gmra.mrb[44].mxu1 %vm271_vm1, %v22944_v21  ;;  %v23187_v21 = vld [vmem:[%s28320_s0 + $0x1e0] sm:$0xff] }
 0x205   :  { %16929 = vmatprep.mubr.msk.f32.mxu0 %vm271_vm1, %v23169_v19  ;;  %17853 = vmatprep.mubr.msk.f32.mxu1 %vm271_vm1, %v22953_v23  ;;  %28774 = vst [vmem:[#allocation70_spill] sm:$0xff] %v23187_v21  ;;  %v23196_v23 = vld [vmem:[%s28320_s0 + $0x1e8] sm:$0xff] }
 0x206   :  { %28775 = vst [vmem:[#allocation71_spill] sm:$0xff] %v23196_v23 }
 0x208   :  { %16930 = vmatmul.mubr.msk.f32.gmra.mrb[58].mxu0 %vm271_vm1, %v23178_v20  ;;  %17854 = vmatmul.mubr.msk.f32.gmra.mrb[46].mxu1 %vm271_vm1, %v22962_v55  ;;  %v23205_v55 = vld [vmem:[%s28320_s0 + $0x1f0] sm:$0xff] }
 0x209   :  { %16932 = vmatprep.mubr.msk.f32.mxu0 %vm271_vm1, %v23187_v21  ;;  %17856 = vmatprep.mubr.msk.f32.mxu1 %vm271_vm1, %v22971_v56  ;;  %28776 = vst [vmem:[#allocation72_spill] sm:$0xff] %v23205_v55  ;;  %v23214_v56 = vld [vmem:[%s28320_s0 + $0x1f8] sm:$0xff] }
 0x20a   :  { %28777 = vst [vmem:[#allocation73_spill] sm:$0xff] %v23214_v56 }
 0x20c   :  { %16933 = vmatmul.mubr.msk.f32.gmra.mrb[60].mxu0 %vm271_vm1, %v23196_v23  ;;  %17857 = vmatmul.mubr.msk.f32.gmra.mrb[48].mxu1 %vm271_vm1, %v22980_v57  ;;  %v23223_v57 = vld [vmem:[%s28320_s0 + $0x200] sm:$0xff] }
 0x20d   :  { %16935 = vmatprep.mubr.msk.f32.mxu0 %vm271_vm1, %v23205_v55  ;;  %17859 = vmatprep.mubr.msk.f32.mxu1 %vm271_vm1, %v22989_v58  ;;  %28778 = vst [vmem:[#allocation74_spill] sm:$0xff] %v23223_v57  ;;  %v23232_v58 = vld [vmem:[%s28320_s0 + $0x208] sm:$0xff] }
 0x20e   :  { %28779 = vst [vmem:[#allocation75_spill] sm:$0xff] %v23232_v58 }
 0x210   :  { %16936 = vmatmul.mubr.msk.f32.gmra.mrb[62].mxu0 %vm271_vm1, %v23214_v56  ;;  %17860 = vmatmul.mubr.msk.f32.gmra.mrb[50].mxu1 %vm271_vm1, %v22998_v59  ;;  %v13123_v59 = vld [vmem:[%s28319_s1 + $0x50] sm:$0xff] }
 0x211   :  { %16938 = vmatprep.mubr.msk.f32.mxu0 %vm271_vm1, %v23223_v57  ;;  %17862 = vmatprep.mubr.msk.f32.mxu1 %vm271_vm1, %v23007_v61  ;;  %v13758_v61 = vld [vmem:[%s28321_s2 + $0x50] sm:$0xff] }
 0x212   :  { %v19528_v40 = vpack.c.bf16 %v13759_v41, %v13758_v61  ;;  %v23288_v41 = vld [vmem:[%s28320_s0 + $0x228] sm:$0xff]  ;;  %v23315_v61 = vld [vmem:[%s28320_s0 + $0x240] sm:$0xff] }
 0x213   :  { %28783 = vst [vmem:[#allocation79_spill] sm:$0xff] %v23288_v41  ;;  %28786 = vst [vmem:[#allocation82_spill] sm:$0xff] %v23315_v61 }
 0x214   :  { %16939 = vmatmul.mubr.msk.f32.gmra.mrb[64].mxu0 %vm271_vm1, %v23232_v58  ;;  %17863 = vmatmul.mubr.msk.f32.gmra.mrb[52].mxu1 %vm271_vm1, %v23016_v60  ;;  %v19498_v60 = vpack.c.bf16 %v13124_v53, %v13123_v59  ;;  %v23273_v53 = vld [vmem:[%s28320_s0 + $0x220] sm:$0xff]  ;;  %v23297_v59 = vld [vmem:[%s28320_s0 + $0x230] sm:$0xff] }
 0x215   :  { %16941 = vmatprep.mubr.msk.f32.mxu0 %vm271_vm1, %v23250_v42  ;;  %17865 = vmatprep.mubr.msk.f32.mxu1 %vm271_vm1, %v23025_v54  ;;  %28782 = vst [vmem:[#allocation78_spill] sm:$0xff] %v23273_v53  ;;  %28784 = vst [vmem:[#allocation80_spill] sm:$0xff] %v23297_v59 }
 0x216   :  { %19500 = vmatprep.subr.msk.bf16.mxu0 %vm21301_vm3, %v19498_v60  ;;  %19530 = vmatprep.subr.msk.bf16.mxu1 %vm21301_vm3, %v19528_v40 }
 0x217   :  { %19503 = vmatpush3.bf16.msk.msra.mxu0 %vm21301_vm3, %v19498_v60  ;;  %19533 = vmatpush3.bf16.msk.msra.mxu1 %vm21301_vm3, %v19528_v40  ;;  %v23306_v40 = vld [vmem:[%s28320_s0 + $0x238] sm:$0xff]  ;;  %v23324_v60 = vld [vmem:[%s28320_s0 + $0x248] sm:$0xff] }
 0x218   :  { %16942 = vmatmul.mubr.msk.f32.gmra.mrb[66].mxu0 %vm271_vm1, %v23264_v39  ;;  %17866 = vmatmul.mubr.msk.f32.gmra.mrb[54].mxu1 %vm271_vm1, %v23034_v24  ;;  %28785 = vst [vmem:[#allocation81_spill] sm:$0xff] %v23306_v40  ;;  %28787 = vst [vmem:[#allocation83_spill] sm:$0xff] %v23324_v60 }
 0x219   :  { %16944 = vmatprep.mubr.msk.f32.mxu0 %vm271_vm1, %v23273_v53  ;;  %17868 = vmatprep.mubr.msk.f32.mxu1 %vm271_vm1, %v23043_v50 }
 0x21c   :  { %16945 = vmatmul.mubr.msk.f32.gmra.mrb[68].mxu0 %vm271_vm1, %v23288_v41  ;;  %17869 = vmatmul.mubr.msk.f32.gmra.mrb[56].mxu1 %vm271_vm1, %v23052_v49 }
 0x21d   :  { %16947 = vmatprep.mubr.msk.f32.mxu0 %vm271_vm1, %v23297_v59  ;;  %17871 = vmatprep.mubr.msk.f32.mxu1 %vm271_vm1, %v23061_v48  ;;  %v23603_v48 = vld [vmem:[%s28320_s0 + $0x340] sm:$0xff] }
 0x220   :  { %16948 = vmatmul.mubr.msk.f32.gmra.mrb[70].mxu0 %vm271_vm1, %v23306_v40  ;;  %17872 = vmatmul.mubr.msk.f32.gmra.mrb[58].mxu1 %vm271_vm1, %v23070_v47  ;;  %v23594_v47 = vld [vmem:[%s28320_s0 + $0x338] sm:$0xff] }
 0x221   :  { %16950 = vmatprep.mubr.msk.f32.mxu0 %vm271_vm1, %v23315_v61  ;;  %17874 = vmatprep.mubr.msk.f32.mxu1 %vm271_vm1, %v23079_v46  ;;  %v23342_v46 = vld [vmem:[%s28320_s0 + $0x258] sm:$0xff]  ;;  %28817 = vst [vmem:[#allocation113_spill] sm:$0xff] %v23594_v47 }
 0x222   :  { %28789 = vst [vmem:[#allocation85_spill] sm:$0xff] %v23342_v46 }
 0x224   :  { %16951 = vmatmul.mubr.msk.f32.gmra.mrb[72].mxu0 %vm271_vm1, %v23324_v60  ;;  %17875 = vmatmul.mubr.msk.f32.gmra.mrb[60].mxu1 %vm271_vm1, %v23088_v45  ;;  %v23351_v45 = vld [vmem:[%s28320_s0 + $0x260] sm:$0xff] }
 0x225   :  { %16953 = vmatprep.mubr.msk.f32.mxu0 %vm271_vm1, %v23333_v7  ;;  %17877 = vmatprep.mubr.msk.f32.mxu1 %vm271_vm1, %v23097_v44  ;;  %28790 = vst [vmem:[#allocation86_spill] sm:$0xff] %v23351_v45  ;;  %v23360_v44 = vld [vmem:[%s28320_s0 + $0x268] sm:$0xff] }
 0x226   :  { %28791 = vst [vmem:[#allocation87_spill] sm:$0xff] %v23360_v44 }
 0x228   :  { %16954 = vmatmul.mubr.msk.f32.gmra.mrb[74].mxu0 %vm271_vm1, %v23342_v46  ;;  %17878 = vmatmul.mubr.msk.f32.gmra.mrb[62].mxu1 %vm271_vm1, %v23106_v43  ;;  %v23369_v43 = vld [vmem:[%s28320_s0 + $0x270] sm:$0xff] }
 0x229   :  { %16956 = vmatprep.mubr.msk.f32.mxu0 %vm271_vm1, %v23351_v45  ;;  %17880 = vmatprep.mubr.msk.f32.mxu1 %vm271_vm1, %v23115_v51  ;;  %28792 = vst [vmem:[#allocation88_spill] sm:$0xff] %v23369_v43  ;;  %v23378_v51 = vld [vmem:[%s28320_s0 + $0x278] sm:$0xff] }
 0x22a   :  { %28793 = vst [vmem:[#allocation89_spill] sm:$0xff] %v23378_v51 }
 0x22c   :  { %16957 = vmatmul.mubr.msk.f32.gmra.mrb[76].mxu0 %vm271_vm1, %v23360_v44  ;;  %17881 = vmatmul.mubr.msk.f32.gmra.mrb[64].mxu1 %vm271_vm1, %v23124_v52  ;;  %v23387_v52 = vld [vmem:[%s28320_s0 + $0x280] sm:$0xff] }
 0x22d   :  { %16959 = vmatprep.mubr.msk.f32.mxu0 %vm271_vm1, %v23369_v43  ;;  %17883 = vmatprep.mubr.msk.f32.mxu1 %vm271_vm1, %v23133_v62  ;;  %28794 = vst [vmem:[#allocation90_spill] sm:$0xff] %v23387_v52  ;;  %v23396_v62 = vld [vmem:[%s28320_s0 + $0x288] sm:$0xff] }
 0x22e   :  { %28795 = vst [vmem:[#allocation91_spill] sm:$0xff] %v23396_v62 }
 0x230   :  { %16960 = vmatmul.mubr.msk.f32.gmra.mrb[78].mxu0 %vm271_vm1, %v23378_v51  ;;  %17884 = vmatmul.mubr.msk.f32.gmra.mrb[66].mxu1 %vm271_vm1, %v23142_v26  ;;  %v23405_v26 = vld [vmem:[%s28320_s0 + $0x290] sm:$0xff] }
 0x231   :  { %16962 = vmatprep.mubr.msk.f32.mxu0 %vm271_vm1, %v23387_v52  ;;  %17886 = vmatprep.mubr.msk.f32.mxu1 %vm271_vm1, %v23151_v63  ;;  %28796 = vst [vmem:[#allocation92_spill] sm:$0xff] %v23405_v26  ;;  %v23414_v63 = vld [vmem:[%s28320_s0 + $0x298] sm:$0xff] }
 0x232   :  { %28797 = vst [vmem:[#allocation93_spill] sm:$0xff] %v23414_v63 }
 0x234   :  { %16963 = vmatmul.mubr.msk.f32.gmra.mrb[80].mxu0 %vm271_vm1, %v23396_v62  ;;  %17887 = vmatmul.mubr.msk.f32.gmra.mrb[68].mxu1 %vm271_vm1, %v23160_v1  ;;  %v23423_v1 = vld [vmem:[%s28320_s0 + $0x2a0] sm:$0xff] }
 0x235   :  { %16965 = vmatprep.mubr.msk.f32.mxu0 %vm271_vm1, %v23405_v26  ;;  %17889 = vmatprep.mubr.msk.f32.mxu1 %vm271_vm1, %v23169_v19  ;;  %28798 = vst [vmem:[#allocation94_spill] sm:$0xff] %v23423_v1  ;;  %v23432_v19 = vld [vmem:[%s28320_s0 + $0x2a8] sm:$0xff] }
 0x236   :  { %28799 = vst [vmem:[#allocation95_spill] sm:$0xff] %v23432_v19 }
 0x238   :  { %16966 = vmatmul.mubr.msk.f32.gmra.mrb[82].mxu0 %vm271_vm1, %v23414_v63  ;;  %17890 = vmatmul.mubr.msk.f32.gmra.mrb[70].mxu1 %vm271_vm1, %v23178_v20  ;;  %v23441_v20 = vld [vmem:[%s28320_s0 + $0x2b0] sm:$0xff] }
 0x239   :  { %16968 = vmatprep.mubr.msk.f32.mxu0 %vm271_vm1, %v23423_v1  ;;  %17892 = vmatprep.mubr.msk.f32.mxu1 %vm271_vm1, %v23187_v21  ;;  %28800 = vst [vmem:[#allocation96_spill] sm:$0xff] %v23441_v20  ;;  %v23450_v21 = vld [vmem:[%s28320_s0 + $0x2b8] sm:$0xff] }
 0x23a   :  { %28801 = vst [vmem:[#allocation97_spill] sm:$0xff] %v23450_v21 }
 0x23c   :  { %16969 = vmatmul.mubr.msk.f32.gmra.mrb[84].mxu0 %vm271_vm1, %v23432_v19  ;;  %17893 = vmatmul.mubr.msk.f32.gmra.mrb[72].mxu1 %vm271_vm1, %v23196_v23  ;;  %v23459_v23 = vld [vmem:[%s28320_s0 + $0x2c0] sm:$0xff] }
 0x23d   :  { %16971 = vmatprep.mubr.msk.f32.mxu0 %vm271_vm1, %v23441_v20  ;;  %17895 = vmatprep.mubr.msk.f32.mxu1 %vm271_vm1, %v23205_v55  ;;  %28802 = vst [vmem:[#allocation98_spill] sm:$0xff] %v23459_v23  ;;  %v23468_v55 = vld [vmem:[%s28320_s0 + $0x2c8] sm:$0xff] }
 0x23e   :  { %28803 = vst [vmem:[#allocation99_spill] sm:$0xff] %v23468_v55 }
 0x240   :  { %16972 = vmatmul.mubr.msk.f32.gmra.mrb[86].mxu0 %vm271_vm1, %v23450_v21  ;;  %17896 = vmatmul.mubr.msk.f32.gmra.mrb[74].mxu1 %vm271_vm1, %v23214_v56  ;;  %v23477_v56 = vld [vmem:[%s28320_s0 + $0x2d0] sm:$0xff] }
 0x241   :  { %16974 = vmatprep.mubr.msk.f32.mxu0 %vm271_vm1, %v23459_v23  ;;  %17898 = vmatprep.mubr.msk.f32.mxu1 %vm271_vm1, %v23223_v57  ;;  %28804 = vst [vmem:[#allocation100_spill] sm:$0xff] %v23477_v56  ;;  %v23486_v57 = vld [vmem:[%s28320_s0 + $0x2d8] sm:$0xff] }
 0x242   :  { %28805 = vst [vmem:[#allocation101_spill] sm:$0xff] %v23486_v57 }
 0x244   :  { %16975 = vmatmul.mubr.msk.f32.gmra.mrb[88].mxu0 %vm271_vm1, %v23468_v55  ;;  %17899 = vmatmul.mubr.msk.f32.gmra.mrb[76].mxu1 %vm271_vm1, %v23232_v58  ;;  %v23495_v58 = vld [vmem:[%s28320_s0 + $0x2e0] sm:$0xff] }
 0x245   :  { %16977 = vmatprep.mubr.msk.f32.mxu0 %vm271_vm1, %v23477_v56  ;;  %17901 = vmatprep.mubr.msk.f32.mxu1 %vm271_vm1, %v23250_v42  ;;  %28806 = vst [vmem:[#allocation102_spill] sm:$0xff] %v23495_v58  ;;  %v23504_v42 = vld [vmem:[%s28320_s0 + $0x2e8] sm:$0xff] }
 0x246   :  { %28807 = vst [vmem:[#allocation103_spill] sm:$0xff] %v23504_v42 }
 0x248   :  { %16978 = vmatmul.mubr.msk.f32.gmra.mrb[90].mxu0 %vm271_vm1, %v23486_v57  ;;  %17902 = vmatmul.mubr.msk.f32.gmra.mrb[78].mxu1 %vm271_vm1, %v23264_v39  ;;  %v23513_v39 = vld [vmem:[%s28320_s0 + $0x2f0] sm:$0xff] }
 0x249   :  { %16980 = vmatprep.mubr.msk.f32.mxu0 %vm271_vm1, %v23495_v58  ;;  %17904 = vmatprep.mubr.msk.f32.mxu1 %vm271_vm1, %v23273_v53  ;;  %28808 = vst [vmem:[#allocation104_spill] sm:$0xff] %v23513_v39  ;;  %v23522_v53 = vld [vmem:[%s28320_s0 + $0x2f8] sm:$0xff] }
 0x24a   :  { %28809 = vst [vmem:[#allocation105_spill] sm:$0xff] %v23522_v53 }
 0x24c   :  { %16981 = vmatmul.mubr.msk.f32.gmra.mrb[92].mxu0 %vm271_vm1, %v23504_v42  ;;  %17905 = vmatmul.mubr.msk.f32.gmra.mrb[80].mxu1 %vm271_vm1, %v23288_v41  ;;  %v23531_v41 = vld [vmem:[%s28320_s0 + $0x300] sm:$0xff] }
 0x24d   :  { %16983 = vmatprep.mubr.msk.f32.mxu0 %vm271_vm1, %v23513_v39  ;;  %17907 = vmatprep.mubr.msk.f32.mxu1 %vm271_vm1, %v23297_v59  ;;  %28810 = vst [vmem:[#allocation106_spill] sm:$0xff] %v23531_v41  ;;  %v23540_v59 = vld [vmem:[%s28320_s0 + $0x308] sm:$0xff] }
 0x24e   :  { %28811 = vst [vmem:[#allocation107_spill] sm:$0xff] %v23540_v59 }
 0x250   :  { %16984 = vmatmul.mubr.msk.f32.gmra.mrb[94].mxu0 %vm271_vm1, %v23522_v53  ;;  %17908 = vmatmul.mubr.msk.f32.gmra.mrb[82].mxu1 %vm271_vm1, %v23306_v40  ;;  %v23549_v40 = vld [vmem:[%s28320_s0 + $0x310] sm:$0xff] }
 0x251   :  { %16986 = vmatprep.mubr.msk.f32.mxu0 %vm271_vm1, %v23531_v41  ;;  %17910 = vmatprep.mubr.msk.f32.mxu1 %vm271_vm1, %v23315_v61  ;;  %28812 = vst [vmem:[#allocation108_spill] sm:$0xff] %v23549_v40  ;;  %v23558_v61 = vld [vmem:[%s28320_s0 + $0x318] sm:$0xff] }
 0x252   :  { %28813 = vst [vmem:[#allocation109_spill] sm:$0xff] %v23558_v61 }
 0x254   :  { %16987 = vmatmul.mubr.msk.f32.gmra.mrb[96].mxu0 %vm271_vm1, %v23540_v59  ;;  %17911 = vmatmul.mubr.msk.f32.gmra.mrb[84].mxu1 %vm271_vm1, %v23324_v60  ;;  %v23567_v60 = vld [vmem:[%s28320_s0 + $0x320] sm:$0xff] }
 0x255   :  { %16989 = vmatprep.mubr.msk.f32.mxu0 %vm271_vm1, %v23549_v40  ;;  %17913 = vmatprep.mubr.msk.f32.mxu1 %vm271_vm1, %v23333_v7  ;;  %28814 = vst [vmem:[#allocation110_spill] sm:$0xff] %v23567_v60  ;;  %v23576_v7 = vld [vmem:[%s28320_s0 + $0x328] sm:$0xff] }
 0x256   :  { %28815 = vst [vmem:[#allocation111_spill] sm:$0xff] %v23576_v7 }
 0x258   :  { %16990 = vmatmul.mubr.msk.f32.gmra.mrb[98].mxu0 %vm271_vm1, %v23558_v61  ;;  %17914 = vmatmul.mubr.msk.f32.gmra.mrb[86].mxu1 %vm271_vm1, %v23342_v46  ;;  %v23585_v46 = vld [vmem:[%s28320_s0 + $0x330] sm:$0xff] }
 0x259   :  { %16992 = vmatprep.mubr.msk.f32.mxu0 %vm271_vm1, %v23567_v60  ;;  %17916 = vmatprep.mubr.msk.f32.mxu1 %vm271_vm1, %v23351_v45  ;;  %28816 = vst [vmem:[#allocation112_spill] sm:$0xff] %v23585_v46 }
 0x25c   :  { %16993 = vmatmul.mubr.msk.f32.gmra.mrb[100].mxu0 %vm271_vm1, %v23576_v7  ;;  %17917 = vmatmul.mubr.msk.f32.gmra.mrb[88].mxu1 %vm271_vm1, %v23360_v44 }
 0x25d   :  { %16995 = vmatprep.mubr.msk.f32.mxu0 %vm271_vm1, %v23585_v46  ;;  %17919 = vmatprep.mubr.msk.f32.mxu1 %vm271_vm1, %v23369_v43  ;;  %v23612_v43 = vld [vmem:[%s28320_s0 + $0x348] sm:$0xff] }
 0x25f   :  { %v16812_v45 = vpop.f32.mrb[192].mxu0 }
 0x260   :  { %16996 = vmatmul.mubr.msk.f32.gmra.mrb[102].mxu0 %vm271_vm1, %v23594_v47  ;;  %17920 = vmatmul.mubr.msk.f32.gmra.mrb[90].mxu1 %vm271_vm1, %v23378_v51  ;;  %v1926_v44 = vpop.f32.mrb[193].mxu0  ;;  %v23621_v51 = vld [vmem:[%s28320_s0 + $0x350] sm:$0xff] }
 0x261   :  { %16998 = vmatprep.mubr.msk.f32.mxu0 %vm271_vm1, %v23603_v48  ;;  %17922 = vmatprep.mubr.msk.f32.mxu1 %vm271_vm1, %v23387_v52  ;;  %28818 = vst [vmem:[#allocation114_spill] sm:$0xff] %v23621_v51  ;;  %v23711_v52 = vld [vmem:[%s28320_s0 + $0x3a0] sm:$0xff] }
 0x262   :  { %28828 = vst [vmem:[#allocation124_spill] sm:$0xff] %v23711_v52 }
 0x263   :  { %v16815_v45 = vpop.f32.mrb[194].mxu0 }
 0x264   :  { %16999 = vmatmul.mubr.msk.f32.gmra.mrb[104].mxu0 %vm271_vm1, %v23612_v43  ;;  %17923 = vmatmul.mubr.msk.f32.gmra.mrb[92].mxu1 %vm271_vm1, %v23396_v62  ;;  %v1934_v44 = vpop.f32.mrb[195].mxu0  ;;  %v23630_v45 = vld [vmem:[%s28320_s0 + $0x358] sm:$0xff] }
 0x265   :  { %17001 = vmatprep.mubr.msk.f32.mxu0 %vm271_vm1, %v23621_v51  ;;  %17925 = vmatprep.mubr.msk.f32.mxu1 %vm271_vm1, %v23405_v26  ;;  %28819 = vst [vmem:[#allocation115_spill] sm:$0xff] %v23630_v45  ;;  %v23639_v44 = vld [vmem:[%s28320_s0 + $0x360] sm:$0xff]  ;;  %v23648_v26 = vld [vmem:[%s28320_s0 + $0x368] sm:$0xff]  ;;  %v23702_v62 = vld [vmem:[%s28320_s0 + $0x398] sm:$0xff] }
 0x266   :  { %28820 = vst [vmem:[#allocation116_spill] sm:$0xff] %v23639_v44  ;;  %28821 = vst [vmem:[#allocation117_spill] sm:$0xff] %v23648_v26 }
 0x267   :  { %28827 = vst [vmem:[#allocation123_spill] sm:$0xff] %v23702_v62 }
 0x268   :  { %17002 = vmatmul.mubr.msk.f32.gmra.mrb[106].mxu0 %vm271_vm1, %v23630_v45  ;;  %17926 = vmatmul.mubr.msk.f32.gmra.mrb[94].mxu1 %vm271_vm1, %v23414_v63  ;;  %v23657_v63 = vld [vmem:[%s28320_s0 + $0x370] sm:$0xff] }
 0x269   :  { %17004 = vmatprep.mubr.msk.f32.mxu0 %vm271_vm1, %v23639_v44  ;;  %17928 = vmatprep.mubr.msk.f32.mxu1 %vm271_vm1, %v23423_v1  ;;  %28822 = vst [vmem:[#allocation118_spill] sm:$0xff] %v23657_v63  ;;  %v23666_v1 = vld [vmem:[%s28320_s0 + $0x378] sm:$0xff] }
 0x26a   :  { %28823 = vst [vmem:[#allocation119_spill] sm:$0xff] %v23666_v1 }
 0x26c   :  { %17005 = vmatmul.mubr.msk.f32.gmra.mrb[108].mxu0 %vm271_vm1, %v23648_v26  ;;  %17929 = vmatmul.mubr.msk.f32.gmra.mrb[96].mxu1 %vm271_vm1, %v23432_v19  ;;  %v23675_v19 = vld [vmem:[%s28320_s0 + $0x380] sm:$0xff] }
 0x26d   :  { %17007 = vmatprep.mubr.msk.f32.mxu0 %vm271_vm1, %v23657_v63  ;;  %17931 = vmatprep.mubr.msk.f32.mxu1 %vm271_vm1, %v23441_v20  ;;  %28824 = vst [vmem:[#allocation120_spill] sm:$0xff] %v23675_v19  ;;  %v23684_v20 = vld [vmem:[%s28320_s0 + $0x388] sm:$0xff] }
 0x26e   :  { %28825 = vst [vmem:[#allocation121_spill] sm:$0xff] %v23684_v20 }
 0x270   :  { %17008 = vmatmul.mubr.msk.f32.gmra.mrb[110].mxu0 %vm271_vm1, %v23666_v1  ;;  %17932 = vmatmul.mubr.msk.f32.gmra.mrb[98].mxu1 %vm271_vm1, %v23450_v21  ;;  %v23693_v21 = vld [vmem:[%s28320_s0 + $0x390] sm:$0xff] }
 0x271   :  { %17010 = vmatprep.mubr.msk.f32.mxu0 %vm271_vm1, %v23675_v19  ;;  %17934 = vmatprep.mubr.msk.f32.mxu1 %vm271_vm1, %v23459_v23  ;;  %28826 = vst [vmem:[#allocation122_spill] sm:$0xff] %v23693_v21 }
 0x274   :  { %17011 = vmatmul.mubr.msk.f32.gmra.mrb[112].mxu0 %vm271_vm1, %v23684_v20  ;;  %17935 = vmatmul.mubr.msk.f32.gmra.mrb[100].mxu1 %vm271_vm1, %v23468_v55 }
 0x275   :  { %17013 = vmatprep.mubr.msk.f32.mxu0 %vm271_vm1, %v23693_v21  ;;  %17937 = vmatprep.mubr.msk.f32.mxu1 %vm271_vm1, %v23477_v56  ;;  %v23720_v56 = vld [vmem:[%s28320_s0 + $0x3a8] sm:$0xff] }
 0x276   :  { %28829 = vst [vmem:[#allocation125_spill] sm:$0xff] %v23720_v56 }
 0x277   :  { %v17772_v23 = vpop.f32.mrb[204].mxu1 }
 0x278   :  { %17014 = vmatmul.mubr.msk.f32.gmra.mrb[114].mxu0 %vm271_vm1, %v23702_v62  ;;  %v5456_v55 = vpop.f32.mrb[205].mxu1  ;;  %17938 = vmatmul.mubr.msk.f32.gmra.mrb[102].mxu1 %vm271_vm1, %v23486_v57  ;;  %v23729_v57 = vld [vmem:[%s28320_s0 + $0x3b0] sm:$0xff] }
 0x279   :  { %17016 = vmatprep.mubr.msk.f32.mxu0 %vm271_vm1, %v23711_v52  ;;  %17940 = vmatprep.mubr.msk.f32.mxu1 %vm271_vm1, %v23495_v58  ;;  %28830 = vst [vmem:[#allocation126_spill] sm:$0xff] %v23729_v57  ;;  %v23738_v58 = vld [vmem:[%s28320_s0 + $0x3b8] sm:$0xff] }
 0x27a   :  { %28831 = vst [vmem:[#allocation127_spill] sm:$0xff] %v23738_v58 }
 0x27b   :  { %v17775_v23 = vpop.f32.mrb[206].mxu1 }
 0x27c   :  { %17017 = vmatmul.mubr.msk.f32.gmra.mrb[116].mxu0 %vm271_vm1, %v23720_v56  ;;  %v5464_v55 = vpop.f32.mrb[207].mxu1  ;;  %17941 = vmatmul.mubr.msk.f32.gmra.mrb[104].mxu1 %vm271_vm1, %v23504_v42  ;;  %v23747_v42 = vld [vmem:[%s28320_s0 + $0x3c0] sm:$0xff] }
 0x27d   :  { %17019 = vmatprep.mubr.msk.f32.mxu0 %vm271_vm1, %v23729_v57  ;;  %17943 = vmatprep.mubr.msk.f32.mxu1 %vm271_vm1, %v23513_v39  ;;  %28832 = vst [vmem:[#allocation128_spill] sm:$0xff] %v23747_v42  ;;  %v23756_v39 = vld [vmem:[%s28320_s0 + $0x3c8] sm:$0xff] }
 0x27e   :  { %28833 = vst [vmem:[#allocation129_spill] sm:$0xff] %v23756_v39 }
 0x27f   :  { %v17778_v23 = vpop.f32.mrb[208].mxu1 }
 0x280   :  { %17020 = vmatmul.mubr.msk.f32.gmra.mrb[118].mxu0 %vm271_vm1, %v23738_v58  ;;  %v5472_v55 = vpop.f32.mrb[209].mxu1  ;;  %17944 = vmatmul.mubr.msk.f32.gmra.mrb[106].mxu1 %vm271_vm1, %v23522_v53  ;;  %v23765_v53 = vld [vmem:[%s28320_s0 + $0x3d0] sm:$0xff] }
 0x281   :  { %17022 = vmatprep.mubr.msk.f32.mxu0 %vm271_vm1, %v23747_v42  ;;  %17946 = vmatprep.mubr.msk.f32.mxu1 %vm271_vm1, %v23531_v41  ;;  %v23774_v41 = vld [vmem:[%s28320_s0 + $0x3d8] sm:$0xff] }
 0x282   :  { %28834 = vst [vmem:[#allocation130_spill] sm:$0xff] %v23774_v41 }
 0x283   :  { %v17781_v23 = vpop.f32.mrb[210].mxu1 }
 0x284   :  { %17023 = vmatmul.mubr.msk.f32.gmra.mrb[120].mxu0 %vm271_vm1, %v23756_v39  ;;  %v5480_v55 = vpop.f32.mrb[211].mxu1  ;;  %17947 = vmatmul.mubr.msk.f32.gmra.mrb[108].mxu1 %vm271_vm1, %v23540_v59  ;;  %v23783_v59 = vld [vmem:[%s28320_s0 + $0x3e0] sm:$0xff] }
 0x285   :  { %17025 = vmatprep.mubr.msk.f32.mxu0 %vm271_vm1, %v23765_v53  ;;  %17949 = vmatprep.mubr.msk.f32.mxu1 %vm271_vm1, %v23549_v40  ;;  %v23792_v40 = vld [vmem:[%s28320_s0 + $0x3e8] sm:$0xff] }
 0x287   :  { %v17784_v23 = vpop.f32.mrb[212].mxu1 }
 0x288   :  { %17026 = vmatmul.mubr.msk.f32.gmra.mrb[122].mxu0 %vm271_vm1, %v23774_v41  ;;  %v5488_v55 = vpop.f32.mrb[213].mxu1  ;;  %17950 = vmatmul.mubr.msk.f32.gmra.mrb[110].mxu1 %vm271_vm1, %v23558_v61  ;;  %v23801_v61 = vld [vmem:[%s28320_s0 + $0x3f0] sm:$0xff] }
 0x289   :  { %17028 = vmatprep.mubr.msk.f32.mxu0 %vm271_vm1, %v23783_v59  ;;  %17952 = vmatprep.mubr.msk.f32.mxu1 %vm271_vm1, %v23567_v60  ;;  %v23810_v60 = vld [vmem:[%s28320_s0 + $0x3f8] sm:$0xff] }
 0x28b   :  { %v17787_v23 = vpop.f32.mrb[214].mxu1 }
 0x28c   :  { %17029 = vmatmul.mubr.msk.f32.gmra.mrb[124].mxu0 %vm271_vm1, %v23792_v40  ;;  %v5496_v55 = vpop.f32.mrb[215].mxu1  ;;  %17953 = vmatmul.mubr.msk.f32.gmra.mrb[112].mxu1 %vm271_vm1, %v23576_v7  ;;  %v23819_v7 = vld [vmem:[%s28320_s0 + $0x400] sm:$0xff] }
 0x28d   :  { %17031 = vmatprep.mubr.msk.f32.mxu0 %vm271_vm1, %v23801_v61  ;;  %17955 = vmatprep.mubr.msk.f32.mxu1 %vm271_vm1, %v23585_v46  ;;  %v23828_v46 = vld [vmem:[%s28320_s0 + $0x408] sm:$0xff] }
 0x28f   :  { %v17790_v23 = vpop.f32.mrb[216].mxu1 }
 0x290   :  { %17032 = vmatmul.mubr.msk.f32.gmra.mrb[126].mxu0 %vm271_vm1, %v23810_v60  ;;  %v5504_v55 = vpop.f32.mrb[217].mxu1  ;;  %17956 = vmatmul.mubr.msk.f32.gmra.mrb[114].mxu1 %vm271_vm1, %v23594_v47  ;;  %v23837_v47 = vld [vmem:[%s28320_s0 + $0x410] sm:$0xff] }
 0x291   :  { %17034 = vmatprep.mubr.msk.f32.mxu0 %vm271_vm1, %v23819_v7  ;;  %17958 = vmatprep.mubr.msk.f32.mxu1 %vm271_vm1, %v23603_v48 }
 0x293   :  { %v17793_v23 = vpop.f32.mrb[218].mxu1 }
 0x294   :  { %17035 = vmatmul.mubr.msk.f32.gmra.mrb[128].mxu0 %vm271_vm1, %v23828_v46  ;;  %v5512_v55 = vpop.f32.mrb[219].mxu1  ;;  %17959 = vmatmul.mubr.msk.f32.gmra.mrb[116].mxu1 %vm271_vm1, %v23612_v43  ;;  %v23846_v23 = vld [vmem:[%s28320_s0 + $0x418] sm:$0xff] }
 0x295   :  { %17037 = vmatprep.mubr.msk.f32.mxu0 %vm271_vm1, %v23837_v47  ;;  %17961 = vmatprep.mubr.msk.f32.mxu1 %vm271_vm1, %v23621_v51  ;;  %v23855_v55 = vld [vmem:[%s28320_s0 + $0x420] sm:$0xff]  ;;  %v23864_v51 = vld [vmem:[%s28320_s0 + $0x428] sm:$0xff] }
 0x298   :  { %17038 = vmatmul.mubr.msk.f32.gmra.mrb[130].mxu0 %vm271_vm1, %v23846_v23  ;;  %17962 = vmatmul.mubr.msk.f32.gmra.mrb[118].mxu1 %vm271_vm1, %v23630_v45  ;;  %v23873_v45 = vld [vmem:[%s28320_s0 + $0x430] sm:$0xff] }
 0x299   :  { %17040 = vmatprep.mubr.msk.f32.mxu0 %vm271_vm1, %v23855_v55  ;;  %17964 = vmatprep.mubr.msk.f32.mxu1 %vm271_vm1, %v23639_v44  ;;  %v23882_v44 = vld [vmem:[%s28320_s0 + $0x438] sm:$0xff] }
 0x29c   :  { %17041 = vmatmul.mubr.msk.f32.gmra.mrb[132].mxu0 %vm271_vm1, %v23864_v51  ;;  %17965 = vmatmul.mubr.msk.f32.gmra.mrb[120].mxu1 %vm271_vm1, %v23648_v26  ;;  %v23891_v26 = vld [vmem:[%s28320_s0 + $0x440] sm:$0xff] }
 0x29d   :  { %17043 = vmatprep.mubr.msk.f32.mxu0 %vm271_vm1, %v23873_v45  ;;  %17967 = vmatprep.mubr.msk.f32.mxu1 %vm271_vm1, %v23657_v63  ;;  %v23900_v63 = vld [vmem:[%s28320_s0 + $0x448] sm:$0xff] }
 0x2a0   :  { %17044 = vmatmul.mubr.msk.f32.gmra.mrb[134].mxu0 %vm271_vm1, %v23882_v44  ;;  %17968 = vmatmul.mubr.msk.f32.gmra.mrb[122].mxu1 %vm271_vm1, %v23666_v1  ;;  %v23909_v1 = vld [vmem:[%s28320_s0 + $0x450] sm:$0xff] }
 0x2a1   :  { %17046 = vmatprep.mubr.msk.f32.mxu0 %vm271_vm1, %v23891_v26  ;;  %17970 = vmatprep.mubr.msk.f32.mxu1 %vm271_vm1, %v23675_v19  ;;  %v23918_v19 = vld [vmem:[%s28320_s0 + $0x458] sm:$0xff] }
 0x2a4   :  { %17047 = vmatmul.mubr.msk.f32.gmra.mrb[136].mxu0 %vm271_vm1, %v23900_v63  ;;  %17971 = vmatmul.mubr.msk.f32.gmra.mrb[124].mxu1 %vm271_vm1, %v23684_v20  ;;  %v23927_v20 = vld [vmem:[%s28320_s0 + $0x460] sm:$0xff] }
 0x2a5   :  { %17049 = vmatprep.mubr.msk.f32.mxu0 %vm271_vm1, %v23909_v1  ;;  %17973 = vmatprep.mubr.msk.f32.mxu1 %vm271_vm1, %v23693_v21  ;;  %v23936_v21 = vld [vmem:[%s28320_s0 + $0x468] sm:$0xff] }
 0x2a8   :  { %17050 = vmatmul.mubr.msk.f32.gmra.mrb[138].mxu0 %vm271_vm1, %v23918_v19  ;;  %17974 = vmatmul.mubr.msk.f32.gmra.mrb[126].mxu1 %vm271_vm1, %v23702_v62  ;;  %v23945_v62 = vld [vmem:[%s28320_s0 + $0x470] sm:$0xff] }
 0x2a9   :  { %17052 = vmatprep.mubr.msk.f32.mxu0 %vm271_vm1, %v23927_v20  ;;  %17976 = vmatprep.mubr.msk.f32.mxu1 %vm271_vm1, %v23711_v52  ;;  %v23954_v52 = vld [vmem:[%s28320_s0 + $0x478] sm:$0xff] }
 0x2ac   :  { %17053 = vmatmul.mubr.msk.f32.gmra.mrb[140].mxu0 %vm271_vm1, %v23936_v21  ;;  %17977 = vmatmul.mubr.msk.f32.gmra.mrb[128].mxu1 %vm271_vm1, %v23720_v56  ;;  %v23963_v56 = vld [vmem:[%s28320_s0 + $0x480] sm:$0xff] }
 0x2ad   :  { %17055 = vmatprep.mubr.msk.f32.mxu0 %vm271_vm1, %v23945_v62  ;;  %17979 = vmatprep.mubr.msk.f32.mxu1 %vm271_vm1, %v23729_v57  ;;  %v23972_v57 = vld [vmem:[%s28320_s0 + $0x488] sm:$0xff] }
 0x2b0   :  { %17056 = vmatmul.mubr.msk.f32.gmra.mrb[142].mxu0 %vm271_vm1, %v23954_v52  ;;  %17980 = vmatmul.mubr.msk.f32.gmra.mrb[130].mxu1 %vm271_vm1, %v23738_v58  ;;  %v23981_v58 = vld [vmem:[%s28320_s0 + $0x490] sm:$0xff] }
 0x2b1   :  { %17058 = vmatprep.mubr.msk.f32.mxu0 %vm271_vm1, %v23963_v56  ;;  %17982 = vmatprep.mubr.msk.f32.mxu1 %vm271_vm1, %v23747_v42  ;;  %v23990_v42 = vld [vmem:[%s28320_s0 + $0x498] sm:$0xff] }
 0x2b4   :  { %17059 = vmatmul.mubr.msk.f32.gmra.mrb[144].mxu0 %vm271_vm1, %v23972_v57  ;;  %17983 = vmatmul.mubr.msk.f32.gmra.mrb[132].mxu1 %vm271_vm1, %v23756_v39  ;;  %v23999_v39 = vld [vmem:[%s28320_s0 + $0x4a0] sm:$0xff] }
 0x2b5   :  { %17061 = vmatprep.mubr.msk.f32.mxu0 %vm271_vm1, %v23981_v58  ;;  %17985 = vmatprep.mubr.msk.f32.mxu1 %vm271_vm1, %v23765_v53 }
 0x2b8   :  { %17062 = vmatmul.mubr.msk.f32.gmra.mrb[146].mxu0 %vm271_vm1, %v23990_v42  ;;  %17986 = vmatmul.mubr.msk.f32.gmra.mrb[134].mxu1 %vm271_vm1, %v23774_v41  ;;  %v24012_v41 = vld [vmem:[%s28320_s0 + $0x4b0] sm:$0xff] }
 0x2b9   :  { %17064 = vmatprep.mubr.msk.f32.mxu0 %vm271_vm1, %v23999_v39  ;;  %17988 = vmatprep.mubr.msk.f32.mxu1 %vm271_vm1, %v23783_v59  ;;  %28835 = vst [vmem:[#allocation131_spill] sm:$0xff] %v24012_v41 }
 0x2bc   :  { %17065 = vmatmul.mubr.msk.f32.gmra.mrb[148].mxu0 %vm271_vm1, %v22112_v0  ;;  %17989 = vmatmul.mubr.msk.f32.gmra.mrb[136].mxu1 %vm271_vm1, %v23792_v40  ;;  %v13969_v0 = vld [vmem:[%s28322_s3 + $0x50] sm:$0xff] }
 0x2bd   :  { %17067 = vmatprep.mubr.msk.f32.mxu0 %vm271_vm1, %v24012_v41  ;;  %17991 = vmatprep.mubr.msk.f32.mxu1 %vm271_vm1, %v23801_v61 }
 0x2c0   :  { %17068 = vmatmul.mubr.msk.f32.gmra.mrb[150].mxu0 %vm271_vm1, %v22125_v2  ;;  %17992 = vmatmul.mubr.msk.f32.gmra.mrb[138].mxu1 %vm271_vm1, %v23810_v60  ;;  %v13970_v2 = vld [vmem:[%s28322_s3 + $0x58] sm:$0xff] }
 0x2c1   :  { %17070 = vmatprep.mubr.msk.f32.mxu0 %vm271_vm1, %v22130_v3  ;;  %17994 = vmatprep.mubr.msk.f32.mxu1 %vm271_vm1, %v23819_v7  ;;  %v14232_v3 = vld [vmem:[%s28323_s4 + $0x50] sm:$0xff] }
 0x2c4   :  { %17071 = vmatmul.mubr.msk.f32.gmra.mrb[152].mxu0 %vm271_vm1, %v22141_v4  ;;  %17995 = vmatmul.mubr.msk.f32.gmra.mrb[140].mxu1 %vm271_vm1, %v23828_v46  ;;  %v24107_v4 = vpack.c.bf16 %v13970_v2, %v13969_v0  ;;  %v28860_v0 = vld [vmem:[#allocation12_spill] sm:$0xff] }
 0x2c5   :  { %17073 = vmatprep.mubr.msk.f32.mxu0 %vm271_vm1, %v22146_v5  ;;  %17997 = vmatprep.mubr.msk.f32.mxu1 %vm271_vm1, %v23837_v47  ;;  %v14233_v5 = vld [vmem:[%s28323_s4 + $0x58] sm:$0xff]  ;;  %v24277_v2 = vld [vmem:[%s28320_s0 + $0x530] sm:$0xff] }
 0x2c6   :  { %19535 = vmatprep.subr.bf16.mxu0 %v24107_v4  ;;  %28861 = vst [vmem:[#allocation12_spill] sm:$0xff] %v24277_v2 }
 0x2c8   :  { %17074 = vmatmul.mubr.msk.f32.gmra.mrb[154].mxu0 %vm271_vm1, %v22157_v6  ;;  %17998 = vmatmul.mubr.msk.f32.gmra.mrb[142].mxu1 %vm271_vm1, %v23846_v23  ;;  %v24112_v6 = vpack.c.bf16 %v14233_v5, %v14232_v3  ;;  %v28862_v3 = vld [vmem:[#allocation13_spill] sm:$0xff] }
 0x2c9   :  { %17076 = vmatprep.mubr.msk.f32.mxu0 %vm271_vm1, %v22162_v8  ;;  %18000 = vmatprep.mubr.msk.f32.mxu1 %vm271_vm1, %v23855_v55  ;;  %v24129_v8 = vld [vmem:[%s28320_s0 + $0x4a8] sm:$0xff]  ;;  %v24286_v5 = vld [vmem:[%s28320_s0 + $0x538] sm:$0xff] }
 0x2ca   :  { %19601 = vmatprep.subr.bf16.mxu1 %v24112_v6  ;;  %28863 = vst [vmem:[#allocation13_spill] sm:$0xff] %v24286_v5 }
 0x2cc   :  { %17077 = vmatmul.mubr.msk.f32.gmra.mrb[156].mxu0 %vm271_vm1, %v22173_v9  ;;  %18001 = vmatmul.mubr.msk.f32.gmra.mrb[144].mxu1 %vm271_vm1, %v23864_v51  ;;  %v24142_v9 = vld [vmem:[%s28320_s0 + $0x4b8] sm:$0xff] }
 0x2cd   :  { %17079 = vmatprep.mubr.msk.f32.mxu0 %vm271_vm1, %v22178_v10  ;;  %18003 = vmatprep.mubr.msk.f32.mxu1 %vm271_vm1, %v23873_v45  ;;  %28836 = vst [vmem:[#allocation132_spill] sm:$0xff] %v24142_v9  ;;  %v24151_v10 = vld [vmem:[%s28320_s0 + $0x4c0] sm:$0xff] }
 0x2ce   :  { %28837 = vst [vmem:[#allocation133_spill] sm:$0xff] %v24151_v10 }
 0x2d0   :  { %17080 = vmatmul.mubr.msk.f32.gmra.mrb[158].mxu0 %vm271_vm1, %v22189_v11  ;;  %18004 = vmatmul.mubr.msk.f32.gmra.mrb[146].mxu1 %vm271_vm1, %v23882_v44  ;;  %v24160_v11 = vld [vmem:[%s28320_s0 + $0x4c8] sm:$0xff] }
 0x2d1   :  { %17082 = vmatprep.mubr.msk.f32.mxu0 %vm271_vm1, %v22194_v12  ;;  %18006 = vmatprep.mubr.msk.f32.mxu1 %vm271_vm1, %v23891_v26  ;;  %28838 = vst [vmem:[#allocation134_spill] sm:$0xff] %v24160_v11  ;;  %v24169_v12 = vld [vmem:[%s28320_s0 + $0x4d0] sm:$0xff] }
 0x2d2   :  { %28839 = vst [vmem:[#allocation135_spill] sm:$0xff] %v24169_v12 }
 0x2d4   :  { %17083 = vmatmul.mubr.msk.f32.gmra.mrb[160].mxu0 %vm271_vm1, %v22205_v13  ;;  %18007 = vmatmul.mubr.msk.f32.gmra.mrb[148].mxu1 %vm271_vm1, %v23900_v63  ;;  %v24178_v13 = vld [vmem:[%s28320_s0 + $0x4d8] sm:$0xff] }
 0x2d5   :  { %17085 = vmatprep.mubr.msk.f32.mxu0 %vm271_vm1, %v22210_v14  ;;  %18009 = vmatprep.mubr.msk.f32.mxu1 %vm271_vm1, %v23909_v1  ;;  %28840 = vst [vmem:[#allocation136_spill] sm:$0xff] %v24178_v13  ;;  %v24187_v14 = vld [vmem:[%s28320_s0 + $0x4e0] sm:$0xff] }
 0x2d6   :  { %28841 = vst [vmem:[#allocation137_spill] sm:$0xff] %v24187_v14 }
 0x2d8   :  { %17086 = vmatmul.mubr.msk.f32.gmra.mrb[162].mxu0 %vm271_vm1, %v22222_v15  ;;  %18010 = vmatmul.mubr.msk.f32.gmra.mrb[150].mxu1 %vm271_vm1, %v23918_v19  ;;  %v28842_v15 = vld [vmem:[#allocation3_spill] sm:$0xff] }
 0x2d9   :  { %17088 = vmatprep.mubr.msk.f32.mxu0 %vm271_vm1, %v22227_v16  ;;  %18012 = vmatprep.mubr.msk.f32.mxu1 %vm271_vm1, %v23927_v20  ;;  %v24196_v16 = vld [vmem:[%s28320_s0 + $0x4e8] sm:$0xff] }
 0x2da   :  { %28843 = vst [vmem:[#allocation3_spill] sm:$0xff] %v24196_v16 }
 0x2dc   :  { %17089 = vmatmul.mubr.msk.f32.gmra.mrb[164].mxu0 %vm271_vm1, %v22240_v17  ;;  %18013 = vmatmul.mubr.msk.f32.gmra.mrb[152].mxu1 %vm271_vm1, %v23936_v21  ;;  %v28844_v17 = vld [vmem:[#allocation4_spill] sm:$0xff] }
 0x2dd   :  { %17091 = vmatprep.mubr.msk.f32.mxu0 %vm271_vm1, %v22245_v18  ;;  %18015 = vmatprep.mubr.msk.f32.mxu1 %vm271_vm1, %v23945_v62  ;;  %v24205_v18 = vld [vmem:[%s28320_s0 + $0x4f0] sm:$0xff] }
 0x2de   :  { %28845 = vst [vmem:[#allocation4_spill] sm:$0xff] %v24205_v18 }
 0x2e0   :  { %17092 = vmatmul.mubr.msk.f32.gmra.mrb[166].mxu0 %vm271_vm1, %v22267_v22  ;;  %18016 = vmatmul.mubr.msk.f32.gmra.mrb[154].mxu1 %vm271_vm1, %v23954_v52  ;;  %v28846_v22 = vld [vmem:[#allocation5_spill] sm:$0xff] }
 0x2e1   :  { %17094 = vmatprep.mubr.msk.f32.mxu0 %vm271_vm1, %v22277_v25  ;;  %18018 = vmatprep.mubr.msk.f32.mxu1 %vm271_vm1, %v23963_v56  ;;  %v24214_v25 = vld [vmem:[%s28320_s0 + $0x4f8] sm:$0xff] }
 0x2e2   :  { %28847 = vst [vmem:[#allocation5_spill] sm:$0xff] %v24214_v25 }
 0x2e4   :  { %17095 = vmatmul.mubr.msk.f32.gmra.mrb[168].mxu0 %vm271_vm1, %v22293_v27  ;;  %18019 = vmatmul.mubr.msk.f32.gmra.mrb[156].mxu1 %vm271_vm1, %v23972_v57  ;;  %v28848_v27 = vld [vmem:[#allocation6_spill] sm:$0xff] }
 0x2e5   :  { %17097 = vmatprep.mubr.msk.f32.mxu0 %vm271_vm1, %v22298_v28  ;;  %18021 = vmatprep.mubr.msk.f32.mxu1 %vm271_vm1, %v23981_v58  ;;  %v24223_v28 = vld [vmem:[%s28320_s0 + $0x500] sm:$0xff] }
 0x2e6   :  { %28849 = vst [vmem:[#allocation6_spill] sm:$0xff] %v24223_v28 }
 0x2e8   :  { %17098 = vmatmul.mubr.msk.f32.gmra.mrb[170].mxu0 %vm271_vm1, %v22312_v29  ;;  %18022 = vmatmul.mubr.msk.f32.gmra.mrb[158].mxu1 %vm271_vm1, %v23990_v42  ;;  %v28850_v29 = vld [vmem:[#allocation7_spill] sm:$0xff] }
 0x2e9   :  { %17100 = vmatprep.mubr.msk.f32.mxu0 %vm271_vm1, %v22317_v30  ;;  %18024 = vmatprep.mubr.msk.f32.mxu1 %vm271_vm1, %v23999_v39  ;;  %v24232_v30 = vld [vmem:[%s28320_s0 + $0x508] sm:$0xff] }
 0x2ea   :  { %28851 = vst [vmem:[#allocation7_spill] sm:$0xff] %v24232_v30 }
 0x2ec   :  { %17101 = vmatmul.mubr.msk.f32.gmra.mrb[172].mxu0 %vm271_vm1, %v22330_v31  ;;  %18025 = vmatmul.mubr.msk.f32.gmra.mrb[160].mxu1 %vm271_vm1, %v24129_v8  ;;  %v28852_v31 = vld [vmem:[#allocation8_spill] sm:$0xff] }
 0x2ed   :  { %17103 = vmatprep.mubr.msk.f32.mxu0 %vm271_vm1, %v22335_v32  ;;  %18027 = vmatprep.mubr.msk.f32.mxu1 %vm271_vm1, %v24012_v41  ;;  %v24241_v32 = vld [vmem:[%s28320_s0 + $0x510] sm:$0xff]  ;;  %v28906_v41 = vld [vmem:[#allocation55_spill] sm:$0xff] }
 0x2ee   :  { %28853 = vst [vmem:[#allocation8_spill] sm:$0xff] %v24241_v32 }
 0x2f0   :  { %17104 = vmatmul.mubr.msk.f32.gmra.mrb[174].mxu0 %vm271_vm1, %v22348_v33  ;;  %18028 = vmatmul.mubr.msk.f32.gmra.mrb[162].mxu1 %vm271_vm1, %v24142_v9  ;;  %v28854_v33 = vld [vmem:[#allocation9_spill] sm:$0xff] }
 0x2f1   :  { %17106 = vmatprep.mubr.msk.f32.mxu0 %vm271_vm1, %v22353_v34  ;;  %18030 = vmatprep.mubr.msk.f32.mxu1 %vm271_vm1, %v24151_v10  ;;  %v24250_v34 = vld [vmem:[%s28320_s0 + $0x518] sm:$0xff]  ;;  %v28901_v10 = vld [vmem:[#allocation50_spill] sm:$0xff] }
 0x2f2   :  { %28855 = vst [vmem:[#allocation9_spill] sm:$0xff] %v24250_v34  ;;  %v28904_v9 = vld [vmem:[#allocation53_spill] sm:$0xff] }
 0x2f4   :  { %17107 = vmatmul.mubr.msk.f32.gmra.mrb[176].mxu0 %vm271_vm1, %v22366_v35  ;;  %18031 = vmatmul.mubr.msk.f32.gmra.mrb[164].mxu1 %vm271_vm1, %v24160_v11  ;;  %v28856_v35 = vld [vmem:[#allocation10_spill] sm:$0xff]  ;;  %v28900_v11 = vld [vmem:[#allocation49_spill] sm:$0xff] }
 0x2f5   :  { %17109 = vmatprep.mubr.msk.f32.mxu0 %vm271_vm1, %v22371_v36  ;;  %18033 = vmatprep.mubr.msk.f32.mxu1 %vm271_vm1, %v24169_v12  ;;  %v24259_v36 = vld [vmem:[%s28320_s0 + $0x520] sm:$0xff]  ;;  %v28899_v12 = vld [vmem:[#allocation48_spill] sm:$0xff] }
 0x2f6   :  { %28857 = vst [vmem:[#allocation10_spill] sm:$0xff] %v24259_v36 }
 0x2f8   :  { %17110 = vmatmul.mubr.msk.f32.gmra.mrb[178].mxu0 %vm271_vm1, %v22384_v37  ;;  %18034 = vmatmul.mubr.msk.f32.gmra.mrb[166].mxu1 %vm271_vm1, %v24178_v13  ;;  %v28858_v37 = vld [vmem:[#allocation11_spill] sm:$0xff] }
 0x2f9   :  { %17112 = vmatprep.mubr.msk.f32.mxu0 %vm271_vm1, %v22389_v38  ;;  %18036 = vmatprep.mubr.msk.f32.mxu1 %vm271_vm1, %v24187_v14  ;;  %v24268_v38 = vld [vmem:[%s28320_s0 + $0x528] sm:$0xff]  ;;  %v28897_v14 = vld [vmem:[#allocation46_spill] sm:$0xff] }
 0x2fa   :  { %28859 = vst [vmem:[#allocation11_spill] sm:$0xff] %v24268_v38  ;;  %v28898_v13 = vld [vmem:[#allocation47_spill] sm:$0xff] }
 0x2fc   :  { %17113 = vmatmul.mubr.msk.f32.gmra.mrb[180].mxu0 %vm271_vm1, %v28842_v15  ;;  %18037 = vmatmul.mubr.msk.f32.gmra.mrb[168].mxu1 %vm271_vm1, %v24196_v16  ;;  %v28864_v15 = vld [vmem:[#allocation14_spill] sm:$0xff]  ;;  %v28896_v16 = vld [vmem:[#allocation45_spill] sm:$0xff] }
 0x2fd   :  { %17115 = vmatprep.mubr.msk.f32.mxu0 %vm271_vm1, %v28844_v17  ;;  %18039 = vmatprep.mubr.msk.f32.mxu1 %vm271_vm1, %v24205_v18  ;;  %v24295_v17 = vld [vmem:[%s28320_s0 + $0x540] sm:$0xff]  ;;  %v28895_v18 = vld [vmem:[#allocation44_spill] sm:$0xff] }
 0x2fe   :  { %28865 = vst [vmem:[#allocation14_spill] sm:$0xff] %v24295_v17 }
 0x300   :  { %17116 = vmatmul.mubr.msk.f32.gmra.mrb[182].mxu0 %vm271_vm1, %v28846_v22  ;;  %18040 = vmatmul.mubr.msk.f32.gmra.mrb[170].mxu1 %vm271_vm1, %v24214_v25  ;;  %v28866_v22 = vld [vmem:[#allocation15_spill] sm:$0xff] }
 0x301   :  { %17118 = vmatprep.mubr.msk.f32.mxu0 %vm271_vm1, %v28848_v27  ;;  %18042 = vmatprep.mubr.msk.f32.mxu1 %vm271_vm1, %v24223_v28  ;;  %v21070_v27 = vld [vmem:[%s28320_s0 + $0x548] sm:$0xff]  ;;  %v28893_v28 = vld [vmem:[#allocation42_spill] sm:$0xff] }
 0x302   :  { %v28894_v25 = vld [vmem:[#allocation43_spill] sm:$0xff] }
 0x304   :  { %17119 = vmatmul.mubr.msk.f32.gmra.mrb[184].mxu0 %vm271_vm1, %v28850_v29  ;;  %18043 = vmatmul.mubr.msk.f32.gmra.mrb[172].mxu1 %vm271_vm1, %v24232_v30  ;;  %v28867_v29 = vld [vmem:[#allocation16_spill] sm:$0xff]  ;;  %v28892_v30 = vld [vmem:[#allocation41_spill] sm:$0xff] }
 0x305   :  { %17121 = vmatprep.mubr.msk.f32.mxu0 %vm271_vm1, %v28852_v31  ;;  %18045 = vmatprep.mubr.msk.f32.mxu1 %vm271_vm1, %v24241_v32  ;;  %v21071_v31 = vld [vmem:[%s28320_s0 + $0x550] sm:$0xff] }
 0x306   :  { %v28891_v32 = vld [vmem:[#allocation40_spill] sm:$0xff] }
 0x308   :  { %17122 = vmatmul.mubr.msk.f32.gmra.mrb[186].mxu0 %vm271_vm1, %v28854_v33  ;;  %18046 = vmatmul.mubr.msk.f32.gmra.mrb[174].mxu1 %vm271_vm1, %v24250_v34  ;;  %v28868_v33 = vld [vmem:[#allocation17_spill] sm:$0xff]  ;;  %v21091_v34 = vld [vmem:[%s28320_s0 + $0x5f0] sm:$0xff] }
 0x309   :  { %17124 = vmatprep.mubr.msk.f32.mxu0 %vm271_vm1, %v28856_v35  ;;  %18048 = vmatprep.mubr.msk.f32.mxu1 %vm271_vm1, %v24259_v36  ;;  %v21072_v35 = vld [vmem:[%s28320_s0 + $0x558] sm:$0xff]  ;;  %v28887_v36 = vld [vmem:[#allocation36_spill] sm:$0xff] }
 0x30c   :  { %17125 = vmatmul.mubr.msk.f32.gmra.mrb[188].mxu0 %vm271_vm1, %v28858_v37  ;;  %18049 = vmatmul.mubr.msk.f32.gmra.mrb[176].mxu1 %vm271_vm1, %v24268_v38  ;;  %v28869_v37 = vld [vmem:[#allocation18_spill] sm:$0xff]  ;;  %v21090_v38 = vld [vmem:[%s28320_s0 + $0x5e8] sm:$0xff] }
 0x30d   :  { %17127 = vmatprep.mubr.msk.f32.mxu0 %vm271_vm1, %v28860_v0  ;;  %18051 = vmatprep.mubr.msk.f32.mxu1 %vm271_vm1, %v24277_v2  ;;  %v21073_v0 = vld [vmem:[%s28320_s0 + $0x560] sm:$0xff] }
 0x310   :  { %17128 = vmatmul.mubr.msk.f32.gmra.mrb[190].mxu0 %vm271_vm1, %v28862_v3  ;;  %18052 = vmatmul.mubr.msk.f32.gmra.mrb[178].mxu1 %vm271_vm1, %v24286_v5  ;;  %v28870_v3 = vld [vmem:[#allocation19_spill] sm:$0xff] }
 0x311   :  { %17130 = vmatprep.mubr.msk.f32.mxu0 %vm271_vm1, %v28864_v15  ;;  %18054 = vmatprep.mubr.msk.f32.mxu1 %vm271_vm1, %v24295_v17  ;;  %v21074_v15 = vld [vmem:[%s28320_s0 + $0x568] sm:$0xff]  ;;  %v21088_v17 = vld [vmem:[%s28320_s0 + $0x5d8] sm:$0xff] }
 0x312   :  { %v13972_v5 = vld [vmem:[%s28322_s3 + $0x68] sm:$0xff] }
 0x314   :  { %17131 = vmatmul.mubr.msk.f32.gmra.mrb[196].mxu0 %vm271_vm1, %v28866_v22  ;;  %18055 = vmatmul.mubr.msk.f32.gmra.mrb[180].mxu1 %vm271_vm1, %v21070_v27  ;;  %v28871_v22 = vld [vmem:[#allocation20_spill] sm:$0xff] }
 0x315   :  { %17133 = vmatprep.mubr.msk.f32.mxu0 %vm271_vm1, %v28867_v29  ;;  %18057 = vmatprep.mubr.msk.f32.mxu1 %vm271_vm1, %v21071_v31  ;;  %v21075_v27 = vld [vmem:[%s28320_s0 + $0x570] sm:$0xff]  ;;  %v28872_v29 = vld [vmem:[#allocation21_spill] sm:$0xff] }
 0x316   :  { %v21076_v31 = vld [vmem:[%s28320_s0 + $0x578] sm:$0xff] }
 0x318   :  { %17134 = vmatmul.mubr.msk.f32.gmra.mrb[198].mxu0 %vm271_vm1, %v28868_v33  ;;  %18058 = vmatmul.mubr.msk.f32.gmra.mrb[182].mxu1 %vm271_vm1, %v21072_v35  ;;  %v28873_v33 = vld [vmem:[#allocation22_spill] sm:$0xff] }
 0x319   :  { %17136 = vmatprep.mubr.msk.f32.mxu0 %vm271_vm1, %v28869_v37  ;;  %18060 = vmatprep.mubr.msk.f32.mxu1 %vm271_vm1, %v21073_v0  ;;  %v21077_v35 = vld [vmem:[%s28320_s0 + $0x580] sm:$0xff]  ;;  %v28874_v37 = vld [vmem:[#allocation23_spill] sm:$0xff] }
 0x31a   :  { %v21078_v0 = vld [vmem:[%s28320_s0 + $0x588] sm:$0xff] }
 0x31c   :  { %17137 = vmatmul.mubr.msk.f32.gmra.mrb[200].mxu0 %vm271_vm1, %v28870_v3  ;;  %18061 = vmatmul.mubr.msk.f32.gmra.mrb[184].mxu1 %vm271_vm1, %v21074_v15  ;;  %v28875_v3 = vld [vmem:[#allocation24_spill] sm:$0xff] }
 0x31d   :  { %17139 = vmatprep.mubr.msk.f32.mxu0 %vm271_vm1, %v28871_v22  ;;  %18063 = vmatprep.mubr.msk.f32.mxu1 %vm271_vm1, %v21075_v27  ;;  %v21079_v15 = vld [vmem:[%s28320_s0 + $0x590] sm:$0xff]  ;;  %v28876_v22 = vld [vmem:[#allocation25_spill] sm:$0xff] }
 0x31e   :  { %v21080_v27 = vld [vmem:[%s28320_s0 + $0x598] sm:$0xff] }
 0x320   :  { %17140 = vmatmul.mubr.msk.f32.gmra.mrb[202].mxu0 %vm271_vm1, %v28872_v29  ;;  %18064 = vmatmul.mubr.msk.f32.gmra.mrb[186].mxu1 %vm271_vm1, %v21076_v31  ;;  %v28877_v29 = vld [vmem:[#allocation26_spill] sm:$0xff] }
 0x321   :  { %17142 = vmatprep.mubr.msk.f32.mxu0 %vm271_vm1, %v28873_v33  ;;  %18066 = vmatprep.mubr.msk.f32.mxu1 %vm271_vm1, %v21077_v35  ;;  %v21081_v31 = vld [vmem:[%s28320_s0 + $0x5a0] sm:$0xff]  ;;  %v28878_v33 = vld [vmem:[#allocation27_spill] sm:$0xff] }
 0x322   :  { %v21082_v35 = vld [vmem:[%s28320_s0 + $0x5a8] sm:$0xff] }
 0x324   :  { %17143 = vmatmul.mubr.msk.f32.gmra.mrb[204].mxu0 %vm271_vm1, %v28874_v37  ;;  %18067 = vmatmul.mubr.msk.f32.gmra.mrb[188].mxu1 %vm271_vm1, %v21078_v0  ;;  %v28879_v37 = vld [vmem:[#allocation28_spill] sm:$0xff] }
 0x325   :  { %17145 = vmatprep.mubr.msk.f32.mxu0 %vm271_vm1, %v28875_v3  ;;  %18069 = vmatprep.mubr.msk.f32.mxu1 %vm271_vm1, %v21079_v15  ;;  %v21083_v0 = vld [vmem:[%s28320_s0 + $0x5b0] sm:$0xff]  ;;  %v28880_v3 = vld [vmem:[#allocation29_spill] sm:$0xff] }
 0x326   :  { %v21084_v15 = vld [vmem:[%s28320_s0 + $0x5b8] sm:$0xff] }
 0x328   :  { %17146 = vmatmul.mubr.msk.f32.gmra.mrb[206].mxu0 %vm271_vm1, %v28876_v22  ;;  %18070 = vmatmul.mubr.msk.f32.gmra.mrb[190].mxu1 %vm271_vm1, %v21080_v27  ;;  %v28881_v22 = vld [vmem:[#allocation30_spill] sm:$0xff] }
 0x329   :  { %17148 = vmatprep.mubr.msk.f32.mxu0 %vm271_vm1, %v28877_v29  ;;  %18072 = vmatprep.mubr.msk.f32.mxu1 %vm271_vm1, %v21081_v31  ;;  %v21085_v27 = vld [vmem:[%s28320_s0 + $0x5c0] sm:$0xff]  ;;  %v28882_v31 = vld [vmem:[#allocation31_spill] sm:$0xff] }
 0x32c   :  { %17149 = vmatmul.mubr.msk.f32.gmra.mrb[208].mxu0 %vm271_vm1, %v28878_v33  ;;  %18073 = vmatmul.mubr.msk.f32.gmra.mrb[192].mxu1 %vm271_vm1, %v21082_v35  ;;  %v21086_v35 = vld [vmem:[%s28320_s0 + $0x5c8] sm:$0xff] }
 0x32d   :  { %17151 = vmatprep.mubr.msk.f32.mxu0 %vm271_vm1, %v28879_v37  ;;  %18075 = vmatprep.mubr.msk.f32.mxu1 %vm271_vm1, %v21083_v0  ;;  %v28883_v0 = vld [vmem:[#allocation32_spill] sm:$0xff] }
 0x330   :  { %17152 = vmatmul.mubr.msk.f32.gmra.mrb[210].mxu0 %vm271_vm1, %v28880_v3  ;;  %18076 = vmatmul.mubr.msk.f32.gmra.mrb[194].mxu1 %vm271_vm1, %v21084_v15  ;;  %v21087_v15 = vld [vmem:[%s28320_s0 + $0x5d0] sm:$0xff] }
 0x331   :  { %17162 = vmatprep.mubr.msk.f32.mxu0 %vm271_vm1, %v28881_v22  ;;  %18078 = vmatprep.mubr.msk.f32.mxu1 %vm271_vm1, %v21085_v27  ;;  %v28884_v27 = vld [vmem:[#allocation33_spill] sm:$0xff] }
 0x334   :  { %17163 = vmatmul.mubr.msk.f32.vlgmr.msra.gmra.mrb[0].mxu0 %vm271_vm1, %v28882_v31  ;;  %18079 = vmatmul.mubr.msk.f32.gmra.mrb[196].mxu1 %vm271_vm1, %v21086_v35  ;;  %v13971_v35 = vld [vmem:[%s28322_s3 + $0x60] sm:$0xff] }
 0x335   :  { %17165 = vmatprep.mubr.msk.f32.mxu0 %vm271_vm1, %v28883_v0  ;;  %18081 = vmatprep.mubr.msk.f32.mxu1 %vm271_vm1, %v21087_v15  ;;  %v28885_v15 = vld [vmem:[#allocation34_spill] sm:$0xff]  ;;  %v19538_v2 = vpack.c.bf16 %v13972_v5, %v13971_v35  ;;  %v28888_v5 = vld [vmem:[#allocation37_spill] sm:$0xff] }
 0x336   :  { %19537 = vmatpush3.bf16.msra.mxu0 %v24107_v4  ;;  %v21089_v4 = vld [vmem:[%s28320_s0 + $0x5e0] sm:$0xff]  ;;  %v21092_v35 = vld [vmem:[%s28320_s0 + $0x5f8] sm:$0xff] }
 0x337   :  { %19539 = vmatprep.subr.bf16.mxu0 %v19538_v2 }
 0x338   :  { %17166 = vmatmul.mubr.msk.f32.gmra.mrb[2].mxu0 %vm271_vm1, %v28884_v27  ;;  %18082 = vmatmul.mubr.msk.f32.gmra.mrb[198].mxu1 %vm271_vm1, %v21088_v17  ;;  %v28886_v17 = vld [vmem:[#allocation35_spill] sm:$0xff] }
 0x339   :  { %17168 = vmatprep.mubr.msk.f32.mxu0 %vm271_vm1, %v28885_v15  ;;  %18084 = vmatprep.mubr.msk.f32.mxu1 %vm271_vm1, %v21089_v4  ;;  %v21093_v4 = vld [vmem:[%s28320_s0 + $0x600] sm:$0xff] }
 0x33a   :  { %19541 = vmatpush3.bf16.msra.mxu0 %v19538_v2  ;;  %v21094_v2 = vld [vmem:[%s28320_s0 + $0x608] sm:$0xff] }
 0x33c   :  { %17169 = vmatmul.mubr.msk.f32.gmra.mrb[4].mxu0 %vm271_vm1, %v28886_v17  ;;  %18085 = vmatmul.mubr.msk.f32.gmra.mrb[200].mxu1 %vm271_vm1, %v21090_v38  ;;  %v28889_v38 = vld [vmem:[#allocation38_spill] sm:$0xff] }
 0x33d   :  { %17171 = vmatprep.mubr.msk.f32.mxu0 %vm271_vm1, %v28887_v36  ;;  %18087 = vmatprep.mubr.msk.f32.mxu1 %vm271_vm1, %v21091_v34  ;;  %v28890_v34 = vld [vmem:[#allocation39_spill] sm:$0xff] }
 0x340   :  { %17172 = vmatmul.mubr.msk.f32.gmra.mrb[6].mxu0 %vm271_vm1, %v28888_v5  ;;  %18088 = vmatmul.mubr.msk.f32.gmra.mrb[202].mxu1 %vm271_vm1, %v21092_v35  ;;  %v21095_v35 = vld [vmem:[%s28320_s0 + $0x610] sm:$0xff] }
 0x341   :  { %17174 = vmatprep.mubr.msk.f32.mxu0 %vm271_vm1, %v28889_v38  ;;  %18090 = vmatprep.mubr.msk.f32.mxu1 %vm271_vm1, %v21093_v4  ;;  %v21096_v4 = vld [vmem:[%s28320_s0 + $0x618] sm:$0xff] }
 0x344   :  { %17175 = vmatmul.mubr.msk.f32.gmra.mrb[8].mxu0 %vm271_vm1, %v28890_v34  ;;  %18091 = vmatmul.mubr.msk.f32.gmra.mrb[220].mxu1 %vm271_vm1, %v21094_v2  ;;  %v21097_v2 = vld [vmem:[%s28320_s0 + $0x620] sm:$0xff] }
 0x345   :  { %17177 = vmatprep.mubr.msk.f32.mxu0 %vm271_vm1, %v28891_v32  ;;  %18093 = vmatprep.mubr.msk.f32.mxu1 %vm271_vm1, %v21095_v35  ;;  %v21098_v35 = vld [vmem:[%s28320_s0 + $0x628] sm:$0xff] }
 0x348   :  { %17178 = vmatmul.mubr.msk.f32.gmra.mrb[10].mxu0 %vm271_vm1, %v28892_v30  ;;  %18094 = vmatmul.mubr.msk.f32.gmra.mrb[222].mxu1 %vm271_vm1, %v21096_v4  ;;  %v21099_v4 = vld [vmem:[%s28320_s0 + $0x630] sm:$0xff] }
 0x349   :  { %17180 = vmatprep.mubr.msk.f32.mxu0 %vm271_vm1, %v28893_v28  ;;  %18096 = vmatprep.mubr.msk.f32.mxu1 %vm271_vm1, %v21097_v2  ;;  %v21100_v2 = vld [vmem:[%s28320_s0 + $0x638] sm:$0xff] }
 0x34c   :  { %17181 = vmatmul.mubr.msk.f32.gmra.mrb[12].mxu0 %vm271_vm1, %v28894_v25  ;;  %18097 = vmatmul.mubr.msk.f32.gmra.mrb[224].mxu1 %vm271_vm1, %v21098_v35  ;;  %v21101_v35 = vld [vmem:[%s28320_s0 + $0x640] sm:$0xff] }
 0x34d   :  { %17183 = vmatprep.mubr.msk.f32.mxu0 %vm271_vm1, %v28895_v18  ;;  %18099 = vmatprep.mubr.msk.f32.mxu1 %vm271_vm1, %v21099_v4  ;;  %v21102_v4 = vld [vmem:[%s28320_s0 + $0x648] sm:$0xff] }
 0x350   :  { %17184 = vmatmul.mubr.msk.f32.gmra.mrb[14].mxu0 %vm271_vm1, %v28896_v16  ;;  %18100 = vmatmul.mubr.msk.f32.gmra.mrb[226].mxu1 %vm271_vm1, %v21100_v2  ;;  %v21103_v2 = vld [vmem:[%s28320_s0 + $0x650] sm:$0xff] }
 0x351   :  { %17186 = vmatprep.mubr.msk.f32.mxu0 %vm271_vm1, %v28897_v14  ;;  %18102 = vmatprep.mubr.msk.f32.mxu1 %vm271_vm1, %v21101_v35  ;;  %v21104_v35 = vld [vmem:[%s28320_s0 + $0x658] sm:$0xff] }
 0x354   :  { %17187 = vmatmul.mubr.msk.f32.gmra.mrb[16].mxu0 %vm271_vm1, %v28898_v13  ;;  %18103 = vmatmul.mubr.msk.f32.gmra.mrb[228].mxu1 %vm271_vm1, %v21102_v4  ;;  %v28902_v4 = vld [vmem:[#allocation51_spill] sm:$0xff] }
 0x355   :  { %17189 = vmatprep.mubr.msk.f32.mxu0 %vm271_vm1, %v28899_v12  ;;  %18105 = vmatprep.mubr.msk.f32.mxu1 %vm271_vm1, %v21103_v2  ;;  %v28903_v2 = vld [vmem:[#allocation52_spill] sm:$0xff] }
 0x358   :  { %17190 = vmatmul.mubr.msk.f32.gmra.mrb[18].mxu0 %vm271_vm1, %v28900_v11  ;;  %18106 = vmatmul.mubr.msk.f32.gmra.mrb[230].mxu1 %vm271_vm1, %v21104_v35  ;;  %v14234_v35 = vld [vmem:[%s28323_s4 + $0x60] sm:$0xff] }
 0x359   :  { %17192 = vmatprep.mubr.msk.f32.mxu0 %vm271_vm1, %v28901_v10  ;;  %18108 = vmatprep.mubr.msk.f32.mxu1 %vm271_vm1, %v28877_v29  ;;  %v14235_v29 = vld [vmem:[%s28323_s4 + $0x68] sm:$0xff] }
 0x35c   :  { %17193 = vmatmul.mubr.msk.f32.gmra.mrb[20].mxu0 %vm271_vm1, %v28902_v4  ;;  %18109 = vmatmul.mubr.msk.f32.gmra.mrb[232].mxu1 %vm271_vm1, %v28878_v33  ;;  %v28905_v33 = vld [vmem:[#allocation54_spill] sm:$0xff] }
 0x35d   :  { %17195 = vmatprep.mubr.msk.f32.mxu0 %vm271_vm1, %v28903_v2  ;;  %18111 = vmatprep.mubr.msk.f32.mxu1 %vm271_vm1, %v28879_v37  ;;  %v19604_v37 = vpack.c.bf16 %v14235_v29, %v14234_v35  ;;  %v28924_v35 = vld [vmem:[#allocation73_spill] sm:$0xff]  ;;  %v28926_v29 = vld [vmem:[#allocation75_spill] sm:$0xff] }
 0x360   :  { %17196 = vmatmul.mubr.msk.f32.gmra.mrb[22].mxu0 %vm271_vm1, %v28904_v9  ;;  %18112 = vmatmul.mubr.msk.f32.gmra.mrb[234].mxu1 %vm271_vm1, %v28880_v3  ;;  %v28908_v3 = vld [vmem:[#allocation57_spill] sm:$0xff] }
 0x361   :  { %17198 = vmatprep.mubr.msk.f32.mxu0 %vm271_vm1, %v28905_v33  ;;  %18122 = vmatprep.mubr.msk.f32.mxu1 %vm271_vm1, %v28881_v22  ;;  %v28909_v22 = vld [vmem:[#allocation58_spill] sm:$0xff] }
 0x364   :  { %17199 = vmatmul.mubr.msk.f32.gmra.mrb[24].mxu0 %vm271_vm1, %v28906_v41  ;;  %18123 = vmatmul.mubr.msk.f32.vlgmr.msra.gmra.mrb[12].mxu1 %vm271_vm1, %v28882_v31  ;;  %v28910_v31 = vld [vmem:[#allocation59_spill] sm:$0xff] }
 0x365   :  { %19603 = vmatpush3.bf16.msra.mxu1 %v24112_v6  ;;  %17201 = vmatprep.mubr.msk.f32.mxu0 %vm271_vm1, %v23025_v54  ;;  %v28907_v6 = vld [vmem:[#allocation56_spill] sm:$0xff] }
 0x366   :  { %18125 = vmatprep.mubr.msk.f32.mxu1 %vm271_vm1, %v28883_v0  ;;  %19605 = vmatprep.subr.bf16.mxu1 %v19604_v37  ;;  %v28911_v0 = vld [vmem:[#allocation60_spill] sm:$0xff] }
 0x368   :  { %17202 = vmatmul.mubr.msk.f32.gmra.mrb[26].mxu0 %vm271_vm1, %v23034_v24  ;;  %18126 = vmatmul.mubr.msk.f32.gmra.mrb[14].mxu1 %vm271_vm1, %v28884_v27  ;;  %v28913_v27 = vld [vmem:[#allocation62_spill] sm:$0xff] }
 0x369   :  { %17204 = vmatprep.mubr.msk.f32.mxu0 %vm271_vm1, %v23043_v50  ;;  %18128 = vmatprep.mubr.msk.f32.mxu1 %vm271_vm1, %v28885_v15  ;;  %v28914_v15 = vld [vmem:[#allocation63_spill] sm:$0xff] }
 0x36a   :  { %19607 = vmatpush3.bf16.msra.mxu1 %v19604_v37  ;;  %v28930_v37 = vld [vmem:[#allocation79_spill] sm:$0xff] }
 0x36c   :  { %17205 = vmatmul.mubr.msk.f32.gmra.mrb[28].mxu0 %vm271_vm1, %v23052_v49  ;;  %18129 = vmatmul.mubr.msk.f32.gmra.mrb[16].mxu1 %vm271_vm1, %v28886_v17  ;;  %v28915_v17 = vld [vmem:[#allocation64_spill] sm:$0xff] }
 0x36d   :  { %17207 = vmatprep.mubr.msk.f32.mxu0 %vm271_vm1, %v28907_v6  ;;  %18131 = vmatprep.mubr.msk.f32.mxu1 %vm271_vm1, %v28887_v36  ;;  %v28912_v36 = vld [vmem:[#allocation61_spill] sm:$0xff] }
 0x370   :  { %17208 = vmatmul.mubr.msk.f32.gmra.mrb[30].mxu0 %vm271_vm1, %v28908_v3  ;;  %18132 = vmatmul.mubr.msk.f32.gmra.mrb[18].mxu1 %vm271_vm1, %v28888_v5  ;;  %v28922_v5 = vld [vmem:[#allocation71_spill] sm:$0xff] }
 0x371   :  { %17210 = vmatprep.mubr.msk.f32.mxu0 %vm271_vm1, %v28909_v22  ;;  %18134 = vmatprep.mubr.msk.f32.mxu1 %vm271_vm1, %v28889_v38  ;;  %v28923_v38 = vld [vmem:[#allocation72_spill] sm:$0xff] }
 0x374   :  { %17211 = vmatmul.mubr.msk.f32.gmra.mrb[32].mxu0 %vm271_vm1, %v28910_v31  ;;  %18135 = vmatmul.mubr.msk.f32.gmra.mrb[20].mxu1 %vm271_vm1, %v28890_v34 }
 0x375   :  { %17213 = vmatprep.mubr.msk.f32.mxu0 %vm271_vm1, %v28911_v0  ;;  %18137 = vmatprep.mubr.msk.f32.mxu1 %vm271_vm1, %v28891_v32  ;;  %v28916_v32 = vld [vmem:[#allocation65_spill] sm:$0xff] }
 0x378   :  { %17214 = vmatmul.mubr.msk.f32.gmra.mrb[34].mxu0 %vm271_vm1, %v28912_v36  ;;  %18138 = vmatmul.mubr.msk.f32.gmra.mrb[22].mxu1 %vm271_vm1, %v28892_v30  ;;  %v28917_v30 = vld [vmem:[#allocation66_spill] sm:$0xff] }
 0x379   :  { %17216 = vmatprep.mubr.msk.f32.mxu0 %vm271_vm1, %v28913_v27  ;;  %18140 = vmatprep.mubr.msk.f32.mxu1 %vm271_vm1, %v28893_v28  ;;  %v28918_v28 = vld [vmem:[#allocation67_spill] sm:$0xff] }
 0x37c   :  { %17217 = vmatmul.mubr.msk.f32.gmra.mrb[36].mxu0 %vm271_vm1, %v28914_v15  ;;  %18141 = vmatmul.mubr.msk.f32.gmra.mrb[24].mxu1 %vm271_vm1, %v28894_v25  ;;  %v28919_v25 = vld [vmem:[#allocation68_spill] sm:$0xff] }
 0x37d   :  { %17219 = vmatprep.mubr.msk.f32.mxu0 %vm271_vm1, %v28915_v17  ;;  %18143 = vmatprep.mubr.msk.f32.mxu1 %vm271_vm1, %v28895_v18  ;;  %v28920_v18 = vld [vmem:[#allocation69_spill] sm:$0xff] }
 0x380   :  { %17220 = vmatmul.mubr.msk.f32.gmra.mrb[38].mxu0 %vm271_vm1, %v28916_v32  ;;  %18144 = vmatmul.mubr.msk.f32.gmra.mrb[26].mxu1 %vm271_vm1, %v28896_v16  ;;  %v28921_v16 = vld [vmem:[#allocation70_spill] sm:$0xff] }
 0x381   :  { %17222 = vmatprep.mubr.msk.f32.mxu0 %vm271_vm1, %v28917_v30  ;;  %18146 = vmatprep.mubr.msk.f32.mxu1 %vm271_vm1, %v28897_v14  ;;  %v14236_v14 = vld [vmem:[%s28323_s4 + $0x70] sm:$0xff] }
 0x384   :  { %17223 = vmatmul.mubr.msk.f32.gmra.mrb[40].mxu0 %vm271_vm1, %v28918_v28  ;;  %18147 = vmatmul.mubr.msk.f32.gmra.mrb[28].mxu1 %vm271_vm1, %v28898_v13  ;;  %v13973_v13 = vld [vmem:[%s28322_s3 + $0x70] sm:$0xff] }
 0x385   :  { %17225 = vmatprep.mubr.msk.f32.mxu0 %vm271_vm1, %v28919_v25  ;;  %18149 = vmatprep.mubr.msk.f32.mxu1 %vm271_vm1, %v28899_v12  ;;  %v13974_v12 = vld [vmem:[%s28322_s3 + $0x78] sm:$0xff] }
 0x388   :  { %17226 = vmatmul.mubr.msk.f32.gmra.mrb[42].mxu0 %vm271_vm1, %v28920_v18  ;;  %18150 = vmatmul.mubr.msk.f32.gmra.mrb[30].mxu1 %vm271_vm1, %v28900_v11  ;;  %v19542_v11 = vpack.c.bf16 %v13974_v12, %v13973_v13  ;;  %v28951_v13 = vld [vmem:[#allocation100_spill] sm:$0xff]  ;;  %v28952_v12 = vld [vmem:[#allocation101_spill] sm:$0xff] }
 0x389   :  { %17228 = vmatprep.mubr.msk.f32.mxu0 %vm271_vm1, %v28921_v16  ;;  %18152 = vmatprep.mubr.msk.f32.mxu1 %vm271_vm1, %v28901_v10  ;;  %v14237_v10 = vld [vmem:[%s28323_s4 + $0x78] sm:$0xff] }
 0x38a   :  { %v19608_v34 = vpack.c.bf16 %v14237_v10, %v14236_v14  ;;  %19543 = vmatprep.subr.bf16.mxu0 %v19542_v11  ;;  %v28953_v14 = vld [vmem:[#allocation102_spill] sm:$0xff]  ;;  %v28956_v10 = vld [vmem:[#allocation105_spill] sm:$0xff] }
 0x38b   :  { %19545 = vmatpush3.bf16.msra.mxu0 %v19542_v11  ;;  %v28955_v11 = vld [vmem:[#allocation104_spill] sm:$0xff] }
 0x38c   :  { %17229 = vmatmul.mubr.msk.f32.gmra.mrb[44].mxu0 %vm271_vm1, %v28922_v5  ;;  %18153 = vmatmul.mubr.msk.f32.gmra.mrb[32].mxu1 %vm271_vm1, %v28902_v4  ;;  %v28925_v4 = vld [vmem:[#allocation74_spill] sm:$0xff] }
 0x38d   :  { %17231 = vmatprep.mubr.msk.f32.mxu0 %vm271_vm1, %v28923_v38  ;;  %18155 = vmatprep.mubr.msk.f32.mxu1 %vm271_vm1, %v28903_v2  ;;  %v28927_v2 = vld [vmem:[#allocation76_spill] sm:$0xff] }
 0x38e   :  { %19609 = vmatprep.subr.bf16.mxu1 %v19608_v34 }
 0x38f   :  { %19611 = vmatpush3.bf16.msra.mxu1 %v19608_v34  ;;  %v28958_v34 = vld [vmem:[#allocation107_spill] sm:$0xff] }
 0x390   :  { %17232 = vmatmul.mubr.msk.f32.gmra.mrb[46].mxu0 %vm271_vm1, %v28924_v35  ;;  %18156 = vmatmul.mubr.msk.f32.gmra.mrb[34].mxu1 %vm271_vm1, %v28904_v9  ;;  %v28928_v9 = vld [vmem:[#allocation77_spill] sm:$0xff] }
 0x391   :  { %17234 = vmatprep.mubr.msk.f32.mxu0 %vm271_vm1, %v28925_v4  ;;  %18158 = vmatprep.mubr.msk.f32.mxu1 %vm271_vm1, %v28905_v33  ;;  %v28929_v33 = vld [vmem:[#allocation78_spill] sm:$0xff] }
 0x394   :  { %17235 = vmatmul.mubr.msk.f32.gmra.mrb[48].mxu0 %vm271_vm1, %v28926_v29  ;;  %18159 = vmatmul.mubr.msk.f32.gmra.mrb[36].mxu1 %vm271_vm1, %v28906_v41  ;;  %v28931_v41 = vld [vmem:[#allocation80_spill] sm:$0xff] }
 0x395   :  { %17237 = vmatprep.mubr.msk.f32.mxu0 %vm271_vm1, %v28927_v2  ;;  %18161 = vmatprep.mubr.msk.f32.mxu1 %vm271_vm1, %v23025_v54  ;;  %v28932_v54 = vld [vmem:[#allocation81_spill] sm:$0xff] }
 0x398   :  { %17238 = vmatmul.mubr.msk.f32.gmra.mrb[50].mxu0 %vm271_vm1, %v28928_v9  ;;  %18162 = vmatmul.mubr.msk.f32.gmra.mrb[38].mxu1 %vm271_vm1, %v23034_v24  ;;  %v28933_v24 = vld [vmem:[#allocation82_spill] sm:$0xff] }
 0x399   :  { %17240 = vmatprep.mubr.msk.f32.mxu0 %vm271_vm1, %v28929_v33  ;;  %18164 = vmatprep.mubr.msk.f32.mxu1 %vm271_vm1, %v23043_v50  ;;  %v28934_v50 = vld [vmem:[#allocation83_spill] sm:$0xff] }
 0x39c   :  { %17241 = vmatmul.mubr.msk.f32.gmra.mrb[52].mxu0 %vm271_vm1, %v28930_v37  ;;  %18165 = vmatmul.mubr.msk.f32.gmra.mrb[40].mxu1 %vm271_vm1, %v23052_v49  ;;  %v28935_v49 = vld [vmem:[#allocation84_spill] sm:$0xff] }
 0x39d   :  { %17243 = vmatprep.mubr.msk.f32.mxu0 %vm271_vm1, %v28931_v41  ;;  %18167 = vmatprep.mubr.msk.f32.mxu1 %vm271_vm1, %v28907_v6  ;;  %v28936_v6 = vld [vmem:[#allocation85_spill] sm:$0xff] }
 0x3a0   :  { %17244 = vmatmul.mubr.msk.f32.gmra.mrb[54].mxu0 %vm271_vm1, %v28932_v54  ;;  %18168 = vmatmul.mubr.msk.f32.gmra.mrb[42].mxu1 %vm271_vm1, %v28908_v3  ;;  %v28937_v3 = vld [vmem:[#allocation86_spill] sm:$0xff] }
 0x3a1   :  { %17246 = vmatprep.mubr.msk.f32.mxu0 %vm271_vm1, %v28933_v24  ;;  %18170 = vmatprep.mubr.msk.f32.mxu1 %vm271_vm1, %v28909_v22  ;;  %v28938_v22 = vld [vmem:[#allocation87_spill] sm:$0xff] }
 0x3a4   :  { %17247 = vmatmul.mubr.msk.f32.gmra.mrb[56].mxu0 %vm271_vm1, %v28934_v50  ;;  %18171 = vmatmul.mubr.msk.f32.gmra.mrb[44].mxu1 %vm271_vm1, %v28910_v31  ;;  %v28939_v31 = vld [vmem:[#allocation88_spill] sm:$0xff] }
 0x3a5   :  { %17249 = vmatprep.mubr.msk.f32.mxu0 %vm271_vm1, %v28935_v49  ;;  %18173 = vmatprep.mubr.msk.f32.mxu1 %vm271_vm1, %v28911_v0  ;;  %v28940_v0 = vld [vmem:[#allocation89_spill] sm:$0xff] }
 0x3a8   :  { %17250 = vmatmul.mubr.msk.f32.gmra.mrb[58].mxu0 %vm271_vm1, %v28936_v6  ;;  %18174 = vmatmul.mubr.msk.f32.gmra.mrb[46].mxu1 %vm271_vm1, %v28912_v36  ;;  %v28941_v36 = vld [vmem:[#allocation90_spill] sm:$0xff] }
 0x3a9   :  { %17252 = vmatprep.mubr.msk.f32.mxu0 %vm271_vm1, %v28937_v3  ;;  %18176 = vmatprep.mubr.msk.f32.mxu1 %vm271_vm1, %v28913_v27  ;;  %v28942_v27 = vld [vmem:[#allocation91_spill] sm:$0xff] }
 0x3ac   :  { %17253 = vmatmul.mubr.msk.f32.gmra.mrb[60].mxu0 %vm271_vm1, %v28938_v22  ;;  %18177 = vmatmul.mubr.msk.f32.gmra.mrb[48].mxu1 %vm271_vm1, %v28914_v15  ;;  %v28943_v15 = vld [vmem:[#allocation92_spill] sm:$0xff] }
 0x3ad   :  { %17255 = vmatprep.mubr.msk.f32.mxu0 %vm271_vm1, %v28939_v31  ;;  %18179 = vmatprep.mubr.msk.f32.mxu1 %vm271_vm1, %v28915_v17  ;;  %v28944_v17 = vld [vmem:[#allocation93_spill] sm:$0xff] }
 0x3b0   :  { %17256 = vmatmul.mubr.msk.f32.gmra.mrb[62].mxu0 %vm271_vm1, %v28940_v0  ;;  %18180 = vmatmul.mubr.msk.f32.gmra.mrb[50].mxu1 %vm271_vm1, %v28916_v32  ;;  %v28945_v32 = vld [vmem:[#allocation94_spill] sm:$0xff] }
 0x3b1   :  { %17258 = vmatprep.mubr.msk.f32.mxu0 %vm271_vm1, %v28941_v36  ;;  %18182 = vmatprep.mubr.msk.f32.mxu1 %vm271_vm1, %v28917_v30  ;;  %v28946_v30 = vld [vmem:[#allocation95_spill] sm:$0xff] }
 0x3b4   :  { %17259 = vmatmul.mubr.msk.f32.gmra.mrb[64].mxu0 %vm271_vm1, %v28942_v27  ;;  %18183 = vmatmul.mubr.msk.f32.gmra.mrb[52].mxu1 %vm271_vm1, %v28918_v28  ;;  %v28947_v28 = vld [vmem:[#allocation96_spill] sm:$0xff] }
 0x3b5   :  { %17261 = vmatprep.mubr.msk.f32.mxu0 %vm271_vm1, %v28943_v15  ;;  %18185 = vmatprep.mubr.msk.f32.mxu1 %vm271_vm1, %v28919_v25  ;;  %v28948_v25 = vld [vmem:[#allocation97_spill] sm:$0xff] }
 0x3b8   :  { %17262 = vmatmul.mubr.msk.f32.gmra.mrb[66].mxu0 %vm271_vm1, %v28944_v17  ;;  %18186 = vmatmul.mubr.msk.f32.gmra.mrb[54].mxu1 %vm271_vm1, %v28920_v18  ;;  %v28949_v18 = vld [vmem:[#allocation98_spill] sm:$0xff] }
 0x3b9   :  { %17264 = vmatprep.mubr.msk.f32.mxu0 %vm271_vm1, %v28945_v32  ;;  %18188 = vmatprep.mubr.msk.f32.mxu1 %vm271_vm1, %v28921_v16  ;;  %v28950_v16 = vld [vmem:[#allocation99_spill] sm:$0xff] }
 0x3bc   :  { %17265 = vmatmul.mubr.msk.f32.gmra.mrb[68].mxu0 %vm271_vm1, %v28946_v30  ;;  %18189 = vmatmul.mubr.msk.f32.gmra.mrb[56].mxu1 %vm271_vm1, %v28922_v5  ;;  %v28954_v5 = vld [vmem:[#allocation103_spill] sm:$0xff] }
 0x3bd   :  { %17267 = vmatprep.mubr.msk.f32.mxu0 %vm271_vm1, %v28947_v28  ;;  %18191 = vmatprep.mubr.msk.f32.mxu1 %vm271_vm1, %v28923_v38  ;;  %v28957_v38 = vld [vmem:[#allocation106_spill] sm:$0xff] }
 0x3c0   :  { %17268 = vmatmul.mubr.msk.f32.gmra.mrb[70].mxu0 %vm271_vm1, %v28948_v25  ;;  %18192 = vmatmul.mubr.msk.f32.gmra.mrb[58].mxu1 %vm271_vm1, %v28924_v35  ;;  %v28959_v35 = vld [vmem:[#allocation108_spill] sm:$0xff] }
 0x3c1   :  { %17270 = vmatprep.mubr.msk.f32.mxu0 %vm271_vm1, %v28949_v18  ;;  %18194 = vmatprep.mubr.msk.f32.mxu1 %vm271_vm1, %v28925_v4  ;;  %v28960_v4 = vld [vmem:[#allocation109_spill] sm:$0xff] }
 0x3c4   :  { %17271 = vmatmul.mubr.msk.f32.gmra.mrb[72].mxu0 %vm271_vm1, %v28950_v16  ;;  %18195 = vmatmul.mubr.msk.f32.gmra.mrb[60].mxu1 %vm271_vm1, %v28926_v29  ;;  %v28961_v29 = vld [vmem:[#allocation110_spill] sm:$0xff] }
 0x3c5   :  { %17273 = vmatprep.mubr.msk.f32.mxu0 %vm271_vm1, %v28951_v13  ;;  %18197 = vmatprep.mubr.msk.f32.mxu1 %vm271_vm1, %v28927_v2  ;;  %v28962_v2 = vld [vmem:[#allocation111_spill] sm:$0xff] }
 0x3c8   :  { %17274 = vmatmul.mubr.msk.f32.gmra.mrb[74].mxu0 %vm271_vm1, %v28952_v12  ;;  %18198 = vmatmul.mubr.msk.f32.gmra.mrb[62].mxu1 %vm271_vm1, %v28928_v9  ;;  %v28963_v9 = vld [vmem:[#allocation112_spill] sm:$0xff] }
 0x3c9   :  { %17276 = vmatprep.mubr.msk.f32.mxu0 %vm271_vm1, %v28953_v14  ;;  %18200 = vmatprep.mubr.msk.f32.mxu1 %vm271_vm1, %v28929_v33  ;;  %v13975_v33 = vld [vmem:[%s28322_s3 + $0x80] sm:$0xff] }
 0x3cc   :  { %17277 = vmatmul.mubr.msk.f32.gmra.mrb[76].mxu0 %vm271_vm1, %v28954_v5  ;;  %18201 = vmatmul.mubr.msk.f32.gmra.mrb[64].mxu1 %vm271_vm1, %v28930_v37  ;;  %v13976_v37 = vld [vmem:[%s28322_s3 + $0x88] sm:$0xff] }
 0x3cd   :  { %17279 = vmatprep.mubr.msk.f32.mxu0 %vm271_vm1, %v28955_v11  ;;  %18203 = vmatprep.mubr.msk.f32.mxu1 %vm271_vm1, %v28931_v41  ;;  %v14238_v41 = vld [vmem:[%s28323_s4 + $0x80] sm:$0xff] }
 0x3d0   :  { %17280 = vmatmul.mubr.msk.f32.gmra.mrb[78].mxu0 %vm271_vm1, %v28956_v10  ;;  %18204 = vmatmul.mubr.msk.f32.gmra.mrb[66].mxu1 %vm271_vm1, %v28932_v54  ;;  %v19546_v54 = vpack.c.bf16 %v13976_v37, %v13975_v33  ;;  %v28975_v33 = vld [vmem:[#allocation124_spill] sm:$0xff]  ;;  %v28976_v37 = vld [vmem:[#allocation125_spill] sm:$0xff] }
 0x3d1   :  { %17282 = vmatprep.mubr.msk.f32.mxu0 %vm271_vm1, %v28957_v38  ;;  %18206 = vmatprep.mubr.msk.f32.mxu1 %vm271_vm1, %v28933_v24  ;;  %v14239_v24 = vld [vmem:[%s28323_s4 + $0x88] sm:$0xff] }
 0x3d2   :  { %19547 = vmatprep.subr.bf16.mxu0 %v19546_v54 }
 0x3d3   :  { %19549 = vmatpush3.bf16.msra.mxu0 %v19546_v54  ;;  %v28978_v54 = vld [vmem:[#allocation127_spill] sm:$0xff] }
 0x3d4   :  { %17283 = vmatmul.mubr.msk.f32.gmra.mrb[80].mxu0 %vm271_vm1, %v28958_v34  ;;  %18207 = vmatmul.mubr.msk.f32.gmra.mrb[68].mxu1 %vm271_vm1, %v28934_v50  ;;  %v19612_v50 = vpack.c.bf16 %v14239_v24, %v14238_v41  ;;  %v28977_v41 = vld [vmem:[#allocation126_spill] sm:$0xff]  ;;  %v28979_v24 = vld [vmem:[#allocation128_spill] sm:$0xff] }
 0x3d5   :  { %17285 = vmatprep.mubr.msk.f32.mxu0 %vm271_vm1, %v28959_v35  ;;  %18209 = vmatprep.mubr.msk.f32.mxu1 %vm271_vm1, %v28935_v49  ;;  %v28964_v49 = vld [vmem:[#allocation113_spill] sm:$0xff] }
 0x3d6   :  { %19613 = vmatprep.subr.bf16.mxu1 %v19612_v50 }
 0x3d7   :  { %19615 = vmatpush3.bf16.msra.mxu1 %v19612_v50  ;;  %v28980_v50 = vld [vmem:[#allocation129_spill] sm:$0xff] }
 0x3d8   :  { %17286 = vmatmul.mubr.msk.f32.gmra.mrb[82].mxu0 %vm271_vm1, %v28960_v4  ;;  %18210 = vmatmul.mubr.msk.f32.gmra.mrb[70].mxu1 %vm271_vm1, %v28936_v6  ;;  %v28965_v6 = vld [vmem:[#allocation114_spill] sm:$0xff]  ;;  %v28971_v4 = vld [vmem:[#allocation120_spill] sm:$0xff] }
 0x3d9   :  { %17288 = vmatprep.mubr.msk.f32.mxu0 %vm271_vm1, %v28961_v29  ;;  %18212 = vmatprep.mubr.msk.f32.mxu1 %vm271_vm1, %v28937_v3  ;;  %v28966_v3 = vld [vmem:[#allocation115_spill] sm:$0xff]  ;;  %v28972_v29 = vld [vmem:[#allocation121_spill] sm:$0xff] }
 0x3dc   :  { %17289 = vmatmul.mubr.msk.f32.gmra.mrb[84].mxu0 %vm271_vm1, %v28962_v2  ;;  %18213 = vmatmul.mubr.msk.f32.gmra.mrb[72].mxu1 %vm271_vm1, %v28938_v22  ;;  %v28973_v2 = vld [vmem:[#allocation122_spill] sm:$0xff] }
 0x3dd   :  { %17291 = vmatprep.mubr.msk.f32.mxu0 %vm271_vm1, %v28963_v9  ;;  %18215 = vmatprep.mubr.msk.f32.mxu1 %vm271_vm1, %v28939_v31  ;;  %v28967_v31 = vld [vmem:[#allocation116_spill] sm:$0xff]  ;;  %v28974_v9 = vld [vmem:[#allocation123_spill] sm:$0xff] }
 0x3e0   :  { %17292 = vmatmul.mubr.msk.f32.gmra.mrb[86].mxu0 %vm271_vm1, %v28964_v49  ;;  %18216 = vmatmul.mubr.msk.f32.gmra.mrb[74].mxu1 %vm271_vm1, %v28940_v0  ;;  %v28968_v0 = vld [vmem:[#allocation117_spill] sm:$0xff] }
 0x3e1   :  { %17294 = vmatprep.mubr.msk.f32.mxu0 %vm271_vm1, %v23603_v48  ;;  %18218 = vmatprep.mubr.msk.f32.mxu1 %vm271_vm1, %v28941_v36 }
 0x3e4   :  { %17295 = vmatmul.mubr.msk.f32.gmra.mrb[88].mxu0 %vm271_vm1, %v23612_v43  ;;  %18219 = vmatmul.mubr.msk.f32.gmra.mrb[76].mxu1 %vm271_vm1, %v28942_v27  ;;  %v28969_v27 = vld [vmem:[#allocation118_spill] sm:$0xff] }
 0x3e5   :  { %17297 = vmatprep.mubr.msk.f32.mxu0 %vm271_vm1, %v28965_v6  ;;  %18221 = vmatprep.mubr.msk.f32.mxu1 %vm271_vm1, %v28943_v15  ;;  %v28981_v6 = vld [vmem:[#allocation130_spill] sm:$0xff] }
 0x3e7   :  { %v17132_v48 = vpop.f32.mrb[196].mxu0 }
 0x3e8   :  { %17298 = vmatmul.mubr.msk.f32.gmra.mrb[90].mxu0 %vm271_vm1, %v28966_v3  ;;  %18222 = vmatmul.mubr.msk.f32.gmra.mrb[78].mxu1 %vm271_vm1, %v28944_v17  ;;  %v3042_v22 = vpop.f32.mrb[197].mxu0  ;;  %v28970_v17 = vld [vmem:[#allocation119_spill] sm:$0xff] }
 0x3e9   :  { %17300 = vmatprep.mubr.msk.f32.mxu0 %vm271_vm1, %v28967_v31  ;;  %18224 = vmatprep.mubr.msk.f32.mxu1 %vm271_vm1, %v28945_v32  ;;  %v21107_v48 = vld [vmem:[%s28320_s0 + $0x328] sm:$0xff] }
 0x3eb   :  { %v17135_v43 = vpop.f32.mrb[198].mxu0 }
 0x3ec   :  { %17301 = vmatmul.mubr.msk.f32.gmra.mrb[92].mxu0 %vm271_vm1, %v28968_v0  ;;  %18225 = vmatmul.mubr.msk.f32.gmra.mrb[80].mxu1 %vm271_vm1, %v28946_v30  ;;  %v3050_v36 = vpop.f32.mrb[199].mxu0 }
 0x3ed   :  { %17303 = vmatprep.mubr.msk.f32.mxu0 %vm271_vm1, %v28969_v27  ;;  %18227 = vmatprep.mubr.msk.f32.mxu1 %vm271_vm1, %v28947_v28 }
 0x3ef   :  { %v17138_v15 = vpop.f32.mrb[200].mxu0 }
 0x3f0   :  { %17304 = vmatmul.mubr.msk.f32.gmra.mrb[94].mxu0 %vm271_vm1, %v28970_v17  ;;  %18228 = vmatmul.mubr.msk.f32.gmra.mrb[82].mxu1 %vm271_vm1, %v28948_v25  ;;  %v3058_v32 = vpop.f32.mrb[201].mxu0  ;;  %v21113_v15 = vld [vmem:[%s28320_s0 + $0x358] sm:$0xff] }
 0x3f1   :  { %17306 = vmatprep.mubr.msk.f32.mxu0 %vm271_vm1, %v28971_v4  ;;  %18230 = vmatprep.mubr.msk.f32.mxu1 %vm271_vm1, %v28949_v18 }
 0x3f3   :  { %v17141_v30 = vpop.f32.mrb[202].mxu0 }
 0x3f4   :  { %17307 = vmatmul.mubr.msk.f32.gmra.mrb[96].mxu0 %vm271_vm1, %v28972_v29  ;;  %18231 = vmatmul.mubr.msk.f32.gmra.mrb[84].mxu1 %vm271_vm1, %v28950_v16  ;;  %v3066_v28 = vpop.f32.mrb[203].mxu0  ;;  %v21115_v30 = vld [vmem:[%s28320_s0 + $0x368] sm:$0xff] }
 0x3f5   :  { %17309 = vmatprep.mubr.msk.f32.mxu0 %vm271_vm1, %v28973_v2  ;;  %18233 = vmatprep.mubr.msk.f32.mxu1 %vm271_vm1, %v28951_v13 }
 0x3f7   :  { %v17144_v25 = vpop.f32.mrb[204].mxu0 }
 0x3f8   :  { %17310 = vmatmul.mubr.msk.f32.gmra.mrb[98].mxu0 %vm271_vm1, %v28974_v9  ;;  %18234 = vmatmul.mubr.msk.f32.gmra.mrb[86].mxu1 %vm271_vm1, %v28952_v12  ;;  %v3074_v18 = vpop.f32.mrb[205].mxu0  ;;  %v21117_v25 = vld [vmem:[%s28320_s0 + $0x378] sm:$0xff] }
 0x3f9   :  { %17312 = vmatprep.mubr.msk.f32.mxu0 %vm271_vm1, %v28975_v33  ;;  %18236 = vmatprep.mubr.msk.f32.mxu1 %vm271_vm1, %v28953_v14 }
 0x3fb   :  { %v17147_v16 = vpop.f32.mrb[206].mxu0 }
 0x3fc   :  { %17313 = vmatmul.mubr.msk.f32.gmra.mrb[100].mxu0 %vm271_vm1, %v28976_v37  ;;  %18237 = vmatmul.mubr.msk.f32.gmra.mrb[88].mxu1 %vm271_vm1, %v28954_v5  ;;  %v3082_v13 = vpop.f32.mrb[207].mxu0  ;;  %v21119_v16 = vld [vmem:[%s28320_s0 + $0x388] sm:$0xff] }
 0x3fd   :  { %17315 = vmatprep.mubr.msk.f32.mxu0 %vm271_vm1, %v28977_v41  ;;  %18239 = vmatprep.mubr.msk.f32.mxu1 %vm271_vm1, %v28955_v11 }
 0x3ff   :  { %v17150_v12 = vpop.f32.mrb[208].mxu0 }
 0x400   :  { %17316 = vmatmul.mubr.msk.f32.gmra.mrb[102].mxu0 %vm271_vm1, %v28978_v54  ;;  %18240 = vmatmul.mubr.msk.f32.gmra.mrb[90].mxu1 %vm271_vm1, %v28956_v10  ;;  %v3090_v14 = vpop.f32.mrb[209].mxu0  ;;  %v21121_v12 = vld [vmem:[%s28320_s0 + $0x398] sm:$0xff] }
 0x401   :  { %17318 = vmatprep.mubr.msk.f32.mxu0 %vm271_vm1, %v28979_v24  ;;  %18242 = vmatprep.mubr.msk.f32.mxu1 %vm271_vm1, %v28957_v38  ;;  %v21105_v38 = vld [vmem:[%s28320_s0 + $0x318] sm:$0xff] }
 0x403   :  { %v17153_v5 = vpop.f32.mrb[210].mxu0 }
 0x404   :  { %17319 = vmatmul.mubr.msk.f32.gmra.mrb[104].mxu0 %vm271_vm1, %v28980_v50  ;;  %18243 = vmatmul.mubr.msk.f32.gmra.mrb[92].mxu1 %vm271_vm1, %v28958_v34  ;;  %v3098_v11 = vpop.f32.mrb[211].mxu0  ;;  %v21123_v5 = vld [vmem:[%s28320_s0 + $0x3a8] sm:$0xff] }
 0x405   :  { %17321 = vmatprep.mubr.msk.f32.mxu0 %vm271_vm1, %v23765_v53  ;;  %18245 = vmatprep.mubr.msk.f32.mxu1 %vm271_vm1, %v28959_v35  ;;  %v21106_v53 = vld [vmem:[%s28320_s0 + $0x320] sm:$0xff] }
 0x407   :  { %v24895_v10 = vpop.f32.mrb[0].mxu0 }
 0x408   :  { %v24897_v49 = vpop.f32.mrb[1].mxu0  ;;  %17322 = vmatmul.mubr.msk.f32.gmra.mrb[106].mxu0 %vm271_vm1, %v28981_v6  ;;  %18246 = vmatmul.mubr.msk.f32.gmra.mrb[94].mxu1 %vm271_vm1, %v21105_v38  ;;  %v21125_v38 = vld [vmem:[%s28320_s0 + $0x3b8] sm:$0xff] }
 0x409   :  { %17324 = vmatprep.mubr.msk.f32.mxu0 %vm271_vm1, %v23783_v59  ;;  %18248 = vmatprep.mubr.msk.f32.mxu1 %vm271_vm1, %v21106_v53  ;;  %v21108_v59 = vld [vmem:[%s28320_s0 + $0x330] sm:$0xff] }
 0x40b   :  { %v24911_v34 = vpop.f32.mrb[2].mxu0 }
 0x40c   :  { %v24913_v35 = vpop.f32.mrb[3].mxu0  ;;  %17325 = vmatmul.mubr.msk.f32.gmra.mrb[108].mxu0 %vm271_vm1, %v23792_v40  ;;  %18249 = vmatmul.mubr.msk.f32.gmra.mrb[96].mxu1 %vm271_vm1, %v21107_v48  ;;  %v21109_v40 = vld [vmem:[%s28320_s0 + $0x338] sm:$0xff] }
 0x40d   :  { %17327 = vmatprep.mubr.msk.f32.mxu0 %vm271_vm1, %v23801_v61  ;;  %18251 = vmatprep.mubr.msk.f32.mxu1 %vm271_vm1, %v21108_v59  ;;  %v21110_v61 = vld [vmem:[%s28320_s0 + $0x340] sm:$0xff]  ;;  %v13978_v59 = vld [vmem:[%s28322_s3 + $0x98] sm:$0x3f] }
 0x40f   :  { %v24927_v3 = vpop.f32.mrb[4].mxu0 }
 0x410   :  { %v24929_v22 = vpop.f32.mrb[5].mxu0  ;;  %17328 = vmatmul.mubr.msk.f32.gmra.mrb[110].mxu0 %vm271_vm1, %v23810_v60  ;;  %18252 = vmatmul.mubr.msk.f32.gmra.mrb[98].mxu1 %vm271_vm1, %v21109_v40  ;;  %v21111_v60 = vld [vmem:[%s28320_s0 + $0x348] sm:$0xff] }
 0x411   :  { %17330 = vmatprep.mubr.msk.f32.mxu0 %vm271_vm1, %v23819_v7  ;;  %18254 = vmatprep.mubr.msk.f32.mxu1 %vm271_vm1, %v21110_v61  ;;  %v21112_v7 = vld [vmem:[%s28320_s0 + $0x350] sm:$0xff]  ;;  %v21127_v61 = vld [vmem:[%s28320_s0 + $0x3c8] sm:$0xff] }
 0x413   :  { %v24943_v31 = vpop.f32.mrb[6].mxu0 }
 0x414   :  { %v24945_v43 = vpop.f32.mrb[7].mxu0  ;;  %17331 = vmatmul.mubr.msk.f32.gmra.mrb[112].mxu0 %vm271_vm1, %v23828_v46  ;;  %18255 = vmatmul.mubr.msk.f32.gmra.mrb[100].mxu1 %vm271_vm1, %v21111_v60 }
 0x415   :  { %17333 = vmatprep.mubr.msk.f32.mxu0 %vm271_vm1, %v23837_v47  ;;  %18257 = vmatprep.mubr.msk.f32.mxu1 %vm271_vm1, %v21112_v7  ;;  %v21114_v47 = vld [vmem:[%s28320_s0 + $0x360] sm:$0xff]  ;;  %v28982_v7 = vmov 0 }
 0x416   :  { %v28983_v7 = vsel %vm25088_vm5, 4294967295, %v28982_v7 }
 0x417   :  { %v24959_v0 = vpop.f32.mrb[8].mxu0  ;;  %v18092_v36 = vpop.f32.mrb[220].mxu1  ;;  %28984 = vst [vmem:[#allocation15_spill] sm:$0xff] %v28983_v7 }
 0x418   :  { %v24961_v27 = vpop.f32.mrb[9].mxu0  ;;  %17334 = vmatmul.mubr.msk.f32.gmra.mrb[114].mxu0 %vm271_vm1, %v23846_v23  ;;  %v6548_v46 = vpop.f32.mrb[221].mxu1  ;;  %18258 = vmatmul.mubr.msk.f32.gmra.mrb[102].mxu1 %vm271_vm1, %v21113_v15  ;;  %v14240_v36 = vld [vmem:[%s28323_s4 + $0x90] sm:$0xff] }
 0x419   :  { %17336 = vmatprep.mubr.msk.f32.mxu0 %vm271_vm1, %v23855_v55  ;;  %18260 = vmatprep.mubr.msk.f32.mxu1 %vm271_vm1, %v21114_v47  ;;  %v21116_v55 = vld [vmem:[%s28320_s0 + $0x370] sm:$0xff] }
 0x41a   :  { %v21128_v46 = vld [vmem:[%s28320_s0 + $0x3d0] sm:$0xff] }
 0x41b   :  { %v24975_v17 = vpop.f32.mrb[10].mxu0  ;;  %v18095_v32 = vpop.f32.mrb[222].mxu1 }
 0x41c   :  { %v24977_v23 = vpop.f32.mrb[11].mxu0  ;;  %17337 = vmatmul.mubr.msk.f32.gmra.mrb[116].mxu0 %vm271_vm1, %v23864_v51  ;;  %v6556_v4 = vpop.f32.mrb[223].mxu1  ;;  %18261 = vmatmul.mubr.msk.f32.gmra.mrb[104].mxu1 %vm271_vm1, %v21115_v30 }
 0x41d   :  { %17339 = vmatprep.mubr.msk.f32.mxu0 %vm271_vm1, %v23873_v45  ;;  %18263 = vmatprep.mubr.msk.f32.mxu1 %vm271_vm1, %v21116_v55  ;;  %v21118_v45 = vld [vmem:[%s28320_s0 + $0x380] sm:$0xff]  ;;  %v21129_v55 = vld [vmem:[%s28320_s0 + $0x3d8] sm:$0xff] }
 0x41f   :  { %v24991_v29 = vpop.f32.mrb[12].mxu0  ;;  %v18098_v28 = vpop.f32.mrb[224].mxu1 }
 0x420   :  { %v24993_v51 = vpop.f32.mrb[13].mxu0  ;;  %17340 = vmatmul.mubr.msk.f32.gmra.mrb[118].mxu0 %vm271_vm1, %v23882_v44  ;;  %v6564_v2 = vpop.f32.mrb[225].mxu1  ;;  %18264 = vmatmul.mubr.msk.f32.gmra.mrb[106].mxu1 %vm271_vm1, %v21117_v25 }
 0x421   :  { %17342 = vmatprep.mubr.msk.f32.mxu0 %vm271_vm1, %v23891_v26  ;;  %18266 = vmatprep.mubr.msk.f32.mxu1 %vm271_vm1, %v21118_v45  ;;  %v21120_v26 = vld [vmem:[%s28320_s0 + $0x390] sm:$0xff] }
 0x423   :  { %v25007_v9 = vpop.f32.mrb[14].mxu0  ;;  %v18101_v18 = vpop.f32.mrb[226].mxu1 }
 0x424   :  { %v25009_v44 = vpop.f32.mrb[15].mxu0  ;;  %17343 = vmatmul.mubr.msk.f32.gmra.mrb[120].mxu0 %vm271_vm1, %v23900_v63  ;;  %v6572_v33 = vpop.f32.mrb[227].mxu1  ;;  %18267 = vmatmul.mubr.msk.f32.gmra.mrb[108].mxu1 %vm271_vm1, %v21119_v16 }
 0x425   :  { %17345 = vmatprep.mubr.msk.f32.mxu0 %vm271_vm1, %v23909_v1  ;;  %18269 = vmatprep.mubr.msk.f32.mxu1 %vm271_vm1, %v21120_v26  ;;  %v21122_v1 = vld [vmem:[%s28320_s0 + $0x3a0] sm:$0xff]  ;;  %v28985_v33 = vld [vmem:[#allocation131_spill] sm:$0xff] }
 0x427   :  { %v25023_v37 = vpop.f32.mrb[16].mxu0  ;;  %v18104_v13 = vpop.f32.mrb[228].mxu1 }
 0x428   :  { %v25025_v63 = vpop.f32.mrb[17].mxu0  ;;  %17346 = vmatmul.mubr.msk.f32.gmra.mrb[122].mxu0 %vm271_vm1, %v23918_v19  ;;  %v6580_v41 = vpop.f32.mrb[229].mxu1  ;;  %18270 = vmatmul.mubr.msk.f32.gmra.mrb[110].mxu1 %vm271_vm1, %v21121_v12  ;;  %v21133_v12 = vld [vmem:[%s28320_s0 + $0x3f8] sm:$0xff] }
 0x429   :  { %17348 = vmatprep.mubr.msk.f32.mxu0 %vm271_vm1, %v23927_v20  ;;  %18272 = vmatprep.mubr.msk.f32.mxu1 %vm271_vm1, %v21122_v1  ;;  %v21124_v20 = vld [vmem:[%s28320_s0 + $0x3b0] sm:$0xff] }
 0x42a   :  { %v28986_v41 = vld [vmem:[#allocation132_spill] sm:$0xff] }
 0x42b   :  { %v25039_v54 = vpop.f32.mrb[18].mxu0  ;;  %v18107_v14 = vpop.f32.mrb[230].mxu1 }
 0x42c   :  { %v25041_v19 = vpop.f32.mrb[19].mxu0  ;;  %17349 = vmatmul.mubr.msk.f32.gmra.mrb[124].mxu0 %vm271_vm1, %v23936_v21  ;;  %v6588_v24 = vpop.f32.mrb[231].mxu1  ;;  %18273 = vmatmul.mubr.msk.f32.gmra.mrb[112].mxu1 %vm271_vm1, %v21123_v5  ;;  %v28987_v14 = vld [vmem:[#allocation133_spill] sm:$0xff] }
 0x42d   :  { %17351 = vmatprep.mubr.msk.f32.mxu0 %vm271_vm1, %v23945_v62  ;;  %18275 = vmatprep.mubr.msk.f32.mxu1 %vm271_vm1, %v21124_v20  ;;  %v21126_v62 = vld [vmem:[%s28320_s0 + $0x3c0] sm:$0xff] }
 0x42f   :  { %v25055_v50 = vpop.f32.mrb[20].mxu0  ;;  %v18110_v11 = vpop.f32.mrb[232].mxu1 }
 0x430   :  { %v25057_v21 = vpop.f32.mrb[21].mxu0  ;;  %17352 = vmatmul.mubr.msk.f32.gmra.mrb[126].mxu0 %vm271_vm1, %v23954_v52  ;;  %v6596_v6 = vpop.f32.mrb[233].mxu1  ;;  %18276 = vmatmul.mubr.msk.f32.gmra.mrb[114].mxu1 %vm271_vm1, %v21125_v38  ;;  %v13977_v52 = vld [vmem:[%s28322_s3 + $0x90] sm:$0xff]  ;;  %v21135_v38 = vld [vmem:[%s28320_s0 + $0x408] sm:$0xff] }
 0x431   :  { %17354 = vmatprep.mubr.msk.f32.mxu0 %vm271_vm1, %v23963_v56  ;;  %18278 = vmatprep.mubr.msk.f32.mxu1 %vm271_vm1, %v21126_v62  ;;  %v19550_v60 = vpack.c.bf16 %v13978_v59, %v13977_v52  ;;  %v28988_v6 = vld [vmem:[#allocation134_spill] sm:$0xff]  ;;  %v21136_v52 = vld [vmem:[%s28320_s0 + $0x410] sm:$0xff] }
 0x433   :  { %v25071_v53 = vpop.f32.mrb[22].mxu0  ;;  %v18113_v48 = vpop.f32.mrb[234].mxu1  ;;  %19552 = vmatprep.subr.msk.bf16.mxu0 %vm25088_vm5, %v19550_v60 }
 0x434   :  { %v25079_v40 = vpop.f32.mrb[23].mxu0  ;;  %17355 = vmatmul.mubr.msk.f32.gmra.mrb[128].mxu0 %vm271_vm1, %v23972_v57  ;;  %v6604_v56 = vpop.f32.mrb[235].mxu1  ;;  %18279 = vmatmul.mubr.msk.f32.gmra.mrb[116].mxu1 %vm271_vm1, %v21127_v61  ;;  %v14241_v57 = vld [vmem:[%s28323_s4 + $0x98] sm:$0x3f]  ;;  %v28989_v48 = vld [vmem:[#allocation135_spill] sm:$0xff] }
 0x435   :  { %17357 = vmatprep.mubr.msk.f32.mxu0 %vm271_vm1, %v23981_v58  ;;  %18281 = vmatprep.mubr.msk.f32.mxu1 %vm271_vm1, %v21128_v46  ;;  %v19616_v15 = vpack.c.bf16 %v14241_v57, %v14240_v36  ;;  %v28990_v36 = vld [vmem:[#allocation136_spill] sm:$0xff]  ;;  %v21137_v57 = vld [vmem:[%s28320_s0 + $0x418] sm:$0xff] }
 0x436   :  { %19555 = vmatpush3.bf16.msk.msra.mxu0 %vm25088_vm5, %v19550_v60 }
 0x437   :  { %v25106_v47 = vpop.f32.mrb[24].mxu0  ;;  %v25108_v32 = vpop.f32.mrb[12].mxu1  ;;  %19618 = vmatprep.subr.msk.bf16.mxu1 %vm25088_vm5, %v19616_v15 }
 0x438   :  { %v7901_v58 = vmax.f32 %v24895_v10, %v25108_v32  ;;  %v25116_v4 = vpop.f32.mrb[25].mxu0  ;;  %17358 = vmatmul.mubr.msk.f32.gmra.mrb[130].mxu0 %vm271_vm1, %v23990_v42  ;;  %v6685_v30 = vpop.f32.mrb[13].mxu1  ;;  %18282 = vmatmul.mubr.msk.f32.gmra.mrb[118].mxu1 %vm271_vm1, %v21129_v55  ;;  %v21130_v10 = vld [vmem:[%s28320_s0 + $0x3e0] sm:$0xff] }
 0x439   :  { %v7900_v28 = vmax.f32 %v24897_v49, %v6685_v30  ;;  %17360 = vmatprep.mubr.msk.f32.mxu0 %vm271_vm1, %v23999_v39  ;;  %18284 = vmatprep.mubr.msk.f32.mxu1 %vm271_vm1, %v21130_v10  ;;  %v21131_v49 = vld [vmem:[%s28320_s0 + $0x3e8] sm:$0xff] }
 0x43a   :  { %19621 = vmatpush3.bf16.msk.msra.mxu1 %vm25088_vm5, %v19616_v15  ;;  %v28991_v15 = vld [vmem:[#allocation137_spill] sm:$0xff] }
 0x43b   :  { %v25133_v42 = vpop.f32.mrb[26].mxu0  ;;  %v18127_v2 = vpop.f32.mrb[14].mxu1 }
 0x43c   :  { %v7903_v25 = vmax.f32 %v24911_v34, %v18127_v2  ;;  %v25136_v45 = vpop.f32.mrb[27].mxu0  ;;  %17361 = vmatmul.mubr.msk.f32.gmra.mrb[132].mxu0 %vm271_vm1, %v24129_v8  ;;  %v6695_v39 = vpop.f32.mrb[15].mxu1  ;;  %18285 = vmatmul.mubr.msk.f32.gmra.mrb[120].mxu1 %vm271_vm1, %v21131_v49  ;;  %v21132_v34 = vld [vmem:[%s28320_s0 + $0x3f0] sm:$0xff] }
 0x43d   :  { %v7902_v18 = vmax.f32 %v24913_v35, %v6695_v39  ;;  %17363 = vmatprep.mubr.msk.f32.mxu0 %vm271_vm1, %v28985_v33  ;;  %18287 = vmatprep.mubr.msk.f32.mxu1 %vm271_vm1, %v21132_v34  ;;  %v21139_v33 = vld [vmem:[%s28320_s0 + $0x428] sm:$0xff]  ;;  %v28995_v34 = vld [vmem:[#allocation4_spill] sm:$0xff] }
 0x43f   :  { %v25151_v16 = vpop.f32.mrb[28].mxu0  ;;  %v25153_v8 = vpop.f32.mrb[16].mxu1 }
 0x440   :  { %v7905_v26 = vmax.f32 %v24927_v3, %v25153_v8  ;;  %v25157_v13 = vpop.f32.mrb[29].mxu0  ;;  %17364 = vmatmul.mubr.msk.f32.gmra.mrb[134].mxu0 %vm271_vm1, %v28986_v41  ;;  %v25161_v35 = vpop.f32.mrb[17].mxu1  ;;  %18288 = vmatmul.mubr.msk.f32.gmra.mrb[122].mxu1 %vm271_vm1, %v21133_v12  ;;  %v21134_v3 = vld [vmem:[%s28320_s0 + $0x400] sm:$0xff] }
 0x441   :  { %v7904_v1 = vmax.f32 %v24929_v22, %v25161_v35  ;;  %17366 = vmatprep.mubr.msk.f32.mxu0 %vm271_vm1, %v28987_v14  ;;  %18290 = vmatprep.mubr.msk.f32.mxu1 %vm271_vm1, %v21134_v3 }
 0x443   :  { %v25175_v24 = vpop.f32.mrb[30].mxu0  ;;  %v25177_v5 = vpop.f32.mrb[18].mxu1 }
 0x444   :  { %v7907_v20 = vmax.f32 %v24943_v31, %v25177_v5  ;;  %v25181_v11 = vpop.f32.mrb[31].mxu0  ;;  %17367 = vmatmul.mubr.msk.f32.gmra.mrb[136].mxu0 %vm271_vm1, %v28988_v6  ;;  %v25185_v22 = vpop.f32.mrb[19].mxu1  ;;  %18291 = vmatmul.mubr.msk.f32.gmra.mrb[124].mxu1 %vm271_vm1, %v21135_v38  ;;  %v21141_v6 = vld [vmem:[%s28320_s0 + $0x438] sm:$0xff] }
 0x445   :  { %v7906_v62 = vmax.f32 %v24945_v43, %v25185_v22  ;;  %17369 = vmatprep.mubr.msk.f32.mxu0 %vm271_vm1, %v28989_v48  ;;  %18293 = vmatprep.mubr.msk.f32.mxu1 %vm271_vm1, %v21136_v52  ;;  %v28999_v22 = vld [vmem:[#allocation6_spill] sm:$0xff]  ;;  %v21145_v31 = vld [vmem:[%s28320_s0 + $0x458] sm:$0xff] }
 0x447   :  { %v25199_v59 = vpop.f32.mrb[32].mxu0  ;;  %v18136_v56 = vpop.f32.mrb[20].mxu1 }
 0x448   :  { %v7909_v61 = vmax.f32 %v24959_v0, %v18136_v56  ;;  %v25202_v60 = vpop.f32.mrb[33].mxu0  ;;  %17370 = vmatmul.mubr.msk.f32.gmra.mrb[138].mxu0 %vm271_vm1, %v28990_v36  ;;  %v6725_v43 = vpop.f32.mrb[21].mxu1  ;;  %18294 = vmatmul.mubr.msk.f32.gmra.mrb[126].mxu1 %vm271_vm1, %v21137_v57  ;;  %v21138_v0 = vld [vmem:[%s28320_s0 + $0x420] sm:$0xff]  ;;  %v29003_v57 = vld [vmem:[#allocation8_spill] sm:$0xff] }
 0x449   :  { %v7908_v46 = vmax.f32 %v24961_v27, %v6725_v43  ;;  %17372 = vmatprep.mubr.msk.f32.mxu0 %vm271_vm1, %v28991_v15  ;;  %18296 = vmatprep.mubr.msk.f32.mxu1 %vm271_vm1, %v21138_v0  ;;  %v28994_v27 = vld [vmem:[#allocation3_spill] sm:$0xff] }
 0x44a   :  { %v25217_v32 = vmax.f32 %v7901_v58, %v7909_v61  ;;  %v21143_v43 = vld [vmem:[%s28320_s0 + $0x448] sm:$0xff] }
 0x44b   :  { %v25219_v30 = vpop.f32.mrb[34].mxu0  ;;  %v18139_v55 = vpop.f32.mrb[22].mxu1  ;;  %v25221_v10 = vmax.f32 %v7900_v28, %v7908_v46 }
 0x44c   :  { %28992 = vst [vmem:[#allocation16_spill] sm:$0xff] %v25217_v32  ;;  %v7911_v2 = vmax.f32 %v24975_v17, %v18139_v55  ;;  %v25224_v39 = vpop.f32.mrb[35].mxu0  ;;  %17373 = vmatmul.mubr.msk.f32.gmra.mrb[140].mxu0 %vm271_vm1, %v28994_v27  ;;  %v6735_v49 = vpop.f32.mrb[23].mxu1  ;;  %18297 = vmatmul.mubr.msk.f32.gmra.mrb[128].mxu1 %vm271_vm1, %v21139_v33  ;;  %v21140_v17 = vld [vmem:[%s28320_s0 + $0x430] sm:$0xff]  ;;  %v25636_v32 = vld [vmem:[%s28320_s0 + $0x5c0] sm:$0xff] }
 0x44d   :  { %28993 = vst [vmem:[#allocation17_spill] sm:$0xff] %v25221_v10  ;;  %v7910_v58 = vmax.f32 %v24977_v23, %v6735_v49  ;;  %17375 = vmatprep.mubr.msk.f32.mxu0 %vm271_vm1, %v28995_v34  ;;  %18299 = vmatprep.mubr.msk.f32.mxu1 %vm271_vm1, %v21140_v17  ;;  %v28998_v23 = vld [vmem:[#allocation5_spill] sm:$0xff]  ;;  %v29008_v34 = vld [vmem:[#allocation11_spill] sm:$0xff]  ;;  %29024 = vst [vmem:[#allocation32_spill] sm:$0xff] %v25636_v32 }
 0x44e   :  { %v25239_v28 = vmax.f32 %v7903_v25, %v7911_v2  ;;  %v29006_v2 = vld [vmem:[#allocation9_spill] sm:$0xff]  ;;  %v21147_v17 = vld [vmem:[%s28320_s0 + $0x468] sm:$0xff]  ;;  %v21182_v10 = vld [vmem:[%s28320_s0 + $0x500] sm:$0xff] }
 0x44f   :  { %v25241_v8 = vpop.f32.mrb[36].mxu0  ;;  %v18142_v41 = vpop.f32.mrb[24].mxu1  ;;  %v25243_v35 = vmax.f32 %v7902_v18, %v7910_v58 }
 0x450   :  { %28996 = vst [vmem:[#allocation18_spill] sm:$0xff] %v25239_v28  ;;  %v7913_v12 = vmax.f32 %v24991_v29, %v18142_v41  ;;  %v25246_v14 = vpop.f32.mrb[37].mxu0  ;;  %17376 = vmatmul.mubr.msk.f32.gmra.mrb[142].mxu0 %vm271_vm1, %v28998_v23  ;;  %v6745_v3 = vpop.f32.mrb[25].mxu1  ;;  %18300 = vmatmul.mubr.msk.f32.gmra.mrb[130].mxu1 %vm271_vm1, %v21141_v6  ;;  %v21142_v29 = vld [vmem:[%s28320_s0 + $0x440] sm:$0xff]  ;;  %v21148_v23 = vld [vmem:[%s28320_s0 + $0x470] sm:$0xff]  ;;  %v25621_v28 = vld [vmem:[%s28320_s0 + $0x5b8] sm:$0xff] }
 0x451   :  { %28997 = vst [vmem:[#allocation19_spill] sm:$0xff] %v25243_v35  ;;  %v7912_v25 = vmax.f32 %v24993_v51, %v6745_v3  ;;  %17378 = vmatprep.mubr.msk.f32.mxu0 %vm271_vm1, %v28999_v22  ;;  %18302 = vmatprep.mubr.msk.f32.mxu1 %vm271_vm1, %v21142_v29  ;;  %v29002_v51 = vld [vmem:[#allocation7_spill] sm:$0xff]  ;;  %v29010_v29 = vld [vmem:[#allocation13_spill] sm:$0xff] }
 0x452   :  { %v25261_v18 = vmax.f32 %v7905_v26, %v7913_v12  ;;  %v29009_v12 = vld [vmem:[#allocation12_spill] sm:$0xff] }
 0x453   :  { %v25263_v38 = vpop.f32.mrb[38].mxu0  ;;  %v18145_v48 = vpop.f32.mrb[26].mxu1  ;;  %v25265_v52 = vmax.f32 %v7904_v1, %v7912_v25 }
 0x454   :  { %29000 = vst [vmem:[#allocation20_spill] sm:$0xff] %v25261_v18  ;;  %v7915_v56 = vmax.f32 %v25007_v9, %v18145_v48  ;;  %v25268_v61 = vpop.f32.mrb[39].mxu0  ;;  %17379 = vmatmul.mubr.msk.f32.gmra.mrb[144].mxu0 %vm271_vm1, %v29002_v51  ;;  %v6755_v36 = vpop.f32.mrb[27].mxu1  ;;  %18303 = vmatmul.mubr.msk.f32.gmra.mrb[132].mxu1 %vm271_vm1, %v21143_v43  ;;  %v21144_v9 = vld [vmem:[%s28320_s0 + $0x450] sm:$0xff]  ;;  %v21150_v43 = vld [vmem:[%s28320_s0 + $0x480] sm:$0xff]  ;;  %v25436_v51 = vld [vmem:[%s28320_s0 + $0x568] sm:$0xff] }
 0x455   :  { %29001 = vst [vmem:[#allocation21_spill] sm:$0xff] %v25265_v52  ;;  %v7914_v26 = vmax.f32 %v25009_v44, %v6755_v36  ;;  %17381 = vmatprep.mubr.msk.f32.mxu0 %vm271_vm1, %v29003_v57  ;;  %18305 = vmatprep.mubr.msk.f32.mxu1 %vm271_vm1, %v21144_v9  ;;  %v29011_v36 = vld [vmem:[#allocation14_spill] sm:$0xff] }
 0x456   :  { %v25286_v1 = vmax.f32 %v7907_v20, %v7915_v56  ;;  %v29007_v20 = vld [vmem:[#allocation10_spill] sm:$0xff]  ;;  %v21149_v56 = vld [vmem:[%s28320_s0 + $0x478] sm:$0xff] }
 0x457   :  { %v25288_v46 = vpop.f32.mrb[40].mxu0  ;;  %v25290_v15 = vpop.f32.mrb[28].mxu1  ;;  %v25292_v0 = vmax.f32 %v7906_v62, %v7914_v26 }
 0x458   :  { %29004 = vst [vmem:[#allocation22_spill] sm:$0xff] %v25286_v1  ;;  %v7917_v44 = vmax.f32 %v25023_v37, %v25290_v15  ;;  %v25296_v55 = vpop.f32.mrb[41].mxu0  ;;  %17382 = vmatmul.mubr.msk.f32.gmra.mrb[146].mxu0 %vm271_vm1, %v29006_v2  ;;  %v25300_v27 = vpop.f32.mrb[29].mxu1  ;;  %18306 = vmatmul.mubr.msk.f32.gmra.mrb[134].mxu1 %vm271_vm1, %v21145_v31  ;;  %v21146_v37 = vld [vmem:[%s28320_s0 + $0x460] sm:$0xff]  ;;  %v25373_v2 = vld [vmem:[%s28320_s0 + $0x548] sm:$0xff]  ;;  %v25602_v1 = vld [vmem:[%s28320_s0 + $0x5b0] sm:$0xff] }
 0x459   :  { %29005 = vst [vmem:[#allocation23_spill] sm:$0xff] %v25292_v0  ;;  %v7916_v5 = vmax.f32 %v25025_v63, %v25300_v27  ;;  %17384 = vmatprep.mubr.msk.f32.mxu0 %vm271_vm1, %v29007_v20  ;;  %18308 = vmatprep.mubr.msk.f32.mxu1 %vm271_vm1, %v21146_v37  ;;  %v21152_v31 = vld [vmem:[%s28320_s0 + $0x488] sm:$0xff]  ;;  %v25388_v37 = vld [vmem:[%s28320_s0 + $0x550] sm:$0xff] }
 0x45a   :  { %v21178_v0 = vld [vmem:[%s28320_s0 + $0x4f0] sm:$0xff] }
 0x45b   :  { %v25314_v62 = vpop.f32.mrb[42].mxu0  ;;  %v25316_v49 = vpop.f32.mrb[30].mxu1 }
 0x45c   :  { %v7919_v33 = vmax.f32 %v25039_v54, %v25316_v49  ;;  %v25320_v58 = vpop.f32.mrb[43].mxu0  ;;  %17385 = vmatmul.mubr.msk.f32.gmra.mrb[148].mxu0 %vm271_vm1, %v29008_v34  ;;  %v25324_v63 = vpop.f32.mrb[31].mxu1  ;;  %18309 = vmatmul.mubr.msk.f32.gmra.mrb[136].mxu1 %vm271_vm1, %v21147_v17  ;;  %v21154_v34 = vld [vmem:[%s28320_s0 + $0x490] sm:$0xff]  ;;  %v21164_v49 = vld [vmem:[%s28320_s0 + $0x4b8] sm:$0xff] }
 0x45d   :  { %v7918_v41 = vmax.f32 %v25041_v19, %v25324_v63  ;;  %17387 = vmatprep.mubr.msk.f32.mxu0 %vm271_vm1, %v29009_v12  ;;  %18311 = vmatprep.mubr.msk.f32.mxu1 %vm271_vm1, %v21148_v23 }
 0x45f   :  { %v25338_v3 = vpop.f32.mrb[44].mxu0  ;;  %v25340_v6 = vpop.f32.mrb[32].mxu1 }
 0x460   :  { %v25344_v22 = vpop.f32.mrb[45].mxu0  ;;  %17388 = vmatmul.mubr.msk.f32.gmra.mrb[150].mxu0 %vm271_vm1, %v29010_v29  ;;  %v25348_v48 = vpop.f32.mrb[33].mxu1  ;;  %18312 = vmatmul.mubr.msk.f32.gmra.mrb[138].mxu1 %vm271_vm1, %v21149_v56  ;;  %v25404_v56 = vld [vmem:[%s28320_s0 + $0x558] sm:$0xff]  ;;  %v29016_v63 = vmax.f32 %v25055_v50, %v25340_v6  ;;  %v21168_v6 = vld [vmem:[%s28320_s0 + $0x4c8] sm:$0xff] }
 0x461   :  { %17390 = vmatprep.mubr.msk.f32.mxu0 %vm271_vm1, %v29011_v36  ;;  %18314 = vmatprep.mubr.msk.f32.mxu1 %vm271_vm1, %v21150_v43  ;;  %v21156_v43 = vld [vmem:[%s28320_s0 + $0x498] sm:$0xff] }
 0x463   :  { %v25362_v26 = vpop.f32.mrb[46].mxu0  ;;  %v25364_v57 = vpop.f32.mrb[34].mxu1 }
 0x464   :  { %v25368_v15 = vpop.f32.mrb[47].mxu0  ;;  %17391 = vmatmul.mubr.msk.f32.gmra.mrb[152].mxu0 %vm271_vm1, %v25373_v2  ;;  %v25377_v27 = vpop.f32.mrb[35].mxu1  ;;  %18315 = vmatmul.mubr.msk.f32.gmra.mrb[140].mxu1 %vm271_vm1, %v21152_v31 }
 0x465   :  { %17393 = vmatprep.mubr.msk.f32.mxu0 %vm271_vm1, %v25388_v37  ;;  %18317 = vmatprep.mubr.msk.f32.mxu1 %vm271_vm1, %v21154_v34  ;;  %v21158_v34 = vld [vmem:[%s28320_s0 + $0x4a0] sm:$0xff] }
 0x467   :  { %v25396_v17 = vpop.f32.mrb[48].mxu0  ;;  %v18160_v12 = vpop.f32.mrb[36].mxu1 }
 0x468   :  { %v7925_v23 = vmax.f32 %v25106_v47, %v18160_v12  ;;  %v25399_v29 = vpop.f32.mrb[49].mxu0  ;;  %17394 = vmatmul.mubr.msk.f32.gmra.mrb[154].mxu0 %vm271_vm1, %v25404_v56  ;;  %v6805_v36 = vpop.f32.mrb[37].mxu1  ;;  %18318 = vmatmul.mubr.msk.f32.gmra.mrb[142].mxu1 %vm271_vm1, %v21156_v43  ;;  %v25416_v47 = vld [vmem:[%s28320_s0 + $0x560] sm:$0xff] }
 0x469   :  { %v7924_v31 = vmax.f32 %v25116_v4, %v6805_v36  ;;  %17396 = vmatprep.mubr.msk.f32.mxu0 %vm271_vm1, %v25416_v47  ;;  %18320 = vmatprep.mubr.msk.f32.mxu1 %vm271_vm1, %v21158_v34 }
 0x46a   :  { %v25424_v12 = vmax.f32 %v7917_v44, %v7925_v23  ;;  %v21160_v44 = vld [vmem:[%s28320_s0 + $0x4a8] sm:$0xff]  ;;  %v21162_v23 = vld [vmem:[%s28320_s0 + $0x4b0] sm:$0xff] }
 0x46b   :  { %v25426_v20 = vpop.f32.mrb[50].mxu0  ;;  %v18163_v43 = vpop.f32.mrb[38].mxu1  ;;  %v25428_v4 = vmax.f32 %v7916_v5, %v7924_v31 }
 0x46c   :  { %29012 = vst [vmem:[#allocation24_spill] sm:$0xff] %v25424_v12  ;;  %v7927_v36 = vmax.f32 %v25133_v42, %v18163_v43  ;;  %v25431_v9 = vpop.f32.mrb[51].mxu0  ;;  %17397 = vmatmul.mubr.msk.f32.gmra.mrb[156].mxu0 %vm271_vm1, %v25436_v51  ;;  %v6815_v34 = vpop.f32.mrb[39].mxu1  ;;  %18321 = vmatmul.mubr.msk.f32.gmra.mrb[144].mxu1 %vm271_vm1, %v21160_v44  ;;  %v25448_v42 = vld [vmem:[%s28320_s0 + $0x570] sm:$0xff] }
 0x46d   :  { %29013 = vst [vmem:[#allocation25_spill] sm:$0xff] %v25428_v4  ;;  %v7926_v5 = vmax.f32 %v25136_v45, %v6815_v34  ;;  %17399 = vmatprep.mubr.msk.f32.mxu0 %vm271_vm1, %v25448_v42  ;;  %18323 = vmatprep.mubr.msk.f32.mxu1 %vm271_vm1, %v21162_v23  ;;  %v25474_v23 = vld [vmem:[%s28320_s0 + $0x578] sm:$0xff]  ;;  %v9995_v4 = vld [vmem:[%s28323_s4 + $0x8] sm:$0xff] }
 0x46e   :  { %v25459_v31 = vmax.f32 %v7919_v33, %v7927_v36  ;;  %v21166_v33 = vld [vmem:[%s28320_s0 + $0x4c0] sm:$0xff] }
 0x46f   :  { %v25461_v45 = vpop.f32.mrb[52].mxu0  ;;  %v18166_v43 = vpop.f32.mrb[40].mxu1  ;;  %v25466_v34 = vmax.f32 %v7918_v41, %v7926_v5  ;;  %v29018_v5 = vmax.f32 %v25057_v21, %v25348_v48  ;;  %v21170_v48 = vld [vmem:[%s28320_s0 + $0x4d0] sm:$0xff] }
 0x470   :  { %29014 = vst [vmem:[#allocation26_spill] sm:$0xff] %v25459_v31  ;;  %v7929_v44 = vmax.f32 %v25151_v16, %v18166_v43  ;;  %v25469_v25 = vpop.f32.mrb[53].mxu0  ;;  %17400 = vmatmul.mubr.msk.f32.gmra.mrb[158].mxu0 %vm271_vm1, %v25474_v23  ;;  %v6825_v54 = vpop.f32.mrb[41].mxu1  ;;  %18324 = vmatmul.mubr.msk.f32.gmra.mrb[146].mxu1 %vm271_vm1, %v21164_v49  ;;  %v25486_v16 = vld [vmem:[%s28320_s0 + $0x580] sm:$0xff]  ;;  %v21186_v31 = vld [vmem:[%s28320_s0 + $0x510] sm:$0xff] }
 0x471   :  { %29015 = vst [vmem:[#allocation27_spill] sm:$0xff] %v25466_v34  ;;  %v7928_v19 = vmax.f32 %v25157_v13, %v6825_v54  ;;  %17402 = vmatprep.mubr.msk.f32.mxu0 %vm271_vm1, %v25486_v16  ;;  %18326 = vmatprep.mubr.msk.f32.mxu1 %vm271_vm1, %v21166_v33  ;;  %v25512_v33 = vld [vmem:[%s28320_s0 + $0x588] sm:$0xff]  ;;  %v9994_v34 = vld [vmem:[%s28323_s4] sm:$0xff] }
 0x472   :  { %v25497_v41 = vmax.f32 %v29016_v63, %v7929_v44  ;;  %v29020_v44 = vmax.f32 %v25071_v53, %v25364_v57  ;;  %v25553_v53 = vld [vmem:[%s28320_s0 + $0x598] sm:$0xff] }
 0x473   :  { %v25499_v13 = vpop.f32.mrb[54].mxu0  ;;  %v18169_v36 = vpop.f32.mrb[42].mxu1  ;;  %v25504_v43 = vmax.f32 %v29018_v5, %v7928_v19 }
 0x474   :  { %29017 = vst [vmem:[#allocation28_spill] sm:$0xff] %v25497_v41  ;;  %v7931_v54 = vmax.f32 %v25175_v24, %v18169_v36  ;;  %v25507_v49 = vpop.f32.mrb[55].mxu0  ;;  %17403 = vmatmul.mubr.msk.f32.gmra.mrb[160].mxu0 %vm271_vm1, %v25512_v33  ;;  %v6835_v50 = vpop.f32.mrb[43].mxu1  ;;  %18327 = vmatmul.mubr.msk.f32.gmra.mrb[148].mxu1 %vm271_vm1, %v21168_v6  ;;  %v25524_v24 = vld [vmem:[%s28320_s0 + $0x590] sm:$0xff]  ;;  %v29022_v36 = vmax.f32 %v25079_v40, %v25377_v27  ;;  %v21172_v40 = vld [vmem:[%s28320_s0 + $0x4d8] sm:$0xff]  ;;  %v25587_v27 = vld [vmem:[%s28320_s0 + $0x5a8] sm:$0xff] }
 0x475   :  { %29019 = vst [vmem:[#allocation29_spill] sm:$0xff] %v25504_v43  ;;  %v7930_v21 = vmax.f32 %v25181_v11, %v6835_v50  ;;  %17405 = vmatprep.mubr.msk.f32.mxu0 %vm271_vm1, %v25524_v24  ;;  %18329 = vmatprep.mubr.msk.f32.mxu1 %vm271_vm1, %v21170_v48  ;;  %v25670_v43 = vld [vmem:[%s28320_s0 + $0x5d0] sm:$0xff] }
 0x476   :  { %v25535_v19 = vmax.f32 %v29020_v44, %v7931_v54  ;;  %v25568_v54 = vld [vmem:[%s28320_s0 + $0x5a0] sm:$0xff]  ;;  %29028 = vst [vmem:[#allocation36_spill] sm:$0xff] %v25670_v43 }
 0x477   :  { %v25537_v11 = vpop.f32.mrb[56].mxu0  ;;  %v25539_v63 = vpop.f32.mrb[44].mxu1  ;;  %v25544_v5 = vmax.f32 %v29022_v36, %v7930_v21  ;;  %v21174_v21 = vld [vmem:[%s28320_s0 + $0x4e0] sm:$0xff]  ;;  %v8189_v36 = vld [vmem:[%s28322_s3 + $0x8] sm:$0xff] }
 0x478   :  { %29021 = vst [vmem:[#allocation30_spill] sm:$0xff] %v25535_v19  ;;  %v25548_v6 = vpop.f32.mrb[57].mxu0  ;;  %17406 = vmatmul.mubr.msk.f32.gmra.mrb[162].mxu0 %vm271_vm1, %v25553_v53  ;;  %v25557_v57 = vpop.f32.mrb[45].mxu1  ;;  %18330 = vmatmul.mubr.msk.f32.gmra.mrb[150].mxu1 %vm271_vm1, %v21172_v40 }
 0x479   :  { %29023 = vst [vmem:[#allocation31_spill] sm:$0xff] %v25544_v5  ;;  %17408 = vmatprep.mubr.msk.f32.mxu0 %vm271_vm1, %v25568_v54  ;;  %18332 = vmatprep.mubr.msk.f32.mxu1 %vm271_vm1, %v21174_v21  ;;  %v21176_v21 = vld [vmem:[%s28320_s0 + $0x4e8] sm:$0xff] }
 0x47a   :  { %v25655_v5 = vld [vmem:[%s28320_s0 + $0x5c8] sm:$0xff] }
 0x47b   :  { %v25576_v48 = vpop.f32.mrb[58].mxu0  ;;  %v25578_v44 = vpop.f32.mrb[46].mxu1  ;;  %29027 = vst [vmem:[#allocation35_spill] sm:$0xff] %v25655_v5 }
 0x47c   :  { %v25582_v40 = vpop.f32.mrb[59].mxu0  ;;  %17409 = vmatmul.mubr.msk.f32.gmra.mrb[164].mxu0 %vm271_vm1, %v25587_v27  ;;  %v25591_v50 = vpop.f32.mrb[47].mxu1  ;;  %18333 = vmatmul.mubr.msk.f32.gmra.mrb[152].mxu1 %vm271_vm1, %v21176_v21 }
 0x47d   :  { %17411 = vmatprep.mubr.msk.f32.mxu0 %vm271_vm1, %v25602_v1  ;;  %18335 = vmatprep.mubr.msk.f32.mxu1 %vm271_vm1, %v21178_v0  ;;  %v21180_v0 = vld [vmem:[%s28320_s0 + $0x4f8] sm:$0xff] }
 0x47f   :  { %v25610_v18 = vpop.f32.mrb[60].mxu0  ;;  %v25612_v21 = vpop.f32.mrb[48].mxu1 }
 0x480   :  { %v25616_v52 = vpop.f32.mrb[61].mxu0  ;;  %17412 = vmatmul.mubr.msk.f32.gmra.mrb[166].mxu0 %vm271_vm1, %v25621_v28  ;;  %v25625_v35 = vpop.f32.mrb[49].mxu1  ;;  %18336 = vmatmul.mubr.msk.f32.gmra.mrb[154].mxu1 %vm271_vm1, %v21180_v0 }
 0x481   :  { %17414 = vmatprep.mubr.msk.f32.mxu0 %vm271_vm1, %v25636_v32  ;;  %18338 = vmatprep.mubr.msk.f32.mxu1 %vm271_vm1, %v21182_v10  ;;  %v21184_v10 = vld [vmem:[%s28320_s0 + $0x508] sm:$0xff]  ;;  %v25702_v32 = vld [vmem:[%s28320_s0 + $0x5d8] sm:$0xff] }
 0x482   :  { %29031 = vst [vmem:[#allocation39_spill] sm:$0xff] %v25702_v32 }
 0x483   :  { %v25644_v7 = vpop.f32.mrb[62].mxu0  ;;  %v25646_v0 = vpop.f32.mrb[50].mxu1 }
 0x484   :  { %29025 = vst [vmem:[#allocation33_spill] sm:$0xff] %v25644_v7  ;;  %v25650_v19 = vpop.f32.mrb[63].mxu0  ;;  %17415 = vmatmul.mubr.msk.f32.gmra.mrb[168].mxu0 %vm271_vm1, %v25655_v5  ;;  %v25659_v41 = vpop.f32.mrb[51].mxu1  ;;  %18339 = vmatmul.mubr.msk.f32.gmra.mrb[156].mxu1 %vm271_vm1, %v21184_v10  ;;  %v8188_v10 = vld [vmem:[%s28322_s3] sm:$0xff] }
 0x485   :  { %29026 = vst [vmem:[#allocation34_spill] sm:$0xff] %v25650_v19  ;;  %17417 = vmatprep.mubr.msk.f32.mxu0 %vm271_vm1, %v25670_v43  ;;  %18341 = vmatprep.mubr.msk.f32.mxu1 %vm271_vm1, %v21186_v31  ;;  %v25687_v12 = vpack.c.bf16 %v8189_v36, %v8188_v10  ;;  %v25694_v19 = vpack.c.bf16 %v9995_v4, %v9994_v34  ;;  %v21188_v10 = vld [vmem:[%s28320_s0 + $0x518] sm:$0xff]  ;;  %v21190_v34 = vld [vmem:[%s28320_s0 + $0x520] sm:$0xff] }
 0x487   :  { %v25692_v43 = vpop.f32.mrb[64].mxu0  ;;  %v18184_v31 = vpop.f32.mrb[52].mxu1  ;;  %29029 = vst [vmem:[#allocation37_spill] sm:$0xff] %v25694_v19  ;;  %19557 = vmatprep.subr.bf16.mxu0 %v25687_v12  ;;  %19623 = vmatprep.subr.bf16.mxu1 %v25694_v19 }
 0x488   :  { %v7941_v5 = vmax.f32 %v25288_v46, %v18184_v31  ;;  %v25697_v7 = vpop.f32.mrb[65].mxu0  ;;  %17418 = vmatmul.mubr.msk.f32.gmra.mrb[170].mxu0 %vm271_vm1, %v25702_v32  ;;  %v6885_v36 = vpop.f32.mrb[53].mxu1  ;;  %18342 = vmatmul.mubr.msk.f32.gmra.mrb[158].mxu1 %vm271_vm1, %v21188_v10  ;;  %v25714_v46 = vld [vmem:[%s28320_s0 + $0x5e0] sm:$0xff]  ;;  %v29033_v31 = vmax.f32 %v25199_v59, %v25539_v63  ;;  %v25742_v59 = vld [vmem:[%s28320_s0 + $0x5e8] sm:$0xff] }
 0x489   :  { %29030 = vst [vmem:[#allocation38_spill] sm:$0xff] %v25697_v7  ;;  %v7940_v4 = vmax.f32 %v25296_v55, %v6885_v36  ;;  %29032 = vst [vmem:[#allocation40_spill] sm:$0xff] %v25714_v46  ;;  %17420 = vmatprep.mubr.msk.f32.mxu0 %vm271_vm1, %v25714_v46  ;;  %18344 = vmatprep.mubr.msk.f32.mxu1 %vm271_vm1, %v21190_v34  ;;  %v29035_v55 = vmax.f32 %v25202_v60, %v25557_v57  ;;  %v21192_v60 = vld [vmem:[%s28320_s0 + $0x528] sm:$0xff] }
 0x48a   :  { %v25725_v10 = vmax.f32 %v29033_v31, %v7941_v5  ;;  %v29037_v57 = vmax.f32 %v25219_v30, %v25578_v44  ;;  %v21196_v30 = vld [vmem:[%s28320_s0 + $0x538] sm:$0xff]  ;;  %v29041_v44 = vmax.f32 %v25241_v8, %v25612_v21 }
 0x48b   :  { %v25732_v36 = vmax.f32 %v29035_v55, %v7940_v4  ;;  %v25734_v46 = vpop.f32.mrb[66].mxu0  ;;  %v18187_v7 = vpop.f32.mrb[54].mxu1 }
 0x48c   :  { %29034 = vst [vmem:[#allocation41_spill] sm:$0xff] %v25725_v10  ;;  %v7943_v32 = vmax.f32 %v25314_v62, %v18187_v7  ;;  %v25737_v34 = vpop.f32.mrb[67].mxu0  ;;  %17421 = vmatmul.mubr.msk.f32.gmra.mrb[172].mxu0 %vm271_vm1, %v25742_v59  ;;  %v6895_v63 = vpop.f32.mrb[55].mxu1  ;;  %18345 = vmatmul.mubr.msk.f32.gmra.mrb[160].mxu1 %vm271_vm1, %v21192_v60  ;;  %v25754_v7 = vld [vmem:[%s28320_s0 + $0x5f0] sm:$0xff] }
 0x48d   :  { %29036 = vst [vmem:[#allocation42_spill] sm:$0xff] %v25732_v36  ;;  %v7942_v5 = vmax.f32 %v25320_v58, %v6895_v63  ;;  %17423 = vmatprep.mubr.msk.f32.mxu0 %vm271_vm1, %v25754_v7  ;;  %v21194_v62 = vld [vmem:[%s28320_s0 + $0x530] sm:$0xff]  ;;  %v29039_v58 = vmax.f32 %v25224_v39, %v25591_v50  ;;  %v21198_v50 = vld [vmem:[%s28320_s0 + $0x540] sm:$0xff] }
 0x48e   :  { %18347 = vmatprep.mubr.msk.f32.mxu1 %vm271_vm1, %v21194_v62  ;;  %v25765_v4 = vmax.f32 %v29037_v57, %v7943_v32  ;;  %v25780_v62 = vld [vmem:[%s28320_s0 + $0x5f8] sm:$0xff] }
 0x48f   :  { %v25770_v31 = vmax.f32 %v29039_v58, %v7942_v5  ;;  %v25772_v55 = vpop.f32.mrb[68].mxu0  ;;  %v18190_v63 = vpop.f32.mrb[56].mxu1 }
 0x490   :  { %29038 = vst [vmem:[#allocation43_spill] sm:$0xff] %v25765_v4  ;;  %v7945_v60 = vmax.f32 %v25338_v3, %v18190_v63  ;;  %v25775_v19 = vpop.f32.mrb[69].mxu0  ;;  %17424 = vmatmul.mubr.msk.f32.gmra.mrb[174].mxu0 %vm271_vm1, %v25780_v62  ;;  %v6905_v32 = vpop.f32.mrb[57].mxu1  ;;  %18348 = vmatmul.mubr.msk.f32.gmra.mrb[162].mxu1 %vm271_vm1, %v21196_v30  ;;  %v25792_v3 = vld [vmem:[%s28320_s0 + $0x600] sm:$0xff] }
 0x491   :  { %29040 = vst [vmem:[#allocation44_spill] sm:$0xff] %v25770_v31  ;;  %v7944_v39 = vmax.f32 %v25344_v22, %v6905_v32  ;;  %17426 = vmatprep.mubr.msk.f32.mxu0 %vm271_vm1, %v25792_v3  ;;  %18350 = vmatprep.mubr.msk.f32.mxu1 %vm271_vm1, %v21198_v50  ;;  %v29043_v22 = vmax.f32 %v25246_v14, %v25625_v35  ;;  %v25818_v50 = vld [vmem:[%s28320_s0 + $0x608] sm:$0xff]  ;;  %v25828_v14 = vld [vmem:[%s28320_s0 + $0x610] sm:$0xff] }
 0x492   :  { %v25803_v5 = vmax.f32 %v29041_v44, %v7945_v60 }
 0x493   :  { %v25808_v57 = vmax.f32 %v29043_v22, %v7944_v39  ;;  %v25810_v58 = vpop.f32.mrb[70].mxu0  ;;  %v18193_v63 = vpop.f32.mrb[58].mxu1 }
 0x494   :  { %29042 = vst [vmem:[#allocation45_spill] sm:$0xff] %v25803_v5  ;;  %v7947_v32 = vmax.f32 %v25362_v26, %v18193_v63  ;;  %v25813_v30 = vpop.f32.mrb[71].mxu0  ;;  %17427 = vmatmul.mubr.msk.f32.gmra.mrb[176].mxu0 %vm271_vm1, %v25818_v50  ;;  %v6915_v8 = vpop.f32.mrb[59].mxu1  ;;  %18351 = vmatmul.mubr.msk.f32.gmra.mrb[164].mxu1 %vm271_vm1, %v25373_v2  ;;  %v29045_v26 = vmax.f32 %v25263_v38, %v25646_v0 }
 0x495   :  { %29044 = vst [vmem:[#allocation46_spill] sm:$0xff] %v25808_v57  ;;  %v7946_v35 = vmax.f32 %v25368_v15, %v6915_v8  ;;  %17429 = vmatprep.mubr.msk.f32.mxu0 %vm271_vm1, %v25828_v14  ;;  %18353 = vmatprep.mubr.msk.f32.mxu1 %vm271_vm1, %v25388_v37  ;;  %v29047_v2 = vmax.f32 %v25268_v61, %v25659_v41  ;;  %v25852_v37 = vld [vmem:[%s28320_s0 + $0x618] sm:$0xff]  ;;  %v25982_v57 = vld [vmem:[%s28320_s0 + $0x668] sm:$0xff] }
 0x496   :  { %v25837_v21 = vmax.f32 %v29045_v26, %v7947_v32 }
 0x497   :  { %v25842_v15 = vmax.f32 %v29047_v2, %v7946_v35  ;;  %v25844_v60 = vpop.f32.mrb[72].mxu0  ;;  %v18196_v39 = vpop.f32.mrb[60].mxu1 }
 0x498   :  { %29046 = vst [vmem:[#allocation47_spill] sm:$0xff] %v25837_v21  ;;  %v7949_v44 = vmax.f32 %v25396_v17, %v18196_v39  ;;  %v25847_v22 = vpop.f32.mrb[73].mxu0  ;;  %17430 = vmatmul.mubr.msk.f32.gmra.mrb[178].mxu0 %vm271_vm1, %v25852_v37  ;;  %v6925_v38 = vpop.f32.mrb[61].mxu1  ;;  %18354 = vmatmul.mubr.msk.f32.gmra.mrb[166].mxu1 %vm271_vm1, %v25404_v56  ;;  %v25862_v17 = vld [vmem:[%s28320_s0 + $0x620] sm:$0xff] }
 0x499   :  { %29048 = vst [vmem:[#allocation48_spill] sm:$0xff] %v25842_v15  ;;  %v7948_v61 = vmax.f32 %v25399_v29, %v6925_v38  ;;  %17432 = vmatprep.mubr.msk.f32.mxu0 %vm271_vm1, %v25862_v17  ;;  %18356 = vmatprep.mubr.msk.f32.mxu1 %vm271_vm1, %v25416_v47  ;;  %v25876_v29 = vld [vmem:[%s28320_s0 + $0x628] sm:$0xff] }
 0x49b   :  { %v25868_v41 = vpop.f32.mrb[74].mxu0  ;;  %v18199_v0 = vpop.f32.mrb[62].mxu1 }
 0x49c   :  { %v7951_v63 = vmax.f32 %v25426_v20, %v18199_v0  ;;  %v25871_v32 = vpop.f32.mrb[75].mxu0  ;;  %17433 = vmatmul.mubr.msk.f32.gmra.mrb[180].mxu0 %vm271_vm1, %v25876_v29  ;;  %v6935_v56 = vpop.f32.mrb[63].mxu1  ;;  %18357 = vmatmul.mubr.msk.f32.gmra.mrb[168].mxu1 %vm271_vm1, %v25436_v51  ;;  %v25886_v20 = vld [vmem:[%s28320_s0 + $0x630] sm:$0xff] }
 0x49d   :  { %v7950_v47 = vmax.f32 %v25431_v9, %v6935_v56  ;;  %17435 = vmatprep.mubr.msk.f32.mxu0 %vm271_vm1, %v25886_v20  ;;  %18359 = vmatprep.mubr.msk.f32.mxu1 %vm271_vm1, %v25448_v42  ;;  %v25903_v9 = vld [vmem:[%s28320_s0 + $0x638] sm:$0xff] }
 0x49f   :  { %v25892_v8 = vpop.f32.mrb[76].mxu0  ;;  %v25894_v35 = vpop.f32.mrb[64].mxu1 }
 0x4a0   :  { %v7953_v51 = vmax.f32 %v25461_v45, %v25894_v35  ;;  %v25898_v26 = vpop.f32.mrb[77].mxu0  ;;  %17436 = vmatmul.mubr.msk.f32.gmra.mrb[182].mxu0 %vm271_vm1, %v25903_v9  ;;  %v6945_v2 = vpop.f32.mrb[65].mxu1  ;;  %18360 = vmatmul.mubr.msk.f32.gmra.mrb[170].mxu1 %vm271_vm1, %v25474_v23  ;;  %v25913_v45 = vld [vmem:[%s28320_s0 + $0x640] sm:$0xff]  ;;  %v25940_v35 = vld [vmem:[%s28320_s0 + $0x650] sm:$0xff] }
 0x4a1   :  { %v7952_v42 = vmax.f32 %v25469_v25, %v6945_v2  ;;  %17438 = vmatprep.mubr.msk.f32.mxu0 %vm271_vm1, %v25913_v45  ;;  %18362 = vmatprep.mubr.msk.f32.mxu1 %vm271_vm1, %v25486_v16  ;;  %v25930_v25 = vld [vmem:[%s28320_s0 + $0x648] sm:$0xff] }
 0x4a3   :  { %v25919_v39 = vpop.f32.mrb[78].mxu0  ;;  %v25921_v38 = vpop.f32.mrb[66].mxu1 }
 0x4a4   :  { %v25925_v0 = vpop.f32.mrb[79].mxu0  ;;  %17439 = vmatmul.mubr.msk.f32.gmra.mrb[184].mxu0 %vm271_vm1, %v25930_v25  ;;  %v6955_v56 = vpop.f32.mrb[67].mxu1  ;;  %18363 = vmatmul.mubr.msk.f32.gmra.mrb[172].mxu1 %vm271_vm1, %v25512_v33 }
 0x4a5   :  { %v7954_v16 = vmax.f32 %v25507_v49, %v6955_v56  ;;  %17441 = vmatprep.mubr.msk.f32.mxu0 %vm271_vm1, %v25940_v35  ;;  %18365 = vmatprep.mubr.msk.f32.mxu1 %vm271_vm1, %v25524_v24  ;;  %v25954_v49 = vld [vmem:[%s28320_s0 + $0x658] sm:$0xff] }
 0x4a7   :  { %v25946_v2 = vpop.f32.mrb[80].mxu0  ;;  %v18208_v23 = vpop.f32.mrb[68].mxu1 }
 0x4a8   :  { %v7957_v21 = vmax.f32 %v25537_v11, %v18208_v23  ;;  %v25949_v15 = vpop.f32.mrb[81].mxu0  ;;  %17442 = vmatmul.mubr.msk.f32.gmra.mrb[186].mxu0 %vm271_vm1, %v25954_v49  ;;  %v6965_v33 = vpop.f32.mrb[69].mxu1  ;;  %18366 = vmatmul.mubr.msk.f32.gmra.mrb[174].mxu1 %vm271_vm1, %v25553_v53  ;;  %v25964_v11 = vld [vmem:[%s28320_s0 + $0x660] sm:$0xff] }
 0x4a9   :  { %v7956_v24 = vmax.f32 %v25548_v6, %v6965_v33  ;;  %17444 = vmatprep.mubr.msk.f32.mxu0 %vm271_vm1, %v25964_v11  ;;  %18368 = vmatprep.mubr.msk.f32.mxu1 %vm271_vm1, %v25568_v54 }
 0x4aa   :  { %v25970_v23 = vmax.f32 %v7949_v44, %v7957_v21 }
 0x4ab   :  { %v25972_v56 = vmax.f32 %v7948_v61, %v7956_v24  ;;  %v25974_v5 = vpop.f32.mrb[82].mxu0  ;;  %v18211_v53 = vpop.f32.mrb[70].mxu1 }
 0x4ac   :  { %29049 = vst [vmem:[#allocation49_spill] sm:$0xff] %v25970_v23  ;;  %v7959_v6 = vmax.f32 %v25576_v48, %v18211_v53  ;;  %v25977_v33 = vpop.f32.mrb[83].mxu0  ;;  %17445 = vmatmul.mubr.msk.f32.gmra.mrb[188].mxu0 %vm271_vm1, %v25982_v57  ;;  %v6975_v54 = vpop.f32.mrb[71].mxu1  ;;  %18369 = vmatmul.mubr.msk.f32.gmra.mrb[176].mxu1 %vm271_vm1, %v25587_v27  ;;  %v25992_v48 = vld [vmem:[%s28320_s0 + $0x670] sm:$0xff] }
 0x4ad   :  { %29050 = vst [vmem:[#allocation50_spill] sm:$0xff] %v25972_v56  ;;  %v7958_v21 = vmax.f32 %v25582_v40, %v6975_v54  ;;  %17447 = vmatprep.mubr.msk.f32.mxu0 %vm271_vm1, %v25992_v48  ;;  %18371 = vmatprep.mubr.msk.f32.mxu1 %vm271_vm1, %v25602_v1  ;;  %v26010_v54 = vld [vmem:[%s28320_s0 + $0x678] sm:$0xff] }
 0x4ae   :  { %v25998_v44 = vmax.f32 %v7951_v63, %v7959_v6  ;;  %v26069_v56 = vld [vmem:[%s28320_s0 + $0x698] sm:$0xff] }
 0x4af   :  { %v26000_v61 = vmax.f32 %v7950_v47, %v7958_v21  ;;  %v26002_v24 = vpop.f32.mrb[84].mxu0  ;;  %v18214_v27 = vpop.f32.mrb[72].mxu1  ;;  %v29053_v47 = vld [vmem:[#allocation32_spill] sm:$0xff] }
 0x4b0   :  { %29051 = vst [vmem:[#allocation51_spill] sm:$0xff] %v25998_v44  ;;  %v7961_v40 = vmax.f32 %v25610_v18, %v18214_v27  ;;  %v26005_v53 = vpop.f32.mrb[85].mxu0  ;;  %17448 = vmatmul.mubr.msk.f32.gmra.mrb[190].mxu0 %vm271_vm1, %v26010_v54  ;;  %v6985_v1 = vpop.f32.mrb[73].mxu1  ;;  %18372 = vmatmul.mubr.msk.f32.gmra.mrb[178].mxu1 %vm271_vm1, %v25621_v28  ;;  %v26020_v18 = vld [vmem:[%s28320_s0 + $0x680] sm:$0xff]  ;;  %v29056_v44 = vld [vmem:[#allocation33_spill] sm:$0xff] }
 0x4b1   :  { %29052 = vst [vmem:[#allocation52_spill] sm:$0xff] %v26000_v61  ;;  %v7960_v63 = vmax.f32 %v25616_v52, %v6985_v1  ;;  %17450 = vmatprep.mubr.msk.f32.mxu0 %vm271_vm1, %v26020_v18  ;;  %18374 = vmatprep.mubr.msk.f32.mxu1 %vm271_vm1, %v29053_v47  ;;  %v26038_v61 = vld [vmem:[%s28320_s0 + $0x688] sm:$0xff] }
 0x4b2   :  { %v26026_v6 = vmax.f32 %v7953_v51, %v7961_v40  ;;  %v29057_v51 = vld [vmem:[#allocation35_spill] sm:$0xff] }
 0x4b3   :  { %v26028_v21 = vmax.f32 %v7952_v42, %v7960_v63  ;;  %v26030_v27 = vpop.f32.mrb[86].mxu0  ;;  %v18217_v28 = vpop.f32.mrb[74].mxu1  ;;  %v29058_v42 = vld [vmem:[#allocation34_spill] sm:$0xff]  ;;  %v29059_v63 = vld [vmem:[#allocation36_spill] sm:$0xff] }
 0x4b4   :  { %29054 = vst [vmem:[#allocation53_spill] sm:$0xff] %v26026_v6  ;;  %v7963_v52 = vmax.f32 %v29056_v44, %v18217_v28  ;;  %v26033_v1 = vpop.f32.mrb[87].mxu0  ;;  %17451 = vmatmul.mubr.msk.f32.gmra.mrb[212].mxu0 %vm271_vm1, %v26038_v61  ;;  %v6995_v47 = vpop.f32.mrb[75].mxu1  ;;  %18375 = vmatmul.mubr.msk.f32.gmra.mrb[180].mxu1 %vm271_vm1, %v29057_v51  ;;  %v26048_v44 = vld [vmem:[%s28320_s0 + $0x690] sm:$0xff]  ;;  %v29060_v28 = vmax.f32 %v25499_v13, %v25921_v38  ;;  %v29063_v38 = vld [vmem:[#allocation39_spill] sm:$0xff] }
 0x4b5   :  { %29055 = vst [vmem:[#allocation54_spill] sm:$0xff] %v26028_v21  ;;  %v7962_v40 = vmax.f32 %v29058_v42, %v6995_v47  ;;  %17453 = vmatprep.mubr.msk.f32.mxu0 %vm271_vm1, %v26048_v44  ;;  %18377 = vmatprep.mubr.msk.f32.mxu1 %vm271_vm1, %v29059_v63 }
 0x4b6   :  { %v26057_v6 = vmax.f32 %v29060_v28, %v7963_v52 }
 0x4b7   :  { %v26059_v21 = vmax.f32 %v7954_v16, %v7962_v40  ;;  %v26061_v51 = vpop.f32.mrb[88].mxu0  ;;  %v18220_v47 = vpop.f32.mrb[76].mxu1  ;;  %v29064_v16 = vld [vmem:[#allocation38_spill] sm:$0xff]  ;;  %v29065_v40 = vld [vmem:[#allocation40_spill] sm:$0xff] }
 0x4b8   :  { %29061 = vst [vmem:[#allocation55_spill] sm:$0xff] %v26057_v6  ;;  %v7965_v42 = vmax.f32 %v25692_v43, %v18220_v47  ;;  %v26064_v23 = vpop.f32.mrb[89].mxu0  ;;  %17454 = vmatmul.mubr.msk.f32.gmra.mrb[214].mxu0 %vm271_vm1, %v26069_v56  ;;  %v7005_v13 = vpop.f32.mrb[77].mxu1  ;;  %18378 = vmatmul.mubr.msk.f32.gmra.mrb[182].mxu1 %vm271_vm1, %v29063_v38  ;;  %v26079_v43 = vld [vmem:[%s28320_s0 + $0x6a0] sm:$0xff] }
 0x4b9   :  { %29062 = vst [vmem:[#allocation56_spill] sm:$0xff] %v26059_v21  ;;  %v7964_v52 = vmax.f32 %v29064_v16, %v7005_v13  ;;  %17456 = vmatprep.mubr.msk.f32.mxu0 %vm271_vm1, %v26079_v43  ;;  %18380 = vmatprep.mubr.msk.f32.mxu1 %vm271_vm1, %v29065_v40  ;;  %v26096_v13 = vld [vmem:[%s28320_s0 + $0x6a8] sm:$0xff]  ;;  %v26128_v21 = vld [vmem:[%s28320_s0 + $0x6b8] sm:$0xff] }
 0x4ba   :  { %29069 = vst [vmem:[#allocation60_spill] sm:$0xff] %v26128_v21 }
 0x4bb   :  { %v26085_v63 = vpop.f32.mrb[90].mxu0  ;;  %v26087_v28 = vpop.f32.mrb[78].mxu1 }
 0x4bc   :  { %v7967_v47 = vmax.f32 %v25734_v46, %v26087_v28  ;;  %v26091_v38 = vpop.f32.mrb[91].mxu0  ;;  %17457 = vmatmul.mubr.msk.f32.gmra.mrb[216].mxu0 %vm271_vm1, %v26096_v13  ;;  %v7015_v16 = vpop.f32.mrb[79].mxu1  ;;  %18381 = vmatmul.mubr.msk.f32.gmra.mrb[184].mxu1 %vm271_vm1, %v25742_v59  ;;  %v26106_v46 = vld [vmem:[%s28320_s0 + $0x6b0] sm:$0xff]  ;;  %v26115_v28 = vld [vmem:[%s28320_s0 + $0x6c0] sm:$0xff] }
 0x4bd   :  { %v7966_v40 = vmax.f32 %v25737_v34, %v7015_v16  ;;  %17459 = vmatprep.mubr.msk.f32.mxu0 %vm271_vm1, %v26106_v46  ;;  %18383 = vmatprep.mubr.msk.f32.mxu1 %vm271_vm1, %v25754_v7  ;;  %29066 = vst [vmem:[#allocation57_spill] sm:$0xff] %v26115_v28  ;;  %v26142_v34 = vld [vmem:[%s28320_s0 + $0x6c8] sm:$0xff] }
 0x4be   :  { %29070 = vst [vmem:[#allocation61_spill] sm:$0xff] %v26142_v34 }
 0x4bf   :  { %v26117_v6 = vpop.f32.mrb[92].mxu0  ;;  %v26119_v59 = vpop.f32.mrb[80].mxu1 }
 0x4c0   :  { %29067 = vst [vmem:[#allocation58_spill] sm:$0xff] %v26117_v6  ;;  %v26123_v16 = vpop.f32.mrb[93].mxu0  ;;  %17460 = vmatmul.mubr.msk.f32.gmra.mrb[218].mxu0 %vm271_vm1, %v26128_v21  ;;  %v7025_v7 = vpop.f32.mrb[81].mxu1  ;;  %18384 = vmatmul.mubr.msk.f32.gmra.mrb[186].mxu1 %vm271_vm1, %v25780_v62 }
 0x4c1   :  { %29068 = vst [vmem:[#allocation59_spill] sm:$0xff] %v26123_v16  ;;  %v7968_v6 = vmax.f32 %v25775_v19, %v7025_v7  ;;  %17462 = vmatprep.mubr.msk.f32.mxu0 %vm271_vm1, %v26115_v28  ;;  %18386 = vmatprep.mubr.msk.f32.mxu1 %vm271_vm1, %v25792_v3  ;;  %v26147_v16 = vld [vmem:[%s28320_s0 + $0x6d0] sm:$0xff]  ;;  %v26172_v19 = vld [vmem:[%s28320_s0 + $0x6d8] sm:$0xff] }
 0x4c2   :  { %29071 = vst [vmem:[#allocation62_spill] sm:$0xff] %v26147_v16  ;;  %29073 = vst [vmem:[#allocation64_spill] sm:$0xff] %v26172_v19 }
 0x4c3   :  { %v26149_v21 = vpop.f32.mrb[94].mxu0  ;;  %v26151_v62 = vpop.f32.mrb[82].mxu1 }
 0x4c4   :  { %v26155_v7 = vpop.f32.mrb[95].mxu0  ;;  %17463 = vmatmul.mubr.msk.f32.gmra.mrb[220].mxu0 %vm271_vm1, %v26142_v34  ;;  %v26159_v3 = vpop.f32.mrb[83].mxu1  ;;  %18387 = vmatmul.mubr.msk.f32.gmra.mrb[188].mxu1 %vm271_vm1, %v25818_v50 }
 0x4c5   :  { %29072 = vst [vmem:[#allocation63_spill] sm:$0xff] %v26155_v7  ;;  %v7970_v28 = vmax.f32 %v25813_v30, %v26159_v3  ;;  %17465 = vmatprep.mubr.msk.f32.mxu0 %vm271_vm1, %v26147_v16  ;;  %18389 = vmatprep.mubr.msk.f32.mxu1 %vm271_vm1, %v25828_v14  ;;  %v26177_v7 = vld [vmem:[%s28320_s0 + $0x6e0] sm:$0xff] }
 0x4c6   :  { %29074 = vst [vmem:[#allocation65_spill] sm:$0xff] %v26177_v7 }
 0x4c7   :  { %v26179_v50 = vpop.f32.mrb[96].mxu0  ;;  %v18232_v34 = vpop.f32.mrb[84].mxu1 }
 0x4c8   :  { %v7973_v30 = vmax.f32 %v25844_v60, %v18232_v34  ;;  %v26182_v3 = vpop.f32.mrb[97].mxu0  ;;  %17466 = vmatmul.mubr.msk.f32.gmra.mrb[222].mxu0 %vm271_vm1, %v26172_v19  ;;  %v7045_v14 = vpop.f32.mrb[85].mxu1  ;;  %18390 = vmatmul.mubr.msk.f32.gmra.mrb[190].mxu1 %vm271_vm1, %v25852_v37  ;;  %v26196_v60 = vld [vmem:[%s28320_s0 + $0x6e8] sm:$0xff] }
 0x4c9   :  { %29075 = vst [vmem:[#allocation66_spill] sm:$0xff] %v26182_v3  ;;  %v7972_v16 = vmax.f32 %v25847_v22, %v7045_v14  ;;  %17468 = vmatprep.mubr.msk.f32.mxu0 %vm271_vm1, %v26177_v7  ;;  %18392 = vmatprep.mubr.msk.f32.mxu1 %vm271_vm1, %v25862_v17  ;;  %v26203_v3 = vld [vmem:[%s28320_s0 + $0x6f0] sm:$0xff] }
 0x4ca   :  { %v26198_v34 = vmax.f32 %v7965_v42, %v7973_v30 }
 0x4cb   :  { %v26205_v37 = vmax.f32 %v7964_v52, %v7972_v16  ;;  %v26207_v22 = vpop.f32.mrb[98].mxu0  ;;  %v18235_v14 = vpop.f32.mrb[86].mxu1 }
 0x4cc   :  { %29076 = vst [vmem:[#allocation67_spill] sm:$0xff] %v26198_v34  ;;  %v7975_v7 = vmax.f32 %v25868_v41, %v18235_v14  ;;  %v26210_v17 = vpop.f32.mrb[99].mxu0  ;;  %17469 = vmatmul.mubr.msk.f32.gmra.mrb[224].mxu0 %vm271_vm1, %v26196_v60  ;;  %v7055_v19 = vpop.f32.mrb[87].mxu1  ;;  %18393 = vmatmul.mubr.msk.f32.gmra.mrb[192].mxu1 %vm271_vm1, %v25876_v29  ;;  %v26224_v41 = vld [vmem:[%s28320_s0 + $0x6f8] sm:$0xff]  ;;  %v29081_v14 = vmax.f32 %v25772_v55, %v26119_v59  ;;  %v8192_v55 = vld [vmem:[%s28322_s3 + $0x20] sm:$0xff] }
 0x4cd   :  { %29077 = vst [vmem:[#allocation68_spill] sm:$0xff] %v26205_v37  ;;  %v7974_v42 = vmax.f32 %v25871_v32, %v7055_v19  ;;  %17471 = vmatprep.mubr.msk.f32.mxu0 %vm271_vm1, %v26203_v3  ;;  %18395 = vmatprep.mubr.msk.f32.mxu1 %vm271_vm1, %v25886_v20 }
 0x4ce   :  { %v26226_v52 = vmax.f32 %v7967_v47, %v7975_v7  ;;  %v8190_v47 = vld [vmem:[%s28322_s3 + $0x10] sm:$0xff] }
 0x4cf   :  { %v26228_v16 = vmax.f32 %v7966_v40, %v7974_v42  ;;  %v26230_v30 = vpop.f32.mrb[100].mxu0  ;;  %v18238_v29 = vpop.f32.mrb[88].mxu1  ;;  %v8191_v40 = vld [vmem:[%s28322_s3 + $0x18] sm:$0xff] }
 0x4d0   :  { %29078 = vst [vmem:[#allocation69_spill] sm:$0xff] %v26226_v52  ;;  %v7977_v32 = vmax.f32 %v25892_v8, %v18238_v29  ;;  %v26233_v19 = vpop.f32.mrb[101].mxu0  ;;  %17472 = vmatmul.mubr.msk.f32.gmra.mrb[226].mxu0 %vm271_vm1, %v26224_v41  ;;  %v7065_v20 = vpop.f32.mrb[89].mxu1  ;;  %18396 = vmatmul.mubr.msk.f32.gmra.mrb[194].mxu1 %vm271_vm1, %v25903_v9  ;;  %v29080_v8 = vld [vmem:[#allocation25_spill] sm:$0xff] }
 0x4d1   :  { %29079 = vst [vmem:[#allocation70_spill] sm:$0xff] %v26228_v16  ;;  %v7976_v7 = vmax.f32 %v25898_v26, %v7065_v20  ;;  %18454 = vmatprep.mubr.msk.f32.mxu0 %vm8209_vm6, %v29080_v8  ;;  %18398 = vmatprep.mubr.msk.f32.mxu1 %vm271_vm1, %v25913_v45  ;;  %v19560_v16 = vpack.c.bf16 %v8191_v40, %v8190_v47  ;;  %v29084_v45 = vld [vmem:[#allocation24_spill] sm:$0xff] }
 0x4d2   :  { %v26253_v9 = vmax.f32 %v29081_v14, %v7977_v32 }
 0x4d3   :  { %v26255_v42 = vmax.f32 %v7968_v6, %v7976_v7  ;;  %v26257_v29 = vpop.f32.mrb[102].mxu0  ;;  %v18241_v52 = vpop.f32.mrb[90].mxu1  ;;  %v8193_v6 = vld [vmem:[%s28322_s3 + $0x28] sm:$0xff] }
 0x4d4   :  { %29082 = vst [vmem:[#allocation71_spill] sm:$0xff] %v26253_v9  ;;  %v7979_v34 = vmax.f32 %v25919_v39, %v18241_v52  ;;  %v26260_v26 = vpop.f32.mrb[103].mxu0  ;;  %v7075_v20 = vpop.f32.mrb[91].mxu1  ;;  %18399 = vmatmul.mubr.msk.f32.gmra.mrb[196].mxu1 %vm271_vm1, %v25930_v25  ;;  %18455 = vmatmul.mubr.msk.f32.vlgmr.msra.gmra.mrb[228].mxu0 %vm8209_vm6, %v29084_v45  ;;  %v29085_v39 = vld [vmem:[#allocation27_spill] sm:$0xff]  ;;  %v29086_v25 = vmax.f32 %v25810_v58, %v26151_v62  ;;  %v29089_v58 = vld [vmem:[#allocation26_spill] sm:$0xff] }
 0x4d5   :  { %29083 = vst [vmem:[#allocation72_spill] sm:$0xff] %v26255_v42  ;;  %v7978_v59 = vmax.f32 %v25925_v0, %v7075_v20  ;;  %18457 = vmatprep.mubr.msk.f32.mxu0 %vm8209_vm6, %v29085_v39  ;;  %18401 = vmatprep.mubr.msk.f32.mxu1 %vm271_vm1, %v25940_v35  ;;  %v19564_v0 = vpack.c.bf16 %v8193_v6, %v8192_v55  ;;  %v29090_v35 = vld [vmem:[#allocation29_spill] sm:$0xff]  ;;  %v29092_v6 = vld [vmem:[#allocation31_spill] sm:$0xff] }
 0x4d6   :  { %v26280_v52 = vmax.f32 %v29086_v25, %v7979_v34  ;;  %19559 = vmatpush3.bf16.msra.mxu0 %v25687_v12  ;;  %v29093_v25 = vld [vmem:[#allocation30_spill] sm:$0xff] }
 0x4d7   :  { %v26283_v32 = vmax.f32 %v7970_v28, %v7978_v59  ;;  %v26285_v47 = vpop.f32.mrb[104].mxu0  ;;  %v18244_v40 = vpop.f32.mrb[92].mxu1  ;;  %19561 = vmatprep.subr.bf16.mxu0 %v19560_v16 }
 0x4d8   :  { %29087 = vst [vmem:[#allocation73_spill] sm:$0xff] %v26280_v52  ;;  %v7981_v7 = vmax.f32 %v25946_v2, %v18244_v40  ;;  %v26288_v14 = vpop.f32.mrb[105].mxu0  ;;  %v7085_v20 = vpop.f32.mrb[93].mxu1  ;;  %18402 = vmatmul.mubr.msk.f32.gmra.mrb[198].mxu1 %vm271_vm1, %v25954_v49  ;;  %18458 = vmatmul.mubr.msk.f32.gmra.mrb[230].mxu0 %vm8209_vm6, %v29089_v58 }
 0x4d9   :  { %29088 = vst [vmem:[#allocation74_spill] sm:$0xff] %v26283_v32  ;;  %v7980_v12 = vmax.f32 %v25949_v15, %v7085_v20  ;;  %18460 = vmatprep.mubr.msk.f32.mxu0 %vm8209_vm6, %v29090_v35  ;;  %18404 = vmatprep.mubr.msk.f32.mxu1 %vm271_vm1, %v25964_v11  ;;  %v29091_v15 = vld [vmem:[#allocation28_spill] sm:$0xff] }
 0x4da   :  { %19563 = vmatpush3.bf16.msra.mxu0 %v19560_v16 }
 0x4db   :  { %v26299_v28 = vpop.f32.mrb[106].mxu0  ;;  %v18247_v2 = vpop.f32.mrb[94].mxu1  ;;  %19565 = vmatprep.subr.bf16.mxu0 %v19564_v0 }
 0x4dc   :  { %v7983_v62 = vmax.f32 %v25974_v5, %v18247_v2  ;;  %v26302_v34 = vpop.f32.mrb[107].mxu0  ;;  %v7095_v49 = vpop.f32.mrb[95].mxu1  ;;  %18405 = vmatmul.mubr.msk.f32.gmra.mrb[200].mxu1 %vm271_vm1, %v25982_v57  ;;  %18461 = vmatmul.mubr.msk.f32.gmra.mrb[232].mxu0 %vm8209_vm6, %v29091_v15 }
 0x4dd   :  { %v7982_v55 = vmax.f32 %v25977_v33, %v7095_v49  ;;  %18463 = vmatprep.mubr.msk.f32.mxu0 %vm8209_vm6, %v29092_v6  ;;  %18407 = vmatprep.mubr.msk.f32.mxu1 %vm271_vm1, %v25992_v48 }
 0x4de   :  { %19567 = vmatpush3.bf16.msra.mxu0 %v19564_v0 }
 0x4df   :  { %v26313_v11 = vpop.f32.mrb[108].mxu0  ;;  %v18250_v5 = vpop.f32.mrb[96].mxu1 }
 0x4e0   :  { %v7985_v16 = vmax.f32 %v26002_v24, %v18250_v5  ;;  %v26316_v59 = vpop.f32.mrb[109].mxu0  ;;  %v7105_v57 = vpop.f32.mrb[97].mxu1  ;;  %18408 = vmatmul.mubr.msk.f32.gmra.mrb[202].mxu1 %vm271_vm1, %v26010_v54  ;;  %18464 = vmatmul.mubr.msk.f32.gmra.mrb[234].mxu0 %vm8209_vm6, %v29093_v25  ;;  %v8194_v54 = vld [vmem:[%s28322_s3 + $0x30] sm:$0xff] }
 0x4e1   :  { %v7984_v33 = vmax.f32 %v26005_v53, %v7105_v57  ;;  %18466 = vmatprep.mubr.msk.f32.mxu0 %vm8209_vm6, %v25732_v36  ;;  %18410 = vmatprep.mubr.msk.f32.mxu1 %vm271_vm1, %v26020_v18  ;;  %v8195_v18 = vld [vmem:[%s28322_s3 + $0x38] sm:$0xff]  ;;  %v29094_v57 = vld [vmem:[#allocation46_spill] sm:$0xff] }
 0x4e3   :  { %v26327_v48 = vpop.f32.mrb[110].mxu0  ;;  %v18253_v24 = vpop.f32.mrb[98].mxu1 }
 0x4e4   :  { %v7987_v40 = vmax.f32 %v26030_v27, %v18253_v24  ;;  %v26330_v0 = vpop.f32.mrb[111].mxu0  ;;  %v7115_v20 = vpop.f32.mrb[99].mxu1  ;;  %18411 = vmatmul.mubr.msk.f32.gmra.mrb[236].mxu1 %vm271_vm1, %v26038_v61  ;;  %18467 = vmatmul.mubr.msk.f32.gmra.mrb[236].mxu0 %vm8209_vm6, %v25725_v10  ;;  %v19568_v61 = vpack.c.bf16 %v8195_v18, %v8194_v54 }
 0x4e5   :  { %v7986_v53 = vmax.f32 %v26033_v1, %v7115_v20  ;;  %18469 = vmatprep.mubr.msk.f32.mxu0 %vm8209_vm6, %v25770_v31  ;;  %18413 = vmatprep.mubr.msk.f32.mxu1 %vm271_vm1, %v26048_v44 }
 0x4e6   :  { %19569 = vmatprep.subr.bf16.mxu0 %v19568_v61 }
 0x4e7   :  { %v26347_v27 = vpop.f32.mrb[112].mxu0  ;;  %v18256_v2 = vpop.f32.mrb[100].mxu1  ;;  %19571 = vmatpush3.bf16.msra.mxu0 %v19568_v61 }
 0x4e8   :  { %v7989_v1 = vmax.f32 %v26061_v51, %v18256_v2  ;;  %v26350_v49 = vpop.f32.mrb[113].mxu0  ;;  %v7125_v5 = vpop.f32.mrb[101].mxu1  ;;  %18414 = vmatmul.mubr.msk.f32.gmra.mrb[238].mxu1 %vm271_vm1, %v26069_v56  ;;  %18470 = vmatmul.mubr.msk.f32.gmra.mrb[238].mxu0 %vm8209_vm6, %v25765_v4  ;;  %v29098_v2 = vld [vmem:[#allocation45_spill] sm:$0xff] }
 0x4e9   :  { %v7988_v44 = vmax.f32 %v26064_v23, %v7125_v5  ;;  %18472 = vmatprep.mubr.msk.f32.mxu0 %vm8209_vm6, %v29094_v57  ;;  %18416 = vmatprep.mubr.msk.f32.mxu1 %vm271_vm1, %v26079_v43  ;;  %v29102_v5 = vld [vmem:[#allocation58_spill] sm:$0xff] }
 0x4ea   :  { %v26361_v24 = vmax.f32 %v7981_v7, %v7989_v1  ;;  %v29099_v7 = vld [vmem:[#allocation48_spill] sm:$0xff] }
 0x4eb   :  { %v26363_v51 = vmax.f32 %v7980_v12, %v7988_v44  ;;  %v26365_v20 = vpop.f32.mrb[114].mxu0  ;;  %v18259_v54 = vpop.f32.mrb[102].mxu1 }
 0x4ec   :  { %29095 = vst [vmem:[#allocation75_spill] sm:$0xff] %v26361_v24  ;;  %v7991_v56 = vmax.f32 %v26085_v63, %v18259_v54  ;;  %v26368_v18 = vpop.f32.mrb[115].mxu0  ;;  %v7135_v23 = vpop.f32.mrb[103].mxu1  ;;  %18417 = vmatmul.mubr.msk.f32.gmra.mrb[240].mxu1 %vm271_vm1, %v26096_v13  ;;  %18473 = vmatmul.mubr.msk.f32.gmra.mrb[240].mxu0 %vm8209_vm6, %v29098_v2 }
 0x4ed   :  { %29096 = vst [vmem:[#allocation76_spill] sm:$0xff] %v26363_v51  ;;  %29097 = vst [vmem:[#allocation77_spill] sm:$0xff] %v26368_v18  ;;  %v7990_v43 = vmax.f32 %v26091_v38, %v7135_v23  ;;  %18475 = vmatprep.mubr.msk.f32.mxu0 %vm8209_vm6, %v29099_v7  ;;  %18419 = vmatprep.mubr.msk.f32.mxu1 %vm271_vm1, %v26106_v46  ;;  %v29104_v18 = vld [vmem:[#allocation60_spill] sm:$0xff]  ;;  %v29105_v38 = vld [vmem:[#allocation47_spill] sm:$0xff] }
 0x4ee   :  { %v26379_v12 = vmax.f32 %v7983_v62, %v7991_v56  ;;  %v29106_v23 = vld [vmem:[#allocation59_spill] sm:$0xff]  ;;  %v29107_v62 = vld [vmem:[#allocation50_spill] sm:$0xff] }
 0x4ef   :  { %v26381_v63 = vmax.f32 %v7982_v55, %v7990_v43  ;;  %v26383_v61 = vpop.f32.mrb[116].mxu0  ;;  %v18262_v1 = vpop.f32.mrb[104].mxu1  ;;  %v29108_v55 = vld [vmem:[#allocation57_spill] sm:$0xff] }
 0x4f0   :  { %29101 = vst [vmem:[#allocation79_spill] sm:$0xff] %v26383_v61  ;;  %v7993_v13 = vmax.f32 %v29102_v5, %v18262_v1  ;;  %v26386_v44 = vpop.f32.mrb[117].mxu0  ;;  %v7145_v54 = vpop.f32.mrb[105].mxu1  ;;  %18420 = vmatmul.mubr.msk.f32.gmra.mrb[242].mxu1 %vm271_vm1, %v29104_v18  ;;  %18476 = vmatmul.mubr.msk.f32.gmra.mrb[242].mxu0 %vm8209_vm6, %v29105_v38  ;;  %v29111_v61 = vld [vmem:[#allocation61_spill] sm:$0xff] }
 0x4f1   :  { %29100 = vst [vmem:[#allocation78_spill] sm:$0xff] %v26381_v63  ;;  %29103 = vst [vmem:[#allocation80_spill] sm:$0xff] %v26386_v44  ;;  %v7992_v46 = vmax.f32 %v29106_v23, %v7145_v54  ;;  %18478 = vmatprep.mubr.msk.f32.mxu0 %vm8209_vm6, %v29107_v62  ;;  %18422 = vmatprep.mubr.msk.f32.mxu1 %vm271_vm1, %v29108_v55  ;;  %v29112_v54 = vld [vmem:[#allocation49_spill] sm:$0xff]  ;;  %v29113_v23 = vld [vmem:[#allocation63_spill] sm:$0xff] }
 0x4f2   :  { %v26397_v56 = vmax.f32 %v7985_v16, %v7993_v13  ;;  %v29114_v16 = vld [vmem:[#allocation52_spill] sm:$0xff] }
 0x4f3   :  { %v26399_v43 = vmax.f32 %v7984_v33, %v7992_v46  ;;  %v26401_v1 = vpop.f32.mrb[118].mxu0  ;;  %v18265_v5 = vpop.f32.mrb[106].mxu1  ;;  %v29115_v33 = vld [vmem:[#allocation62_spill] sm:$0xff] }
 0x4f4   :  { %29109 = vst [vmem:[#allocation81_spill] sm:$0xff] %v26401_v1  ;;  %v7995_v18 = vmax.f32 %v26149_v21, %v18265_v5  ;;  %v26404_v44 = vpop.f32.mrb[119].mxu0  ;;  %v7155_v38 = vpop.f32.mrb[107].mxu1  ;;  %18423 = vmatmul.mubr.msk.f32.gmra.mrb[244].mxu1 %vm271_vm1, %v29111_v61  ;;  %18479 = vmatmul.mubr.msk.f32.gmra.mrb[244].mxu0 %vm8209_vm6, %v29112_v54  ;;  %v29136_v1 = vld [vmem:[#allocation69_spill] sm:$0xff] }
 0x4f5   :  { %29110 = vst [vmem:[#allocation82_spill] sm:$0xff] %v26404_v44  ;;  %v7994_v55 = vmax.f32 %v29113_v23, %v7155_v38  ;;  %18481 = vmatprep.mubr.msk.f32.mxu0 %vm8209_vm6, %v29114_v16  ;;  %18425 = vmatprep.mubr.msk.f32.mxu1 %vm271_vm1, %v29115_v33  ;;  %v29118_v23 = vld [vmem:[#allocation64_spill] sm:$0xff]  ;;  %v29119_v16 = vld [vmem:[#allocation51_spill] sm:$0xff] }
 0x4f6   :  { %v26415_v13 = vmax.f32 %v7987_v40, %v7995_v18  ;;  %v29120_v40 = vld [vmem:[#allocation66_spill] sm:$0xff] }
 0x4f7   :  { %v26417_v21 = vmax.f32 %v7986_v53, %v7994_v55  ;;  %v26419_v46 = vpop.f32.mrb[120].mxu0  ;;  %v26421_v5 = vpop.f32.mrb[108].mxu1  ;;  %v29121_v18 = vld [vmem:[#allocation54_spill] sm:$0xff]  ;;  %v29122_v55 = vld [vmem:[#allocation65_spill] sm:$0xff] }
 0x4f8   :  { %29116 = vst [vmem:[#allocation83_spill] sm:$0xff] %v26419_v46  ;;  %v7997_v61 = vmax.f32 %v26179_v50, %v26421_v5  ;;  %v26425_v44 = vpop.f32.mrb[121].mxu0  ;;  %v26427_v38 = vpop.f32.mrb[109].mxu1  ;;  %18426 = vmatmul.mubr.msk.f32.gmra.mrb[246].mxu1 %vm271_vm1, %v29118_v23  ;;  %18482 = vmatmul.mubr.msk.f32.gmra.mrb[246].mxu0 %vm8209_vm6, %v29119_v16  ;;  %v29132_v46 = vld [vmem:[#allocation67_spill] sm:$0xff] }
 0x4f9   :  { %29117 = vst [vmem:[#allocation84_spill] sm:$0xff] %v26425_v44  ;;  %v7996_v53 = vmax.f32 %v29120_v40, %v26427_v38  ;;  %18484 = vmatprep.mubr.msk.f32.mxu0 %vm8209_vm6, %v29121_v18  ;;  %18428 = vmatprep.mubr.msk.f32.mxu1 %vm271_vm1, %v29122_v55  ;;  %v29125_v38 = vld [vmem:[#allocation53_spill] sm:$0xff]  ;;  %v29126_v55 = vld [vmem:[#allocation56_spill] sm:$0xff]  ;;  %v29129_v40 = vld [vmem:[#allocation55_spill] sm:$0xff] }
 0x4fb   :  { %v26439_v50 = vpop.f32.mrb[122].mxu0  ;;  %v26441_v33 = vpop.f32.mrb[110].mxu1 }
 0x4fc   :  { %29123 = vst [vmem:[#allocation85_spill] sm:$0xff] %v26439_v50  ;;  %v26445_v23 = vpop.f32.mrb[123].mxu0  ;;  %v26447_v44 = vpop.f32.mrb[111].mxu1  ;;  %18429 = vmatmul.mubr.msk.f32.gmra.mrb[248].mxu1 %vm271_vm1, %v26196_v60  ;;  %18485 = vmatmul.mubr.msk.f32.gmra.mrb[248].mxu0 %vm8209_vm6, %v29125_v38  ;;  %v9998_v50 = vld [vmem:[%s28323_s4 + $0x20] sm:$0xff] }
 0x4fd   :  { %29124 = vst [vmem:[#allocation86_spill] sm:$0xff] %v26445_v23  ;;  %18487 = vmatprep.mubr.msk.f32.mxu0 %vm8209_vm6, %v29126_v55  ;;  %18431 = vmatprep.mubr.msk.f32.mxu1 %vm271_vm1, %v26203_v3  ;;  %v9996_v3 = vld [vmem:[%s28323_s4 + $0x10] sm:$0xff]  ;;  %v29133_v55 = vld [vmem:[#allocation70_spill] sm:$0xff] }
 0x4ff   :  { %v26459_v5 = vpop.f32.mrb[124].mxu0  ;;  %v26461_v23 = vpop.f32.mrb[112].mxu1 }
 0x500   :  { %29127 = vst [vmem:[#allocation87_spill] sm:$0xff] %v26459_v5  ;;  %v26465_v60 = vpop.f32.mrb[125].mxu0  ;;  %v26467_v18 = vpop.f32.mrb[113].mxu1  ;;  %18432 = vmatmul.mubr.msk.f32.gmra.mrb[250].mxu1 %vm271_vm1, %v26224_v41  ;;  %18488 = vmatmul.mubr.msk.f32.gmra.mrb[250].mxu0 %vm8209_vm6, %v29129_v40  ;;  %v9997_v5 = vld [vmem:[%s28323_s4 + $0x18] sm:$0xff] }
 0x501   :  { %29128 = vst [vmem:[#allocation88_spill] sm:$0xff] %v26465_v60  ;;  %18490 = vmatprep.mubr.msk.f32.mxu0 %vm8209_vm6, %v26205_v37  ;;  %18874 = vmatprep.mubr.msk.f32.mxu1 %vm8209_vm6, %v29080_v8  ;;  %v19626_v40 = vpack.c.bf16 %v9997_v5, %v9996_v3  ;;  %v9999_v5 = vld [vmem:[%s28323_s4 + $0x28] sm:$0xff] }
 0x502   :  { %v8197_v8 = vld [vmem:[%s28322_s3 + $0x48] sm:$0x3f]  ;;  %v19630_v37 = vpack.c.bf16 %v9999_v5, %v9998_v50 }
 0x503   :  { %v26485_v41 = vpop.f32.mrb[126].mxu0  ;;  %v26487_v60 = vpop.f32.mrb[114].mxu1 }
 0x504   :  { %29130 = vst [vmem:[#allocation89_spill] sm:$0xff] %v26485_v41  ;;  %v26491_v38 = vpop.f32.mrb[127].mxu0  ;;  %v26493_v16 = vpop.f32.mrb[115].mxu1  ;;  %18491 = vmatmul.mubr.msk.f32.gmra.mrb[252].mxu0 %vm8209_vm6, %v29132_v46  ;;  %18875 = vmatmul.mubr.msk.f32.vlgmr.msra.gmra.mrb[252].mxu1 %vm8209_vm6, %v29084_v45  ;;  %v8196_v45 = vld [vmem:[%s28322_s3 + $0x40] sm:$0xff] }
 0x505   :  { %29131 = vst [vmem:[#allocation90_spill] sm:$0xff] %v26491_v38  ;;  %18493 = vmatprep.mubr.msk.f32.mxu0 %vm8209_vm6, %v29133_v55  ;;  %18877 = vmatprep.mubr.msk.f32.mxu1 %vm8209_vm6, %v29085_v39  ;;  %v29134_v38 = vld [vmem:[#allocation37_spill] sm:$0xff]  ;;  %v19572_v46 = vpack.c.bf16 %v8197_v8, %v8196_v45  ;;  %v10000_v8 = vld [vmem:[%s28323_s4 + $0x30] sm:$0xff] }
 0x506   :  { %19625 = vmatpush3.bf16.msra.mxu1 %v29134_v38  ;;  %v10001_v45 = vld [vmem:[%s28323_s4 + $0x38] sm:$0xff] }
 0x507   :  { %v26518_v41 = vpop.f32.mrb[128].mxu0  ;;  %v18280_v3 = vpop.f32.mrb[116].mxu1  ;;  %19627 = vmatprep.subr.bf16.mxu1 %v19626_v40  ;;  %19574 = vmatprep.subr.msk.bf16.mxu0 %vm25088_vm5, %v19572_v46 }
 0x508   :  { %v8005_v55 = vmax.f32 %v26285_v47, %v18280_v3  ;;  %v26521_v54 = vpop.f32.mrb[129].mxu0  ;;  %v7205_v39 = vpop.f32.mrb[117].mxu1  ;;  %18494 = vmatmul.mubr.msk.f32.gmra.mrb[254].mxu0 %vm8209_vm6, %v29136_v1  ;;  %18878 = vmatmul.mubr.msk.f32.gmra.mrb[254].mxu1 %vm8209_vm6, %v29089_v58 }
 0x509   :  { %29135 = vst [vmem:[#allocation91_spill] sm:$0xff] %v26521_v54  ;;  %v8004_v50 = vmax.f32 %v26288_v14, %v7205_v39  ;;  %18496 = vmatprep.mubr.msk.f32.mxu0 %vm8209_vm6, %v26255_v42  ;;  %18880 = vmatprep.mubr.msk.f32.mxu1 %vm8209_vm6, %v29090_v35  ;;  %v19634_v54 = vpack.c.bf16 %v10001_v45, %v10000_v8 }
 0x50a   :  { %v26538_v47 = vmax.f32 %v7997_v61, %v8005_v55  ;;  %19629 = vmatpush3.bf16.msra.mxu1 %v19626_v40  ;;  %19577 = vmatpush3.bf16.msk.msra.mxu0 %vm25088_vm5, %v19572_v46  ;;  %v10003_v40 = vld [vmem:[%s28323_s4 + $0x48] sm:$0x3f]  ;;  %v29140_v55 = vmax.f32 %v26210_v17, %v26447_v44 }
 0x50b   :  { %v26542_v5 = vmax.f32 %v7996_v53, %v8004_v50  ;;  %v26544_v3 = vpop.f32.mrb[130].mxu0  ;;  %v18283_v58 = vpop.f32.mrb[118].mxu1  ;;  %19631 = vmatprep.subr.bf16.mxu1 %v19630_v37  ;;  %v10002_v53 = vld [vmem:[%s28323_s4 + $0x40] sm:$0xff] }
 0x50c   :  { %v8007_v39 = vmax.f32 %v26299_v28, %v18283_v58  ;;  %v26549_v14 = vpop.f32.mrb[131].mxu0  ;;  %v7215_v61 = vpop.f32.mrb[119].mxu1  ;;  %18497 = vmatmul.mubr.msk.f32.gmra.mrb[192].mxu0 %vm8209_vm6, %v26253_v9  ;;  %18881 = vmatmul.mubr.msk.f32.gmra.mrb[0].mxu1 %vm8209_vm6, %v29091_v15  ;;  %v29138_v58 = vmax.f32 %v26207_v22, %v26441_v33  ;;  %v19638_v50 = vpack.c.bf16 %v10003_v40, %v10002_v53 }
 0x50d   :  { %v8006_v46 = vmax.f32 %v26302_v34, %v7215_v61  ;;  %18499 = vmatprep.mubr.msk.f32.mxu0 %vm8209_vm6, %v26283_v32  ;;  %18883 = vmatprep.mubr.msk.f32.mxu1 %vm8209_vm6, %v29092_v6  ;;  %v29141_v22 = vmax.f32 %v26230_v30, %v26461_v23 }
 0x50e   :  { %v26569_v28 = vmax.f32 %v29138_v58, %v8007_v39  ;;  %19633 = vmatpush3.bf16.msra.mxu1 %v19630_v37 }
 0x50f   :  { %v26574_v8 = vmax.f32 %v29140_v55, %v8006_v46  ;;  %v26576_v45 = vpop.f32.mrb[132].mxu0  ;;  %v18286_v34 = vpop.f32.mrb[120].mxu1  ;;  %19635 = vmatprep.subr.bf16.mxu1 %v19634_v54 }
 0x510   :  { %29139 = vst [vmem:[#allocation92_spill] sm:$0xff] %v26569_v28  ;;  %v8009_v61 = vmax.f32 %v26313_v11, %v18286_v34  ;;  %v26579_v15 = vpop.f32.mrb[133].mxu0  ;;  %v7225_v6 = vpop.f32.mrb[121].mxu1  ;;  %18500 = vmatmul.mubr.msk.f32.gmra.mrb[194].mxu0 %vm8209_vm6, %v26280_v52  ;;  %18884 = vmatmul.mubr.msk.f32.gmra.mrb[2].mxu1 %vm8209_vm6, %v29093_v25  ;;  %v29143_v11 = vmax.f32 %v26233_v19, %v26467_v18 }
 0x511   :  { %v8008_v37 = vmax.f32 %v26316_v59, %v7225_v6  ;;  %18502 = vmatprep.mubr.msk.f32.mxu0 %vm8209_vm6, %v26363_v51  ;;  %18886 = vmatprep.mubr.msk.f32.mxu1 %vm8209_vm6, %v25732_v36  ;;  %v29145_v19 = vmax.f32 %v26257_v29, %v26487_v60  ;;  %v29170_v36 = vld [vmem:[#allocation87_spill] sm:$0xff] }
 0x512   :  { %v26593_v17 = vmax.f32 %v29141_v22, %v8009_v61  ;;  %19637 = vmatpush3.bf16.msra.mxu1 %v19634_v54  ;;  %v29147_v54 = vmax.f32 %v26260_v26, %v26493_v16  ;;  %v29150_v61 = vld [vmem:[#allocation79_spill] sm:$0xff] }
 0x513   :  { %v26598_v44 = vmax.f32 %v29143_v11, %v8008_v37  ;;  %v26600_v33 = vpop.f32.mrb[134].mxu0  ;;  %v18289_v6 = vpop.f32.mrb[122].mxu1  ;;  %19640 = vmatprep.subr.msk.bf16.mxu1 %vm25088_vm5, %v19638_v50 }
 0x514   :  { %29142 = vst [vmem:[#allocation93_spill] sm:$0xff] %v26593_v17  ;;  %v8011_v59 = vmax.f32 %v26327_v48, %v18289_v6  ;;  %v26605_v39 = vpop.f32.mrb[135].mxu0  ;;  %v7235_v53 = vpop.f32.mrb[123].mxu1  ;;  %18503 = vmatmul.mubr.msk.f32.gmra.mrb[196].mxu0 %vm8209_vm6, %v26361_v24  ;;  %18887 = vmatmul.mubr.msk.f32.gmra.mrb[4].mxu1 %vm8209_vm6, %v25725_v10  ;;  %v29151_v6 = vld [vmem:[#allocation47_spill] sm:$0xff] }
 0x515   :  { %29144 = vst [vmem:[#allocation94_spill] sm:$0xff] %v26598_v44  ;;  %v8010_v30 = vmax.f32 %v26330_v0, %v7235_v53  ;;  %18505 = vmatprep.mubr.msk.f32.mxu0 %vm8209_vm6, %v26381_v63  ;;  %18889 = vmatprep.mubr.msk.f32.mxu1 %vm8209_vm6, %v25770_v31 }
 0x516   :  { %v26619_v48 = vmax.f32 %v29145_v19, %v8011_v59  ;;  %19643 = vmatpush3.bf16.msk.msra.mxu1 %vm25088_vm5, %v19638_v50  ;;  %v29152_v59 = vld [vmem:[#allocation80_spill] sm:$0xff] }
 0x517   :  { %v26626_v18 = vmax.f32 %v29147_v54, %v8010_v30  ;;  %v26628_v0 = vpop.f32.mrb[136].mxu0  ;;  %v18292_v23 = vpop.f32.mrb[124].mxu1  ;;  %v29153_v54 = vld [vmem:[#allocation81_spill] sm:$0xff] }
 0x518   :  { %29146 = vst [vmem:[#allocation95_spill] sm:$0xff] %v26619_v48  ;;  %v8013_v40 = vmax.f32 %v26347_v27, %v18292_v23  ;;  %v26631_v46 = vpop.f32.mrb[137].mxu0  ;;  %v7245_v58 = vpop.f32.mrb[125].mxu1  ;;  %18506 = vmatmul.mubr.msk.f32.gmra.mrb[198].mxu0 %vm8209_vm6, %v26379_v12  ;;  %18890 = vmatmul.mubr.msk.f32.gmra.mrb[6].mxu1 %vm8209_vm6, %v25765_v4  ;;  %v29162_v4 = vld [vmem:[#allocation54_spill] sm:$0xff] }
 0x519   :  { %29148 = vst [vmem:[#allocation96_spill] sm:$0xff] %v26626_v18  ;;  %v8012_v29 = vmax.f32 %v26350_v49, %v7245_v58  ;;  %18508 = vmatprep.mubr.msk.f32.mxu0 %vm8209_vm6, %v26399_v43  ;;  %18892 = vmatprep.mubr.msk.f32.mxu1 %vm8209_vm6, %v29094_v57  ;;  %v29149_v49 = vld [vmem:[#allocation77_spill] sm:$0xff]  ;;  %v29160_v57 = vld [vmem:[#allocation51_spill] sm:$0xff] }
 0x51b   :  { %v26642_v26 = vpop.f32.mrb[138].mxu0  ;;  %v18295_v27 = vpop.f32.mrb[126].mxu1 }
 0x51c   :  { %v8015_v16 = vmax.f32 %v26365_v20, %v18295_v27  ;;  %v26645_v60 = vpop.f32.mrb[139].mxu0  ;;  %v7255_v55 = vpop.f32.mrb[127].mxu1  ;;  %18509 = vmatmul.mubr.msk.f32.gmra.mrb[200].mxu0 %vm8209_vm6, %v26397_v56  ;;  %18893 = vmatmul.mubr.msk.f32.gmra.mrb[8].mxu1 %vm8209_vm6, %v29098_v2 }
 0x51d   :  { %v8014_v34 = vmax.f32 %v29149_v49, %v7255_v55  ;;  %18511 = vmatprep.mubr.msk.f32.mxu0 %vm8209_vm6, %v26417_v21  ;;  %18895 = vmatprep.mubr.msk.f32.mxu1 %vm8209_vm6, %v29099_v7  ;;  %v29154_v55 = vld [vmem:[#allocation49_spill] sm:$0xff]  ;;  %v29155_v49 = vld [vmem:[#allocation82_spill] sm:$0xff] }
 0x51f   :  { %v26656_v50 = vpop.f32.mrb[140].mxu0  ;;  %v18298_v20 = vpop.f32.mrb[128].mxu1 }
 0x520   :  { %v8017_v37 = vmax.f32 %v29150_v61, %v18298_v20  ;;  %v26659_v22 = vpop.f32.mrb[141].mxu0  ;;  %v7265_v11 = vpop.f32.mrb[129].mxu1  ;;  %18512 = vmatmul.mubr.msk.f32.gmra.mrb[202].mxu0 %vm8209_vm6, %v26415_v13  ;;  %18896 = vmatmul.mubr.msk.f32.gmra.mrb[10].mxu1 %vm8209_vm6, %v29151_v6  ;;  %v29156_v61 = vld [vmem:[#allocation52_spill] sm:$0xff] }
 0x521   :  { %v8016_v53 = vmax.f32 %v29152_v59, %v7265_v11  ;;  %18514 = vmatprep.mubr.msk.f32.mxu0 %vm8209_vm6, %v26542_v5  ;;  %18898 = vmatprep.mubr.msk.f32.mxu1 %vm8209_vm6, %v29107_v62  ;;  %v14141_v11 = vld [vmem:[%s28322_s3 + $0xa0] sm:$0xff]  ;;  %v14142_v59 = vld [vmem:[%s28322_s3 + $0xa8] sm:$0xff] }
 0x522   :  { %v29159_v62 = vld [vmem:[#allocation83_spill] sm:$0xff] }
 0x523   :  { %v26670_v30 = vpop.f32.mrb[142].mxu0  ;;  %v26672_v19 = vpop.f32.mrb[130].mxu1 }
 0x524   :  { %v8019_v23 = vmax.f32 %v29153_v54, %v26672_v19  ;;  %v26676_v58 = vpop.f32.mrb[143].mxu0  ;;  %v7275_v27 = vpop.f32.mrb[131].mxu1  ;;  %18515 = vmatmul.mubr.msk.f32.gmra.mrb[204].mxu0 %vm8209_vm6, %v26538_v47  ;;  %18899 = vmatmul.mubr.msk.f32.gmra.mrb[204].mxu1 %vm8209_vm6, %v29154_v55  ;;  %v14404_v19 = vld [vmem:[%s28323_s4 + $0xa0] sm:$0xff]  ;;  %v26696_v54 = vpack.c.bf16 %v14142_v59, %v14141_v11  ;;  %v29161_v11 = vld [vmem:[#allocation84_spill] sm:$0xff] }
 0x525   :  { %v8018_v20 = vmax.f32 %v29155_v49, %v7275_v27  ;;  %18517 = vmatprep.mubr.msk.f32.mxu0 %vm8209_vm6, %v26574_v8  ;;  %18901 = vmatprep.mubr.msk.f32.mxu1 %vm8209_vm6, %v29156_v61  ;;  %v14405_v27 = vld [vmem:[%s28323_s4 + $0xa8] sm:$0xff] }
 0x526   :  { %29157 = vst [vmem:[#allocation97_spill] sm:$0xff] %v26696_v54  ;;  %v26703_v55 = vpack.c.bf16 %v14405_v27, %v14404_v19  ;;  %19579 = vmatprep.subr.bf16.mxu0 %v26696_v54 }
 0x527   :  { %v26701_v49 = vpop.f32.mrb[144].mxu0  ;;  %v18304_v61 = vpop.f32.mrb[132].mxu1 }
 0x528   :  { %29158 = vst [vmem:[#allocation98_spill] sm:$0xff] %v26703_v55  ;;  %v8021_v6 = vmax.f32 %v29159_v62, %v18304_v61  ;;  %v26706_v7 = vpop.f32.mrb[145].mxu0  ;;  %v7285_v2 = vpop.f32.mrb[133].mxu1  ;;  %18518 = vmatmul.mubr.msk.f32.gmra.mrb[206].mxu0 %vm8209_vm6, %v26569_v28  ;;  %18902 = vmatmul.mubr.msk.f32.gmra.mrb[206].mxu1 %vm8209_vm6, %v29160_v57  ;;  %v29165_v57 = vld [vmem:[#allocation85_spill] sm:$0xff] }
 0x529   :  { %v8020_v59 = vmax.f32 %v29161_v11, %v7285_v2  ;;  %18520 = vmatprep.mubr.msk.f32.mxu0 %vm8209_vm6, %v26598_v44  ;;  %18904 = vmatprep.mubr.msk.f32.mxu1 %vm8209_vm6, %v29162_v4  ;;  %v29166_v4 = vld [vmem:[#allocation53_spill] sm:$0xff] }
 0x52a   :  { %v26717_v19 = vmax.f32 %v8013_v40, %v8021_v6  ;;  %19645 = vmatprep.subr.bf16.mxu1 %v26703_v55  ;;  %v29167_v40 = vld [vmem:[#allocation86_spill] sm:$0xff] }
 0x52b   :  { %v26721_v62 = vmax.f32 %v8012_v29, %v8020_v59  ;;  %v26723_v61 = vpop.f32.mrb[146].mxu0  ;;  %v18307_v27 = vpop.f32.mrb[134].mxu1  ;;  %v29168_v29 = vld [vmem:[#allocation56_spill] sm:$0xff] }
 0x52c   :  { %29163 = vst [vmem:[#allocation99_spill] sm:$0xff] %v26717_v19  ;;  %v8023_v31 = vmax.f32 %v29165_v57, %v18307_v27  ;;  %v26726_v2 = vpop.f32.mrb[147].mxu0  ;;  %v7295_v11 = vpop.f32.mrb[135].mxu1  ;;  %18521 = vmatmul.mubr.msk.f32.gmra.mrb[208].mxu0 %vm8209_vm6, %v26593_v17  ;;  %18905 = vmatmul.mubr.msk.f32.gmra.mrb[208].mxu1 %vm8209_vm6, %v29166_v4 }
 0x52d   :  { %29164 = vst [vmem:[#allocation100_spill] sm:$0xff] %v26721_v62  ;;  %v8022_v6 = vmax.f32 %v29167_v40, %v7295_v11  ;;  %18523 = vmatprep.mubr.msk.f32.mxu0 %vm8209_vm6, %v26626_v18  ;;  %18907 = vmatprep.mubr.msk.f32.mxu1 %vm8209_vm6, %v29168_v29  ;;  %v29171_v11 = vld [vmem:[#allocation55_spill] sm:$0xff]  ;;  %v29172_v40 = vld [vmem:[#allocation88_spill] sm:$0xff] }
 0x52e   :  { %v26737_v59 = vmax.f32 %v8015_v16, %v8023_v31  ;;  %v29173_v31 = vld [vmem:[#allocation68_spill] sm:$0xff] }
 0x52f   :  { %v26739_v57 = vmax.f32 %v8014_v34, %v8022_v6  ;;  %v26741_v27 = vpop.f32.mrb[148].mxu0  ;;  %v18310_v10 = vpop.f32.mrb[136].mxu1  ;;  %v29174_v6 = vld [vmem:[#allocation89_spill] sm:$0xff] }
 0x530   :  { %v8025_v25 = vmax.f32 %v29170_v36, %v18310_v10  ;;  %v26744_v35 = vpop.f32.mrb[149].mxu0  ;;  %v7305_v4 = vpop.f32.mrb[137].mxu1  ;;  %18524 = vmatmul.mubr.msk.f32.gmra.mrb[210].mxu0 %vm8209_vm6, %v26619_v48  ;;  %18908 = vmatmul.mubr.msk.f32.gmra.mrb[210].mxu1 %vm8209_vm6, %v29171_v11 }
 0x531   :  { %29169 = vst [vmem:[#allocation101_spill] sm:$0xff] %v26739_v57  ;;  %v8024_v29 = vmax.f32 %v29172_v40, %v7305_v4  ;;  %18526 = vmatprep.mubr.msk.f32.mxu0 %vm8209_vm6, %v26721_v62  ;;  %18910 = vmatprep.mubr.msk.f32.mxu1 %vm8209_vm6, %v29173_v31  ;;  %v29175_v4 = vld [vmem:[#allocation67_spill] sm:$0xff]  ;;  %v29176_v40 = vld [vmem:[#allocation90_spill] sm:$0xff] }
 0x532   :  { %v26755_v16 = vmax.f32 %v8017_v37, %v8025_v25  ;;  %v29177_v25 = vld [vmem:[#allocation70_spill] sm:$0xff] }
 0x533   :  { %v26757_v10 = vmax.f32 %v8016_v53, %v8024_v29  ;;  %v26759_v36 = vpop.f32.mrb[150].mxu0  ;;  %v18313_v34 = vpop.f32.mrb[138].mxu1 }
 0x534   :  { %v8027_v38 = vmax.f32 %v29174_v6, %v18313_v34  ;;  %v26762_v55 = vpop.f32.mrb[151].mxu0  ;;  %v7315_v11 = vpop.f32.mrb[139].mxu1  ;;  %18527 = vmatmul.mubr.msk.f32.gmra.mrb[0].mxu0 %vm8209_vm6, %v26717_v19  ;;  %18911 = vmatmul.mubr.msk.f32.gmra.mrb[212].mxu1 %vm8209_vm6, %v29175_v4 }
 0x535   :  { %v8026_v31 = vmax.f32 %v29176_v40, %v7315_v11  ;;  %18529 = vmatprep.mubr.msk.f32.mxu0 %vm8209_vm6, %v26739_v57  ;;  %18913 = vmatprep.mubr.msk.f32.mxu1 %vm8209_vm6, %v29177_v25  ;;  %v29178_v11 = vld [vmem:[#allocation91_spill] sm:$0xff] }
 0x536   :  { %v26773_v37 = vmax.f32 %v8019_v23, %v8027_v38 }
 0x537   :  { %v26775_v53 = vmax.f32 %v8018_v20, %v8026_v31  ;;  %v26777_v29 = vpop.f32.mrb[152].mxu0  ;;  %v18316_v34 = vpop.f32.mrb[140].mxu1 }
 0x538   :  { %v8029_v6 = vmax.f32 %v26518_v41, %v18316_v34  ;;  %v26780_v54 = vpop.f32.mrb[153].mxu0  ;;  %v7325_v4 = vpop.f32.mrb[141].mxu1  ;;  %18530 = vmatmul.mubr.msk.f32.gmra.mrb[2].mxu0 %vm8209_vm6, %v26737_v59  ;;  %18914 = vmatmul.mubr.msk.f32.gmra.mrb[214].mxu1 %vm8209_vm6, %v29136_v1 }
 0x539   :  { %v8028_v40 = vmax.f32 %v29178_v11, %v7325_v4  ;;  %18532 = vmatprep.mubr.msk.f32.mxu0 %vm8209_vm6, %v26757_v10  ;;  %18916 = vmatprep.mubr.msk.f32.mxu1 %vm8209_vm6, %v26255_v42 }
 0x53b   :  { %v26791_v38 = vpop.f32.mrb[154].mxu0  ;;  %v18319_v41 = vpop.f32.mrb[142].mxu1 }
 0x53c   :  { %v8031_v23 = vmax.f32 %v26544_v3, %v18319_v41  ;;  %v26794_v20 = vpop.f32.mrb[155].mxu0  ;;  %v7335_v31 = vpop.f32.mrb[143].mxu1  ;;  %18533 = vmatmul.mubr.msk.f32.gmra.mrb[4].mxu0 %vm8209_vm6, %v26755_v16  ;;  %18917 = vmatmul.mubr.msk.f32.gmra.mrb[216].mxu1 %vm8209_vm6, %v26253_v9 }
 0x53d   :  { %v8030_v4 = vmax.f32 %v26549_v14, %v7335_v31  ;;  %18535 = vmatprep.mubr.msk.f32.mxu0 %vm8209_vm6, %v26775_v53  ;;  %18919 = vmatprep.mubr.msk.f32.mxu1 %vm8209_vm6, %v26283_v32 }
 0x53f   :  { %v26805_v34 = vpop.f32.mrb[156].mxu0  ;;  %v18322_v3 = vpop.f32.mrb[144].mxu1 }
 0x540   :  { %v8033_v11 = vmax.f32 %v26576_v45, %v18322_v3  ;;  %v26808_v41 = vpop.f32.mrb[157].mxu0  ;;  %v7345_v42 = vpop.f32.mrb[145].mxu1  ;;  %18536 = vmatmul.mubr.msk.f32.gmra.mrb[6].mxu0 %vm8209_vm6, %v26773_v37  ;;  %18920 = vmatmul.mubr.msk.f32.gmra.mrb[218].mxu1 %vm8209_vm6, %v26280_v52 }
 0x541   :  { %v8032_v14 = vmax.f32 %v26579_v15, %v7345_v42  ;;  %18922 = vmatprep.mubr.msk.f32.mxu1 %vm8209_vm6, %v26363_v51 }
 0x543   :  { %v26817_v31 = vpop.f32.mrb[158].mxu0  ;;  %v18325_v32 = vpop.f32.mrb[146].mxu1 }
 0x544   :  { %v8035_v9 = vmax.f32 %v26600_v33, %v18325_v32  ;;  %v26820_v45 = vpop.f32.mrb[159].mxu0  ;;  %v7355_v3 = vpop.f32.mrb[147].mxu1  ;;  %18923 = vmatmul.mubr.msk.f32.gmra.mrb[220].mxu1 %vm8209_vm6, %v26361_v24 }
 0x545   :  { %v8034_v1 = vmax.f32 %v26605_v39, %v7355_v3  ;;  %18925 = vmatprep.mubr.msk.f32.mxu1 %vm8209_vm6, %v26381_v63 }
 0x547   :  { %v26827_v42 = vpop.f32.mrb[160].mxu0  ;;  %v18328_v15 = vpop.f32.mrb[148].mxu1 }
 0x548   :  { %v8037_v51 = vmax.f32 %v26628_v0, %v18328_v15  ;;  %v26830_v52 = vpop.f32.mrb[161].mxu0  ;;  %v7365_v25 = vpop.f32.mrb[149].mxu1  ;;  %18926 = vmatmul.mubr.msk.f32.gmra.mrb[222].mxu1 %vm8209_vm6, %v26379_v12 }
 0x549   :  { %v8036_v32 = vmax.f32 %v26631_v46, %v7365_v25  ;;  %18928 = vmatprep.mubr.msk.f32.mxu1 %vm8209_vm6, %v26399_v43 }
 0x54a   :  { %v26837_v33 = vmax.f32 %v8029_v6, %v8037_v51 }
 0x54b   :  { %v26839_v39 = vmax.f32 %v8028_v40, %v8036_v32  ;;  %v26841_v3 = vpop.f32.mrb[162].mxu0  ;;  %v18331_v63 = vpop.f32.mrb[150].mxu1 }
 0x54c   :  { %v8039_v0 = vmax.f32 %v26642_v26, %v18331_v63  ;;  %v26844_v15 = vpop.f32.mrb[163].mxu0  ;;  %v7375_v24 = vpop.f32.mrb[151].mxu1  ;;  %18929 = vmatmul.mubr.msk.f32.gmra.mrb[224].mxu1 %vm8209_vm6, %v26397_v56 }
 0x54d   :  { %v8038_v46 = vmax.f32 %v26645_v60, %v7375_v24  ;;  %18538 = vmatprep.mubr.msk.f32.mxu0 %vm8209_vm6, %v26839_v39  ;;  %18931 = vmatprep.mubr.msk.f32.mxu1 %vm8209_vm6, %v26417_v21 }
 0x54e   :  { %v26853_v51 = vmax.f32 %v8031_v23, %v8039_v0  ;;  %18539 = vmatmul.mubr.msk.f32.gmra.mrb[8].mxu0 %vm8209_vm6, %v26837_v33 }
 0x54f   :  { %v26857_v63 = vmax.f32 %v8030_v4, %v8038_v46  ;;  %v26859_v26 = vpop.f32.mrb[164].mxu0  ;;  %v18334_v25 = vpop.f32.mrb[152].mxu1 }
 0x550   :  { %29179 = vst [vmem:[#allocation102_spill] sm:$0xff] %v26853_v51  ;;  %v8041_v6 = vmax.f32 %v26656_v50, %v18334_v25  ;;  %v26862_v40 = vpop.f32.mrb[165].mxu0  ;;  %v7385_v24 = vpop.f32.mrb[153].mxu1  ;;  %18932 = vmatmul.mubr.msk.f32.gmra.mrb[226].mxu1 %vm8209_vm6, %v26415_v13 }
 0x551   :  { %v8040_v60 = vmax.f32 %v26659_v22, %v7385_v24  ;;  %18541 = vmatprep.mubr.msk.f32.mxu0 %vm8209_vm6, %v26857_v63  ;;  %18934 = vmatprep.mubr.msk.f32.mxu1 %vm8209_vm6, %v26542_v5 }
 0x552   :  { %v26871_v23 = vmax.f32 %v8033_v11, %v8041_v6  ;;  %18542 = vmatmul.mubr.msk.f32.gmra.mrb[10].mxu0 %vm8209_vm6, %v26853_v51 }
 0x553   :  { %v26875_v50 = vmax.f32 %v8032_v14, %v8040_v60  ;;  %v26877_v4 = vpop.f32.mrb[166].mxu0  ;;  %v18337_v32 = vpop.f32.mrb[154].mxu1 }
 0x554   :  { %29180 = vst [vmem:[#allocation103_spill] sm:$0xff] %v26871_v23  ;;  %v8043_v0 = vmax.f32 %v26670_v30, %v18337_v32  ;;  %v26880_v46 = vpop.f32.mrb[167].mxu0  ;;  %v7395_v22 = vpop.f32.mrb[155].mxu1  ;;  %18935 = vmatmul.mubr.msk.f32.gmra.mrb[228].mxu1 %vm8209_vm6, %v26538_v47 }
 0x555   :  { %29181 = vst [vmem:[#allocation104_spill] sm:$0xff] %v26875_v50  ;;  %v8042_v25 = vmax.f32 %v26676_v58, %v7395_v22  ;;  %18544 = vmatprep.mubr.msk.f32.mxu0 %vm8209_vm6, %v26875_v50  ;;  %18937 = vmatprep.mubr.msk.f32.mxu1 %vm8209_vm6, %v26574_v8 }
 0x556   :  { %v26889_v11 = vmax.f32 %v8035_v9, %v8043_v0  ;;  %18545 = vmatmul.mubr.msk.f32.gmra.mrb[12].mxu0 %vm8209_vm6, %v26871_v23 }
 0x557   :  { %v26893_v30 = vmax.f32 %v8034_v1, %v8042_v25  ;;  %v26895_v14 = vpop.f32.mrb[168].mxu0  ;;  %v18340_v6 = vpop.f32.mrb[156].mxu1 }
 0x558   :  { %29182 = vst [vmem:[#allocation105_spill] sm:$0xff] %v26889_v11  ;;  %v8045_v24 = vmax.f32 %v26701_v49, %v18340_v6  ;;  %v26898_v60 = vpop.f32.mrb[169].mxu0  ;;  %v7405_v58 = vpop.f32.mrb[157].mxu1  ;;  %18938 = vmatmul.mubr.msk.f32.gmra.mrb[230].mxu1 %vm8209_vm6, %v26569_v28 }
 0x559   :  { %29183 = vst [vmem:[#allocation106_spill] sm:$0xff] %v26893_v30  ;;  %v8044_v32 = vmax.f32 %v26706_v7, %v7405_v58  ;;  %18547 = vmatprep.mubr.msk.f32.mxu0 %vm8209_vm6, %v26893_v30  ;;  %18940 = vmatprep.mubr.msk.f32.mxu1 %vm8209_vm6, %v26598_v44 }
 0x55a   :  { %18548 = vmatmul.mubr.msk.f32.gmra.mrb[14].mxu0 %vm8209_vm6, %v26889_v11 }
 0x55b   :  { %v26909_v9 = vpop.f32.mrb[170].mxu0  ;;  %v18343_v1 = vpop.f32.mrb[158].mxu1 }
 0x55c   :  { %v8047_v49 = vmax.f32 %v26723_v61, %v18343_v1  ;;  %v26912_v0 = vpop.f32.mrb[171].mxu0  ;;  %v7415_v22 = vpop.f32.mrb[159].mxu1  ;;  %18941 = vmatmul.mubr.msk.f32.gmra.mrb[232].mxu1 %vm8209_vm6, %v26593_v17 }
 0x55d   :  { %v8046_v7 = vmax.f32 %v26726_v2, %v7415_v22  ;;  %18943 = vmatprep.mubr.msk.f32.mxu1 %vm8209_vm6, %v26626_v18 }
 0x55f   :  { %v26919_v25 = vpop.f32.mrb[172].mxu0  ;;  %v18346_v6 = vpop.f32.mrb[160].mxu1 }
 0x560   :  { %v8049_v58 = vmax.f32 %v26741_v27, %v18346_v6  ;;  %v26922_v44 = vpop.f32.mrb[173].mxu0  ;;  %v7425_v28 = vpop.f32.mrb[161].mxu1  ;;  %18944 = vmatmul.mubr.msk.f32.gmra.mrb[234].mxu1 %vm8209_vm6, %v26619_v48 }
 0x561   :  { %v8048_v61 = vmax.f32 %v26744_v35, %v7425_v28  ;;  %18946 = vmatprep.mubr.msk.f32.mxu1 %vm8209_vm6, %v26721_v62 }
 0x563   :  { %v26929_v2 = vpop.f32.mrb[174].mxu0  ;;  %v18349_v1 = vpop.f32.mrb[162].mxu1 }
 0x564   :  { %v8051_v22 = vmax.f32 %v26759_v36, %v18349_v1  ;;  %v26932_v18 = vpop.f32.mrb[175].mxu0  ;;  %v7435_v17 = vpop.f32.mrb[163].mxu1  ;;  %18947 = vmatmul.mubr.msk.f32.gmra.mrb[12].mxu1 %vm8209_vm6, %v26717_v19 }
 0x565   :  { %v8050_v27 = vmax.f32 %v26762_v55, %v7435_v17  ;;  %18949 = vmatprep.mubr.msk.f32.mxu1 %vm8209_vm6, %v26739_v57 }
 0x567   :  { %v26939_v35 = vpop.f32.mrb[176].mxu0  ;;  %v18352_v28 = vpop.f32.mrb[164].mxu1 }
 0x568   :  { %v8053_v6 = vmax.f32 %v26777_v29, %v18352_v28  ;;  %v26942_v62 = vpop.f32.mrb[177].mxu0  ;;  %v7445_v48 = vpop.f32.mrb[165].mxu1  ;;  %18950 = vmatmul.mubr.msk.f32.gmra.mrb[14].mxu1 %vm8209_vm6, %v26737_v59 }
 0x569   :  { %v8052_v36 = vmax.f32 %v26780_v54, %v7445_v48  ;;  %18952 = vmatprep.mubr.msk.f32.mxu1 %vm8209_vm6, %v26757_v10 }
 0x56a   :  { %v26949_v17 = vmax.f32 %v8045_v24, %v8053_v6 }
 0x56b   :  { %v26951_v55 = vmax.f32 %v8044_v32, %v8052_v36  ;;  %v26953_v1 = vpop.f32.mrb[178].mxu0  ;;  %v18355_v57 = vpop.f32.mrb[166].mxu1 }
 0x56c   :  { %29184 = vst [vmem:[#allocation107_spill] sm:$0xff] %v26949_v17  ;;  %v8055_v29 = vmax.f32 %v26791_v38, %v18355_v57  ;;  %v26956_v28 = vpop.f32.mrb[179].mxu0  ;;  %v7455_v19 = vpop.f32.mrb[167].mxu1  ;;  %18953 = vmatmul.mubr.msk.f32.gmra.mrb[16].mxu1 %vm8209_vm6, %v26755_v16 }
 0x56d   :  { %29185 = vst [vmem:[#allocation108_spill] sm:$0xff] %v26951_v55  ;;  %v8054_v48 = vmax.f32 %v26794_v20, %v7455_v19  ;;  %18550 = vmatprep.mubr.msk.f32.mxu0 %vm8209_vm6, %v26951_v55  ;;  %18955 = vmatprep.mubr.msk.f32.mxu1 %vm8209_vm6, %v26775_v53 }
 0x56e   :  { %v26965_v54 = vmax.f32 %v8047_v49, %v8055_v29  ;;  %18551 = vmatmul.mubr.msk.f32.gmra.mrb[16].mxu0 %vm8209_vm6, %v26949_v17 }
 0x56f   :  { %v26969_v57 = vmax.f32 %v8046_v7, %v8054_v48  ;;  %v26971_v38 = vpop.f32.mrb[180].mxu0  ;;  %v18358_v24 = vpop.f32.mrb[168].mxu1 }
 0x570   :  { %v8057_v32 = vmax.f32 %v26805_v34, %v18358_v24  ;;  %v26974_v6 = vpop.f32.mrb[181].mxu0  ;;  %v7465_v19 = vpop.f32.mrb[169].mxu1  ;;  %18956 = vmatmul.mubr.msk.f32.gmra.mrb[18].mxu1 %vm8209_vm6, %v26773_v37 }
 0x571   :  { %29186 = vst [vmem:[#allocation109_spill] sm:$0xff] %v26969_v57  ;;  %v8056_v20 = vmax.f32 %v26808_v41, %v7465_v19  ;;  %18553 = vmatprep.mubr.msk.f32.mxu0 %vm8209_vm6, %v26969_v57  ;;  %18958 = vmatprep.mubr.msk.f32.mxu1 %vm8209_vm6, %v26839_v39 }
 0x572   :  { %v26983_v49 = vmax.f32 %v8049_v58, %v8057_v32  ;;  %18554 = vmatmul.mubr.msk.f32.gmra.mrb[18].mxu0 %vm8209_vm6, %v26965_v54 }
 0x573   :  { %v26987_v34 = vmax.f32 %v8048_v61, %v8056_v20  ;;  %v26989_v7 = vpop.f32.mrb[182].mxu0  ;;  %v18361_v36 = vpop.f32.mrb[170].mxu1 }
 0x574   :  { %v8059_v29 = vmax.f32 %v26817_v31, %v18361_v36  ;;  %v26992_v48 = vpop.f32.mrb[183].mxu0  ;;  %v7475_v41 = vpop.f32.mrb[171].mxu1  ;;  %18959 = vmatmul.mubr.msk.f32.gmra.mrb[20].mxu1 %vm8209_vm6, %v26837_v33 }
 0x575   :  { %v8058_v24 = vmax.f32 %v26820_v45, %v7475_v41  ;;  %18556 = vmatprep.mubr.msk.f32.mxu0 %vm8209_vm6, %v26987_v34  ;;  %18961 = vmatprep.mubr.msk.f32.mxu1 %vm8209_vm6, %v26857_v63 }
 0x576   :  { %v27001_v58 = vmax.f32 %v8051_v22, %v8059_v29  ;;  %18557 = vmatmul.mubr.msk.f32.gmra.mrb[20].mxu0 %vm8209_vm6, %v26983_v49 }
 0x577   :  { %v27005_v31 = vmax.f32 %v8050_v27, %v8058_v24  ;;  %v27007_v61 = vpop.f32.mrb[184].mxu0  ;;  %v18364_v32 = vpop.f32.mrb[172].mxu1 }
 0x578   :  { %v8061_v19 = vmax.f32 %v26827_v42, %v18364_v32  ;;  %v27010_v20 = vpop.f32.mrb[185].mxu0  ;;  %v7485_v45 = vpop.f32.mrb[173].mxu1  ;;  %18962 = vmatmul.mubr.msk.f32.gmra.mrb[22].mxu1 %vm8209_vm6, %v26853_v51 }
 0x579   :  { %v8060_v36 = vmax.f32 %v26830_v52, %v7485_v45  ;;  %18559 = vmatprep.mubr.msk.f32.mxu0 %vm8209_vm6, %v27005_v31  ;;  %18964 = vmatprep.mubr.msk.f32.mxu1 %vm8209_vm6, %v26875_v50 }
 0x57a   :  { %18560 = vmatmul.mubr.msk.f32.gmra.mrb[22].mxu0 %vm8209_vm6, %v27001_v58 }
 0x57b   :  { %v27021_v22 = vpop.f32.mrb[186].mxu0  ;;  %v18367_v42 = vpop.f32.mrb[174].mxu1 }
 0x57c   :  { %v8063_v27 = vmax.f32 %v26841_v3, %v18367_v42  ;;  %v27024_v29 = vpop.f32.mrb[187].mxu0  ;;  %v7495_v41 = vpop.f32.mrb[175].mxu1  ;;  %18965 = vmatmul.mubr.msk.f32.gmra.mrb[24].mxu1 %vm8209_vm6, %v26871_v23 }
 0x57d   :  { %v8062_v52 = vmax.f32 %v26844_v15, %v7495_v41  ;;  %18967 = vmatprep.mubr.msk.f32.mxu1 %vm8209_vm6, %v26893_v30 }
 0x57f   :  { %v27031_v24 = vpop.f32.mrb[188].mxu0  ;;  %v18370_v32 = vpop.f32.mrb[176].mxu1 }
 0x580   :  { %v8065_v45 = vmax.f32 %v26859_v26, %v18370_v32  ;;  %v27034_v50 = vpop.f32.mrb[189].mxu0  ;;  %v7505_v51 = vpop.f32.mrb[177].mxu1  ;;  %18968 = vmatmul.mubr.msk.f32.gmra.mrb[26].mxu1 %vm8209_vm6, %v26889_v11 }
 0x581   :  { %v8064_v3 = vmax.f32 %v26862_v40, %v7505_v51  ;;  %18970 = vmatprep.mubr.msk.f32.mxu1 %vm8209_vm6, %v26951_v55 }
 0x583   :  { %v27041_v15 = vpop.f32.mrb[190].mxu0  ;;  %v18373_v42 = vpop.f32.mrb[178].mxu1 }
 0x584   :  { %v8067_v41 = vmax.f32 %v26877_v4, %v18373_v42  ;;  %v27044_v30 = vpop.f32.mrb[191].mxu0  ;;  %v7515_v23 = vpop.f32.mrb[179].mxu1  ;;  %18971 = vmatmul.mubr.msk.f32.gmra.mrb[28].mxu1 %vm8209_vm6, %v26949_v17 }
 0x585   :  { %v8066_v26 = vmax.f32 %v26880_v46, %v7515_v23  ;;  %18973 = vmatprep.mubr.msk.f32.mxu1 %vm8209_vm6, %v26969_v57 }
 0x587   :  { %v18376_v51 = vpop.f32.mrb[180].mxu1  ;;  %v17452_v40 = vpop.f32.mrb[212].mxu0 }
 0x588   :  { %v8069_v32 = vmax.f32 %v26895_v14, %v18376_v51  ;;  %v7525_v55 = vpop.f32.mrb[181].mxu1  ;;  %18974 = vmatmul.mubr.msk.f32.gmra.mrb[30].mxu1 %vm8209_vm6, %v26965_v54  ;;  %v4163_v4 = vpop.f32.mrb[213].mxu0 }
 0x589   :  { %v8068_v42 = vmax.f32 %v26898_v60, %v7525_v55  ;;  %18976 = vmatprep.mubr.msk.f32.mxu1 %vm8209_vm6, %v26987_v34 }
 0x58a   :  { %v27057_v17 = vmax.f32 %v8061_v19, %v8069_v32 }
 0x58b   :  { %v27059_v23 = vmax.f32 %v8060_v36, %v8068_v42  ;;  %v18379_v46 = vpop.f32.mrb[182].mxu1  ;;  %v17455_v57 = vpop.f32.mrb[214].mxu0 }
 0x58c   :  { %29187 = vst [vmem:[#allocation110_spill] sm:$0xff] %v27057_v17  ;;  %v8071_v40 = vmax.f32 %v26909_v9, %v18379_v46  ;;  %v7535_v11 = vpop.f32.mrb[183].mxu1  ;;  %18977 = vmatmul.mubr.msk.f32.gmra.mrb[32].mxu1 %vm8209_vm6, %v26983_v49  ;;  %v4171_v14 = vpop.f32.mrb[215].mxu0 }
 0x58d   :  { %29188 = vst [vmem:[#allocation111_spill] sm:$0xff] %v27059_v23  ;;  %v8070_v51 = vmax.f32 %v26912_v0, %v7535_v11  ;;  %18562 = vmatprep.mubr.msk.f32.mxu0 %vm8209_vm6, %v27059_v23  ;;  %18979 = vmatprep.mubr.msk.f32.mxu1 %vm8209_vm6, %v27005_v31  ;;  %v14409_v14 = vld [vmem:[%s28323_s4 + $0xc8] sm:$0xff] }
 0x58e   :  { %v27069_v60 = vmax.f32 %v8063_v27, %v8071_v40  ;;  %18563 = vmatmul.mubr.msk.f32.gmra.mrb[24].mxu0 %vm8209_vm6, %v27057_v17 }
 0x58f   :  { %v27073_v55 = vmax.f32 %v8062_v52, %v8070_v51  ;;  %v18382_v9 = vpop.f32.mrb[184].mxu1  ;;  %v17458_v57 = vpop.f32.mrb[216].mxu0 }
 0x590   :  { %29189 = vst [vmem:[#allocation112_spill] sm:$0xff] %v27069_v60  ;;  %v8073_v19 = vmax.f32 %v26919_v25, %v18382_v9  ;;  %v7545_v36 = vpop.f32.mrb[185].mxu1  ;;  %18980 = vmatmul.mubr.msk.f32.gmra.mrb[34].mxu1 %vm8209_vm6, %v27001_v58  ;;  %v4179_v11 = vpop.f32.mrb[217].mxu0  ;;  %v14144_v9 = vld [vmem:[%s28322_s3 + $0xb8] sm:$0xff] }
 0x591   :  { %29190 = vst [vmem:[#allocation113_spill] sm:$0xff] %v27073_v55  ;;  %v8072_v0 = vmax.f32 %v26922_v44, %v7545_v36  ;;  %18565 = vmatprep.mubr.msk.f32.mxu0 %vm8209_vm6, %v27073_v55  ;;  %18982 = vmatprep.mubr.msk.f32.mxu1 %vm8209_vm6, %v27059_v23  ;;  %v29206_v23 = vld [vmem:[#allocation22_spill] sm:$0xff] }
 0x592   :  { %v27083_v27 = vmax.f32 %v8065_v45, %v8073_v19  ;;  %18566 = vmatmul.mubr.msk.f32.gmra.mrb[26].mxu0 %vm8209_vm6, %v27069_v60  ;;  %v29195_v19 = vld [vmem:[#allocation17_spill] sm:$0xff] }
 0x593   :  { %v27087_v52 = vmax.f32 %v8064_v3, %v8072_v0  ;;  %v18385_v25 = vpop.f32.mrb[186].mxu1  ;;  %v17461_v32 = vpop.f32.mrb[218].mxu0 }
 0x594   :  { %29191 = vst [vmem:[#allocation114_spill] sm:$0xff] %v27083_v27  ;;  %v8075_v4 = vmax.f32 %v26929_v2, %v18385_v25  ;;  %v7555_v42 = vpop.f32.mrb[187].mxu1  ;;  %18983 = vmatmul.mubr.msk.f32.gmra.mrb[36].mxu1 %vm8209_vm6, %v27057_v17  ;;  %v4187_v44 = vpop.f32.mrb[219].mxu0 }
 0x595   :  { %29192 = vst [vmem:[#allocation115_spill] sm:$0xff] %v27087_v52  ;;  %v8074_v46 = vmax.f32 %v26932_v18, %v7555_v42  ;;  %18568 = vmatprep.mubr.msk.f32.mxu0 %vm8209_vm6, %v27087_v52  ;;  %18985 = vmatprep.mubr.msk.f32.mxu1 %vm8209_vm6, %v27073_v55  ;;  %v14145_v42 = vld [vmem:[%s28322_s3 + $0xc0] sm:$0xff]  ;;  %v14146_v44 = vld [vmem:[%s28322_s3 + $0xc8] sm:$0xff] }
 0x596   :  { %v27097_v45 = vmax.f32 %v8067_v41, %v8075_v4  ;;  %18569 = vmatmul.mubr.msk.f32.gmra.mrb[28].mxu0 %vm8209_vm6, %v27083_v27  ;;  %v14148_v4 = vld [vmem:[%s28322_s3 + $0xd8] sm:$0xff] }
 0x597   :  { %v27101_v3 = vmax.f32 %v8066_v26, %v8074_v46  ;;  %v27103_v2 = vpop.f32.mrb[188].mxu1  ;;  %v17464_v40 = vpop.f32.mrb[220].mxu0  ;;  %v14143_v26 = vld [vmem:[%s28322_s3 + $0xb0] sm:$0xff] }
 0x598   :  { %29193 = vst [vmem:[#allocation116_spill] sm:$0xff] %v27097_v45  ;;  %v27107_v18 = vpop.f32.mrb[189].mxu1  ;;  %18986 = vmatmul.mubr.msk.f32.gmra.mrb[38].mxu1 %vm8209_vm6, %v27069_v60  ;;  %v4195_v51 = vpop.f32.mrb[221].mxu0  ;;  %v19582_v25 = vpack.c.bf16 %v14144_v9, %v14143_v26  ;;  %v29196_v46 = vld [vmem:[#allocation16_spill] sm:$0xff]  ;;  %v29198_v26 = vld [vmem:[#allocation97_spill] sm:$0xff] }
 0x599   :  { %29194 = vst [vmem:[#allocation117_spill] sm:$0xff] %v27101_v3  ;;  %18571 = vmatprep.mubr.msk.f32.mxu0 %vm8209_vm6, %v27101_v3  ;;  %18988 = vmatprep.mubr.msk.f32.mxu1 %vm8209_vm6, %v27087_v52  ;;  %v29197_v51 = vld [vmem:[#allocation19_spill] sm:$0xff]  ;;  %v14406_v9 = vld [vmem:[%s28323_s4 + $0xb0] sm:$0xff] }
 0x59a   :  { %18572 = vmatmul.mubr.msk.f32.gmra.mrb[30].mxu0 %vm8209_vm6, %v27097_v45  ;;  %v14150_v60 = vld [vmem:[%s28322_s3 + $0xe8] sm:$0x3f] }
 0x59b   :  { %v27125_v57 = vpop.f32.mrb[190].mxu1  ;;  %18594 = vmatprep.mubr.msk.f32.mxu0 %vm8209_vm6, %v29195_v19  ;;  %v17467_v36 = vpop.f32.mrb[222].mxu0 }
 0x59c   :  { %v27131_v0 = vpop.f32.mrb[191].mxu1  ;;  %18989 = vmatmul.mubr.msk.f32.gmra.mrb[40].mxu1 %vm8209_vm6, %v27083_v27  ;;  %v4203_v32 = vpop.f32.mrb[223].mxu0  ;;  %v14407_v36 = vld [vmem:[%s28323_s4 + $0xb8] sm:$0xff]  ;;  %v14149_v27 = vld [vmem:[%s28322_s3 + $0xe0] sm:$0xff] }
 0x59d   :  { %18991 = vmatprep.mubr.msk.f32.mxu1 %vm8209_vm6, %v27101_v3  ;;  %v29199_v3 = vld [vmem:[#allocation18_spill] sm:$0xff] }
 0x59e   :  { %18595 = vmatmul.mubr.msk.f32.vlgmr.msra.gmra.mrb[228].mxu0 %vm8209_vm6, %v29196_v46 }
 0x59f   :  { %v27147_v40 = vpop.f32.mrb[192].mxu1  ;;  %18597 = vmatprep.mubr.msk.f32.mxu0 %vm8209_vm6, %v29197_v51  ;;  %19581 = vmatpush3.bf16.msra.mxu0 %v29198_v26  ;;  %v17470_v32 = vpop.f32.mrb[224].mxu0  ;;  %v19586_v26 = vpack.c.bf16 %v14146_v44, %v14145_v42  ;;  %v29200_v42 = vld [vmem:[#allocation21_spill] sm:$0xff] }
 0x5a0   :  { %v27160_v11 = vpop.f32.mrb[193].mxu1  ;;  %18992 = vmatmul.mubr.msk.f32.gmra.mrb[42].mxu1 %vm8209_vm6, %v27097_v45  ;;  %19583 = vmatprep.subr.bf16.mxu0 %v19582_v25  ;;  %v4211_v41 = vpop.f32.mrb[225].mxu0  ;;  %v14147_v32 = vld [vmem:[%s28322_s3 + $0xd0] sm:$0xff]  ;;  %v19648_v45 = vpack.c.bf16 %v14407_v36, %v14406_v9 }
 0x5a1   :  { %19014 = vmatprep.mubr.msk.f32.mxu1 %vm8209_vm6, %v29195_v19  ;;  %v14408_v19 = vld [vmem:[%s28323_s4 + $0xc0] sm:$0xff] }
 0x5a2   :  { %18598 = vmatmul.mubr.msk.f32.gmra.mrb[230].mxu0 %vm8209_vm6, %v29199_v3 }
 0x5a3   :  { %v27176_v41 = vpop.f32.mrb[194].mxu1  ;;  %18600 = vmatprep.mubr.msk.f32.mxu0 %vm8209_vm6, %v29200_v42  ;;  %19585 = vmatpush3.bf16.msra.mxu0 %v19582_v25  ;;  %v17473_v44 = vpop.f32.mrb[226].mxu0  ;;  %v19590_v25 = vpack.c.bf16 %v14148_v4, %v14147_v32  ;;  %v19652_v4 = vpack.c.bf16 %v14409_v14, %v14408_v19  ;;  %v19594_v14 = vpack.c.bf16 %v14150_v60, %v14149_v27  ;;  %v14413_v27 = vld [vmem:[%s28323_s4 + $0xe8] sm:$0x3f] }
 0x5a4   :  { %v27188_v52 = vpop.f32.mrb[195].mxu1  ;;  %19015 = vmatmul.mubr.msk.f32.vlgmr.msra.gmra.mrb[252].mxu1 %vm8209_vm6, %v29196_v46  ;;  %v4219_v9 = vpop.f32.mrb[227].mxu0  ;;  %19587 = vmatprep.subr.bf16.mxu0 %v19586_v26  ;;  %v29201_v44 = vld [vmem:[#allocation98_spill] sm:$0xff]  ;;  %v29202_v46 = vld [vmem:[#allocation20_spill] sm:$0xff] }
 0x5a5   :  { %19017 = vmatprep.mubr.msk.f32.mxu1 %vm8209_vm6, %v29197_v51  ;;  %19647 = vmatpush3.bf16.msra.mxu1 %v29201_v44  ;;  %v29203_v9 = vld [vmem:[#allocation23_spill] sm:$0xff]  ;;  %v14410_v51 = vld [vmem:[%s28323_s4 + $0xd0] sm:$0xff]  ;;  %v14411_v44 = vld [vmem:[%s28323_s4 + $0xd8] sm:$0xff] }
 0x5a6   :  { %18601 = vmatmul.mubr.msk.f32.gmra.mrb[232].mxu0 %vm8209_vm6, %v29202_v46  ;;  %19649 = vmatprep.subr.bf16.mxu1 %v19648_v45 }
 0x5a7   :  { %v18400_v32 = vpop.f32.mrb[196].mxu1  ;;  %18603 = vmatprep.mubr.msk.f32.mxu0 %vm8209_vm6, %v29203_v9  ;;  %19589 = vmatpush3.bf16.msra.mxu0 %v19586_v26  ;;  %v29204_v26 = vmax.f32 %v26939_v35, %v27103_v2  ;;  %v14412_v35 = vld [vmem:[%s28323_s4 + $0xe0] sm:$0xff] }
 0x5a8   :  { %v8085_v36 = vmax.f32 %v27007_v61, %v18400_v32  ;;  %v7605_v55 = vpop.f32.mrb[197].mxu1  ;;  %19018 = vmatmul.mubr.msk.f32.gmra.mrb[254].mxu1 %vm8209_vm6, %v29199_v3  ;;  %19591 = vmatprep.subr.bf16.mxu0 %v19590_v25  ;;  %v19656_v61 = vpack.c.bf16 %v14411_v44, %v14410_v51  ;;  %v29207_v3 = vmax.f32 %v26942_v62, %v27107_v18  ;;  %v29216_v51 = vld [vmem:[#allocation27_spill] sm:$0xff]  ;;  %v29222_v44 = vld [vmem:[#allocation29_spill] sm:$0xff]  ;;  %v29234_v62 = vld [vmem:[#allocation46_spill] sm:$0xff] }
 0x5a9   :  { %v8084_v19 = vmax.f32 %v27010_v20, %v7605_v55  ;;  %19020 = vmatprep.mubr.msk.f32.mxu1 %vm8209_vm6, %v29200_v42  ;;  %19651 = vmatpush3.bf16.msra.mxu1 %v19648_v45  ;;  %v29209_v55 = vld [vmem:[#allocation25_spill] sm:$0xff]  ;;  %v29211_v42 = vmax.f32 %v26953_v1, %v27125_v57 }
 0x5aa   :  { %v27222_v17 = vmax.f32 %v29204_v26, %v8085_v36  ;;  %18604 = vmatmul.mubr.msk.f32.gmra.mrb[234].mxu0 %vm8209_vm6, %v29206_v23  ;;  %19653 = vmatprep.subr.bf16.mxu1 %v19652_v4  ;;  %v29213_v36 = vld [vmem:[#allocation24_spill] sm:$0xff] }
 0x5ab   :  { %v27229_v60 = vmax.f32 %v29207_v3, %v8084_v19  ;;  %v18403_v20 = vpop.f32.mrb[198].mxu1  ;;  %18606 = vmatprep.mubr.msk.f32.mxu0 %vm8209_vm6, %v29209_v55  ;;  %19593 = vmatpush3.bf16.msra.mxu0 %v19590_v25  ;;  %v29225_v19 = vld [vmem:[#allocation28_spill] sm:$0xff] }
 0x5ac   :  { %29205 = vst [vmem:[#allocation118_spill] sm:$0xff] %v27222_v17  ;;  %v8087_v45 = vmax.f32 %v27021_v22, %v18403_v20  ;;  %v7615_v2 = vpop.f32.mrb[199].mxu1  ;;  %19021 = vmatmul.mubr.msk.f32.gmra.mrb[0].mxu1 %vm8209_vm6, %v29202_v46  ;;  %19596 = vmatprep.subr.msk.bf16.mxu0 %vm25088_vm5, %v19594_v14  ;;  %v19660_v22 = vpack.c.bf16 %v14413_v27, %v14412_v35  ;;  %v29230_v20 = vld [vmem:[#allocation42_spill] sm:$0xff]  ;;  %v29232_v35 = vld [vmem:[#allocation44_spill] sm:$0xff]  ;;  %v29271_v17 = vld [vmem:[#allocation107_spill] sm:$0xff] }
 0x5ad   :  { %29208 = vst [vmem:[#allocation119_spill] sm:$0xff] %v27229_v60  ;;  %v8086_v18 = vmax.f32 %v27024_v29, %v7615_v2  ;;  %19023 = vmatprep.mubr.msk.f32.mxu1 %vm8209_vm6, %v29203_v9  ;;  %19655 = vmatpush3.bf16.msra.mxu1 %v19652_v4  ;;  %v29214_v46 = vmax.f32 %v26956_v28, %v27131_v0  ;;  %v29219_v9 = vld [vmem:[#allocation26_spill] sm:$0xff]  ;;  %v29272_v60 = vld [vmem:[#allocation109_spill] sm:$0xff] }
 0x5ae   :  { %v27250_v25 = vmax.f32 %v29211_v42, %v8087_v45  ;;  %18607 = vmatmul.mubr.msk.f32.gmra.mrb[236].mxu0 %vm8209_vm6, %v29213_v36  ;;  %19657 = vmatprep.subr.bf16.mxu1 %v19656_v61  ;;  %v29217_v28 = vmax.f32 %v26971_v38, %v27147_v40  ;;  %v29233_v45 = vld [vmem:[#allocation43_spill] sm:$0xff]  ;;  %v29235_v42 = vld [vmem:[#allocation45_spill] sm:$0xff] }
 0x5af   :  { %v27257_v32 = vmax.f32 %v29214_v46, %v8086_v18  ;;  %v18406_v29 = vpop.f32.mrb[200].mxu1  ;;  %18609 = vmatprep.mubr.msk.f32.mxu0 %vm8209_vm6, %v29216_v51  ;;  %19599 = vmatpush3.bf16.msk.msra.mxu0 %vm25088_vm5, %v19594_v14 }
 0x5b0   :  { %29212 = vst [vmem:[#allocation120_spill] sm:$0xff] %v27250_v25  ;;  %v8089_v1 = vmax.f32 %v27031_v24, %v18406_v29  ;;  %v7625_v57 = vpop.f32.mrb[201].mxu1  ;;  %19024 = vmatmul.mubr.msk.f32.gmra.mrb[2].mxu1 %vm8209_vm6, %v29206_v23  ;;  %v29220_v24 = vmax.f32 %v26974_v6, %v27160_v11  ;;  %v29223_v6 = vmax.f32 %v26989_v7, %v27176_v41  ;;  %v29229_v7 = vld [vmem:[#allocation30_spill] sm:$0xff]  ;;  %v29237_v29 = vld [vmem:[#allocation47_spill] sm:$0xff]  ;;  %v29269_v25 = vld [vmem:[#allocation105_spill] sm:$0xff] }
 0x5b1   :  { %29215 = vst [vmem:[#allocation121_spill] sm:$0xff] %v27257_v32  ;;  %v8088_v4 = vmax.f32 %v27034_v50, %v7625_v57  ;;  %19026 = vmatprep.mubr.msk.f32.mxu1 %vm8209_vm6, %v29209_v55  ;;  %19659 = vmatpush3.bf16.msra.mxu1 %v19656_v61  ;;  %v29228_v61 = vld [vmem:[#allocation31_spill] sm:$0xff]  ;;  %v29270_v32 = vld [vmem:[#allocation108_spill] sm:$0xff] }
 0x5b2   :  { %v27272_v0 = vmax.f32 %v29217_v28, %v8089_v1  ;;  %18610 = vmatmul.mubr.msk.f32.gmra.mrb[238].mxu0 %vm8209_vm6, %v29219_v9  ;;  %19662 = vmatprep.subr.msk.bf16.mxu1 %vm25088_vm5, %v19660_v22  ;;  %v29238_v1 = vld [vmem:[#allocation50_spill] sm:$0xff] }
 0x5b3   :  { %v27281_v23 = vmax.f32 %v29220_v24, %v8088_v4  ;;  %v18409_v50 = vpop.f32.mrb[202].mxu1  ;;  %18612 = vmatprep.mubr.msk.f32.mxu0 %vm8209_vm6, %v29222_v44  ;;  %v29239_v4 = vld [vmem:[#allocation49_spill] sm:$0xff] }
 0x5b4   :  { %29218 = vst [vmem:[#allocation122_spill] sm:$0xff] %v27272_v0  ;;  %v8091_v14 = vmax.f32 %v27041_v15, %v18409_v50  ;;  %v7635_v38 = vpop.f32.mrb[203].mxu1  ;;  %19027 = vmatmul.mubr.msk.f32.gmra.mrb[4].mxu1 %vm8209_vm6, %v29213_v36  ;;  %v29226_v15 = vmax.f32 %v26992_v48, %v27188_v52  ;;  %v29231_v52 = vld [vmem:[#allocation41_spill] sm:$0xff]  ;;  %v29241_v50 = vld [vmem:[#allocation51_spill] sm:$0xff] }
 0x5b5   :  { %29221 = vst [vmem:[#allocation123_spill] sm:$0xff] %v27281_v23  ;;  %v8090_v40 = vmax.f32 %v27044_v30, %v7635_v38  ;;  %19029 = vmatprep.mubr.msk.f32.mxu1 %vm8209_vm6, %v29216_v51  ;;  %19665 = vmatpush3.bf16.msk.msra.mxu1 %vm25088_vm5, %v19660_v22  ;;  %v29236_v22 = vld [vmem:[#allocation48_spill] sm:$0xff]  ;;  %v29267_v0 = vld [vmem:[#allocation103_spill] sm:$0xff]  ;;  %v29268_v23 = vld [vmem:[#allocation106_spill] sm:$0xff] }
 0x5b6   :  { %v27296_v11 = vmax.f32 %v29223_v6, %v8091_v14  ;;  %18613 = vmatmul.mubr.msk.f32.gmra.mrb[240].mxu0 %vm8209_vm6, %v29225_v19  ;;  %v29242_v14 = vld [vmem:[#allocation54_spill] sm:$0xff]  ;;  %v29244_v6 = vld [vmem:[#allocation56_spill] sm:$0xff] }
 0x5b7   :  { %v27303_v26 = vmax.f32 %v29226_v15, %v8090_v40  ;;  %v18412_v30 = vpop.f32.mrb[236].mxu1  ;;  %18615 = vmatprep.mubr.msk.f32.mxu0 %vm8209_vm6, %v29228_v61  ;;  %v29243_v40 = vld [vmem:[#allocation53_spill] sm:$0xff]  ;;  %v29246_v15 = vld [vmem:[#allocation68_spill] sm:$0xff] }
 0x5b8   :  { %29224 = vst [vmem:[#allocation124_spill] sm:$0xff] %v27296_v11  ;;  %v7645_v3 = vpop.f32.mrb[237].mxu1  ;;  %19030 = vmatmul.mubr.msk.f32.gmra.mrb[6].mxu1 %vm8209_vm6, %v29219_v9  ;;  %v29240_v9 = vld [vmem:[#allocation52_spill] sm:$0xff]  ;;  %v29247_v30 = vld [vmem:[#allocation67_spill] sm:$0xff]  ;;  %v29265_v11 = vld [vmem:[#allocation102_spill] sm:$0xff] }
 0x5b9   :  { %29227 = vst [vmem:[#allocation125_spill] sm:$0xff] %v27303_v26  ;;  %19032 = vmatprep.mubr.msk.f32.mxu1 %vm8209_vm6, %v29222_v44  ;;  %v29249_v3 = vld [vmem:[#allocation69_spill] sm:$0xff]  ;;  %v29266_v26 = vld [vmem:[#allocation104_spill] sm:$0xff] }
 0x5ba   :  { %18616 = vmatmul.mubr.msk.f32.gmra.mrb[242].mxu0 %vm8209_vm6, %v29229_v7 }
 0x5bb   :  { %v18415_v41 = vpop.f32.mrb[238].mxu1  ;;  %18618 = vmatprep.mubr.msk.f32.mxu0 %vm8209_vm6, %v29230_v20 }
 0x5bc   :  { %v7653_v48 = vpop.f32.mrb[239].mxu1  ;;  %19033 = vmatmul.mubr.msk.f32.gmra.mrb[8].mxu1 %vm8209_vm6, %v29225_v19  ;;  %v29245_v19 = vld [vmem:[#allocation55_spill] sm:$0xff] }
 0x5bd   :  { %19035 = vmatprep.mubr.msk.f32.mxu1 %vm8209_vm6, %v29228_v61  ;;  %v29248_v61 = vld [vmem:[#allocation70_spill] sm:$0xff]  ;;  %v29251_v41 = vld [vmem:[#allocation71_spill] sm:$0xff] }
 0x5be   :  { %18619 = vmatmul.mubr.msk.f32.gmra.mrb[244].mxu0 %vm8209_vm6, %v29231_v52  ;;  %v29252_v48 = vld [vmem:[#allocation74_spill] sm:$0xff] }
 0x5bf   :  { %v18418_v55 = vpop.f32.mrb[240].mxu1  ;;  %18621 = vmatprep.mubr.msk.f32.mxu0 %vm8209_vm6, %v29232_v35 }
 0x5c0   :  { %v7661_v27 = vpop.f32.mrb[241].mxu1  ;;  %19036 = vmatmul.mubr.msk.f32.gmra.mrb[10].mxu1 %vm8209_vm6, %v29229_v7  ;;  %v29250_v7 = vld [vmem:[#allocation72_spill] sm:$0xff]  ;;  %v29253_v55 = vld [vmem:[#allocation73_spill] sm:$0xff] }
 0x5c1   :  { %19038 = vmatprep.mubr.msk.f32.mxu1 %vm8209_vm6, %v29230_v20  ;;  %v29254_v27 = vld [vmem:[#allocation76_spill] sm:$0xff] }
 0x5c2   :  { %18622 = vmatmul.mubr.msk.f32.gmra.mrb[246].mxu0 %vm8209_vm6, %v29233_v45 }
 0x5c3   :  { %v18421_v2 = vpop.f32.mrb[242].mxu1  ;;  %18624 = vmatprep.mubr.msk.f32.mxu0 %vm8209_vm6, %v29234_v62 }
 0x5c4   :  { %v7669_v18 = vpop.f32.mrb[243].mxu1  ;;  %19039 = vmatmul.mubr.msk.f32.gmra.mrb[204].mxu1 %vm8209_vm6, %v29231_v52  ;;  %v29255_v2 = vld [vmem:[#allocation75_spill] sm:$0xff] }
 0x5c5   :  { %19041 = vmatprep.mubr.msk.f32.mxu1 %vm8209_vm6, %v29232_v35  ;;  %v29256_v18 = vld [vmem:[#allocation78_spill] sm:$0xff] }
 0x5c6   :  { %18625 = vmatmul.mubr.msk.f32.gmra.mrb[248].mxu0 %vm8209_vm6, %v29235_v42 }
 0x5c7   :  { %v18424_v36 = vpop.f32.mrb[244].mxu1  ;;  %18627 = vmatprep.mubr.msk.f32.mxu0 %vm8209_vm6, %v29236_v22 }
 0x5c8   :  { %v7677_v46 = vpop.f32.mrb[245].mxu1  ;;  %19042 = vmatmul.mubr.msk.f32.gmra.mrb[206].mxu1 %vm8209_vm6, %v29233_v45  ;;  %v29257_v36 = vld [vmem:[#allocation92_spill] sm:$0xff] }
 0x5c9   :  { %19044 = vmatprep.mubr.msk.f32.mxu1 %vm8209_vm6, %v29234_v62  ;;  %v29258_v46 = vld [vmem:[#allocation94_spill] sm:$0xff] }
 0x5ca   :  { %18628 = vmatmul.mubr.msk.f32.gmra.mrb[250].mxu0 %vm8209_vm6, %v29237_v29 }
 0x5cb   :  { %v18427_v51 = vpop.f32.mrb[246].mxu1  ;;  %18630 = vmatprep.mubr.msk.f32.mxu0 %vm8209_vm6, %v29238_v1 }
 0x5cc   :  { %v7685_v57 = vpop.f32.mrb[247].mxu1  ;;  %19045 = vmatmul.mubr.msk.f32.gmra.mrb[208].mxu1 %vm8209_vm6, %v29235_v42  ;;  %v29259_v51 = vld [vmem:[#allocation93_spill] sm:$0xff] }
 0x5cd   :  { %19047 = vmatprep.mubr.msk.f32.mxu1 %vm8209_vm6, %v29236_v22  ;;  %v29260_v57 = vld [vmem:[#allocation96_spill] sm:$0xff] }
 0x5ce   :  { %18631 = vmatmul.mubr.msk.f32.gmra.mrb[252].mxu0 %vm8209_vm6, %v29239_v4 }
 0x5cf   :  { %v18430_v28 = vpop.f32.mrb[248].mxu1  ;;  %18633 = vmatprep.mubr.msk.f32.mxu0 %vm8209_vm6, %v29240_v9 }
 0x5d0   :  { %v7693_v24 = vpop.f32.mrb[249].mxu1  ;;  %19048 = vmatmul.mubr.msk.f32.gmra.mrb[210].mxu1 %vm8209_vm6, %v29237_v29  ;;  %v29261_v28 = vld [vmem:[#allocation95_spill] sm:$0xff] }
 0x5d1   :  { %19050 = vmatprep.mubr.msk.f32.mxu1 %vm8209_vm6, %v29238_v1  ;;  %v29262_v24 = vld [vmem:[#allocation100_spill] sm:$0xff] }
 0x5d2   :  { %18634 = vmatmul.mubr.msk.f32.gmra.mrb[254].mxu0 %vm8209_vm6, %v29241_v50 }
 0x5d3   :  { %v18433_v44 = vpop.f32.mrb[250].mxu1  ;;  %18636 = vmatprep.mubr.msk.f32.mxu0 %vm8209_vm6, %v29242_v14 }
 0x5d4   :  { %v7701_v38 = vpop.f32.mrb[251].mxu1  ;;  %19051 = vmatmul.mubr.msk.f32.gmra.mrb[212].mxu1 %vm8209_vm6, %v29239_v4  ;;  %v29263_v44 = vld [vmem:[#allocation99_spill] sm:$0xff] }
 0x5d5   :  { %19053 = vmatprep.mubr.msk.f32.mxu1 %vm8209_vm6, %v29240_v9  ;;  %v29264_v38 = vld [vmem:[#allocation101_spill] sm:$0xff] }
 0x5d6   :  { %18637 = vmatmul.mubr.msk.f32.gmra.mrb[192].mxu0 %vm8209_vm6, %v29243_v40 }
 0x5d7   :  { %18639 = vmatprep.mubr.msk.f32.mxu0 %vm8209_vm6, %v29244_v6 }
 0x5d8   :  { %19054 = vmatmul.mubr.msk.f32.gmra.mrb[214].mxu1 %vm8209_vm6, %v29241_v50 }
 0x5d9   :  { %19056 = vmatprep.mubr.msk.f32.mxu1 %vm8209_vm6, %v29242_v14 }
 0x5da   :  { %18640 = vmatmul.mubr.msk.f32.gmra.mrb[194].mxu0 %vm8209_vm6, %v29245_v19 }
 0x5db   :  { %18642 = vmatprep.mubr.msk.f32.mxu0 %vm8209_vm6, %v29246_v15 }
 0x5dc   :  { %19057 = vmatmul.mubr.msk.f32.gmra.mrb[216].mxu1 %vm8209_vm6, %v29243_v40 }
 0x5dd   :  { %19059 = vmatprep.mubr.msk.f32.mxu1 %vm8209_vm6, %v29244_v6 }
 0x5de   :  { %18643 = vmatmul.mubr.msk.f32.gmra.mrb[196].mxu0 %vm8209_vm6, %v29247_v30 }
 0x5df   :  { %18645 = vmatprep.mubr.msk.f32.mxu0 %vm8209_vm6, %v29248_v61 }
 0x5e0   :  { %19060 = vmatmul.mubr.msk.f32.gmra.mrb[218].mxu1 %vm8209_vm6, %v29245_v19 }
 0x5e1   :  { %19062 = vmatprep.mubr.msk.f32.mxu1 %vm8209_vm6, %v29246_v15 }
 0x5e2   :  { %18646 = vmatmul.mubr.msk.f32.gmra.mrb[198].mxu0 %vm8209_vm6, %v29249_v3 }
 0x5e3   :  { %18648 = vmatprep.mubr.msk.f32.mxu0 %vm8209_vm6, %v29250_v7 }
 0x5e4   :  { %19063 = vmatmul.mubr.msk.f32.gmra.mrb[220].mxu1 %vm8209_vm6, %v29247_v30 }
 0x5e5   :  { %19065 = vmatprep.mubr.msk.f32.mxu1 %vm8209_vm6, %v29248_v61 }
 0x5e6   :  { %18649 = vmatmul.mubr.msk.f32.gmra.mrb[200].mxu0 %vm8209_vm6, %v29251_v41 }
 0x5e7   :  { %18651 = vmatprep.mubr.msk.f32.mxu0 %vm8209_vm6, %v29252_v48 }
 0x5e8   :  { %19066 = vmatmul.mubr.msk.f32.gmra.mrb[222].mxu1 %vm8209_vm6, %v29249_v3 }
 0x5e9   :  { %19068 = vmatprep.mubr.msk.f32.mxu1 %vm8209_vm6, %v29250_v7 }
 0x5ea   :  { %18652 = vmatmul.mubr.msk.f32.gmra.mrb[202].mxu0 %vm8209_vm6, %v29253_v55 }
 0x5eb   :  { %18654 = vmatprep.mubr.msk.f32.mxu0 %vm8209_vm6, %v29254_v27 }
 0x5ec   :  { %19069 = vmatmul.mubr.msk.f32.gmra.mrb[224].mxu1 %vm8209_vm6, %v29251_v41 }
 0x5ed   :  { %19071 = vmatprep.mubr.msk.f32.mxu1 %vm8209_vm6, %v29252_v48 }
 0x5ee   :  { %18655 = vmatmul.mubr.msk.f32.gmra.mrb[204].mxu0 %vm8209_vm6, %v29255_v2 }
 0x5ef   :  { %18657 = vmatprep.mubr.msk.f32.mxu0 %vm8209_vm6, %v29256_v18 }
 0x5f0   :  { %19072 = vmatmul.mubr.msk.f32.gmra.mrb[226].mxu1 %vm8209_vm6, %v29253_v55 }
 0x5f1   :  { %19074 = vmatprep.mubr.msk.f32.mxu1 %vm8209_vm6, %v29254_v27 }
 0x5f2   :  { %18658 = vmatmul.mubr.msk.f32.gmra.mrb[206].mxu0 %vm8209_vm6, %v26379_v12 }
 0x5f3   :  { %18660 = vmatprep.mubr.msk.f32.mxu0 %vm8209_vm6, %v26399_v43 }
 0x5f4   :  { %19075 = vmatmul.mubr.msk.f32.gmra.mrb[228].mxu1 %vm8209_vm6, %v29255_v2 }
 0x5f5   :  { %19077 = vmatprep.mubr.msk.f32.mxu1 %vm8209_vm6, %v29256_v18 }
 0x5f6   :  { %18661 = vmatmul.mubr.msk.f32.gmra.mrb[208].mxu0 %vm8209_vm6, %v26397_v56 }
 0x5f7   :  { %18663 = vmatprep.mubr.msk.f32.mxu0 %vm8209_vm6, %v26417_v21 }
 0x5f8   :  { %19078 = vmatmul.mubr.msk.f32.gmra.mrb[230].mxu1 %vm8209_vm6, %v26379_v12 }
 0x5f9   :  { %19080 = vmatprep.mubr.msk.f32.mxu1 %vm8209_vm6, %v26399_v43 }
 0x5fa   :  { %18664 = vmatmul.mubr.msk.f32.gmra.mrb[210].mxu0 %vm8209_vm6, %v26415_v13 }
 0x5fb   :  { %18666 = vmatprep.mubr.msk.f32.mxu0 %vm8209_vm6, %v26542_v5 }
 0x5fc   :  { %19081 = vmatmul.mubr.msk.f32.gmra.mrb[232].mxu1 %vm8209_vm6, %v26397_v56 }
 0x5fd   :  { %19083 = vmatprep.mubr.msk.f32.mxu1 %vm8209_vm6, %v26417_v21 }
 0x5fe   :  { %18667 = vmatmul.mubr.msk.f32.gmra.mrb[0].mxu0 %vm8209_vm6, %v26538_v47 }
 0x5ff   :  { %18669 = vmatprep.mubr.msk.f32.mxu0 %vm8209_vm6, %v26574_v8 }
 0x600   :  { %19084 = vmatmul.mubr.msk.f32.gmra.mrb[234].mxu1 %vm8209_vm6, %v26415_v13 }
 0x601   :  { %19086 = vmatprep.mubr.msk.f32.mxu1 %vm8209_vm6, %v26542_v5 }
 0x602   :  { %18670 = vmatmul.mubr.msk.f32.gmra.mrb[2].mxu0 %vm8209_vm6, %v29257_v36 }
 0x603   :  { %18672 = vmatprep.mubr.msk.f32.mxu0 %vm8209_vm6, %v29258_v46 }
 0x604   :  { %19087 = vmatmul.mubr.msk.f32.gmra.mrb[12].mxu1 %vm8209_vm6, %v26538_v47 }
 0x605   :  { %19089 = vmatprep.mubr.msk.f32.mxu1 %vm8209_vm6, %v26574_v8 }
 0x606   :  { %18673 = vmatmul.mubr.msk.f32.gmra.mrb[4].mxu0 %vm8209_vm6, %v29259_v51 }
 0x607   :  { %18675 = vmatprep.mubr.msk.f32.mxu0 %vm8209_vm6, %v29260_v57 }
 0x608   :  { %19090 = vmatmul.mubr.msk.f32.gmra.mrb[14].mxu1 %vm8209_vm6, %v29257_v36 }
 0x609   :  { %19092 = vmatprep.mubr.msk.f32.mxu1 %vm8209_vm6, %v29258_v46 }
 0x60a   :  { %18676 = vmatmul.mubr.msk.f32.gmra.mrb[6].mxu0 %vm8209_vm6, %v29261_v28 }
 0x60b   :  { %18678 = vmatprep.mubr.msk.f32.mxu0 %vm8209_vm6, %v29262_v24 }
 0x60c   :  { %19093 = vmatmul.mubr.msk.f32.gmra.mrb[16].mxu1 %vm8209_vm6, %v29259_v51 }
 0x60d   :  { %19095 = vmatprep.mubr.msk.f32.mxu1 %vm8209_vm6, %v29260_v57 }
 0x60e   :  { %18679 = vmatmul.mubr.msk.f32.gmra.mrb[8].mxu0 %vm8209_vm6, %v29263_v44 }
 0x60f   :  { %18681 = vmatprep.mubr.msk.f32.mxu0 %vm8209_vm6, %v29264_v38 }
 0x610   :  { %19096 = vmatmul.mubr.msk.f32.gmra.mrb[18].mxu1 %vm8209_vm6, %v29261_v28 }
 0x611   :  { %19098 = vmatprep.mubr.msk.f32.mxu1 %vm8209_vm6, %v29262_v24 }
 0x612   :  { %18682 = vmatmul.mubr.msk.f32.gmra.mrb[10].mxu0 %vm8209_vm6, %v26737_v59 }
 0x613   :  { %18684 = vmatprep.mubr.msk.f32.mxu0 %vm8209_vm6, %v26757_v10 }
 0x614   :  { %19099 = vmatmul.mubr.msk.f32.gmra.mrb[20].mxu1 %vm8209_vm6, %v29263_v44 }
 0x615   :  { %19101 = vmatprep.mubr.msk.f32.mxu1 %vm8209_vm6, %v29264_v38 }
 0x616   :  { %18685 = vmatmul.mubr.msk.f32.gmra.mrb[12].mxu0 %vm8209_vm6, %v26755_v16 }
 0x617   :  { %18687 = vmatprep.mubr.msk.f32.mxu0 %vm8209_vm6, %v26775_v53 }
 0x618   :  { %19102 = vmatmul.mubr.msk.f32.gmra.mrb[22].mxu1 %vm8209_vm6, %v26737_v59 }
 0x619   :  { %19104 = vmatprep.mubr.msk.f32.mxu1 %vm8209_vm6, %v26757_v10 }
 0x61a   :  { %18688 = vmatmul.mubr.msk.f32.gmra.mrb[14].mxu0 %vm8209_vm6, %v26773_v37 }
 0x61b   :  { %18690 = vmatprep.mubr.msk.f32.mxu0 %vm8209_vm6, %v26839_v39 }
 0x61c   :  { %19105 = vmatmul.mubr.msk.f32.gmra.mrb[24].mxu1 %vm8209_vm6, %v26755_v16 }
 0x61d   :  { %19107 = vmatprep.mubr.msk.f32.mxu1 %vm8209_vm6, %v26775_v53 }
 0x61e   :  { %18691 = vmatmul.mubr.msk.f32.gmra.mrb[16].mxu0 %vm8209_vm6, %v26837_v33 }
 0x61f   :  { %18693 = vmatprep.mubr.msk.f32.mxu0 %vm8209_vm6, %v26857_v63 }
 0x620   :  { %19108 = vmatmul.mubr.msk.f32.gmra.mrb[26].mxu1 %vm8209_vm6, %v26773_v37 }
 0x621   :  { %19110 = vmatprep.mubr.msk.f32.mxu1 %vm8209_vm6, %v26839_v39 }
 0x622   :  { %18694 = vmatmul.mubr.msk.f32.gmra.mrb[18].mxu0 %vm8209_vm6, %v29265_v11 }
 0x623   :  { %18696 = vmatprep.mubr.msk.f32.mxu0 %vm8209_vm6, %v29266_v26 }
 0x624   :  { %19111 = vmatmul.mubr.msk.f32.gmra.mrb[28].mxu1 %vm8209_vm6, %v26837_v33 }
 0x625   :  { %19113 = vmatprep.mubr.msk.f32.mxu1 %vm8209_vm6, %v26857_v63 }
 0x626   :  { %18697 = vmatmul.mubr.msk.f32.gmra.mrb[20].mxu0 %vm8209_vm6, %v29267_v0 }
 0x627   :  { %18699 = vmatprep.mubr.msk.f32.mxu0 %vm8209_vm6, %v29268_v23 }
 0x628   :  { %19114 = vmatmul.mubr.msk.f32.gmra.mrb[30].mxu1 %vm8209_vm6, %v29265_v11 }
 0x629   :  { %19116 = vmatprep.mubr.msk.f32.mxu1 %vm8209_vm6, %v29266_v26 }
 0x62a   :  { %18700 = vmatmul.mubr.msk.f32.gmra.mrb[22].mxu0 %vm8209_vm6, %v29269_v25 }
 0x62b   :  { %18702 = vmatprep.mubr.msk.f32.mxu0 %vm8209_vm6, %v29270_v32 }
 0x62c   :  { %19117 = vmatmul.mubr.msk.f32.gmra.mrb[32].mxu1 %vm8209_vm6, %v29267_v0 }
 0x62d   :  { %19119 = vmatprep.mubr.msk.f32.mxu1 %vm8209_vm6, %v29268_v23 }
 0x62e   :  { %18703 = vmatmul.mubr.msk.f32.gmra.mrb[24].mxu0 %vm8209_vm6, %v29271_v17 }
 0x62f   :  { %18705 = vmatprep.mubr.msk.f32.mxu0 %vm8209_vm6, %v29272_v60 }
 0x630   :  { %19120 = vmatmul.mubr.msk.f32.gmra.mrb[34].mxu1 %vm8209_vm6, %v29269_v25 }
 0x631   :  { %19122 = vmatprep.mubr.msk.f32.mxu1 %vm8209_vm6, %v29270_v32 }
 0x632   :  { %18706 = vmatmul.mubr.msk.f32.gmra.mrb[26].mxu0 %vm8209_vm6, %v26965_v54 }
 0x633   :  { %18708 = vmatprep.mubr.msk.f32.mxu0 %vm8209_vm6, %v26987_v34 }
 0x634   :  { %19123 = vmatmul.mubr.msk.f32.gmra.mrb[36].mxu1 %vm8209_vm6, %v29271_v17 }
 0x635   :  { %19125 = vmatprep.mubr.msk.f32.mxu1 %vm8209_vm6, %v29272_v60 }
 0x636   :  { %18709 = vmatmul.mubr.msk.f32.gmra.mrb[28].mxu0 %vm8209_vm6, %v26983_v49 }
 0x637   :  { %18711 = vmatprep.mubr.msk.f32.mxu0 %vm8209_vm6, %v27005_v31 }
 0x638   :  { %19126 = vmatmul.mubr.msk.f32.gmra.mrb[38].mxu1 %vm8209_vm6, %v26965_v54 }
 0x639   :  { %19128 = vmatprep.mubr.msk.f32.mxu1 %vm8209_vm6, %v26987_v34 }
 0x63a   :  { %18712 = vmatmul.mubr.msk.f32.gmra.mrb[30].mxu0 %vm8209_vm6, %v27001_v58 }
 0x63b   :  { %18734 = vmatprep.mubr.msk.f32.mxu0 %vm8209_vm6, %v29230_v20 }
 0x63c   :  { %19129 = vmatmul.mubr.msk.f32.gmra.mrb[40].mxu1 %vm8209_vm6, %v26983_v49 }
 0x63d   :  { %19131 = vmatprep.mubr.msk.f32.mxu1 %vm8209_vm6, %v27005_v31 }
 0x63e   :  { %18735 = vmatmul.mubr.msk.f32.vlgmr.msra.gmra.mrb[228].mxu0 %vm8209_vm6, %v29231_v52 }
 0x63f   :  { %18737 = vmatprep.mubr.msk.f32.mxu0 %vm8209_vm6, %v29232_v35 }
 0x640   :  { %19132 = vmatmul.mubr.msk.f32.gmra.mrb[42].mxu1 %vm8209_vm6, %v27001_v58 }
 0x641   :  { %19154 = vmatprep.mubr.msk.f32.mxu1 %vm8209_vm6, %v29230_v20  ;;  %v14495_v20 = vld [vmem:[%s28324_s5 + $0x38] sm:$0xff] }
 0x642   :  { %18738 = vmatmul.mubr.msk.f32.gmra.mrb[230].mxu0 %vm8209_vm6, %v29233_v45 }
 0x643   :  { %18740 = vmatprep.mubr.msk.f32.mxu0 %vm8209_vm6, %v29234_v62 }
 0x644   :  { %19155 = vmatmul.mubr.msk.f32.vlgmr.msra.gmra.mrb[252].mxu1 %vm8209_vm6, %v29231_v52  ;;  %v14496_v52 = vld [vmem:[%s28324_s5 + $0x40] sm:$0xff] }
 0x645   :  { %19157 = vmatprep.mubr.msk.f32.mxu1 %vm8209_vm6, %v29232_v35  ;;  %v19666_v35 = vpack.c.bf16 %v14496_v52, %v14495_v20 }
 0x646   :  { %18741 = vmatmul.mubr.msk.f32.gmra.mrb[232].mxu0 %vm8209_vm6, %v29235_v42 }
 0x647   :  { %18743 = vmatprep.mubr.msk.f32.mxu0 %vm8209_vm6, %v29236_v22  ;;  %19667 = vmatprep.subr.bf16.mxu0 %v19666_v35 }
 0x648   :  { %19158 = vmatmul.mubr.msk.f32.gmra.mrb[254].mxu1 %vm8209_vm6, %v29233_v45  ;;  %19669 = vmatpush3.bf16.msra.mxu0 %v19666_v35  ;;  %v14497_v45 = vld [vmem:[%s28324_s5 + $0x48] sm:$0xff] }
 0x649   :  { %19160 = vmatprep.mubr.msk.f32.mxu1 %vm8209_vm6, %v29234_v62  ;;  %v14498_v62 = vld [vmem:[%s28324_s5 + $0x50] sm:$0xff] }
 0x64a   :  { %18744 = vmatmul.mubr.msk.f32.gmra.mrb[234].mxu0 %vm8209_vm6, %v29237_v29 }
 0x64b   :  { %18746 = vmatprep.mubr.msk.f32.mxu0 %vm8209_vm6, %v29238_v1 }
 0x64c   :  { %19161 = vmatmul.mubr.msk.f32.gmra.mrb[0].mxu1 %vm8209_vm6, %v29235_v42  ;;  %v19670_v42 = vpack.c.bf16 %v14498_v62, %v14497_v45 }
 0x64d   :  { %19163 = vmatprep.mubr.msk.f32.mxu1 %vm8209_vm6, %v29236_v22 }
 0x64e   :  { %18747 = vmatmul.mubr.msk.f32.gmra.mrb[236].mxu0 %vm8209_vm6, %v29239_v4  ;;  %19671 = vmatprep.subr.bf16.mxu0 %v19670_v42 }
 0x64f   :  { %18749 = vmatprep.mubr.msk.f32.mxu0 %vm8209_vm6, %v29240_v9  ;;  %19673 = vmatpush3.bf16.msra.mxu0 %v19670_v42 }
 0x650   :  { %19164 = vmatmul.mubr.msk.f32.gmra.mrb[2].mxu1 %vm8209_vm6, %v29237_v29 }
 0x651   :  { %19166 = vmatprep.mubr.msk.f32.mxu1 %vm8209_vm6, %v29238_v1 }
 0x652   :  { %18750 = vmatmul.mubr.msk.f32.gmra.mrb[238].mxu0 %vm8209_vm6, %v29241_v50 }
 0x653   :  { %18752 = vmatprep.mubr.msk.f32.mxu0 %vm8209_vm6, %v29242_v14 }
 0x654   :  { %19167 = vmatmul.mubr.msk.f32.gmra.mrb[4].mxu1 %vm8209_vm6, %v29239_v4 }
 0x655   :  { %19169 = vmatprep.mubr.msk.f32.mxu1 %vm8209_vm6, %v29240_v9 }
 0x656   :  { %18753 = vmatmul.mubr.msk.f32.gmra.mrb[240].mxu0 %vm8209_vm6, %v29243_v40 }
 0x657   :  { %18755 = vmatprep.mubr.msk.f32.mxu0 %vm8209_vm6, %v29244_v6 }
 0x658   :  { %19170 = vmatmul.mubr.msk.f32.gmra.mrb[6].mxu1 %vm8209_vm6, %v29241_v50 }
 0x659   :  { %19172 = vmatprep.mubr.msk.f32.mxu1 %vm8209_vm6, %v29242_v14 }
 0x65a   :  { %18756 = vmatmul.mubr.msk.f32.gmra.mrb[242].mxu0 %vm8209_vm6, %v29245_v19 }
 0x65b   :  { %18758 = vmatprep.mubr.msk.f32.mxu0 %vm8209_vm6, %v29246_v15 }
 0x65c   :  { %19173 = vmatmul.mubr.msk.f32.gmra.mrb[8].mxu1 %vm8209_vm6, %v29243_v40 }
 0x65d   :  { %19175 = vmatprep.mubr.msk.f32.mxu1 %vm8209_vm6, %v29244_v6 }
 0x65e   :  { %18759 = vmatmul.mubr.msk.f32.gmra.mrb[244].mxu0 %vm8209_vm6, %v29247_v30 }
 0x65f   :  { %18761 = vmatprep.mubr.msk.f32.mxu0 %vm8209_vm6, %v29248_v61 }
 0x660   :  { %19176 = vmatmul.mubr.msk.f32.gmra.mrb[10].mxu1 %vm8209_vm6, %v29245_v19 }
 0x661   :  { %19178 = vmatprep.mubr.msk.f32.mxu1 %vm8209_vm6, %v29246_v15 }
 0x662   :  { %18762 = vmatmul.mubr.msk.f32.gmra.mrb[246].mxu0 %vm8209_vm6, %v29249_v3 }
 0x663   :  { %18764 = vmatprep.mubr.msk.f32.mxu0 %vm8209_vm6, %v29250_v7 }
 0x664   :  { %19179 = vmatmul.mubr.msk.f32.gmra.mrb[204].mxu1 %vm8209_vm6, %v29247_v30 }
 0x665   :  { %19181 = vmatprep.mubr.msk.f32.mxu1 %vm8209_vm6, %v29248_v61 }
 0x666   :  { %18765 = vmatmul.mubr.msk.f32.gmra.mrb[248].mxu0 %vm8209_vm6, %v29251_v41 }
 0x667   :  { %18767 = vmatprep.mubr.msk.f32.mxu0 %vm8209_vm6, %v29252_v48 }
 0x668   :  { %19182 = vmatmul.mubr.msk.f32.gmra.mrb[206].mxu1 %vm8209_vm6, %v29249_v3 }
 0x669   :  { %19184 = vmatprep.mubr.msk.f32.mxu1 %vm8209_vm6, %v29250_v7 }
 0x66a   :  { %18768 = vmatmul.mubr.msk.f32.gmra.mrb[250].mxu0 %vm8209_vm6, %v29253_v55 }
 0x66b   :  { %18770 = vmatprep.mubr.msk.f32.mxu0 %vm8209_vm6, %v29254_v27 }
 0x66c   :  { %19185 = vmatmul.mubr.msk.f32.gmra.mrb[208].mxu1 %vm8209_vm6, %v29251_v41 }
 0x66d   :  { %19187 = vmatprep.mubr.msk.f32.mxu1 %vm8209_vm6, %v29252_v48 }
 0x66e   :  { %18771 = vmatmul.mubr.msk.f32.gmra.mrb[252].mxu0 %vm8209_vm6, %v29255_v2 }
 0x66f   :  { %18773 = vmatprep.mubr.msk.f32.mxu0 %vm8209_vm6, %v29256_v18 }
 0x670   :  { %19188 = vmatmul.mubr.msk.f32.gmra.mrb[210].mxu1 %vm8209_vm6, %v29253_v55 }
 0x671   :  { %19190 = vmatprep.mubr.msk.f32.mxu1 %vm8209_vm6, %v29254_v27 }
 0x672   :  { %18774 = vmatmul.mubr.msk.f32.gmra.mrb[254].mxu0 %vm8209_vm6, %v26379_v12 }
 0x673   :  { %18776 = vmatprep.mubr.msk.f32.mxu0 %vm8209_vm6, %v26399_v43 }
 0x674   :  { %19191 = vmatmul.mubr.msk.f32.gmra.mrb[212].mxu1 %vm8209_vm6, %v29255_v2 }
 0x675   :  { %19193 = vmatprep.mubr.msk.f32.mxu1 %vm8209_vm6, %v29256_v18 }
 0x676   :  { %18777 = vmatmul.mubr.msk.f32.gmra.mrb[192].mxu0 %vm8209_vm6, %v26397_v56 }
 0x677   :  { %18779 = vmatprep.mubr.msk.f32.mxu0 %vm8209_vm6, %v26417_v21 }
 0x678   :  { %19194 = vmatmul.mubr.msk.f32.gmra.mrb[214].mxu1 %vm8209_vm6, %v26379_v12  ;;  %v14499_v12 = vld [vmem:[%s28324_s5 + $0x58] sm:$0xff] }
 0x679   :  { %19196 = vmatprep.mubr.msk.f32.mxu1 %vm8209_vm6, %v26399_v43 }
 0x67a   :  { %18780 = vmatmul.mubr.msk.f32.gmra.mrb[194].mxu0 %vm8209_vm6, %v26415_v13 }
 0x67b   :  { %18782 = vmatprep.mubr.msk.f32.mxu0 %vm8209_vm6, %v26542_v5 }
 0x67c   :  { %19197 = vmatmul.mubr.msk.f32.gmra.mrb[216].mxu1 %vm8209_vm6, %v26397_v56  ;;  %v14500_v56 = vld [vmem:[%s28324_s5 + $0x60] sm:$0xff] }
 0x67d   :  { %19199 = vmatprep.mubr.msk.f32.mxu1 %vm8209_vm6, %v26417_v21  ;;  %v19674_v43 = vpack.c.bf16 %v14500_v56, %v14499_v12  ;;  %v29274_v21 = vld [vmem:[#allocation110_spill] sm:$0xff] }
 0x67e   :  { %18783 = vmatmul.mubr.msk.f32.gmra.mrb[196].mxu0 %vm8209_vm6, %v26538_v47 }
 0x67f   :  { %18785 = vmatprep.mubr.msk.f32.mxu0 %vm8209_vm6, %v26574_v8  ;;  %19675 = vmatprep.subr.bf16.mxu0 %v19674_v43 }
 0x680   :  { %19200 = vmatmul.mubr.msk.f32.gmra.mrb[218].mxu1 %vm8209_vm6, %v26415_v13  ;;  %19677 = vmatpush3.bf16.msra.mxu0 %v19674_v43  ;;  %v29273_v13 = vld [vmem:[#allocation111_spill] sm:$0xff] }
 0x681   :  { %19202 = vmatprep.mubr.msk.f32.mxu1 %vm8209_vm6, %v26542_v5  ;;  %v29276_v5 = vld [vmem:[#allocation112_spill] sm:$0xff] }
 0x682   :  { %18786 = vmatmul.mubr.msk.f32.gmra.mrb[198].mxu0 %vm8209_vm6, %v29257_v36 }
 0x683   :  { %18788 = vmatprep.mubr.msk.f32.mxu0 %vm8209_vm6, %v29258_v46 }
 0x684   :  { %19203 = vmatmul.mubr.msk.f32.gmra.mrb[220].mxu1 %vm8209_vm6, %v26538_v47  ;;  %v29275_v47 = vld [vmem:[#allocation113_spill] sm:$0xff] }
 0x685   :  { %19205 = vmatprep.mubr.msk.f32.mxu1 %vm8209_vm6, %v26574_v8  ;;  %v29277_v8 = vld [vmem:[#allocation115_spill] sm:$0xff] }
 0x686   :  { %18789 = vmatmul.mubr.msk.f32.gmra.mrb[200].mxu0 %vm8209_vm6, %v29259_v51 }
 0x687   :  { %18791 = vmatprep.mubr.msk.f32.mxu0 %vm8209_vm6, %v29260_v57 }
 0x688   :  { %19206 = vmatmul.mubr.msk.f32.gmra.mrb[222].mxu1 %vm8209_vm6, %v29257_v36 }
 0x689   :  { %19208 = vmatprep.mubr.msk.f32.mxu1 %vm8209_vm6, %v29258_v46 }
 0x68a   :  { %18792 = vmatmul.mubr.msk.f32.gmra.mrb[202].mxu0 %vm8209_vm6, %v29261_v28 }
 0x68b   :  { %18794 = vmatprep.mubr.msk.f32.mxu0 %vm8209_vm6, %v29262_v24 }
 0x68c   :  { %19209 = vmatmul.mubr.msk.f32.gmra.mrb[224].mxu1 %vm8209_vm6, %v29259_v51 }
 0x68d   :  { %19211 = vmatprep.mubr.msk.f32.mxu1 %vm8209_vm6, %v29260_v57 }
 0x68e   :  { %18795 = vmatmul.mubr.msk.f32.gmra.mrb[204].mxu0 %vm8209_vm6, %v29263_v44 }
 0x68f   :  { %18797 = vmatprep.mubr.msk.f32.mxu0 %vm8209_vm6, %v29264_v38 }
 0x690   :  { %19212 = vmatmul.mubr.msk.f32.gmra.mrb[226].mxu1 %vm8209_vm6, %v29261_v28 }
 0x691   :  { %19214 = vmatprep.mubr.msk.f32.mxu1 %vm8209_vm6, %v29262_v24 }
 0x692   :  { %18798 = vmatmul.mubr.msk.f32.gmra.mrb[206].mxu0 %vm8209_vm6, %v26737_v59 }
 0x693   :  { %18800 = vmatprep.mubr.msk.f32.mxu0 %vm8209_vm6, %v26757_v10 }
 0x694   :  { %19215 = vmatmul.mubr.msk.f32.gmra.mrb[228].mxu1 %vm8209_vm6, %v29263_v44 }
 0x695   :  { %19217 = vmatprep.mubr.msk.f32.mxu1 %vm8209_vm6, %v29264_v38 }
 0x696   :  { %18801 = vmatmul.mubr.msk.f32.gmra.mrb[208].mxu0 %vm8209_vm6, %v26755_v16 }
 0x697   :  { %18803 = vmatprep.mubr.msk.f32.mxu0 %vm8209_vm6, %v26775_v53 }
 0x698   :  { %19218 = vmatmul.mubr.msk.f32.gmra.mrb[230].mxu1 %vm8209_vm6, %v26737_v59  ;;  %v29278_v59 = vld [vmem:[#allocation114_spill] sm:$0xff] }
 0x699   :  { %19220 = vmatprep.mubr.msk.f32.mxu1 %vm8209_vm6, %v26757_v10  ;;  %v29279_v10 = vld [vmem:[#allocation117_spill] sm:$0xff] }
 0x69a   :  { %18804 = vmatmul.mubr.msk.f32.gmra.mrb[210].mxu0 %vm8209_vm6, %v26773_v37 }
 0x69b   :  { %18806 = vmatprep.mubr.msk.f32.mxu0 %vm8209_vm6, %v26839_v39 }
 0x69c   :  { %19221 = vmatmul.mubr.msk.f32.gmra.mrb[232].mxu1 %vm8209_vm6, %v26755_v16  ;;  %v14501_v16 = vld [vmem:[%s28324_s5 + $0x68] sm:$0x3] }
 0x69d   :  { %19223 = vmatprep.mubr.msk.f32.mxu1 %vm8209_vm6, %v26775_v53  ;;  %19286 = vmatprep.subr.msk.mxu0 %vm11646_vm7, %v14501_v16  ;;  %v29281_v53 = vld [vmem:[#allocation119_spill] sm:$0xff] }
 0x69e   :  { %18807 = vmatmul.mubr.msk.f32.gmra.mrb[0].mxu0 %vm8209_vm6, %v26837_v33 }
 0x69f   :  { %18809 = vmatprep.mubr.msk.f32.mxu0 %vm8209_vm6, %v26857_v63  ;;  %19287 = vmatpush3.msk.msra.mxu0 %vm11646_vm7, %v14501_v16 }
 0x6a0   :  { %19224 = vmatmul.mubr.msk.f32.gmra.mrb[234].mxu1 %vm8209_vm6, %v26773_v37  ;;  %v29280_v37 = vld [vmem:[#allocation116_spill] sm:$0xff] }
 0x6a1   :  { %19226 = vmatprep.mubr.msk.f32.mxu1 %vm8209_vm6, %v26839_v39  ;;  %v11599_v39 = vld [vmem:[%s28324_s5 + $0x8] sm:$0xff] }
 0x6a2   :  { %18810 = vmatmul.mubr.msk.f32.gmra.mrb[2].mxu0 %vm8209_vm6, %v29265_v11 }
 0x6a3   :  { %18812 = vmatprep.mubr.msk.f32.mxu0 %vm8209_vm6, %v29266_v26 }
 0x6a4   :  { %19227 = vmatmul.mubr.msk.f32.gmra.mrb[12].mxu1 %vm8209_vm6, %v26837_v33  ;;  %v11598_v33 = vld [vmem:[%s28324_s5] sm:$0xff] }
 0x6a5   :  { %19229 = vmatprep.mubr.msk.f32.mxu1 %vm8209_vm6, %v26857_v63  ;;  %v29282_v63 = vld [vmem:[#allocation118_spill] sm:$0xff] }
 0x6a6   :  { %18813 = vmatmul.mubr.msk.f32.gmra.mrb[4].mxu0 %vm8209_vm6, %v29267_v0 }
 0x6a7   :  { %18815 = vmatprep.mubr.msk.f32.mxu0 %vm8209_vm6, %v29268_v23 }
 0x6a8   :  { %19230 = vmatmul.mubr.msk.f32.gmra.mrb[14].mxu1 %vm8209_vm6, %v29265_v11 }
 0x6a9   :  { %19232 = vmatprep.mubr.msk.f32.mxu1 %vm8209_vm6, %v29266_v26 }
 0x6aa   :  { %18816 = vmatmul.mubr.msk.f32.gmra.mrb[6].mxu0 %vm8209_vm6, %v29269_v25 }
 0x6ab   :  { %18818 = vmatprep.mubr.msk.f32.mxu0 %vm8209_vm6, %v29270_v32 }
 0x6ac   :  { %19233 = vmatmul.mubr.msk.f32.gmra.mrb[16].mxu1 %vm8209_vm6, %v29267_v0 }
 0x6ad   :  { %19235 = vmatprep.mubr.msk.f32.mxu1 %vm8209_vm6, %v29268_v23 }
 0x6ae   :  { %18819 = vmatmul.mubr.msk.f32.gmra.mrb[8].mxu0 %vm8209_vm6, %v29271_v17 }
 0x6af   :  { %18821 = vmatprep.mubr.msk.f32.mxu0 %vm8209_vm6, %v29272_v60 }
 0x6b0   :  { %19236 = vmatmul.mubr.msk.f32.gmra.mrb[18].mxu1 %vm8209_vm6, %v29269_v25 }
 0x6b1   :  { %19238 = vmatprep.mubr.msk.f32.mxu1 %vm8209_vm6, %v29270_v32 }
 0x6b2   :  { %18822 = vmatmul.mubr.msk.f32.gmra.mrb[10].mxu0 %vm8209_vm6, %v26965_v54 }
 0x6b3   :  { %18824 = vmatprep.mubr.msk.f32.mxu0 %vm8209_vm6, %v26987_v34 }
 0x6b4   :  { %19239 = vmatmul.mubr.msk.f32.gmra.mrb[20].mxu1 %vm8209_vm6, %v29271_v17  ;;  %v27894_v17 = vpack.c.bf16 %v11599_v39, %v11598_v33 }
 0x6b5   :  { %19241 = vmatprep.mubr.msk.f32.mxu1 %vm8209_vm6, %v29272_v60  ;;  %v29288_v60 = vld [vmem:[#allocation124_spill] sm:$0xff] }
 0x6b6   :  { %18825 = vmatmul.mubr.msk.f32.gmra.mrb[12].mxu0 %vm8209_vm6, %v26983_v49  ;;  %19679 = vmatprep.subr.bf16.mxu0 %v27894_v17 }
 0x6b7   :  { %18827 = vmatprep.mubr.msk.f32.mxu0 %vm8209_vm6, %v27005_v31 }
 0x6b8   :  { %19242 = vmatmul.mubr.msk.f32.gmra.mrb[22].mxu1 %vm8209_vm6, %v26965_v54  ;;  %v29283_v54 = vld [vmem:[#allocation121_spill] sm:$0xff] }
 0x6b9   :  { %19244 = vmatprep.mubr.msk.f32.mxu1 %vm8209_vm6, %v26987_v34  ;;  %v29285_v34 = vld [vmem:[#allocation123_spill] sm:$0xff] }
 0x6ba   :  { %18828 = vmatmul.mubr.msk.f32.gmra.mrb[14].mxu0 %vm8209_vm6, %v27001_v58 }
 0x6bb   :  { %18830 = vmatprep.mubr.msk.f32.mxu0 %vm8209_vm6, %v29273_v13 }
 0x6bc   :  { %19245 = vmatmul.mubr.msk.f32.gmra.mrb[24].mxu1 %vm8209_vm6, %v26983_v49  ;;  %v29284_v49 = vld [vmem:[#allocation120_spill] sm:$0xff] }
 0x6bd   :  { %19247 = vmatprep.mubr.msk.f32.mxu1 %vm8209_vm6, %v27005_v31  ;;  %v29287_v31 = vld [vmem:[#allocation125_spill] sm:$0xff] }
 0x6be   :  { %18831 = vmatmul.mubr.msk.f32.gmra.mrb[16].mxu0 %vm8209_vm6, %v29274_v21 }
 0x6bf   :  { %18833 = vmatprep.mubr.msk.f32.mxu0 %vm8209_vm6, %v29275_v47 }
 0x6c0   :  { %19248 = vmatmul.mubr.msk.f32.gmra.mrb[26].mxu1 %vm8209_vm6, %v27001_v58  ;;  %v29286_v58 = vld [vmem:[#allocation122_spill] sm:$0xff] }
 0x6c1   :  { %19250 = vmatprep.mubr.msk.f32.mxu1 %vm8209_vm6, %v29273_v13 }
 0x6c2   :  { %18834 = vmatmul.mubr.msk.f32.gmra.mrb[18].mxu0 %vm8209_vm6, %v29276_v5 }
 0x6c3   :  { %18836 = vmatprep.mubr.msk.f32.mxu0 %vm8209_vm6, %v29277_v8 }
 0x6c4   :  { %19251 = vmatmul.mubr.msk.f32.gmra.mrb[28].mxu1 %vm8209_vm6, %v29274_v21 }
 0x6c5   :  { %19253 = vmatprep.mubr.msk.f32.mxu1 %vm8209_vm6, %v29275_v47 }
 0x6c6   :  { %18837 = vmatmul.mubr.msk.f32.gmra.mrb[20].mxu0 %vm8209_vm6, %v29278_v59 }
 0x6c7   :  { %18839 = vmatprep.mubr.msk.f32.mxu0 %vm8209_vm6, %v29279_v10 }
 0x6c8   :  { %19254 = vmatmul.mubr.msk.f32.gmra.mrb[30].mxu1 %vm8209_vm6, %v29276_v5 }
 0x6c9   :  { %19256 = vmatprep.mubr.msk.f32.mxu1 %vm8209_vm6, %v29277_v8 }
 0x6ca   :  { %18840 = vmatmul.mubr.msk.f32.gmra.mrb[22].mxu0 %vm8209_vm6, %v29280_v37 }
 0x6cb   :  { %18842 = vmatprep.mubr.msk.f32.mxu0 %vm8209_vm6, %v29281_v53 }
 0x6cc   :  { %19257 = vmatmul.mubr.msk.f32.gmra.mrb[32].mxu1 %vm8209_vm6, %v29278_v59 }
 0x6cd   :  { %19259 = vmatprep.mubr.msk.f32.mxu1 %vm8209_vm6, %v29279_v10 }
 0x6ce   :  { %18843 = vmatmul.mubr.msk.f32.gmra.mrb[24].mxu0 %vm8209_vm6, %v29282_v63 }
 0x6cf   :  { %18845 = vmatprep.mubr.msk.f32.mxu0 %vm8209_vm6, %v29283_v54 }
 0x6d0   :  { %19260 = vmatmul.mubr.msk.f32.gmra.mrb[34].mxu1 %vm8209_vm6, %v29280_v37 }
 0x6d1   :  { %19262 = vmatprep.mubr.msk.f32.mxu1 %vm8209_vm6, %v29281_v53 }
 0x6d2   :  { %18846 = vmatmul.mubr.msk.f32.gmra.mrb[26].mxu0 %vm8209_vm6, %v29284_v49 }
 0x6d3   :  { %18848 = vmatprep.mubr.msk.f32.mxu0 %vm8209_vm6, %v29285_v34 }
 0x6d4   :  { %19263 = vmatmul.mubr.msk.f32.gmra.mrb[36].mxu1 %vm8209_vm6, %v29282_v63 }
 0x6d5   :  { %19265 = vmatprep.mubr.msk.f32.mxu1 %vm8209_vm6, %v29283_v54 }
 0x6d6   :  { %18849 = vmatmul.mubr.msk.f32.gmra.mrb[28].mxu0 %vm8209_vm6, %v29286_v58 }
 0x6d7   :  { %18851 = vmatprep.mubr.msk.f32.mxu0 %vm8209_vm6, %v29287_v31 }
 0x6d8   :  { %19266 = vmatmul.mubr.msk.f32.gmra.mrb[38].mxu1 %vm8209_vm6, %v29284_v49 }
 0x6d9   :  { %19268 = vmatprep.mubr.msk.f32.mxu1 %vm8209_vm6, %v29285_v34 }
 0x6da   :  { %18852 = vmatmul.mubr.msk.f32.gmra.mrb[30].mxu0 %vm8209_vm6, %v29288_v60 }
 0x6dc   :  { %19269 = vmatmul.mubr.msk.f32.gmra.mrb[40].mxu1 %vm8209_vm6, %v29286_v58 }
 0x6dd   :  { %19271 = vmatprep.mubr.msk.f32.mxu1 %vm8209_vm6, %v29287_v31 }
 0x6e0   :  { %19272 = vmatmul.mubr.msk.f32.gmra.mrb[42].mxu1 %vm8209_vm6, %v29288_v60 }
 0x711   :  { %v18736_v25 = vpop.f32.mrb[228].mxu0 }
 0x712   :  { %v9515_v32 = vpop.f32.mrb[229].mxu0 }
 0x715   :  { %v18739_v0 = vpop.f32.mrb[230].mxu0 }
 0x716   :  { %v9525_v23 = vpop.f32.mrb[231].mxu0 }
 0x717   :  { %v19156_v11 = vpop.f32.mrb[252].mxu1 }
 0x718   :  { %v11511_v26 = vmax.f32 %v18736_v25, %v19156_v11  ;;  %v11031_v22 = vpop.f32.mrb[253].mxu1  ;;  %v12378_v11 = vld [vmem:[%s28325_s7] sm:$0xff] }
 0x719   :  { %v11510_v29 = vmax.f32 %v9515_v32, %v11031_v22  ;;  %v18742_v1 = vpop.f32.mrb[232].mxu0  ;;  %v12380_v22 = vld [vmem:[%s28325_s7 + $0x10] sm:$0xff] }
 0x71a   :  { %v9535_v4 = vpop.f32.mrb[233].mxu0 }
 0x71b   :  { %v19159_v9 = vpop.f32.mrb[254].mxu1 }
 0x71c   :  { %v11513_v50 = vmax.f32 %v18739_v0, %v19159_v9  ;;  %v11041_v14 = vpop.f32.mrb[255].mxu1  ;;  %v12381_v9 = vld [vmem:[%s28325_s7 + $0x18] sm:$0xff] }
 0x71d   :  { %v11512_v40 = vmax.f32 %v9525_v23, %v11041_v14  ;;  %v18745_v6 = vpop.f32.mrb[234].mxu0 }
 0x71e   :  { %v9545_v19 = vpop.f32.mrb[235].mxu0 }
 0x71f   :  { %v19162_v15 = vpop.f32.mrb[0].mxu1 }
 0x720   :  { %v11515_v30 = vmax.f32 %v18742_v1, %v19162_v15  ;;  %v11051_v61 = vpop.f32.mrb[1].mxu1 }
 0x721   :  { %v11514_v3 = vmax.f32 %v9535_v4, %v11051_v61  ;;  %v18748_v7 = vpop.f32.mrb[236].mxu0 }
 0x722   :  { %v9555_v41 = vpop.f32.mrb[237].mxu0 }
 0x723   :  { %v19165_v48 = vpop.f32.mrb[2].mxu1 }
 0x724   :  { %v11517_v55 = vmax.f32 %v18745_v6, %v19165_v48  ;;  %v11061_v27 = vpop.f32.mrb[3].mxu1  ;;  %v12382_v6 = vld [vmem:[%s28325_s7 + $0x20] sm:$0xff] }
 0x725   :  { %v11516_v2 = vmax.f32 %v9545_v19, %v11061_v27  ;;  %v18751_v18 = vpop.f32.mrb[238].mxu0  ;;  %v12383_v19 = vld [vmem:[%s28325_s7 + $0x28] sm:$0xff]  ;;  %v12385_v27 = vld [vmem:[%s28325_s7 + $0x38] sm:$0xff] }
 0x726   :  { %v9565_v36 = vpop.f32.mrb[239].mxu0 }
 0x727   :  { %v19168_v46 = vpop.f32.mrb[4].mxu1 }
 0x728   :  { %v11519_v51 = vmax.f32 %v18748_v7, %v19168_v46  ;;  %v11071_v57 = vpop.f32.mrb[5].mxu1  ;;  %v19734_v7 = vpack.c.bf16 %v12383_v19, %v12382_v6 }
 0x729   :  { %v11518_v28 = vmax.f32 %v9555_v41, %v11071_v57  ;;  %v18754_v24 = vpop.f32.mrb[240].mxu0 }
 0x72a   :  { %v27927_v44 = vmax.f32 %v11511_v26, %v11519_v51  ;;  %v9575_v38 = vpop.f32.mrb[241].mxu0  ;;  %v12379_v26 = vld [vmem:[%s28325_s7 + $0x8] sm:$0xff] }
 0x72b   :  { %v27929_v20 = vmax.f32 %v11510_v29, %v11518_v28  ;;  %v19171_v52 = vpop.f32.mrb[6].mxu1  ;;  %v19726_v4 = vpack.c.bf16 %v12379_v26, %v12378_v11 }
 0x72c   :  { %v11521_v35 = vmax.f32 %v18751_v18, %v19171_v52  ;;  %v11081_v45 = vpop.f32.mrb[7].mxu1 }
 0x72d   :  { %v11520_v62 = vmax.f32 %v9565_v36, %v11081_v45  ;;  %v18757_v42 = vpop.f32.mrb[242].mxu0  ;;  %19727 = vmatprep.subr.bf16.mxu1 %v19726_v4 }
 0x72e   :  { %v27931_v12 = vmax.f32 %v11513_v50, %v11521_v35  ;;  %v9585_v56 = vpop.f32.mrb[243].mxu0  ;;  %19729 = vmatpush3.bf16.msra.mxu1 %v19726_v4 }
 0x72f   :  { %v27933_v43 = vmax.f32 %v11512_v40, %v11520_v62  ;;  %v19174_v13 = vpop.f32.mrb[8].mxu1  ;;  %v19730_v40 = vpack.c.bf16 %v12381_v9, %v12380_v22 }
 0x730   :  { %v11523_v21 = vmax.f32 %v18754_v24, %v19174_v13  ;;  %v11091_v47 = vpop.f32.mrb[9].mxu1  ;;  %v12386_v24 = vld [vmem:[%s28325_s7 + $0x40] sm:$0xff] }
 0x731   :  { %v11522_v5 = vmax.f32 %v9575_v38, %v11091_v47  ;;  %v27935_v8 = vpop.f32.mrb[244].mxu0  ;;  %19731 = vmatprep.subr.bf16.mxu1 %v19730_v40  ;;  %v12387_v38 = vld [vmem:[%s28325_s7 + $0x48] sm:$0xff]  ;;  %v11601_v47 = vld [vmem:[%s28324_s5 + $0x18] sm:$0xff] }
 0x732   :  { %v27937_v59 = vmax.f32 %v11515_v30, %v11523_v21  ;;  %v27939_v16 = vpop.f32.mrb[245].mxu0  ;;  %19733 = vmatpush3.bf16.msra.mxu1 %v19730_v40 }
 0x733   :  { %v27941_v10 = vmax.f32 %v11514_v3, %v11522_v5  ;;  %v19177_v37 = vpop.f32.mrb[10].mxu1  ;;  %19735 = vmatprep.subr.bf16.mxu1 %v19734_v7  ;;  %v12388_v5 = vld [vmem:[%s28325_s7 + $0x50] sm:$0xff] }
 0x734   :  { %v11525_v53 = vmax.f32 %v18757_v42, %v19177_v37  ;;  %v11101_v33 = vpop.f32.mrb[11].mxu1  ;;  %v11600_v42 = vld [vmem:[%s28324_s5 + $0x10] sm:$0xff] }
 0x735   :  { %v11524_v39 = vmax.f32 %v9585_v56, %v11101_v33  ;;  %v27943_v63 = vpop.f32.mrb[246].mxu0  ;;  %v19742_v56 = vpack.c.bf16 %v12387_v38, %v12386_v24 }
 0x736   :  { %v27945_v54 = vmax.f32 %v11517_v55, %v11525_v53  ;;  %v27947_v49 = vpop.f32.mrb[247].mxu0  ;;  %v12384_v55 = vld [vmem:[%s28325_s7 + $0x30] sm:$0xff]  ;;  %19737 = vmatpush3.bf16.msra.mxu1 %v19734_v7 }
 0x737   :  { %v27949_v34 = vmax.f32 %v11516_v2, %v11524_v39  ;;  %v19180_v58 = vpop.f32.mrb[204].mxu1  ;;  %v19738_v51 = vpack.c.bf16 %v12385_v27, %v12384_v55 }
 0x738   :  { %v11527_v31 = vmax.f32 %v27935_v8, %v19180_v58  ;;  %v11111_v60 = vpop.f32.mrb[205].mxu1  ;;  %v12389_v8 = vld [vmem:[%s28325_s7 + $0x58] sm:$0xff]  ;;  %v19682_v58 = vpack.c.bf16 %v11601_v47, %v11600_v42 }
 0x739   :  { %v11526_v25 = vmax.f32 %v27939_v16, %v11111_v60  ;;  %v27953_v32 = vpop.f32.mrb[248].mxu0  ;;  %19739 = vmatprep.subr.bf16.mxu1 %v19738_v51  ;;  %v11602_v60 = vld [vmem:[%s28324_s5 + $0x20] sm:$0xff]  ;;  %v19746_v11 = vpack.c.bf16 %v12389_v8, %v12388_v5  ;;  %v14524_v5 = vld [vmem:[%s28324_s5 + $0x90] sm:$0xff] }
 0x73a   :  { %v27955_v0 = vpop.f32.mrb[249].mxu0  ;;  %19741 = vmatpush3.bf16.msra.mxu1 %v19738_v51 }
 0x73b   :  { %v27957_v23 = vpop.f32.mrb[206].mxu1  ;;  %19743 = vmatprep.subr.bf16.mxu1 %v19742_v56 }
 0x73c   :  { %v11529_v29 = vmax.f32 %v27943_v63, %v27957_v23  ;;  %v27970_v1 = vpop.f32.mrb[207].mxu1 }
 0x73d   :  { %v11528_v50 = vmax.f32 %v27947_v49, %v27970_v1  ;;  %v27977_v14 = vpop.f32.mrb[250].mxu0  ;;  %v12391_v1 = vld [vmem:[%s28325_s7 + $0x68] sm:$0xff] }
 0x73e   :  { %v27985_v15 = vpop.f32.mrb[251].mxu0  ;;  %19745 = vmatpush3.bf16.msra.mxu1 %v19742_v56 }
 0x73f   :  { %v27987_v30 = vpop.f32.mrb[208].mxu1  ;;  %19747 = vmatprep.subr.bf16.mxu1 %v19746_v11 }
 0x740   :  { %v11531_v61 = vmax.f32 %v27953_v32, %v27987_v30  ;;  %v27991_v3 = vpop.f32.mrb[209].mxu1 }
 0x741   :  { %v11530_v41 = vmax.f32 %v27955_v0, %v27991_v3  ;;  %v18772_v48 = vpop.f32.mrb[252].mxu0  ;;  %v14520_v0 = vld [vmem:[%s28324_s5 + $0x70] sm:$0xff] }
 0x742   :  { %v9635_v2 = vpop.f32.mrb[253].mxu0  ;;  %19749 = vmatpush3.bf16.msra.mxu1 %v19746_v11  ;;  %v12392_v3 = vld [vmem:[%s28325_s7 + $0x70] sm:$0xff] }
 0x743   :  { %v28001_v18 = vpop.f32.mrb[210].mxu1 }
 0x744   :  { %v11533_v36 = vmax.f32 %v27977_v14, %v28001_v18  ;;  %v28005_v46 = vpop.f32.mrb[211].mxu1 }
 0x745   :  { %v11532_v57 = vmax.f32 %v27985_v15, %v28005_v46  ;;  %v18775_v28 = vpop.f32.mrb[254].mxu0  ;;  %v14522_v15 = vld [vmem:[%s28324_s5 + $0x80] sm:$0xff]  ;;  %v14523_v46 = vld [vmem:[%s28324_s5 + $0x88] sm:$0xff] }
 0x746   :  { %v9645_v52 = vpop.f32.mrb[255].mxu0 }
 0x747   :  { %v19192_v35 = vpop.f32.mrb[212].mxu1 }
 0x748   :  { %v11535_v45 = vmax.f32 %v18772_v48, %v19192_v35  ;;  %v11151_v62 = vpop.f32.mrb[213].mxu1 }
 0x749   :  { %v11534_v13 = vmax.f32 %v9635_v2, %v11151_v62  ;;  %v18778_v21 = vpop.f32.mrb[192].mxu0 }
 0x74a   :  { %v11606_v16 = vmax.f32 %v11527_v31, %v11535_v45  ;;  %v9655_v37 = vpop.f32.mrb[193].mxu0  ;;  %v11603_v31 = vld [vmem:[%s28324_s5 + $0x28] sm:$0xff] }
 0x74b   :  { %v11605_v53 = vmax.f32 %v11526_v25, %v11534_v13  ;;  %v19195_v33 = vpop.f32.mrb[214].mxu1  ;;  %v12390_v25 = vld [vmem:[%s28325_s7 + $0x60] sm:$0xff]  ;;  %v19686_v48 = vpack.c.bf16 %v11603_v31, %v11602_v60  ;;  %v19694_v13 = vpack.c.bf16 %v14523_v46, %v14522_v15  ;;  %v14542_v15 = vld [vmem:[%s28324_s5 + $0xd8] sm:$0x3] }
 0x74c   :  { %v11537_v39 = vmax.f32 %v18775_v28, %v19195_v33  ;;  %v11161_v49 = vpop.f32.mrb[215].mxu1  ;;  %v19750_v55 = vpack.c.bf16 %v12391_v1, %v12390_v25  ;;  %v11604_v28 = vld [vmem:[%s28324_s5 + $0x30] sm:$0x3]  ;;  %v14552_v46 = vld [vmem:[%s28324_s5 + $0xe0] sm:$0xff] }
 0x74d   :  { %v11536_v26 = vmax.f32 %v9645_v52, %v11161_v49  ;;  %v18781_v22 = vpop.f32.mrb[194].mxu0  ;;  %19288 = vmatprep.mubr.msk.f32.mxu0 %vm11621_vm8, %v11605_v53 }
 0x74e   :  { %v11608_v4 = vmax.f32 %v11529_v29, %v11537_v39  ;;  %v9665_v9 = vpop.f32.mrb[195].mxu0  ;;  %19289 = vmatmul.mubr.msk.f32.vlgmr.msra.gmra.mrb[32].mxu0 %vm11621_vm8, %v11606_v16  ;;  %19751 = vmatprep.subr.bf16.mxu1 %v19750_v55 }
 0x74f   :  { %v11607_v40 = vmax.f32 %v11528_v50, %v11536_v26  ;;  %v19198_v6 = vpop.f32.mrb[216].mxu1  ;;  %19681 = vmatpush3.bf16.msra.mxu0 %v27894_v17  ;;  %19753 = vmatpush3.bf16.msra.mxu1 %v19750_v55 }
 0x750   :  { %v11539_v19 = vmax.f32 %v18778_v21, %v19198_v6  ;;  %v11171_v7 = vpop.f32.mrb[217].mxu1  ;;  %19683 = vmatprep.subr.bf16.mxu0 %v19682_v58  ;;  %19432 = vmatprep.subr.mxu1 %v12392_v3 }
 0x751   :  { %v11538_v27 = vmax.f32 %v9655_v37, %v11171_v7  ;;  %v28045_v2 = vpop.f32.mrb[196].mxu0  ;;  %19291 = vmatprep.mubr.msk.f32.mxu0 %vm11621_vm8, %v11607_v40 }
 0x752   :  { %v11610_v63 = vmax.f32 %v11531_v61, %v11539_v19  ;;  %v28051_v23 = vpop.f32.mrb[197].mxu0  ;;  %19292 = vmatmul.mubr.msk.f32.gmra.mrb[34].mxu0 %vm11621_vm8, %v11608_v4  ;;  %v14521_v61 = vld [vmem:[%s28324_s5 + $0x78] sm:$0xff] }
 0x753   :  { %v11609_v17 = vmax.f32 %v11530_v41, %v11538_v27  ;;  %v19201_v29 = vpop.f32.mrb[218].mxu1  ;;  %19685 = vmatpush3.bf16.msra.mxu0 %v19682_v58  ;;  %v19690_v14 = vpack.c.bf16 %v14521_v61, %v14520_v0  ;;  %19433 = vmatpush3.msra.mxu1 %v12392_v3  ;;  %v14538_v19 = vld [vmem:[%s28324_s5 + $0xb8] sm:$0xff] }
 0x754   :  { %v11541_v50 = vmax.f32 %v18781_v22, %v19201_v29  ;;  %v11181_v51 = vpop.f32.mrb[219].mxu1  ;;  %19687 = vmatprep.subr.bf16.mxu0 %v19686_v48  ;;  %v14536_v22 = vld [vmem:[%s28324_s5 + $0xa8] sm:$0xff] }
 0x755   :  { %v11540_v32 = vmax.f32 %v9665_v9, %v11181_v51  ;;  %v28060_v30 = vpop.f32.mrb[198].mxu0  ;;  %19294 = vmatprep.mubr.msk.f32.mxu0 %vm11621_vm8, %v11609_v17  ;;  %v14540_v29 = vld [vmem:[%s28324_s5 + $0xc8] sm:$0xff] }
 0x756   :  { %v11612_v41 = vmax.f32 %v11533_v36, %v11541_v50  ;;  %v28075_v24 = vpop.f32.mrb[199].mxu0  ;;  %19295 = vmatmul.mubr.msk.f32.gmra.mrb[36].mxu0 %vm11621_vm8, %v11610_v63 }
 0x757   :  { %v11611_v38 = vmax.f32 %v11532_v57, %v11540_v32  ;;  %v28081_v52 = vpop.f32.mrb[220].mxu1  ;;  %19689 = vmatpush3.bf16.msra.mxu0 %v19686_v48 }
 0x758   :  { %v11543_v35 = vmax.f32 %v28045_v2, %v28081_v52  ;;  %v28085_v45 = vpop.f32.mrb[221].mxu1  ;;  %19312 = vmatprep.subr.msk.mxu0 %vm11646_vm7, %v11604_v28 }
 0x759   :  { %v11542_v18 = vmax.f32 %v28051_v23, %v28085_v45  ;;  %v28090_v36 = vpop.f32.mrb[200].mxu0  ;;  %19297 = vmatprep.mubr.msk.f32.mxu0 %vm11621_vm8, %v11611_v38 }
 0x75a   :  { %v28099_v57 = vpop.f32.mrb[201].mxu0  ;;  %19298 = vmatmul.mubr.msk.f32.gmra.mrb[38].mxu0 %vm11621_vm8, %v11612_v41 }
 0x75b   :  { %v28102_v62 = vpop.f32.mrb[222].mxu1  ;;  %19314 = vmatprep.mubr.msk.f32.mxu0 %vm11621_vm8, %v27929_v20  ;;  %19313 = vmatpush3.msk.msra.mxu0 %vm11646_vm7, %v11604_v28  ;;  %v14525_v20 = vld [vmem:[%s28324_s5 + $0x98] sm:$0xff] }
 0x75c   :  { %v11545_v42 = vmax.f32 %v28060_v30, %v28102_v62  ;;  %v28109_v56 = vpop.f32.mrb[223].mxu1  ;;  %19691 = vmatprep.subr.bf16.mxu0 %v19690_v14  ;;  %v19698_v33 = vpack.c.bf16 %v14525_v20, %v14524_v5 }
 0x75d   :  { %v11544_v21 = vmax.f32 %v28075_v24, %v28109_v56  ;;  %v28113_v47 = vpop.f32.mrb[202].mxu0 }
 0x75e   :  { %v28121_v8 = vpop.f32.mrb[203].mxu0  ;;  %19315 = vmatmul.mubr.msk.f32.vlgmr.msra.gmra.mrb[32].mxu0 %vm11621_vm8, %v27927_v44 }
 0x75f   :  { %v28125_v16 = vpop.f32.mrb[224].mxu1  ;;  %19317 = vmatprep.mubr.msk.f32.mxu0 %vm11621_vm8, %v27933_v43  ;;  %19693 = vmatpush3.bf16.msra.mxu0 %v19690_v14 }
 0x760   :  { %v11547_v37 = vmax.f32 %v28090_v36, %v28125_v16  ;;  %v28131_v53 = vpop.f32.mrb[225].mxu1  ;;  %19695 = vmatprep.subr.bf16.mxu0 %v19694_v13 }
 0x761   :  { %v11546_v39 = vmax.f32 %v28099_v57, %v28131_v53  ;;  %v18796_v49 = vpop.f32.mrb[204].mxu0  ;;  %v14553_v57 = vld [vmem:[%s28324_s5 + $0xe8] sm:$0xff] }
 0x762   :  { %v9715_v58 = vpop.f32.mrb[205].mxu0  ;;  %19318 = vmatmul.mubr.msk.f32.gmra.mrb[34].mxu0 %vm11621_vm8, %v27931_v12  ;;  %v14526_v12 = vld [vmem:[%s28324_s5 + $0xa0] sm:$0x3]  ;;  %v19714_v20 = vpack.c.bf16 %v14553_v57, %v14552_v46  ;;  %v14558_v57 = vld [vmem:[%s28324_s5 + $0x110] sm:$0x3] }
 0x763   :  { %v28137_v44 = vpop.f32.mrb[226].mxu1  ;;  %19320 = vmatprep.mubr.msk.f32.mxu0 %vm11621_vm8, %v27941_v10  ;;  %19697 = vmatpush3.bf16.msra.mxu0 %v19694_v13  ;;  %v14537_v10 = vld [vmem:[%s28324_s5 + $0xb0] sm:$0xff] }
 0x764   :  { %v11549_v43 = vmax.f32 %v28113_v47, %v28137_v44  ;;  %v28143_v60 = vpop.f32.mrb[227].mxu1  ;;  %19699 = vmatprep.subr.bf16.mxu0 %v19698_v33  ;;  %v19702_v9 = vpack.c.bf16 %v14537_v10, %v14536_v22 }
 0x765   :  { %v11548_v11 = vmax.f32 %v28121_v8, %v28143_v60  ;;  %v18799_v26 = vpop.f32.mrb[206].mxu0 }
 0x766   :  { %v9725_v31 = vpop.f32.mrb[207].mxu0  ;;  %19321 = vmatmul.mubr.msk.f32.gmra.mrb[36].mxu0 %vm11621_vm8, %v27937_v59  ;;  %v14539_v59 = vld [vmem:[%s28324_s5 + $0xc0] sm:$0xff] }
 0x767   :  { %v19216_v25 = vpop.f32.mrb[228].mxu1  ;;  %19323 = vmatprep.mubr.msk.f32.mxu0 %vm11621_vm8, %v27949_v34  ;;  %19701 = vmatpush3.bf16.msra.mxu0 %v19698_v33  ;;  %v19706_v63 = vpack.c.bf16 %v14539_v59, %v14538_v19 }
 0x768   :  { %v11551_v1 = vmax.f32 %v18796_v49, %v19216_v25  ;;  %v11231_v4 = vpop.f32.mrb[229].mxu1  ;;  %19338 = vmatprep.subr.msk.mxu0 %vm11646_vm7, %v14526_v12 }
 0x769   :  { %v11550_v40 = vmax.f32 %v9715_v58, %v11231_v4  ;;  %v18802_v6 = vpop.f32.mrb[208].mxu0 }
 0x76a   :  { %v11888_v7 = vmax.f32 %v11543_v35, %v11551_v1  ;;  %v9735_v48 = vpop.f32.mrb[209].mxu0  ;;  %19324 = vmatmul.mubr.msk.f32.gmra.mrb[38].mxu0 %vm11621_vm8, %v27945_v54  ;;  %v14541_v54 = vld [vmem:[%s28324_s5 + $0xd0] sm:$0xff] }
 0x76b   :  { %v11887_v34 = vmax.f32 %v11542_v18, %v11550_v40  ;;  %v19219_v55 = vpop.f32.mrb[230].mxu1  ;;  %19339 = vmatpush3.msk.msra.mxu0 %vm11646_vm7, %v14526_v12  ;;  %v19710_v61 = vpack.c.bf16 %v14541_v54, %v14540_v29 }
 0x76c   :  { %v11553_v27 = vmax.f32 %v18799_v26, %v19219_v55  ;;  %v11241_v2 = vpop.f32.mrb[231].mxu1  ;;  %19703 = vmatprep.subr.bf16.mxu0 %v19702_v9 }
 0x76d   :  { %v11552_v23 = vmax.f32 %v9725_v31, %v11241_v2  ;;  %v18805_v17 = vpop.f32.mrb[210].mxu0  ;;  %19340 = vmatprep.mubr.msk.f32.mxu0 %vm11621_vm8, %v11887_v34 }
 0x76e   :  { %v11890_v50 = vmax.f32 %v11545_v42, %v11553_v27  ;;  %v9745_v51 = vpop.f32.mrb[211].mxu0  ;;  %19341 = vmatmul.mubr.msk.f32.vlgmr.msra.gmra.mrb[32].mxu0 %vm11621_vm8, %v11888_v7  ;;  %v14554_v7 = vld [vmem:[%s28324_s5 + $0xf0] sm:$0xff] }
 0x76f   :  { %v11889_v28 = vmax.f32 %v11544_v21, %v11552_v23  ;;  %v19222_v32 = vpop.f32.mrb[232].mxu1  ;;  %19705 = vmatpush3.bf16.msra.mxu0 %v19702_v9 }
 0x770   :  { %v11555_v30 = vmax.f32 %v18802_v6, %v19222_v32  ;;  %v11251_v0 = vpop.f32.mrb[233].mxu1  ;;  %19707 = vmatprep.subr.bf16.mxu0 %v19706_v63 }
 0x771   :  { %v11554_v3 = vmax.f32 %v9735_v48, %v11251_v0  ;;  %v18808_v41 = vpop.f32.mrb[0].mxu0  ;;  %19343 = vmatprep.mubr.msk.f32.mxu0 %vm11621_vm8, %v11889_v28  ;;  %v14555_v48 = vld [vmem:[%s28324_s5 + $0xf8] sm:$0xff] }
 0x772   :  { %v11892_v24 = vmax.f32 %v11547_v37, %v11555_v30  ;;  %v9755_v38 = vpop.f32.mrb[1].mxu0  ;;  %19344 = vmatmul.mubr.msk.f32.gmra.mrb[34].mxu0 %vm11621_vm8, %v11890_v50  ;;  %v14556_v50 = vld [vmem:[%s28324_s5 + $0x100] sm:$0xff] }
 0x773   :  { %v11891_v52 = vmax.f32 %v11546_v39, %v11554_v3  ;;  %v19225_v35 = vpop.f32.mrb[234].mxu1  ;;  %19709 = vmatpush3.bf16.msra.mxu0 %v19706_v63 }
 0x774   :  { %v11557_v45 = vmax.f32 %v18805_v17, %v19225_v35  ;;  %v11261_v14 = vpop.f32.mrb[235].mxu1  ;;  %19711 = vmatprep.subr.bf16.mxu0 %v19710_v61  ;;  %v19718_v17 = vpack.c.bf16 %v14555_v48, %v14554_v7 }
 0x775   :  { %v11556_v18 = vmax.f32 %v9745_v51, %v11261_v14  ;;  %v18811_v36 = vpop.f32.mrb[2].mxu0  ;;  %19346 = vmatprep.mubr.msk.f32.mxu0 %vm11621_vm8, %v11891_v52  ;;  %v14557_v51 = vld [vmem:[%s28324_s5 + $0x108] sm:$0xff] }
 0x776   :  { %v11894_v62 = vmax.f32 %v11549_v43, %v11557_v45  ;;  %v9765_v42 = vpop.f32.mrb[3].mxu0  ;;  %19347 = vmatmul.mubr.msk.f32.gmra.mrb[36].mxu0 %vm11621_vm8, %v11892_v24 }
 0x777   :  { %v11893_v56 = vmax.f32 %v11548_v11, %v11556_v18  ;;  %v19228_v13 = vpop.f32.mrb[12].mxu1  ;;  %19713 = vmatpush3.bf16.msra.mxu0 %v19710_v61 }
 0x778   :  { %v11559_v21 = vmax.f32 %v18808_v41, %v19228_v13  ;;  %v11271_v5 = vpop.f32.mrb[13].mxu1  ;;  %19364 = vmatprep.subr.msk.mxu0 %vm11646_vm7, %v14542_v15  ;;  %v19722_v41 = vpack.c.bf16 %v14557_v51, %v14556_v50 }
 0x779   :  { %v11558_v16 = vmax.f32 %v9755_v38, %v11271_v5  ;;  %v18814_v37 = vpop.f32.mrb[4].mxu0  ;;  %19349 = vmatprep.mubr.msk.f32.mxu0 %vm11621_vm8, %v11893_v56 }
 0x77a   :  { %v9775_v47 = vpop.f32.mrb[5].mxu0  ;;  %19350 = vmatmul.mubr.msk.f32.gmra.mrb[38].mxu0 %vm11621_vm8, %v11894_v62 }
 0x77b   :  { %v19231_v53 = vpop.f32.mrb[14].mxu1  ;;  %19365 = vmatpush3.msk.msra.mxu0 %vm11646_vm7, %v14542_v15 }
 0x77c   :  { %v11561_v33 = vmax.f32 %v18811_v36, %v19231_v53  ;;  %v11281_v8 = vpop.f32.mrb[15].mxu1  ;;  %19715 = vmatprep.subr.bf16.mxu0 %v19714_v20 }
 0x77d   :  { %v11560_v39 = vmax.f32 %v9765_v42, %v11281_v8  ;;  %v18817_v49 = vpop.f32.mrb[6].mxu0 }
 0x77e   :  { %v9785_v58 = vpop.f32.mrb[7].mxu0 }
 0x77f   :  { %v19234_v44 = vpop.f32.mrb[16].mxu1 }
 0x780   :  { %v11563_v43 = vmax.f32 %v18814_v37, %v19234_v44  ;;  %v11291_v60 = vpop.f32.mrb[17].mxu1 }
 0x781   :  { %v11562_v11 = vmax.f32 %v9775_v47, %v11291_v60  ;;  %v18820_v26 = vpop.f32.mrb[8].mxu0 }
 0x782   :  { %v9795_v12 = vpop.f32.mrb[9].mxu0 }
 0x783   :  { %v19237_v22 = vpop.f32.mrb[18].mxu1 }
 0x784   :  { %v11565_v10 = vmax.f32 %v18817_v49, %v19237_v22  ;;  %v11301_v31 = vpop.f32.mrb[19].mxu1 }
 0x785   :  { %v11564_v25 = vmax.f32 %v9785_v58, %v11301_v31  ;;  %v18823_v1 = vpop.f32.mrb[10].mxu0 }
 0x786   :  { %v9805_v4 = vpop.f32.mrb[11].mxu0 }
 0x787   :  { %v19240_v9 = vpop.f32.mrb[20].mxu1 }
 0x788   :  { %v11567_v40 = vmax.f32 %v18820_v26, %v19240_v9  ;;  %v11311_v6 = vpop.f32.mrb[21].mxu1 }
 0x789   :  { %v11566_v19 = vmax.f32 %v9795_v12, %v11311_v6  ;;  %v18826_v59 = vpop.f32.mrb[12].mxu0 }
 0x78a   :  { %v12044_v34 = vmax.f32 %v11559_v21, %v11567_v40  ;;  %v9815_v55 = vpop.f32.mrb[13].mxu0 }
 0x78b   :  { %v12043_v27 = vmax.f32 %v11558_v16, %v11566_v19  ;;  %v19243_v2 = vpop.f32.mrb[22].mxu1 }
 0x78c   :  { %v11569_v63 = vmax.f32 %v18823_v1, %v19243_v2  ;;  %v11321_v23 = vpop.f32.mrb[23].mxu1 }
 0x78d   :  { %v11568_v29 = vmax.f32 %v9805_v4, %v11321_v23  ;;  %v18829_v54 = vpop.f32.mrb[14].mxu0  ;;  %19366 = vmatprep.mubr.msk.f32.mxu0 %vm11621_vm8, %v12043_v27 }
 0x78e   :  { %v12046_v28 = vmax.f32 %v11561_v33, %v11569_v63  ;;  %v9825_v32 = vpop.f32.mrb[15].mxu0  ;;  %19367 = vmatmul.mubr.msk.f32.vlgmr.msra.gmra.mrb[32].mxu0 %vm11621_vm8, %v12044_v34 }
 0x78f   :  { %v12045_v30 = vmax.f32 %v11560_v39, %v11568_v29  ;;  %v19246_v0 = vpop.f32.mrb[24].mxu1  ;;  %19717 = vmatpush3.bf16.msra.mxu0 %v19714_v20 }
 0x790   :  { %v11571_v61 = vmax.f32 %v18826_v59, %v19246_v0  ;;  %v11331_v3 = vpop.f32.mrb[25].mxu1  ;;  %19719 = vmatprep.subr.bf16.mxu0 %v19718_v17 }
 0x791   :  { %v11570_v24 = vmax.f32 %v9815_v55, %v11331_v3  ;;  %v18832_v38 = vpop.f32.mrb[16].mxu0  ;;  %19369 = vmatprep.mubr.msk.f32.mxu0 %vm11621_vm8, %v12045_v30 }
 0x792   :  { %v12048_v52 = vmax.f32 %v11563_v43, %v11571_v61  ;;  %v9835_v35 = vpop.f32.mrb[17].mxu0  ;;  %19370 = vmatmul.mubr.msk.f32.gmra.mrb[34].mxu0 %vm11621_vm8, %v12046_v28 }
 0x793   :  { %v12047_v45 = vmax.f32 %v11562_v11, %v11570_v24  ;;  %v19249_v14 = vpop.f32.mrb[26].mxu1  ;;  %19721 = vmatpush3.bf16.msra.mxu0 %v19718_v17 }
 0x794   :  { %v11573_v18 = vmax.f32 %v18829_v54, %v19249_v14  ;;  %v11341_v36 = vpop.f32.mrb[27].mxu1  ;;  %19723 = vmatprep.subr.bf16.mxu0 %v19722_v41  ;;  %v14568_v14 = vld [vmem:[%s28327_s6] ss:$0 sm:$0xff] }
 0x795   :  { %v11572_v15 = vmax.f32 %v9825_v32, %v11341_v36  ;;  %v18835_v46 = vpop.f32.mrb[18].mxu0  ;;  %19372 = vmatprep.mubr.msk.f32.mxu0 %vm11621_vm8, %v12047_v45 }
 0x796   :  { %v12050_v62 = vmax.f32 %v11565_v10, %v11573_v18  ;;  %v9845_v42 = vpop.f32.mrb[19].mxu0  ;;  %19373 = vmatmul.mubr.msk.f32.gmra.mrb[36].mxu0 %vm11621_vm8, %v12048_v52  ;;  %v12538_v52 = vld [vmem:[%s28326_s9] sm:$0xff] }
 0x797   :  { %v12049_v56 = vmax.f32 %v11564_v25, %v11572_v15  ;;  %v19252_v13 = vpop.f32.mrb[28].mxu1  ;;  %19725 = vmatpush3.bf16.msra.mxu0 %v19722_v41 }
 0x798   :  { %v11575_v21 = vmax.f32 %v18832_v38, %v19252_v13  ;;  %v11351_v5 = vpop.f32.mrb[29].mxu1  ;;  %19390 = vmatprep.subr.msk.mxu0 %vm11646_vm7, %v14558_v57 }
 0x799   :  { %v11574_v20 = vmax.f32 %v9835_v35, %v11351_v5  ;;  %v18838_v16 = vpop.f32.mrb[20].mxu0  ;;  %19375 = vmatprep.mubr.msk.f32.mxu0 %vm11621_vm8, %v12049_v56  ;;  %v12539_v35 = vld [vmem:[%s28326_s9 + $0x8] sm:$0xff] }
 0x79a   :  { %v9855_v37 = vpop.f32.mrb[21].mxu0  ;;  %19376 = vmatmul.mubr.msk.f32.gmra.mrb[38].mxu0 %vm11621_vm8, %v12050_v62  ;;  %v19754_v45 = vpack.c.bf16 %v12539_v35, %v12538_v52  ;;  %v12541_v62 = vld [vmem:[%s28326_s9 + $0x18] sm:$0xff] }
 0x79b   :  { %v19255_v47 = vpop.f32.mrb[30].mxu1  ;;  %19391 = vmatpush3.msk.msra.mxu0 %vm11646_vm7, %v14558_v57  ;;  %v12540_v57 = vld [vmem:[%s28326_s9 + $0x10] sm:$0xff] }
 0x79c   :  { %v11577_v53 = vmax.f32 %v18835_v46, %v19255_v47  ;;  %v11361_v33 = vpop.f32.mrb[31].mxu1  ;;  %19755 = vmatprep.subr.bf16.mxu1 %v19754_v45  ;;  %v12543_v47 = vld [vmem:[%s28326_s9 + $0x28] sm:$0xff] }
 0x79d   :  { %v11576_v8 = vmax.f32 %v9845_v42, %v11361_v33  ;;  %v18841_v39 = vpop.f32.mrb[22].mxu0 }
 0x79e   :  { %v9865_v49 = vpop.f32.mrb[23].mxu0 }
 0x79f   :  { %v19258_v58 = vpop.f32.mrb[32].mxu1 }
 0x7a0   :  { %v11579_v44 = vmax.f32 %v18838_v16, %v19258_v58  ;;  %v11371_v43 = vpop.f32.mrb[33].mxu1 }
 0x7a1   :  { %v11578_v60 = vmax.f32 %v9855_v37, %v11371_v43  ;;  %v18844_v11 = vpop.f32.mrb[24].mxu0  ;;  %v12542_v37 = vld [vmem:[%s28326_s9 + $0x20] sm:$0xff] }
 0x7a2   :  { %v9875_v26 = vpop.f32.mrb[25].mxu0  ;;  %v19762_v58 = vpack.c.bf16 %v12543_v47, %v12542_v37 }
 0x7a3   :  { %v19261_v12 = vpop.f32.mrb[34].mxu1 }
 0x7a4   :  { %v11581_v22 = vmax.f32 %v18841_v39, %v19261_v12  ;;  %v11381_v10 = vpop.f32.mrb[35].mxu1 }
 0x7a5   :  { %v11580_v31 = vmax.f32 %v9865_v49, %v11381_v10  ;;  %v18847_v25 = vpop.f32.mrb[26].mxu0 }
 0x7a6   :  { %v9885_v1 = vpop.f32.mrb[27].mxu0 }
 0x7a7   :  { %v19264_v4 = vpop.f32.mrb[36].mxu1 }
 0x7a8   :  { %v11583_v9 = vmax.f32 %v18844_v11, %v19264_v4  ;;  %v11391_v40 = vpop.f32.mrb[37].mxu1 }
 0x7a9   :  { %v11582_v6 = vmax.f32 %v9875_v26, %v11391_v40  ;;  %v18850_v19 = vpop.f32.mrb[28].mxu0  ;;  %v14569_v40 = vld [vmem:[%s28328_s8] ss:$0 sm:$0xff] }
 0x7aa   :  { %v12200_v59 = vmax.f32 %v11575_v21, %v11583_v9  ;;  %v9895_v7 = vpop.f32.mrb[29].mxu0 }
 0x7ab   :  { %v12199_v48 = vmax.f32 %v11574_v20, %v11582_v6  ;;  %v19267_v34 = vpop.f32.mrb[38].mxu1  ;;  %v19758_v20 = vpack.c.bf16 %v12541_v62, %v12540_v57 }
 0x7ac   :  { %v11585_v55 = vmax.f32 %v18847_v25, %v19267_v34  ;;  %v11401_v27 = vpop.f32.mrb[39].mxu1  ;;  %v12544_v25 = vld [vmem:[%s28326_s9 + $0x30] sm:$0xff] }
 0x7ad   :  { %v11584_v2 = vmax.f32 %v9885_v1, %v11401_v27  ;;  %v18853_v63 = vpop.f32.mrb[30].mxu0  ;;  %19392 = vmatprep.mubr.msk.f32.mxu0 %vm11621_vm8, %v12199_v48  ;;  %v12545_v1 = vld [vmem:[%s28326_s9 + $0x38] sm:$0xf] }
 0x7ae   :  { %v12202_v23 = vmax.f32 %v11577_v53, %v11585_v55  ;;  %v9905_v17 = vpop.f32.mrb[31].mxu0  ;;  %19393 = vmatmul.mubr.msk.f32.vlgmr.msra.gmra.mrb[32].mxu0 %vm11621_vm8, %v12200_v59  ;;  %v19766_v4 = vpack.c.bf16 %v12545_v1, %v12544_v25 }
 0x7af   :  { %v12201_v29 = vmax.f32 %v11576_v8, %v11584_v2  ;;  %v19270_v54 = vpop.f32.mrb[40].mxu1 }
 0x7b0   :  { %v11587_v50 = vmax.f32 %v18850_v19, %v19270_v54  ;;  %v11411_v51 = vpop.f32.mrb[41].mxu1 }
 0x7b1   :  { %v11586_v28 = vmax.f32 %v9895_v7, %v11411_v51  ;;  %19395 = vmatprep.mubr.msk.f32.mxu0 %vm11621_vm8, %v12201_v29 }
 0x7b2   :  { %v12204_v32 = vmax.f32 %v11579_v44, %v11587_v50  ;;  %19396 = vmatmul.mubr.msk.f32.gmra.mrb[34].mxu0 %vm11621_vm8, %v12202_v23 }
 0x7b3   :  { %v12203_v30 = vmax.f32 %v11578_v60, %v11586_v28  ;;  %v19273_v0 = vpop.f32.mrb[42].mxu1 }
 0x7b4   :  { %v11589_v61 = vmax.f32 %v18853_v63, %v19273_v0  ;;  %v11421_v3 = vpop.f32.mrb[43].mxu1 }
 0x7b5   :  { %v11588_v41 = vmax.f32 %v9905_v17, %v11421_v3  ;;  %19398 = vmatprep.mubr.msk.f32.mxu0 %vm11621_vm8, %v12203_v30 }
 0x7b6   :  { %v12206_v24 = vmax.f32 %v11581_v22, %v11589_v61  ;;  %19399 = vmatmul.mubr.msk.f32.gmra.mrb[36].mxu0 %vm11621_vm8, %v12204_v32 }
 0x7b7   :  { %v12205_v38 = vmax.f32 %v11580_v31, %v11588_v41 }
 0x7b9   :  { %19401 = vmatprep.mubr.msk.f32.mxu0 %vm11621_vm8, %v12205_v38  ;;  %v14578_v38 = vld [vmem:[%s28329_s10] ss:$0 sm:$0xff] }
 0x7ba   :  { %19402 = vmatmul.mubr.msk.f32.gmra.mrb[38].mxu0 %vm11621_vm8, %v12206_v24 }
 0x881   :  { %v19394_v18 = vpop.f32.mrb[32].mxu0 }
 0x882   :  { %v12363_v36 = vadd.f32 %v19394_v18, %v14568_v14  ;;  %v12308_v15 = vpop.f32.mrb[33].mxu0 }
 0x883   :  { %v12362_v46 = vadd.f32 %v14568_v14, %v12308_v15 }
 0x884   :  { %v12371_v13 = vmax.f32 %v12363_v36, 0.0 }
 0x885   :  { %v12370_v42 = vmax.f32 %v12362_v46, 0.0  ;;  %v19397_v56 = vpop.f32.mrb[34].mxu0 }
 0x886   :  { %v12365_v21 = vadd.f32 %v19397_v56, %v14568_v14  ;;  %v12318_v5 = vpop.f32.mrb[35].mxu0 }
 0x887   :  { %v12364_v16 = vadd.f32 %v14568_v14, %v12318_v5  ;;  %19434 = vmatprep.mubr.msk.f32.mxu1 %vm12400_vm9, %v12370_v42 }
 0x888   :  { %19435 = vmatmul.mubr.msk.f32.vlgmr.msra.gmra.mrb[44].mxu1 %vm12400_vm9, %v12371_v13  ;;  %v12373_v8 = vmax.f32 %v12365_v21, 0.0 }
 0x889   :  { %v12372_v53 = vmax.f32 %v12364_v16, 0.0  ;;  %v19400_v33 = vpop.f32.mrb[36].mxu0  ;;  %19757 = vmatpush3.bf16.msra.mxu1 %v19754_v45 }
 0x88a   :  { %v12367_v39 = vadd.f32 %v19400_v33, %v14568_v14  ;;  %v12328_v49 = vpop.f32.mrb[37].mxu0  ;;  %19759 = vmatprep.subr.bf16.mxu1 %v19758_v20 }
 0x88b   :  { %v12366_v44 = vadd.f32 %v14568_v14, %v12328_v49  ;;  %19437 = vmatprep.mubr.msk.f32.mxu1 %vm12400_vm9, %v12372_v53 }
 0x88c   :  { %19438 = vmatmul.mubr.msk.f32.gmra.mrb[46].mxu1 %vm12400_vm9, %v12373_v8  ;;  %v12375_v11 = vmax.f32 %v12367_v39, 0.0 }
 0x88d   :  { %v12374_v43 = vmax.f32 %v12366_v44, 0.0  ;;  %v19403_v60 = vpop.f32.mrb[38].mxu0  ;;  %19761 = vmatpush3.bf16.msra.mxu1 %v19758_v20 }
 0x88e   :  { %v12369_v26 = vadd.f32 %v19403_v60, %v14568_v14  ;;  %v12338_v12 = vpop.f32.mrb[39].mxu0  ;;  %19763 = vmatprep.subr.bf16.mxu1 %v19762_v58 }
 0x88f   :  { %v12368_v22 = vadd.f32 %v14568_v14, %v12338_v12  ;;  %19440 = vmatprep.mubr.msk.f32.mxu1 %vm12400_vm9, %v12374_v43 }
 0x890   :  { %19441 = vmatmul.mubr.msk.f32.gmra.mrb[48].mxu1 %vm12400_vm9, %v12375_v11  ;;  %v12377_v31 = vmax.f32 %v12369_v26, 0.0 }
 0x891   :  { %v12376_v10 = vmax.f32 %v12368_v22, 0.0  ;;  %19765 = vmatpush3.bf16.msra.mxu1 %v19762_v58 }
 0x892   :  { %19768 = vmatprep.subr.msk.bf16.mxu1 %vm21301_vm3, %v19766_v4 }
 0x893   :  { %19443 = vmatprep.mubr.msk.f32.mxu1 %vm12400_vm9, %v12376_v10 }
 0x894   :  { %19444 = vmatmul.mubr.msk.f32.gmra.mrb[50].mxu1 %vm12400_vm9, %v12377_v31 }
 0x895   :  { %19771 = vmatpush3.bf16.msk.msra.mxu1 %vm21301_vm3, %v19766_v4 }
 0x95b   :  { %v19436_v6 = vpop.f32.mrb[44].mxu1 }
 0x95c   :  { %v12497_v19 = vadd.f32 %v19436_v6, %v14569_v40  ;;  %v12491_v59 = vpop.f32.mrb[45].mxu1 }
 0x95d   :  { %v12492_v7 = vadd.f32 %v14569_v40, %v12491_v59 }
 0x95e   :  { %v12531_v55 = vmax.f32 %v12497_v19, 0.0 }
 0x95f   :  { %v12530_v48 = vmax.f32 %v12492_v7, 0.0  ;;  %v19439_v34 = vpop.f32.mrb[46].mxu1 }
 0x960   :  { %v12507_v27 = vadd.f32 %v19439_v34, %v14569_v40  ;;  %v12501_v2 = vpop.f32.mrb[47].mxu1 }
 0x961   :  { %v12502_v63 = vadd.f32 %v14569_v40, %v12501_v2  ;;  %19462 = vmatprep.mubr.msk.f32.mxu1 %vm12553_vm10, %v12530_v48 }
 0x962   :  { %19463 = vmatmul.mubr.msk.f32.vlgmr.msra.gmra.mrb[52].mxu1 %vm12553_vm10, %v12531_v55  ;;  %v12533_v29 = vmax.f32 %v12507_v27, 0.0 }
 0x963   :  { %v12532_v23 = vmax.f32 %v12502_v63, 0.0  ;;  %v19442_v17 = vpop.f32.mrb[48].mxu1 }
 0x964   :  { %v12517_v54 = vadd.f32 %v19442_v17, %v14569_v40  ;;  %v12511_v50 = vpop.f32.mrb[49].mxu1 }
 0x965   :  { %v12512_v51 = vadd.f32 %v14569_v40, %v12511_v50  ;;  %19465 = vmatprep.mubr.msk.f32.mxu1 %vm12553_vm10, %v12532_v23 }
 0x966   :  { %19466 = vmatmul.mubr.msk.f32.gmra.mrb[54].mxu1 %vm12553_vm10, %v12533_v29  ;;  %v12535_v30 = vmax.f32 %v12517_v54, 0.0 }
 0x967   :  { %v12534_v28 = vmax.f32 %v12512_v51, 0.0  ;;  %v19445_v32 = vpop.f32.mrb[50].mxu1 }
 0x968   :  { %v12527_v0 = vadd.f32 %v19445_v32, %v14569_v40  ;;  %v12521_v61 = vpop.f32.mrb[51].mxu1 }
 0x969   :  { %v12522_v3 = vadd.f32 %v14569_v40, %v12521_v61  ;;  %19468 = vmatprep.mubr.msk.f32.mxu1 %vm12553_vm10, %v12534_v28 }
 0x96a   :  { %19469 = vmatmul.mubr.msk.f32.gmra.mrb[56].mxu1 %vm12553_vm10, %v12535_v30  ;;  %v12537_v24 = vmax.f32 %v12527_v0, 0.0 }
 0x96b   :  { %v12536_v41 = vmax.f32 %v12522_v3, 0.0 }
 0x96d   :  { %19471 = vmatprep.mubr.msk.f32.mxu1 %vm12553_vm10, %v12536_v41 }
 0x96e   :  { %19472 = vmatmul.mubr.msk.f32.gmra.mrb[58].mxu1 %vm12553_vm10, %v12537_v24 }
 0xa35   :  { %v19464_v52 = vpop.f32.mrb[52].mxu1 }
 0xa36   :  { %v12653_v35 = vadd.f32 %v19464_v52, %v14578_v38  ;;  %v12647_v45 = vpop.f32.mrb[53].mxu1 }
 0xa37   :  { %v12648_v14 = vadd.f32 %v14578_v38, %v12647_v45 }
 0xa38   :  { %12688 = vst.msk [vmem:[%s28330_s11 + $0x8] sm:$0xff] %vm12686_vm11, %v12653_v35 }
 0xa39   :  { %12687 = vst.msk [vmem:[%s28330_s11] sm:$0xff] %vm12686_vm11, %v12648_v14  ;;  %v19467_v18 = vpop.f32.mrb[54].mxu1 }
 0xa3a   :  { %v12663_v36 = vadd.f32 %v19467_v18, %v14578_v38  ;;  %v12657_v15 = vpop.f32.mrb[55].mxu1 }
 0xa3b   :  { %v12658_v46 = vadd.f32 %v14578_v38, %v12657_v15 }
 0xa3c   :  { %12690 = vst.msk [vmem:[%s28330_s11 + $0x18] sm:$0xff] %vm12686_vm11, %v12663_v36 }
 0xa3d   :  { %12689 = vst.msk [vmem:[%s28330_s11 + $0x10] sm:$0xff] %vm12686_vm11, %v12658_v46  ;;  %v19470_v57 = vpop.f32.mrb[56].mxu1 }
 0xa3e   :  { %v12673_v62 = vadd.f32 %v19470_v57, %v14578_v38  ;;  %v12667_v42 = vpop.f32.mrb[57].mxu1 }
 0xa3f   :  { %v12668_v56 = vadd.f32 %v14578_v38, %v12667_v42 }
 0xa40   :  { %12692 = vst.msk [vmem:[%s28330_s11 + $0x28] sm:$0xff] %vm12686_vm11, %v12673_v62 }
 0xa41   :  { %12691 = vst.msk [vmem:[%s28330_s11 + $0x20] sm:$0xff] %vm12686_vm11, %v12668_v56  ;;  %v19473_v13 = vpop.f32.mrb[58].mxu1 }
 0xa42   :  { %v12683_v21 = vadd.f32 %v19473_v13, %v14578_v38  ;;  %v12677_v5 = vpop.f32.mrb[59].mxu1 }
 0xa43   :  { %v12678_v20 = vadd.f32 %v14578_v38, %v12677_v5 }
 0xa44   :  { %12694 = vst.msk [vmem:[%s28330_s11 + $0x38] sm:$0xff] %vm12686_vm11, %v12683_v21 }
 0xa45   :  { %12693 = vst.msk [vmem:[%s28330_s11 + $0x30] sm:$0xff] %vm12686_vm11, %v12678_v20 }

</bundles_post_ra>
